<compile_context>
chip_gen: v6e
topology: v6e:2x2x1
jax: 0.10.0
libtpu: 0.0.40
codegen_flags: <defaults>
</compile_context>

<pallas_src>
import functools

import jax
import jax.numpy as jnp
import numpy as np
from jax import lax
from jax.experimental import pallas as pl
from jax.experimental.pallas import tpu as pltpu


# Static architecture constants (84x84 input, per the module's assert).
HIDDEN = 256
ACTION_OUT = 4              # 2 * action_dims
ACTOR_N_PAD = 128           # actor output padded to a full lane width
C1_K, C1_K_PAD = 49, 64     # conv_1 im2col depth (1*7*7), sublane-padded
C1_OC, C1_OC_PAD = 32, 128
C2_K = 7 * 7 * 32           # 1568
C2_OC, C2_OC_PAD = 64, 128
C3_K = 5 * 5 * 64           # 1600
FC1_K = 13 * 13 * HIDDEN    # 43264
FC1_K_PAD = 44032           # 43264 + 768 zero columns -> 8 tiles of 5504
FC1_TK = 5504               # 43 * 128 (lane-aligned K tile)


# ----------------------------------------------------------------------------
# Pallas kernel 1: one-shot  O = act(X @ W + b)  tiled over M  (conv layers)
# ----------------------------------------------------------------------------
def _matmul_bias_act_kernel(x_ref, w_ref, b_ref, o_ref, *, activation):
    y = jnp.dot(x_ref[...], w_ref[...], preferred_element_type=jnp.float32)
    y = y + b_ref[...]
    if activation:  # ELU(alpha=1.0)
        y = jnp.where(y > 0.0, y, jnp.exp(jnp.minimum(y, 0.0)) - 1.0)
    o_ref[...] = y.astype(o_ref.dtype)


def pallas_matmul_bias_act(x, w, b, *, activation, tm, out_dtype=jnp.bfloat16):
    """x: (M, K) bf16, w: (K, N) bf16, b: (1, N) f32 -> (M, N) out_dtype."""
    M, K = x.shape
    Kw, N = w.shape
    assert Kw == K and b.shape == (1, N)
    tm = min(tm, M)
    kernel = functools.partial(_matmul_bias_act_kernel, activation=activation)
    return pl.pallas_call(
        kernel,
        out_shape=jax.ShapeDtypeStruct((M, N), out_dtype),
        grid_spec=pltpu.PrefetchScalarGridSpec(
            num_scalar_prefetch=0,
            grid=(pl.cdiv(M, tm),),
            in_specs=[
                pl.BlockSpec((tm, K), lambda i: (i, 0)),   # X: M tile, full K
                pl.BlockSpec((K, N), lambda i: (0, 0)),    # W: VMEM resident
                pl.BlockSpec((1, N), lambda i: (0, 0)),    # bias
            ],
            out_specs=pl.BlockSpec((tm, N), lambda i: (i, 0)),
        ),
        compiler_params=pltpu.CompilerParams(
            dimension_semantics=("parallel",),   # megacore-shardable on v7x
        ),
    )(x, w, b)


# ----------------------------------------------------------------------------
# Pallas kernel 2: fused MLP
#   fc_1 -> Dropout(1.0) -> fc_2 -> Dropout(1.0) -> ELU_4 -> actor_linear
#   Grid streams the fc_1 weight over K; epilogue is tiny and recomputed each
#   step (keeps all matmuls out of conditional regions; last step persists).
# ----------------------------------------------------------------------------
def _mlp_kernel(x_ref, w1_ref, b1_ref, w2_ref, b2_ref, wa_ref, ba_ref,
                out_ref, fc1_ref, acc_ref):
    k = pl.program_id(0)

    @pl.when(k == 0)
    def _():
        acc_ref[...] = jnp.zeros_like(acc_ref)

    # fc_1 partial product for this K tile (bf16 MXU, f32 accumulate).
    acc_ref[...] += jnp.dot(x_ref[...], w1_ref[...],
                            preferred_element_type=jnp.float32)

    h1 = acc_ref[...] + b1_ref[...]                       # fc_1 output (f32)
    fc1_ref[...] = h1                                     # pre-dropout, exported
    h = h1 * 0.0                                          # Dropout(p=1.0), train
    h = jnp.dot(h.astype(w2_ref.dtype), w2_ref[...],      # fc_2
                preferred_element_type=jnp.float32) + b2_ref[...]
    h = h * 0.0                                           # Dropout(p=1.0), train
    h = jnp.where(h > 0.0, h,                             # ELU_4
                  jnp.exp(jnp.minimum(h, 0.0)) - 1.0)
    y = jnp.dot(h.astype(wa_ref.dtype), wa_ref[...],      # actor_linear (padded)
                preferred_element_type=jnp.float32) + ba_ref[...]
    out_ref[...] = y.astype(out_ref.dtype)


def fused_mlp(h, params):
    """h: (B, FC1_K_PAD) bf16 -> (actor padded (B,128) f32, fc_1 (B,256) f32)."""
    B, K1p = h.shape
    assert K1p == FC1_K_PAD
    nk = FC1_K_PAD // FC1_TK
    return pl.pallas_call(
        _mlp_kernel,
        out_shape=(jax.ShapeDtypeStruct((B, ACTOR_N_PAD), jnp.float32),
                   jax.ShapeDtypeStruct((B, HIDDEN), jnp.float32)),
        grid_spec=pltpu.PrefetchScalarGridSpec(
            num_scalar_prefetch=0,
            grid=(nk,),
            in_specs=[
                pl.BlockSpec((B, FC1_TK), lambda k: (0, k)),          # activations
                pl.BlockSpec((FC1_TK, HIDDEN), lambda k: (k, 0)),     # fc_1 W tile
                pl.BlockSpec((1, HIDDEN), lambda k: (0, 0)),          # fc_1 b
                pl.BlockSpec((HIDDEN, HIDDEN), lambda k: (0, 0)),     # fc_2 W
                pl.BlockSpec((1, HIDDEN), lambda k: (0, 0)),          # fc_2 b
                pl.BlockSpec((HIDDEN, ACTOR_N_PAD), lambda k: (0, 0)),  # actor W
                pl.BlockSpec((1, ACTOR_N_PAD), lambda k: (0, 0)),       # actor b
            ],
            out_specs=(
                pl.BlockSpec((B, ACTOR_N_PAD), lambda k: (0, 0)),
                pl.BlockSpec((B, HIDDEN), lambda k: (0, 0)),
            ),
            scratch_shapes=[pltpu.VMEM((B, HIDDEN), jnp.float32)],
        ),
        compiler_params=pltpu.CompilerParams(
            dimension_semantics=("arbitrary",),
        ),
    )(h, params["fc1_w"], params["fc1_b"], params["fc2_w"], params["fc2_b"],
      params["actor_w"], params["actor_b"])


# ----------------------------------------------------------------------------
# Glue: im2col patch extraction (pure slicing, stays in plain JAX).
# ----------------------------------------------------------------------------
def im2col(x, kh, kw, stride):
    """x: (B, H, W, C) -> (B, OH, OW, kh*kw*C), feature order (i, j, c)."""
    B, H, W, C = x.shape
    OH = (H - kh) // stride + 1
    OW = (W - kw) // stride + 1
    cols = []
    for i in range(kh):
        for j in range(kw):
            cols.append(
                x[:, i:i + stride * (OH - 1) + 1:stride,
                     j:j + stride * (OW - 1) + 1:stride, :])
    return jnp.concatenate(cols, axis=-1), OH, OW


# ----------------------------------------------------------------------------
# SACActor forward
# ----------------------------------------------------------------------------
def sac_actor_forward(state, params, *, return_fc1=False):
    assert state.shape[2] == 84 and state.shape[3] == 84, \
        "Currently only supports 84x84 images"
    B = state.shape[0]
    x = jnp.transpose(state, (0, 2, 3, 1)).astype(jnp.bfloat16)  # NCHW -> NHWC

    # conv_1 + ELU_1: (B,84,84,1) -> (B,39,39,32)   [run with 128 padded lanes]
    patches, oh, ow = im2col(x, 7, 7, 2)
    xm = patches.reshape(B * oh * ow, C1_K)
    xm = jnp.pad(xm, ((0, 0), (0, C1_K_PAD - C1_K)))             # K 49 -> 64
    h = pallas_matmul_bias_act(xm, params["conv1_w"], params["conv1_b"],
                               activation=True, tm=512)
    h = h.reshape(B, oh, ow, C1_OC_PAD)[..., :C1_OC]

    # conv_2 + ELU_2: -> (B,17,17,64)
    patches, oh, ow = im2col(h, 7, 7, 2)
    xm = patches.reshape(B * oh * ow, C2_K)
    h = pallas_matmul_bias_act(xm, params["conv2_w"], params["conv2_b"],
                               activation=True, tm=256)
    h = h.reshape(B, oh, ow, C2_OC_PAD)[..., :C2_OC]

    # conv_3 (+ ELU_3: elementwise, so it commutes with Flatten) -> (B,13,13,256)
    patches, oh, ow = im2col(h, 5, 5, 1)
    xm = patches.reshape(B * oh * ow, C3_K)
    h = pallas_matmul_bias_act(xm, params["conv3_w"], params["conv3_b"],
                               activation=True, tm=256)

    # NHWC flatten -- fc1_w columns were permuted at pack time to match
    # torch.nn.Flatten on the NCHW tensor, so no transpose is needed here.
    h = h.reshape(B, FC1_K)
    h = jnp.pad(h, ((0, 0), (0, FC1_K_PAD - FC1_K)))             # K -> 44032

    actor_padded, fc1_out = fused_mlp(h, params)
    out = actor_padded[:, :ACTION_OUT]
    if return_fc1:
        return out, fc1_out
    return out


# ----------------------------------------------------------------------------
# Parameters: PyTorch-layout init + one-time kernel-layout packing.
# ----------------------------------------------------------------------------
def init_torch_params(key):
    ks = jax.random.split(key, 12)

    def u(k, shape, fan_in):
        bound = 1.0 / np.sqrt(fan_in)
        return jax.random.uniform(k, shape, jnp.float32, -bound, bound)

    return {
        "conv1_w": u(ks[0], (32, 1, 7, 7), 1 * 7 * 7),
        "conv1_b": u(ks[1], (32,), 1 * 7 * 7),
        "conv2_w": u(ks[2], (64, 32, 7, 7), 32 * 7 * 7),
        "conv2_b": u(ks[3], (64,), 32 * 7 * 7),
        "conv3_w": u(ks[4], (HIDDEN, 64, 5, 5), 64 * 5 * 5),
        "conv3_b": u(ks[5], (HIDDEN,), 64 * 5 * 5),
        "fc1_w": u(ks[6], (HIDDEN, FC1_K), FC1_K),
        "fc1_b": u(ks[7], (HIDDEN,), FC1_K),
        "fc2_w": u(ks[8], (HIDDEN, HIDDEN), HIDDEN),
        "fc2_b": u(ks[9], (HIDDEN,), HIDDEN),
        "actor_w": u(ks[10], (ACTION_OUT, HIDDEN), HIDDEN),
        "actor_b": u(ks[11], (ACTION_OUT,), HIDDEN),
    }


def pack_params(p):
    """One-time packing of PyTorch-layout weights into the kernel layout."""

    def pack_conv(w_pt, b, k_pad, n_pad):
        oc, ic, kh, kw = w_pt.shape
        w = jnp.transpose(w_pt, (2, 3, 1, 0)).reshape(kh * kw * ic, oc)
        w = jnp.pad(w, ((0, k_pad - w.shape[0]), (0, n_pad - oc)))
        b = jnp.pad(b, (0, n_pad - oc))
        return w.astype(jnp.bfloat16), b.astype(jnp.float32).reshape(1, -1)

    c1w, c1b = pack_conv(p["conv1_w"], p["conv1_b"], C1_K_PAD, C1_OC_PAD)
    c2w, c2b = pack_conv(p["conv2_w"], p["conv2_b"], C2_K, C2_OC_PAD)
    c3w, c3b = pack_conv(p["conv3_w"], p["conv3_b"], C3_K, HIDDEN)

    # fc_1: permute input columns from torch NCHW-flatten order (c, h, w) to
    # the NHWC-flatten order (h, w, c) produced by the conv stack; pad K.
    w1 = p["fc1_w"].reshape(HIDDEN, HIDDEN, 13, 13)           # (out, c, h, w)
    w1 = jnp.transpose(w1, (2, 3, 1, 0)).reshape(FC1_K, HIDDEN)
    w1 = jnp.pad(w1, ((0, FC1_K_PAD - FC1_K), (0, 0)))

    w2 = jnp.transpose(p["fc2_w"], (1, 0))                    # (K, N)
    wa = jnp.transpose(p["actor_w"], (1, 0))                  # (256, 4)
    wa = jnp.pad(wa, ((0, 0), (0, ACTOR_N_PAD - ACTION_OUT)))
    ba = jnp.pad(p["actor_b"], (0, ACTOR_N_PAD - ACTION_OUT))

    return {
        "conv1_w": c1w, "conv1_b": c1b,
        "conv2_w": c2w, "conv2_b": c2b,
        "conv3_w": c3w, "conv3_b": c3b,
        "fc1_w": w1.astype(jnp.bfloat16),
        "fc1_b": p["fc1_b"].astype(jnp.float32).reshape(1, -1),
        "fc2_w": w2.astype(jnp.bfloat16),
        "fc2_b": p["fc2_b"].astype(jnp.float32).reshape(1, -1),
        "actor_w": wa.astype(jnp.bfloat16),
        "actor_b": ba.astype(jnp.float32).reshape(1, -1),
    }


# ----------------------------------------------------------------------------
# Plain-JAX reference for the conv stack + ELU_3 + fc_1 (same bf16-matmul /
# f32-accumulate discipline as the Pallas path) -- used to verify numerics.
# ----------------------------------------------------------------------------
def _elu(x):
    return jnp.where(x > 0.0, x, jnp.exp(jnp.minimum(x, 0.0)) - 1.0)


def reference_fc1(state, p):
    def conv(x, w, b, stride):
        y = lax.conv_general_dilated(
            x.astype(jnp.bfloat16), w.astype(jnp.bfloat16),
            window_strides=(stride, stride), padding="VALID",
            dimension_numbers=("NCHW", "OIHW", "NCHW"),
            preferred_element_type=jnp.float32)
        return y + b.reshape(1, -1, 1, 1)

    h = _elu(conv(state, p["conv1_w"], p["conv1_b"], 2)).astype(jnp.bfloat16)
    h = _elu(conv(h, p["conv2_w"], p["conv2_b"], 2)).astype(jnp.bfloat16)
    h = conv(h, p["conv3_w"], p["conv3_b"], 1)
    h = h.reshape(h.shape[0], -1)                 # torch.nn.Flatten (NCHW order)
    h = _elu(h).astype(jnp.bfloat16)              # ELU_3, then bf16 like kernels
    return jnp.dot(h, p["fc1_w"].T.astype(jnp.bfloat16),
                   preferred_element_type=jnp.float32) + p["fc1_b"]


if __name__ == "__main__":
    torch_params = init_torch_params(jax.random.PRNGKey(42))
    params = pack_params(torch_params)

    # The module asserts 84x84 spatial input; keep the batch small.
    state = jax.random.normal(jax.random.PRNGKey(0), (2, 1, 84, 84), jnp.float32)

    fwd = jax.jit(functools.partial(sac_actor_forward, return_fc1=True))
    out, fc1 = jax.block_until_ready(fwd(state, params))

    assert out.shape == (2, ACTION_OUT), out.shape
    assert bool(jnp.all(jnp.isfinite(out)))

    # 1) Verify the conv / im2col / weight-permutation / fc_1 path against a
    #    plain-JAX lax.conv reference with the same precision discipline.
    fc1_ref = jax.block_until_ready(jax.jit(reference_fc1)(state, torch_params))
    np.testing.assert_allclose(np.asarray(fc1), np.asarray(fc1_ref),
                               rtol=2e-2, atol=2e-2)

    # 2) Dropout(p=1.0) in train mode zeroes everything downstream of fc_1 and
    #    fc_2, so the exact PyTorch output equals the actor bias broadcast.
    expected = jnp.broadcast_to(torch_params["actor_b"][None, :],
                                (2, ACTION_OUT))
    np.testing.assert_allclose(np.asarray(out), np.asarray(expected),
                               rtol=1e-5, atol=1e-6)
    print("KERNEL_OK")
</pallas_src>

<mosaic_0001>
module attributes {stable_mosaic.version = 11 : i64} {
  func.func @_matmul_bias_act_kernel(%arg0: i32, %arg1: memref<512x64xbf16, #tpu.memory_space<vmem>>, %arg2: memref<64x128xbf16, #tpu.memory_space<vmem>>, %arg3: memref<1x128xf32, #tpu.memory_space<vmem>>, %arg4: memref<512x128xbf16, #tpu.memory_space<vmem>>) attributes {dimension_semantics = [#tpu.dimension_semantics<parallel>], iteration_bounds = array<i64: 6>, scalar_prefetch = 0 : i64, scratch_operands = 0 : i64, tpu.core_type = #tpu.core_type<tc>, window_params = [{transform_indices = @transform_0, window_bounds = array<i64: 512, 64>}, {pipeline_mode = #tpu.pipeline_mode<synchronous>, transform_indices = @transform_1, window_bounds = array<i64: 64, 128>}, {pipeline_mode = #tpu.pipeline_mode<synchronous>, transform_indices = @transform_2, window_bounds = array<i64: 1, 128>}, {transform_indices = @transform_3, window_bounds = array<i64: 512, 128>}]} {
    %c0 = arith.constant 0 : index
    %c0_0 = arith.constant 0 : index
    %0 = vector.load %arg1[%c0, %c0_0] : memref<512x64xbf16, #tpu.memory_space<vmem>>, vector<512x64xbf16>
    %c0_1 = arith.constant 0 : index
    %c0_2 = arith.constant 0 : index
    %1 = vector.load %arg2[%c0_1, %c0_2] : memref<64x128xbf16, #tpu.memory_space<vmem>>, vector<64x128xbf16>
    %cst = arith.constant dense<0.000000e+00> : vector<512x128xf32>
    %2 = tpu.matmul %0, %1, %cst {dimension_numbers = #tpu.dot_dimension_numbers<[1], [0], [0], [1], [0, 0, 1, 1], [], []>} : vector<512x64xbf16>, vector<64x128xbf16>, vector<512x128xf32> -> vector<512x128xf32>
    %c0_3 = arith.constant 0 : index
    %c0_4 = arith.constant 0 : index
    %3 = vector.load %arg3[%c0_3, %c0_4] : memref<1x128xf32, #tpu.memory_space<vmem>>, vector<1x128xf32>
    %4 = vector.broadcast %3 : vector<1x128xf32> to vector<512x128xf32>
    %5 = arith.addf %2, %4 : vector<512x128xf32>
    %cst_5 = arith.constant 0.000000e+00 : f32
    %6 = vector.broadcast %cst_5 : f32 to vector<512x128xf32>
    %7 = arith.cmpf ogt, %5, %6 : vector<512x128xf32>
    %cst_6 = arith.constant 0.000000e+00 : f32
    %8 = vector.broadcast %cst_6 : f32 to vector<512x128xf32>
    %9 = arith.minimumf %5, %8 : vector<512x128xf32>
    %10 = math.exp %9 : vector<512x128xf32>
    %cst_7 = arith.constant 1.000000e+00 : f32
    %11 = vector.broadcast %cst_7 : f32 to vector<512x128xf32>
    %12 = arith.subf %10, %11 : vector<512x128xf32>
    %13 = arith.select %7, %5, %12 : vector<512x128xi1>, vector<512x128xf32>
    %14 = arith.truncf %13 : vector<512x128xf32> to vector<512x128xbf16>
    %c0_8 = arith.constant 0 : index
    %c0_9 = arith.constant 0 : index
    %15 = vector.load %arg4[%c0_8, %c0_9] : memref<512x128xbf16, #tpu.memory_space<vmem>>, vector<512x128xbf16>
    tpu.vector_store %arg4[%c0_8, %c0_9], %14 {strides = array<i32>} : memref<512x128xbf16, #tpu.memory_space<vmem>>, vector<512x128xbf16>,
    return
  }
  func.func @transform_0(%arg0: i32) -> (i32, i32) {
    %c0_i32 = arith.constant 0 : i32
    %c0_i32_0 = arith.constant 0 : i32
    return %arg0, %c0_i32 : i32, i32
  }
  func.func @transform_1(%arg0: i32) -> (i32, i32) {
    %c0_i32 = arith.constant 0 : i32
    %c0_i32_0 = arith.constant 0 : i32
    %c0_i32_1 = arith.constant 0 : i32
    return %c0_i32, %c0_i32_0 : i32, i32
  }
  func.func @transform_2(%arg0: i32) -> (i32, i32) {
    %c0_i32 = arith.constant 0 : i32
    %c0_i32_0 = arith.constant 0 : i32
    %c0_i32_1 = arith.constant 0 : i32
    return %c0_i32, %c0_i32_0 : i32, i32
  }
  func.func @transform_3(%arg0: i32) -> (i32, i32) {
    %c0_i32 = arith.constant 0 : i32
    %c0_i32_0 = arith.constant 0 : i32
    return %arg0, %c0_i32 : i32, i32
  }
}

module attributes {stable_mosaic.version = 11 : i64} {
  func.func @_matmul_bias_act_kernel(%arg0: i32, %arg1: memref<256x1568xbf16, #tpu.memory_space<vmem>>, %arg2: memref<1568x128xbf16, #tpu.memory_space<vmem>>, %arg3: memref<1x128xf32, #tpu.memory_space<vmem>>, %arg4: memref<256x128xbf16, #tpu.memory_space<vmem>>) attributes {dimension_semantics = [#tpu.dimension_semantics<parallel>], iteration_bounds = array<i64: 3>, scalar_prefetch = 0 : i64, scratch_operands = 0 : i64, tpu.core_type = #tpu.core_type<tc>, window_params = [{transform_indices = @transform_0, window_bounds = array<i64: 256, 1568>}, {pipeline_mode = #tpu.pipeline_mode<synchronous>, transform_indices = @transform_1, window_bounds = array<i64: 1568, 128>}, {pipeline_mode = #tpu.pipeline_mode<synchronous>, transform_indices = @transform_2, window_bounds = array<i64: 1, 128>}, {transform_indices = @transform_3, window_bounds = array<i64: 256, 128>}]} {
    %c0 = arith.constant 0 : index
    %c0_0 = arith.constant 0 : index
    %0 = vector.load %arg1[%c0, %c0_0] : memref<256x1568xbf16, #tpu.memory_space<vmem>>, vector<256x1568xbf16>
    %c0_1 = arith.constant 0 : index
    %c0_2 = arith.constant 0 : index
    %1 = vector.load %arg2[%c0_1, %c0_2] : memref<1568x128xbf16, #tpu.memory_space<vmem>>, vector<1568x128xbf16>
    %cst = arith.constant dense<0.000000e+00> : vector<256x128xf32>
    %2 = tpu.matmul %0, %1, %cst {dimension_numbers = #tpu.dot_dimension_numbers<[1], [0], [0], [1], [0, 0, 1, 1], [], []>} : vector<256x1568xbf16>, vector<1568x128xbf16>, vector<256x128xf32> -> vector<256x128xf32>
    %c0_3 = arith.constant 0 : index
    %c0_4 = arith.constant 0 : index
    %3 = vector.load %arg3[%c0_3, %c0_4] : memref<1x128xf32, #tpu.memory_space<vmem>>, vector<1x128xf32>
    %4 = vector.broadcast %3 : vector<1x128xf32> to vector<256x128xf32>
    %5 = arith.addf %2, %4 : vector<256x128xf32>
    %cst_5 = arith.constant 0.000000e+00 : f32
    %6 = vector.broadcast %cst_5 : f32 to vector<256x128xf32>
    %7 = arith.cmpf ogt, %5, %6 : vector<256x128xf32>
    %cst_6 = arith.constant 0.000000e+00 : f32
    %8 = vector.broadcast %cst_6 : f32 to vector<256x128xf32>
    %9 = arith.minimumf %5, %8 : vector<256x128xf32>
    %10 = math.exp %9 : vector<256x128xf32>
    %cst_7 = arith.constant 1.000000e+00 : f32
    %11 = vector.broadcast %cst_7 : f32 to vector<256x128xf32>
    %12 = arith.subf %10, %11 : vector<256x128xf32>
    %13 = arith.select %7, %5, %12 : vector<256x128xi1>, vector<256x128xf32>
    %14 = arith.truncf %13 : vector<256x128xf32> to vector<256x128xbf16>
    %c0_8 = arith.constant 0 : index
    %c0_9 = arith.constant 0 : index
    %15 = vector.load %arg4[%c0_8, %c0_9] : memref<256x128xbf16, #tpu.memory_space<vmem>>, vector<256x128xbf16>
    tpu.vector_store %arg4[%c0_8, %c0_9], %14 {strides = array<i32>} : memref<256x128xbf16, #tpu.memory_space<vmem>>, vector<256x128xbf16>,
    return
  }
  func.func @transform_0(%arg0: i32) -> (i32, i32) {
    %c0_i32 = arith.constant 0 : i32
    %c0_i32_0 = arith.constant 0 : i32
    return %arg0, %c0_i32 : i32, i32
  }
  func.func @transform_1(%arg0: i32) -> (i32, i32) {
    %c0_i32 = arith.constant 0 : i32
    %c0_i32_0 = arith.constant 0 : i32
    %c0_i32_1 = arith.constant 0 : i32
    return %c0_i32, %c0_i32_0 : i32, i32
  }
  func.func @transform_2(%arg0: i32) -> (i32, i32) {
    %c0_i32 = arith.constant 0 : i32
    %c0_i32_0 = arith.constant 0 : i32
    %c0_i32_1 = arith.constant 0 : i32
    return %c0_i32, %c0_i32_0 : i32, i32
  }
  func.func @transform_3(%arg0: i32) -> (i32, i32) {
    %c0_i32 = arith.constant 0 : i32
    %c0_i32_0 = arith.constant 0 : i32
    return %arg0, %c0_i32 : i32, i32
  }
}

module attributes {stable_mosaic.version = 11 : i64} {
  func.func @_matmul_bias_act_kernel(%arg0: i32, %arg1: memref<256x1600xbf16, #tpu.memory_space<vmem>>, %arg2: memref<1600x256xbf16, #tpu.memory_space<vmem>>, %arg3: memref<1x256xf32, #tpu.memory_space<vmem>>, %arg4: memref<256x256xbf16, #tpu.memory_space<vmem>>) attributes {dimension_semantics = [#tpu.dimension_semantics<parallel>], iteration_bounds = array<i64: 2>, scalar_prefetch = 0 : i64, scratch_operands = 0 : i64, tpu.core_type = #tpu.core_type<tc>, window_params = [{transform_indices = @transform_0, window_bounds = array<i64: 256, 1600>}, {pipeline_mode = #tpu.pipeline_mode<synchronous>, transform_indices = @transform_1, window_bounds = array<i64: 1600, 256>}, {pipeline_mode = #tpu.pipeline_mode<synchronous>, transform_indices = @transform_2, window_bounds = array<i64: 1, 256>}, {transform_indices = @transform_3, window_bounds = array<i64: 256, 256>}]} {
    %c0 = arith.constant 0 : index
    %c0_0 = arith.constant 0 : index
    %0 = vector.load %arg1[%c0, %c0_0] : memref<256x1600xbf16, #tpu.memory_space<vmem>>, vector<256x1600xbf16>
    %c0_1 = arith.constant 0 : index
    %c0_2 = arith.constant 0 : index
    %1 = vector.load %arg2[%c0_1, %c0_2] : memref<1600x256xbf16, #tpu.memory_space<vmem>>, vector<1600x256xbf16>
    %cst = arith.constant dense<0.000000e+00> : vector<256x256xf32>
    %2 = tpu.matmul %0, %1, %cst {dimension_numbers = #tpu.dot_dimension_numbers<[1], [0], [0], [1], [0, 0, 1, 1], [], []>} : vector<256x1600xbf16>, vector<1600x256xbf16>, vector<256x256xf32> -> vector<256x256xf32>
    %c0_3 = arith.constant 0 : index
    %c0_4 = arith.constant 0 : index
    %3 = vector.load %arg3[%c0_3, %c0_4] : memref<1x256xf32, #tpu.memory_space<vmem>>, vector<1x256xf32>
    %4 = vector.broadcast %3 : vector<1x256xf32> to vector<256x256xf32>
    %5 = arith.addf %2, %4 : vector<256x256xf32>
    %cst_5 = arith.constant 0.000000e+00 : f32
    %6 = vector.broadcast %cst_5 : f32 to vector<256x256xf32>
    %7 = arith.cmpf ogt, %5, %6 : vector<256x256xf32>
    %cst_6 = arith.constant 0.000000e+00 : f32
    %8 = vector.broadcast %cst_6 : f32 to vector<256x256xf32>
    %9 = arith.minimumf %5, %8 : vector<256x256xf32>
    %10 = math.exp %9 : vector<256x256xf32>
    %cst_7 = arith.constant 1.000000e+00 : f32
    %11 = vector.broadcast %cst_7 : f32 to vector<256x256xf32>
    %12 = arith.subf %10, %11 : vector<256x256xf32>
    %13 = arith.select %7, %5, %12 : vector<256x256xi1>, vector<256x256xf32>
    %14 = arith.truncf %13 : vector<256x256xf32> to vector<256x256xbf16>
    %c0_8 = arith.constant 0 : index
    %c0_9 = arith.constant 0 : index
    %15 = vector.load %arg4[%c0_8, %c0_9] : memref<256x256xbf16, #tpu.memory_space<vmem>>, vector<256x256xbf16>
    tpu.vector_store %arg4[%c0_8, %c0_9], %14 {strides = array<i32>} : memref<256x256xbf16, #tpu.memory_space<vmem>>, vector<256x256xbf16>,
    return
  }
  func.func @transform_0(%arg0: i32) -> (i32, i32) {
    %c0_i32 = arith.constant 0 : i32
    %c0_i32_0 = arith.constant 0 : i32
    return %arg0, %c0_i32 : i32, i32
  }
  func.func @transform_1(%arg0: i32) -> (i32, i32) {
    %c0_i32 = arith.constant 0 : i32
    %c0_i32_0 = arith.constant 0 : i32
    %c0_i32_1 = arith.constant 0 : i32
    return %c0_i32, %c0_i32_0 : i32, i32
  }
  func.func @transform_2(%arg0: i32) -> (i32, i32) {
    %c0_i32 = arith.constant 0 : i32
    %c0_i32_0 = arith.constant 0 : i32
    %c0_i32_1 = arith.constant 0 : i32
    return %c0_i32, %c0_i32_0 : i32, i32
  }
  func.func @transform_3(%arg0: i32) -> (i32, i32) {
    %c0_i32 = arith.constant 0 : i32
    %c0_i32_0 = arith.constant 0 : i32
    return %arg0, %c0_i32 : i32, i32
  }
}

module attributes {stable_mosaic.version = 11 : i64} {
  func.func @_mlp_kernel(%arg0: i32, %arg1: memref<2x5504xbf16, #tpu.memory_space<vmem>>, %arg2: memref<5504x256xbf16, #tpu.memory_space<vmem>>, %arg3: memref<1x256xf32, #tpu.memory_space<vmem>>, %arg4: memref<256x256xbf16, #tpu.memory_space<vmem>>, %arg5: memref<1x256xf32, #tpu.memory_space<vmem>>, %arg6: memref<256x128xbf16, #tpu.memory_space<vmem>>, %arg7: memref<1x128xf32, #tpu.memory_space<vmem>>, %arg8: memref<2x128xf32, #tpu.memory_space<vmem>>, %arg9: memref<2x256xf32, #tpu.memory_space<vmem>>, %arg10: memref<2x256xf32, #tpu.memory_space<vmem>>) attributes {dimension_semantics = [#tpu.dimension_semantics<arbitrary>], iteration_bounds = array<i64: 8>, scalar_prefetch = 0 : i64, scratch_operands = 1 : i64, tpu.core_type = #tpu.core_type<tc>, window_params = [{transform_indices = @transform_0, window_bounds = array<i64: 2, 5504>}, {transform_indices = @transform_1, window_bounds = array<i64: 5504, 256>}, {pipeline_mode = #tpu.pipeline_mode<synchronous>, transform_indices = @transform_2, window_bounds = array<i64: 1, 256>}, {pipeline_mode = #tpu.pipeline_mode<synchronous>, transform_indices = @transform_3, window_bounds = array<i64: 256, 256>}, {pipeline_mode = #tpu.pipeline_mode<synchronous>, transform_indices = @transform_4, window_bounds = array<i64: 1, 256>}, {pipeline_mode = #tpu.pipeline_mode<synchronous>, transform_indices = @transform_5, window_bounds = array<i64: 256, 128>}, {pipeline_mode = #tpu.pipeline_mode<synchronous>, transform_indices = @transform_6, window_bounds = array<i64: 1, 128>}, {pipeline_mode = #tpu.pipeline_mode<synchronous>, transform_indices = @transform_7, window_bounds = array<i64: 2, 128>}, {pipeline_mode = #tpu.pipeline_mode<synchronous>, transform_indices = @transform_8, window_bounds = array<i64: 2, 256>}]} {
    %c0_i32 = arith.constant 0 : i32
    %0 = arith.cmpi eq, %arg0, %c0_i32 : i32
    %1 = arith.extui %0 : i1 to i32
    %c0_i32_0 = arith.constant 0 : i32
    %2 = arith.cmpi ne, %1, %c0_i32_0 : i32
    scf.if %2 {
      %cst_31 = arith.constant 0.000000e+00 : f32
      %39 = vector.broadcast %cst_31 : f32 to vector<2x256xf32>
      %c0_32 = arith.constant 0 : index
      %c0_33 = arith.constant 0 : index
      %40 = vector.load %arg10[%c0_32, %c0_33] : memref<2x256xf32, #tpu.memory_space<vmem>>, vector<2x256xf32>
      tpu.vector_store %arg10[%c0_32, %c0_33], %39 {strides = array<i32>} : memref<2x256xf32, #tpu.memory_space<vmem>>, vector<2x256xf32>,
    } else {
    }
    %c0 = arith.constant 0 : index
    %c0_1 = arith.constant 0 : index
    %3 = vector.load %arg10[%c0, %c0_1] : memref<2x256xf32, #tpu.memory_space<vmem>>, vector<2x256xf32>
    %c0_2 = arith.constant 0 : index
    %c0_3 = arith.constant 0 : index
    %4 = vector.load %arg1[%c0_2, %c0_3] : memref<2x5504xbf16, #tpu.memory_space<vmem>>, vector<2x5504xbf16>
    %c0_4 = arith.constant 0 : index
    %c0_5 = arith.constant 0 : index
    %5 = vector.load %arg2[%c0_4, %c0_5] : memref<5504x256xbf16, #tpu.memory_space<vmem>>, vector<5504x256xbf16>
    %cst = arith.constant dense<0.000000e+00> : vector<2x256xf32>
    %6 = tpu.matmul %4, %5, %cst {dimension_numbers = #tpu.dot_dimension_numbers<[1], [0], [0], [1], [0, 0, 1, 1], [], []>} : vector<2x5504xbf16>, vector<5504x256xbf16>, vector<2x256xf32> -> vector<2x256xf32>
    %7 = arith.addf %3, %6 : vector<2x256xf32>
    %c0_6 = arith.constant 0 : index
    %c0_7 = arith.constant 0 : index
    %8 = vector.load %arg10[%c0_6, %c0_7] : memref<2x256xf32, #tpu.memory_space<vmem>>, vector<2x256xf32>
    tpu.vector_store %arg10[%c0_6, %c0_7], %7 {strides = array<i32>} : memref<2x256xf32, #tpu.memory_space<vmem>>, vector<2x256xf32>,
    %c0_8 = arith.constant 0 : index
    %c0_9 = arith.constant 0 : index
    %9 = vector.load %arg10[%c0_8, %c0_9] : memref<2x256xf32, #tpu.memory_space<vmem>>, vector<2x256xf32>
    %c0_10 = arith.constant 0 : index
    %c0_11 = arith.constant 0 : index
    %10 = vector.load %arg3[%c0_10, %c0_11] : memref<1x256xf32, #tpu.memory_space<vmem>>, vector<1x256xf32>
    %11 = vector.broadcast %10 : vector<1x256xf32> to vector<2x256xf32>
    %12 = arith.addf %9, %11 : vector<2x256xf32>
    %c0_12 = arith.constant 0 : index
    %c0_13 = arith.constant 0 : index
    %13 = vector.load %arg9[%c0_12, %c0_13] : memref<2x256xf32, #tpu.memory_space<vmem>>, vector<2x256xf32>
    tpu.vector_store %arg9[%c0_12, %c0_13], %12 {strides = array<i32>} : memref<2x256xf32, #tpu.memory_space<vmem>>, vector<2x256xf32>,
    %cst_14 = arith.constant 0.000000e+00 : f32
    %14 = vector.broadcast %cst_14 : f32 to vector<2x256xf32>
    %15 = arith.mulf %12, %14 : vector<2x256xf32>
    %16 = arith.truncf %15 : vector<2x256xf32> to vector<2x256xbf16>
    %c0_15 = arith.constant 0 : index
    %c0_16 = arith.constant 0 : index
    %17 = vector.load %arg4[%c0_15, %c0_16] : memref<256x256xbf16, #tpu.memory_space<vmem>>, vector<256x256xbf16>
    %cst_17 = arith.constant dense<0.000000e+00> : vector<2x256xf32>
    %18 = tpu.matmul %16, %17, %cst_17 {dimension_numbers = #tpu.dot_dimension_numbers<[1], [0], [0], [1], [0, 0, 1, 1], [], []>} : vector<2x256xbf16>, vector<256x256xbf16>, vector<2x256xf32> -> vector<2x256xf32>
    %c0_18 = arith.constant 0 : index
    %c0_19 = arith.constant 0 : index
    %19 = vector.load %arg5[%c0_18, %c0_19] : memref<1x256xf32, #tpu.memory_space<vmem>>, vector<1x256xf32>
    %20 = vector.broadcast %19 : vector<1x256xf32> to vector<2x256xf32>
    %21 = arith.addf %18, %20 : vector<2x256xf32>
    %cst_20 = arith.constant 0.000000e+00 : f32
    %22 = vector.broadcast %cst_20 : f32 to vector<2x256xf32>
    %23 = arith.mulf %21, %22 : vector<2x256xf32>
    %cst_21 = arith.constant 0.000000e+00 : f32
    %24 = vector.broadcast %cst_21 : f32 to vector<2x256xf32>
    %25 = arith.cmpf ogt, %23, %24 : vector<2x256xf32>
    %cst_22 = arith.constant 0.000000e+00 : f32
    %26 = vector.broadcast %cst_22 : f32 to vector<2x256xf32>
    %27 = arith.minimumf %23, %26 : vector<2x256xf32>
    %28 = math.exp %27 : vector<2x256xf32>
    %cst_23 = arith.constant 1.000000e+00 : f32
    %29 = vector.broadcast %cst_23 : f32 to vector<2x256xf32>
    %30 = arith.subf %28, %29 : vector<2x256xf32>
    %31 = arith.select %25, %23, %30 : vector<2x256xi1>, vector<2x256xf32>
    %32 = arith.truncf %31 : vector<2x256xf32> to vector<2x256xbf16>
    %c0_24 = arith.constant 0 : index
    %c0_25 = arith.constant 0 : index
    %33 = vector.load %arg6[%c0_24, %c0_25] : memref<256x128xbf16, #tpu.memory_space<vmem>>, vector<256x128xbf16>
    %cst_26 = arith.constant dense<0.000000e+00> : vector<2x128xf32>
    %34 = tpu.matmul %32, %33, %cst_26 {dimension_numbers = #tpu.dot_dimension_numbers<[1], [0], [0], [1], [0, 0, 1, 1], [], []>} : vector<2x256xbf16>, vector<256x128xbf16>, vector<2x128xf32> -> vector<2x128xf32>
    %c0_27 = arith.constant 0 : index
    %c0_28 = arith.constant 0 : index
    %35 = vector.load %arg7[%c0_27, %c0_28] : memref<1x128xf32, #tpu.memory_space<vmem>>, vector<1x128xf32>
    %36 = vector.broadcast %35 : vector<1x128xf32> to vector<2x128xf32>
    %37 = arith.addf %34, %36 : vector<2x128xf32>
    %c0_29 = arith.constant 0 : index
    %c0_30 = arith.constant 0 : index
    %38 = vector.load %arg8[%c0_29, %c0_30] : memref<2x128xf32, #tpu.memory_space<vmem>>, vector<2x128xf32>
    tpu.vector_store %arg8[%c0_29, %c0_30], %37 {strides = array<i32>} : memref<2x128xf32, #tpu.memory_space<vmem>>, vector<2x128xf32>,
    return
  }
  func.func @transform_0(%arg0: i32) -> (i32, i32) {
    %c0_i32 = arith.constant 0 : i32
    %c0_i32_0 = arith.constant 0 : i32
    return %c0_i32, %arg0 : i32, i32
  }
  func.func @transform_1(%arg0: i32) -> (i32, i32) {
    %c0_i32 = arith.constant 0 : i32
    %c0_i32_0 = arith.constant 0 : i32
    return %arg0, %c0_i32 : i32, i32
  }
  func.func @transform_2(%arg0: i32) -> (i32, i32) {
    %c0_i32 = arith.constant 0 : i32
    %c0_i32_0 = arith.constant 0 : i32
    %c0_i32_1 = arith.constant 0 : i32
    return %c0_i32, %c0_i32_0 : i32, i32
  }
  func.func @transform_3(%arg0: i32) -> (i32, i32) {
    %c0_i32 = arith.constant 0 : i32
    %c0_i32_0 = arith.constant 0 : i32
    %c0_i32_1 = arith.constant 0 : i32
    return %c0_i32, %c0_i32_0 : i32, i32
  }
  func.func @transform_4(%arg0: i32) -> (i32, i32) {
    %c0_i32 = arith.constant 0 : i32
    %c0_i32_0 = arith.constant 0 : i32
    %c0_i32_1 = arith.constant 0 : i32
    return %c0_i32, %c0_i32_0 : i32, i32
  }
  func.func @transform_5(%arg0: i32) -> (i32, i32) {
    %c0_i32 = arith.constant 0 : i32
    %c0_i32_0 = arith.constant 0 : i32
    %c0_i32_1 = arith.constant 0 : i32
    return %c0_i32, %c0_i32_0 : i32, i32
  }
  func.func @transform_6(%arg0: i32) -> (i32, i32) {
    %c0_i32 = arith.constant 0 : i32
    %c0_i32_0 = arith.constant 0 : i32
    %c0_i32_1 = arith.constant 0 : i32
    return %c0_i32, %c0_i32_0 : i32, i32
  }
  func.func @transform_7(%arg0: i32) -> (i32, i32) {
    %c0_i32 = arith.constant 0 : i32
    %c0_i32_0 = arith.constant 0 : i32
    %c0_i32_1 = arith.constant 0 : i32
    return %c0_i32, %c0_i32_0 : i32, i32
  }
  func.func @transform_8(%arg0: i32) -> (i32, i32) {
    %c0_i32 = arith.constant 0 : i32
    %c0_i32_0 = arith.constant 0 : i32
    %c0_i32_1 = arith.constant 0 : i32
    return %c0_i32, %c0_i32_0 : i32, i32
  }
}

</mosaic_0001>

<bundles_post_ra>
// kernel: sac_actor_forward.4
= control target key start
LH: loop header
LB: loop body
LE: loop exit
PB: predicated region body
PF: predicated region fallthrough
CT: control target
= control target key end

     0   :  { %s2970_s12 = smov 0   ;;  %s2972_s13 = smov 0   ;;  %s3813_s0 = inlined_call_operand.vmem [shape: bf16[3042,64], index: 0, kind: input, shape index: {}]   ;;  %s3814_s1 = inlined_call_operand.vmem [shape: bf16[64,128], index: 1, kind: input, shape index: {}]   ;;  %s3815_s2 = inlined_call_operand.vmem [shape: f32[1,128], index: 2, kind: input, shape index: {}]   ;;  %s3816_s3 = inlined_call_operand.vmem [shape: bf16[3042,128], index: 3, kind: output, shape index: {}]  }
   0x1   :  { %s2974_s14 = smov 0  }
   0x2 LB: > { %s2983_s15 = sadd.s32 4294967295, %s2916_s14   ;;  %s2985_s16 = sadd.s32 1, %s2916_s14   ;;  %s2916_s14 = sphi %s2974_s14, %s3823_s14   ;;  %s2912_s13 = sphi %s2972_s13, %s3822_s13   ;;  %s2908_s12 = sphi %s2970_s12, %s3821_s12  }
   0x3   : > { %s85_s17 = ssub.s32 %s2916_s14, %s2985_s16  ;;  %s88_s18 = sadd.s32 1, %s2912_s13 }
   0x4   : > { %p86_p0 = scmp.eq.s32.totalorder %s85_s17, 0  ;;  %p98_p1 = scmp.ne.s32.totalorder %s2912_s13, %s2908_s12 }
   0x5   : > { %p99_p2 = scmp.eq.s32.totalorder %s2983_s15, 5  ;;  %p2017_p3 = scmp.ge.s32.totalorder %s2916_s14, 1 }
   0x6   : > { %s2993_s19 = scalar_select %p86_p0, %s2912_s13, %s88_s18  }
   0x7   : > { %p2995_p4 = por %p99_p2, %p98_p1  ;;  %p146_p5 = scmp.lt.s32.totalorder %s2916_s14, 7 }
   0x9   : > { %p147_p6 = pnand %p2017_p3, %p146_p5 }
   0xa   : > { %s3003_s23 = sshll.u32 (!%p147_p6), %s2983_s15, 6  ;;  %s170_s10 = sand.u32 (!%p147_p6), 1, %s2908_s12  }
   0xb   : > { %150 = sbr.rel (%p147_p6) target bundleno = 441 (0x1b9), region = 32  ;;  %p178_p7 = scmp.lt.s32.totalorder (!%p147_p6), %s3003_s23, 380 }
   0xc   : > { %s3170_s11 = sshll.u32 (!%p147_p6), %s170_s10, 8 }
   0xd   : > { %s3206_s12 = scalar_lea.vmem (!%p147_p6), [#allocation2], %s3170_s11  }
  0x10   : > { %v2697_v0 = vld [vmem:[%s3814_s1 + $0x18] sm:$0xff]   ;;  %v2698_v1 = vld [vmem:[%s3814_s1 + $0x10] sm:$0xff]   ;;  %s179_s26 = scalar_select %p178_p7, %s3003_s23, 380  ;;  %v2699_v2 = vld [vmem:[%s3814_s1 + $0x8] sm:$0xff]   ;;  %vm456_vm0 = vcmask 523264  }
  0x11   : > { %2529 = vmatprep.subr.bf16.mxu0 %v2697_v0  ;;  %2601 = vmatprep.subr.bf16.mxu1 %v2697_v0  ;;  %v2700_v3 = vld [vmem:[%s3814_s1] sm:$0xff]   ;;  %s1554_s18 = ssub.s32 (%p2995_p4), 381, %s3003_s23  ;;  %s2299_s21 = sshll.u32 (%p2995_p4), %s2983_s15, 8 }
  0x12   : > { %2530 = vmatpush3.bf16.msra.mxu0 %v2697_v0  ;;  %2605 = vmatpush3.bf16.msra.mxu1 %v2697_v0  ;;  %s2020_s29 = sshll.u32 %s179_s26, 2  ;;  %v3088_v36 = vld [vmem:[%s3815_s2] ss:$0 sm:$0xff]  ;;  %p1555_p8 = scmp.lt.s32.totalorder (%p2995_p4), %s1554_s18, 64 }
  0x13   : > { %2531 = vmatprep.subr.bf16.mxu0 %v2698_v1  ;;  %2602 = vmatprep.subr.bf16.mxu1 %v2698_v1  ;;  %s3019_s7 = scalar_lea.vmem %s3813_s0, %s2020_s29  ;;  %s3621_s25 = scalar_lea.vmem (%p2995_p4), %s3816_s3, %s2299_s21  }
  0x14   : > { %v2701_v4 = vld [vmem:[%s3019_s7] sm:$0xff]   ;;  %v2703_v6 = vld [vmem:[%s3019_s7 + $0x8] sm:$0xff]   ;;  %v2705_v8 = vld [vmem:[%s3019_s7 + $0x10] sm:$0xff]  }
  0x15   : > { %v2702_v5 = vld [vmem:[%s3019_s7 + $0x80] sm:$0xff]   ;;  %2537 = vmatprep.mubr.msk.bf16.mxu0 %vm456_vm0, %v2701_v4  ;;  %v2704_v7 = vld [vmem:[%s3019_s7 + $0x88] sm:$0xff]   ;;  %v2706_v9 = vld [vmem:[%s3019_s7 + $0x90] sm:$0xff]  }
  0x16   : > { %2532 = vmatpush3.bf16.msra.mxu0 %v2698_v1  ;;  %2606 = vmatpush3.bf16.msra.mxu1 %v2698_v1  ;;  %v2707_v10 = vld [vmem:[%s3019_s7 + $0x18] sm:$0xff]   ;;  %v2709_v12 = vld [vmem:[%s3019_s7 + $0x20] sm:$0xff]   ;;  %v2711_v14 = vld [vmem:[%s3019_s7 + $0x28] sm:$0xff]  }
  0x17   : > { %2533 = vmatprep.subr.bf16.mxu0 %v2699_v2  ;;  %2603 = vmatprep.subr.bf16.mxu1 %v2699_v2  ;;  %v2708_v11 = vld [vmem:[%s3019_s7 + $0x98] sm:$0xff]   ;;  %v2710_v13 = vld [vmem:[%s3019_s7 + $0xa0] sm:$0xff]   ;;  %v2712_v15 = vld [vmem:[%s3019_s7 + $0xa8] sm:$0xff]  }
  0x18   : > { %2569 = vmatprep.mubr.msk.bf16.mxu1 %vm456_vm0, %v2702_v5  ;;  %v2713_v16 = vld [vmem:[%s3019_s7 + $0x30] sm:$0xff]   ;;  %v2715_v18 = vld [vmem:[%s3019_s7 + $0x38] sm:$0xff]   ;;  %v2717_v20 = vld [vmem:[%s3019_s7 + $0x40] sm:$0xff]  }
  0x19   : > { %v2714_v17 = vld [vmem:[%s3019_s7 + $0xb0] sm:$0xff]   ;;  %v2716_v19 = vld [vmem:[%s3019_s7 + $0xb8] sm:$0xff]   ;;  %v2718_v21 = vld [vmem:[%s3019_s7 + $0xc0] sm:$0xff]  }
  0x1a   : > { %2534 = vmatpush3.bf16.msra.mxu0 %v2699_v2  ;;  %2607 = vmatpush3.bf16.msra.mxu1 %v2699_v2  ;;  %v2719_v22 = vld [vmem:[%s3019_s7 + $0x48] sm:$0xff]   ;;  %v2721_v24 = vld [vmem:[%s3019_s7 + $0x50] sm:$0xff]   ;;  %v2723_v26 = vld [vmem:[%s3019_s7 + $0x58] sm:$0xff]  }
  0x1b   : > { %2535 = vmatprep.subr.bf16.mxu0 %v2700_v3  ;;  %2604 = vmatprep.subr.bf16.mxu1 %v2700_v3  ;;  %v2720_v23 = vld [vmem:[%s3019_s7 + $0xc8] sm:$0xff]   ;;  %v2722_v25 = vld [vmem:[%s3019_s7 + $0xd0] sm:$0xff]   ;;  %v2724_v27 = vld [vmem:[%s3019_s7 + $0xd8] sm:$0xff]  }
  0x1c   : > { %v2725_v28 = vld [vmem:[%s3019_s7 + $0x60] sm:$0xff]   ;;  %v2727_v30 = vld [vmem:[%s3019_s7 + $0x68] sm:$0xff]   ;;  %v2729_v32 = vld [vmem:[%s3019_s7 + $0x70] sm:$0xff]  }
  0x1d   : > { %v2726_v29 = vld [vmem:[%s3019_s7 + $0xe0] sm:$0xff]   ;;  %v2728_v31 = vld [vmem:[%s3019_s7 + $0xe8] sm:$0xff]   ;;  %v2730_v33 = vld [vmem:[%s3019_s7 + $0xf0] sm:$0xff]  }
  0x1e   : > { %2536 = vmatpush3.bf16.msra.mxu0 %v2700_v3  ;;  %2608 = vmatpush3.bf16.msra.mxu1 %v2700_v3  ;;  %v2731_v34 = vld [vmem:[%s3019_s7 + $0x78] sm:$0xff]  }
  0x1f   : > { %v2732_v35 = vld [vmem:[%s3019_s7 + $0xf8] sm:$0xff]  }
  0x21   : > { %2538 = vmatmul.mubr.msk.bf16.vlgmr.msra.gmra.mxu0 %vm456_vm0, %v2703_v6  ;;  %2570 = vmatmul.mubr.msk.bf16.vlgmr.msra.gmra.mxu1 %vm456_vm0, %v2704_v7 }
  0x22   : > { %2541 = vmatprep.mubr.msk.bf16.mxu0 %vm456_vm0, %v2705_v8  ;;  %2573 = vmatprep.mubr.msk.bf16.mxu1 %vm456_vm0, %v2706_v9 }
  0x29   : > { %2542 = vmatmul.mubr.msk.bf16.gmra.mxu0 %vm456_vm0, %v2707_v10  ;;  %2574 = vmatmul.mubr.msk.bf16.gmra.mxu1 %vm456_vm0, %v2708_v11 }
  0x2a   : > { %2545 = vmatprep.mubr.msk.bf16.mxu0 %vm456_vm0, %v2709_v12  ;;  %2577 = vmatprep.mubr.msk.bf16.mxu1 %vm456_vm0, %v2710_v13 }
  0x31   : > { %2546 = vmatmul.mubr.msk.bf16.gmra.mxu0 %vm456_vm0, %v2711_v14  ;;  %2578 = vmatmul.mubr.msk.bf16.gmra.mxu1 %vm456_vm0, %v2712_v15 }
  0x32   : > { %2549 = vmatprep.mubr.msk.bf16.mxu0 %vm456_vm0, %v2713_v16  ;;  %2581 = vmatprep.mubr.msk.bf16.mxu1 %vm456_vm0, %v2714_v17 }
  0x39   : > { %2550 = vmatmul.mubr.msk.bf16.gmra.mxu0 %vm456_vm0, %v2715_v18  ;;  %2582 = vmatmul.mubr.msk.bf16.gmra.mxu1 %vm456_vm0, %v2716_v19 }
  0x3a   : > { %2553 = vmatprep.mubr.msk.bf16.mxu0 %vm456_vm0, %v2717_v20  ;;  %2585 = vmatprep.mubr.msk.bf16.mxu1 %vm456_vm0, %v2718_v21 }
  0x41   : > { %2554 = vmatmul.mubr.msk.bf16.gmra.mxu0 %vm456_vm0, %v2719_v22  ;;  %2586 = vmatmul.mubr.msk.bf16.gmra.mxu1 %vm456_vm0, %v2720_v23 }
  0x42   : > { %2557 = vmatprep.mubr.msk.bf16.mxu0 %vm456_vm0, %v2721_v24  ;;  %2589 = vmatprep.mubr.msk.bf16.mxu1 %vm456_vm0, %v2722_v25 }
  0x49   : > { %2558 = vmatmul.mubr.msk.bf16.gmra.mxu0 %vm456_vm0, %v2723_v26  ;;  %2590 = vmatmul.mubr.msk.bf16.gmra.mxu1 %vm456_vm0, %v2724_v27 }
  0x4a   : > { %2561 = vmatprep.mubr.msk.bf16.mxu0 %vm456_vm0, %v2725_v28  ;;  %2593 = vmatprep.mubr.msk.bf16.mxu1 %vm456_vm0, %v2726_v29 }
  0x51   : > { %2562 = vmatmul.mubr.msk.bf16.gmra.mxu0 %vm456_vm0, %v2727_v30  ;;  %2594 = vmatmul.mubr.msk.bf16.gmra.mxu1 %vm456_vm0, %v2728_v31 }
  0x52   : > { %2565 = vmatprep.mubr.msk.bf16.mxu0 %vm456_vm0, %v2729_v32  ;;  %2597 = vmatprep.mubr.msk.bf16.mxu1 %vm456_vm0, %v2730_v33 }
  0x59   : > { %2566 = vmatmul.mubr.msk.bf16.gmra.mxu0 %vm456_vm0, %v2731_v34  ;;  %2598 = vmatmul.mubr.msk.bf16.gmra.mxu1 %vm456_vm0, %v2732_v35 }
  0xe1   : > { %v2539_v37 = vpop.f32.mrf.mxu0  ;;  %v2571_v38 = vpop.f32.mrf.mxu1 }
  0xe2   : > { %v3091_v39 = vadd.f32 %v2539_v37, %v3088_v36  ;;  %v3094_v40 = vadd.f32 %v2571_v38, %v3088_v36 }
  0xe3   : > { %v587_v41 = vpop.f32.mrf.mxu0  ;;  %v715_v42 = vpop.f32.mrf.mxu1 }
  0xe4   : > { %v908_v43 = vmin.f32 %v3091_v39, 0.0  ;;  %v940_v44 = vmin.f32 %v3094_v40, 0.0  ;;  %v3099_v45 = vadd.f32 %v3088_v36, %v587_v41  ;;  %v3102_v46 = vadd.f32 %v3088_v36, %v715_v42 }
  0xe5   : > { %v2540_v47 = vpop.f32.mrf.mxu0  ;;  %v2572_v48 = vpop.f32.mrf.mxu1  ;;  %vm844_vm1 = vcmp.gt.f32.partialorder %v3091_v39, 0.0  ;;  %vm876_vm2 = vcmp.gt.f32.partialorder %v3094_v40, 0.0 }
  0xe6   : > { %v974_v49 = vmul.f32 1.442695, %v908_v43  ;;  %v1038_v50 = vmul.f32 1.442695, %v940_v44  ;;  %v3105_v51 = vadd.f32 %v2540_v47, %v3088_v36  ;;  %v3108_v52 = vadd.f32 %v2572_v48, %v3088_v36 }
  0xe7   : > { %v906_v53 = vmin.f32 %v3099_v45, 0.0  ;;  %v938_v54 = vmin.f32 %v3102_v46, 0.0  ;;  %v590_v55 = vpop.f32.mrf.mxu0  ;;  %v718_v56 = vpop.f32.mrf.mxu1  ;;  %vm842_vm3 = vcmp.gt.f32.partialorder %v3099_v45, 0.0  ;;  %vm874_vm4 = vcmp.gt.f32.partialorder %v3102_v46, 0.0 }
  0xe8   : > { %2733 = vpow2.f32 %v974_v49  ;;  %v909_v57 = vmin.f32 %v3105_v51, 0.0  ;;  %v941_v60 = vmin.f32 %v3108_v52, 0.0  ;;  %v3115_v0 = vadd.f32 %v3088_v36, %v590_v55 }
  0xe9   : > { %2735 = vpow2.f32 %v1038_v50  ;;  %v970_v58 = vmul.f32 1.442695, %v906_v53  ;;  %v1034_v59 = vmul.f32 1.442695, %v938_v54  ;;  %v2543_v61 = vpop.f32.mrf.mxu0  ;;  %v2575_v62 = vpop.f32.mrf.mxu1  ;;  %v3118_v1 = vadd.f32 %v3088_v36, %v718_v56 }
  0xea   : > { %v976_v63 = vmul.f32 1.442695, %v909_v57  ;;  %v3121_v2 = vadd.f32 %v2543_v61, %v3088_v36  ;;  %v1040_v3 = vmul.f32 1.442695, %v941_v60  ;;  %v3124_v4 = vadd.f32 %v2575_v62, %v3088_v36 }
  0xeb   : > { %2737 = vpow2.f32 %v970_v58  ;;  %v603_v5 = vpop.f32.mrf.mxu0  ;;  %v731_v6 = vpop.f32.mrf.mxu1  ;;  %v907_v7 = vmin.f32 %v3115_v0, 0.0  ;;  %v939_v8 = vmin.f32 %v3118_v1, 0.0  ;;  %vm845_vm5 = vcmp.gt.f32.partialorder %v3105_v51, 0.0 }
  0xec   : > { %2739 = vpow2.f32 %v1034_v59  ;;  %v912_v9 = vmin.f32 %v3121_v2, 0.0  ;;  %v944_v13 = vmin.f32 %v3124_v4, 0.0  ;;  %v3131_v16 = vadd.f32 %v3088_v36, %v603_v5 }
  0xed   : > { %2741 = vpow2.f32 %v976_v63  ;;  %v2544_v10 = vpop.f32.mrf.mxu0  ;;  %v2576_v11 = vpop.f32.mrf.mxu1  ;;  %v972_v12 = vmul.f32 1.442695, %v907_v7  ;;  %v1036_v14 = vmul.f32 1.442695, %v939_v8  ;;  %v3134_v17 = vadd.f32 %v3088_v36, %v731_v6 }
  0xee   : > { %2743 = vpow2.f32 %v1040_v3  ;;  %v982_v15 = vmul.f32 1.442695, %v912_v9  ;;  %v1046_v20 = vmul.f32 1.442695, %v944_v13  ;;  %v3137_v21 = vadd.f32 %v2544_v10, %v3088_v36 }
  0xef   : > { %v606_v18 = vpop.f32.mrf.mxu0  ;;  %v734_v19 = vpop.f32.mrf.mxu1  ;;  %2745 = vpow2.f32 %v972_v12  ;;  %v3140_v22 = vadd.f32 %v2576_v11, %v3088_v36  ;;  %v910_v23 = vmin.f32 %v3131_v16, 0.0  ;;  %v942_v26 = vmin.f32 %v3134_v17, 0.0 }
  0xf0   : > { %2747 = vpow2.f32 %v1036_v14  ;;  %v913_v27 = vmin.f32 %v3137_v21, 0.0  ;;  %v3147_v33 = vadd.f32 %v3088_v36, %v606_v18  ;;  %v3150_v34 = vadd.f32 %v3088_v36, %v734_v19 }
  0xf1   : > { %v2547_v24 = vpop.f32.mrf.mxu0  ;;  %v2579_v25 = vpop.f32.mrf.mxu1  ;;  %2749 = vpow2.f32 %v982_v15  ;;  %v978_v28 = vmul.f32 1.442695, %v910_v23  ;;  %v945_v29 = vmin.f32 %v3140_v22, 0.0  ;;  %v1042_v31 = vmul.f32 1.442695, %v942_v26 }
  0xf2   : > { %2751 = vpow2.f32 %v1046_v20  ;;  %v984_v32 = vmul.f32 1.442695, %v913_v27  ;;  %v3154_v38 = vadd.f32 %v2547_v24, %v3088_v36  ;;  %v911_v43 = vmin.f32 %v3147_v33, 0.0 }
  0xf3   : > { %v619_v30 = vpop.f32.mrf.mxu0  ;;  %2753 = vpow2.f32 %v978_v28  ;;  %v1048_v37 = vmul.f32 1.442695, %v945_v29  ;;  %v747_v41 = vpop.f32.mrf.mxu1  ;;  %v3159_v44 = vadd.f32 %v2579_v25, %v3088_v36  ;;  %v943_v48 = vmin.f32 %v3150_v34, 0.0 }
  0xf4   : > { %2755 = vpow2.f32 %v1042_v31  ;;  %v980_v54 = vmul.f32 1.442695, %v911_v43  ;;  %vm877_vm6 = vcmp.gt.f32.partialorder %v3108_v52, 0.0  ;;  %v916_v58 = vmin.f32 %v3154_v38, 0.0 }
  0xf5   : > { %v2734_v35 = vpop.eup %2733  ;;  %2757 = vpow2.f32 %v984_v32  ;;  %v2548_v49 = vpop.f32.mrf.mxu0  ;;  %v1044_v57 = vmul.f32 1.442695, %v943_v48  ;;  %vm843_vm7 = vcmp.gt.f32.partialorder %v3115_v0, 0.0  ;;  %vm875_vm8 = vcmp.gt.f32.partialorder %v3118_v1, 0.0 }
  0xf6   : > { %v2736_v42 = vpop.eup %2735  ;;  %v2092_v47 = vadd.f32 -1.0, %v2734_v35  ;;  %2759 = vpow2.f32 %v1048_v37  ;;  %v3168_v59 = vpop.f32.mrf.mxu1  ;;  %v948_v61 = vmin.f32 %v3159_v44, 0.0  ;;  %vm848_vm9 = vcmp.gt.f32.partialorder %v3121_v2, 0.0 }
  0xf7   : > { %v2124_v53 = vadd.f32 -1.0, %v2736_v42  ;;  %2761 = vpow2.f32 %v980_v54  ;;  %v622_v5 = vpop.f32.mrf.mxu0  ;;  %v990_v8 = vmul.f32 1.442695, %v916_v58  ;;  %v3183_v9 = vadd.f32 %v3088_v36, %v619_v30 }
  0xf8   : > { %v2738_v50 = vpop.eup %2737  ;;  %v1164_v63 = vsel %vm844_vm1, %v3091_v39, %v2092_v47  ;;  %2763 = vpow2.f32 %v1044_v57  ;;  %vm880_vm10 = vcmp.gt.f32.partialorder %v3124_v4, 0.0  ;;  %v750_v13 = vpop.f32.mrf.mxu1  ;;  %vm849_vm11 = vcmp.gt.f32.partialorder %v3137_v21, 0.0 }
  0xf9   : > { %v2740_v55 = vpop.eup %2739  ;;  %v2090_v56 = vadd.f32 -1.0, %v2738_v50  ;;  %v1196_v6 = vsel %vm876_vm2, %v3094_v40, %v2124_v53  ;;  %v3193_v40 = vadd.f32 %v3088_v36, %v747_v41  ;;  %v914_v24 = vmin.f32 %v3183_v9, 0.0  ;;  %v3203_v26 = vpop.f32.mrf.mxu0 }
  0xfa   : > { %v2742_v60 = vpop.eup %2741  ;;  %v2122_v39 = vadd.f32 -1.0, %v2740_v55  ;;  %v3201_v25 = vadd.f32 %v2548_v49, %v3088_v36  ;;  %vm846_vm12 = vcmp.gt.f32.partialorder %v3131_v16, 0.0  ;;  %2765 = vpow2.f32 %v990_v8 }
  0xfb   : > { %v2744_v62 = vpop.eup %2743  ;;  %v2093_v3 = vadd.f32 -1.0, %v2742_v60  ;;  %v1162_v11 = vsel %vm842_vm3, %v3099_v45, %v2090_v56  ;;  %v1054_v45 = vmul.f32 1.442695, %v948_v61  ;;  %v946_v29 = vmin.f32 %v3193_v40, 0.0 }
  0xfc   : > { %v2125_v7 = vadd.f32 -1.0, %v2744_v62  ;;  %v2746_v10 = vpop.eup %2745  ;;  %v1194_v30 = vsel %vm874_vm4, %v3102_v46, %v2122_v39  ;;  %v986_v35 = vmul.f32 1.442695, %v914_v24  ;;  %vm878_vm13 = vcmp.gt.f32.partialorder %v3134_v17, 0.0 }
  0xfd   : > { %v1165_v12 = vsel %vm845_vm5, %v3105_v51, %v2093_v3  ;;  %v2748_v14 = vpop.eup %2747  ;;  %v2091_v19 = vadd.f32 -1.0, %v2746_v10  ;;  %vm881_vm14 = vcmp.gt.f32.partialorder %v3140_v22, 0.0  ;;  %v1050_v43 = vmul.f32 1.442695, %v946_v29 }
  0xfe   : > { %v2310_v15 = vpack.c.bf16 %v1165_v12, %v1164_v63  ;;  %v1197_v18 = vsel %vm877_vm6, %v3108_v52, %v2125_v7  ;;  %v2750_v20 = vpop.eup %2749  ;;  %v2123_v51 = vadd.f32 -1.0, %v2748_v14  ;;  %vm847_vm15 = vcmp.gt.f32.partialorder %v3147_v33, 0.0 }
  0xff   : > { %v2390_v23 = vpack.c.bf16 %v1197_v18, %v1196_v6  ;;  %v2752_v27 = vpop.eup %2751  ;;  %v1163_v52 = vsel %vm843_vm7, %v3115_v0, %v2091_v19  ;;  %v2096_v28 = vadd.f32 -1.0, %v2750_v20  ;;  %v2583_v0 = vpop.f32.mrf.mxu1  ;;  %vm879_vm0 = vcmp.gt.f32.partialorder %v3150_v34, 0.0 }
 0x100   : > { %2462 = vst [vmem:[%s3206_s12 + $0x8] sm:$0xff] %v2310_v15   ;;  %v2305_v31 = vpack.c.bf16 %v1163_v52, %v1162_v11  ;;  %v1195_v32 = vsel %vm875_vm8, %v3118_v1, %v2123_v51  ;;  %v2754_v37 = vpop.eup %2753  ;;  %v2128_v42 = vadd.f32 -1.0, %v2752_v27  ;;  %2767 = vpow2.f32 %v1054_v45  ;;  %v635_v1 = vpop.f32.mrf.mxu0 }
 0x101   : > { %2478 = vst [vmem:[%s3206_s12 + $0x88] sm:$0xff] %v2390_v23   ;;  %v2385_v41 = vpack.c.bf16 %v1195_v32, %v1194_v30  ;;  %v2756_v47 = vpop.eup %2755  ;;  %v917_v46 = vmin.f32 %v3201_v25, 0.0  ;;  %v1168_v49 = vsel %vm848_vm9, %v3121_v2, %v2096_v28  ;;  %2769 = vpow2.f32 %v986_v35  ;;  %v763_v58 = vpop.f32.mrf.mxu1 }
 0x102   : > { %2306 = vst [vmem:[%s3206_s12] sm:$0xff] %v2305_v31   ;;  %v2758_v48 = vpop.eup %2757  ;;  %v3233_v50 = vadd.f32 %v3168_v59, %v3088_v36  ;;  %v3236_v53 = vadd.f32 %v3088_v36, %v622_v5  ;;  %v2094_v55 = vadd.f32 -1.0, %v2754_v37  ;;  %2771 = vpow2.f32 %v1050_v43  ;;  %v2552_v6 = vpop.f32.mrf.mxu0 }
 0x103   : > { %2477 = vst [vmem:[%s3206_s12 + $0x80] sm:$0xff] %v2385_v41   ;;  %v2760_v54 = vpop.eup %2759  ;;  %v2097_v56 = vadd.f32 -1.0, %v2758_v48  ;;  %v992_v57 = vmul.f32 1.442695, %v917_v46  ;;  %v1200_v60 = vsel %vm880_vm10, %v3124_v4, %v2128_v42  ;;  %v3243_v62 = vadd.f32 %v3088_v36, %v750_v13  ;;  %v2584_v14 = vpop.f32.mrf.mxu1 }
 0x104   : > { %v2129_v61 = vadd.f32 -1.0, %v2760_v54  ;;  %v949_v2 = vmin.f32 %v3233_v50, 0.0  ;;  %v2762_v59 = vpop.eup %2761  ;;  %v2126_v63 = vadd.f32 -1.0, %v2756_v47  ;;  %v915_v5 = vmin.f32 %v3236_v53, 0.0 }
 0x105   : > { %v1169_v3 = vsel %vm849_vm11, %v3137_v21, %v2097_v56  ;;  %2773 = vpow2.f32 %v992_v57  ;;  %v2764_v7 = vpop.eup %2763  ;;  %v2095_v10 = vadd.f32 -1.0, %v2762_v59  ;;  %v1166_v39 = vsel %vm846_vm12, %v3131_v16, %v2094_v55 }
 0x106   : > { %v2320_v4 = vpack.c.bf16 %v1169_v3, %v1168_v49  ;;  %v1201_v8 = vsel %vm881_vm14, %v3140_v22, %v2129_v61  ;;  %v1056_v11 = vmul.f32 1.442695, %v949_v2  ;;  %v2127_v13 = vadd.f32 -1.0, %v2764_v7 }
 0x107   : > { %v2400_v12 = vpack.c.bf16 %v1201_v8, %v1200_v60  ;;  %v988_v21 = vmul.f32 1.442695, %v915_v5  ;;  %v1167_v15 = vsel %vm847_vm15, %v3147_v33, %v2095_v10  ;;  %v947_v18 = vmin.f32 %v3243_v62, 0.0  ;;  %v638_v33 = vpop.f32.mrf.mxu0  ;;  %v2766_v51 = vpop.eup %2765 }
 0x108   : > { %2464 = vst [vmem:[%s3206_s12 + $0x18] sm:$0xff] %v2320_v4   ;;  %2775 = vpow2.f32 %v1056_v11  ;;  %v3262_v22 = vadd.f32 %v3203_v26, %v3088_v36  ;;  %v1198_v16 = vsel %vm878_vm13, %v3134_v17, %v2126_v63  ;;  %v2315_v19 = vpack.c.bf16 %v1167_v15, %v1166_v39  ;;  %v766_v17 = vpop.f32.mrf.mxu1 }
 0x109   : > { %2480 = vst [vmem:[%s3206_s12 + $0x98] sm:$0xff] %v2400_v12   ;;  %v1199_v45 = vsel %vm879_vm0, %v3150_v34, %v2127_v13  ;;  %2777 = vpow2.f32 %v988_v21  ;;  %v1052_v23 = vmul.f32 1.442695, %v947_v18  ;;  %v3274_v26 = vadd.f32 %v2583_v0, %v3088_v36  ;;  %v2555_v30 = vpop.f32.mrf.mxu0 }
 0x10a   : > { %v2395_v20 = vpack.c.bf16 %v1199_v45, %v1198_v16  ;;  %2463 = vst [vmem:[%s3206_s12 + $0x10] sm:$0xff] %v2315_v19   ;;  %v920_v24 = vmin.f32 %v3262_v22, 0.0  ;;  %v3277_v27 = vadd.f32 %v3088_v36, %v635_v1  ;;  %v3281_v52 = vadd.f32 %v3088_v36, %v763_v58  ;;  %v2587_v43 = vpop.f32.mrf.mxu1 }
 0x10b   : > { %2779 = vpow2.f32 %v1052_v23  ;;  %v3284_v34 = vadd.f32 %v2552_v6, %v3088_v36  ;;  %vm852_vm1 = vcmp.gt.f32.partialorder %v3154_v38, 0.0  ;;  %v952_v29 = vmin.f32 %v3274_v26, 0.0  ;;  %v651_v55 = vpop.f32.mrf.mxu0 }
 0x10c   : > { %2479 = vst [vmem:[%s3206_s12 + $0x90] sm:$0xff] %v2395_v20   ;;  %v998_v28 = vmul.f32 1.442695, %v920_v24  ;;  %v2100_v32 = vadd.f32 -1.0, %v2766_v51  ;;  %vm884_vm2 = vcmp.gt.f32.partialorder %v3159_v44, 0.0  ;;  %v918_v35 = vmin.f32 %v3277_v27, 0.0  ;;  %v779_v3 = vpop.f32.mrf.mxu1 }
 0x10d   : > { %v2768_v31 = vpop.eup %2767  ;;  %v950_v0 = vmin.f32 %v3281_v52, 0.0  ;;  %vm850_vm3 = vcmp.gt.f32.partialorder %v3183_v9, 0.0  ;;  %vm853_vm4 = vcmp.gt.f32.partialorder %v3201_v25, 0.0  ;;  %v1062_v41 = vmul.f32 1.442695, %v952_v29  ;;  %v2556_v11 = vpop.f32.mrf.mxu0 }
 0x10e   : > { %v2770_v37 = vpop.eup %2769  ;;  %2781 = vpow2.f32 %v998_v28  ;;  %v921_v42 = vmin.f32 %v3284_v34, 0.0  ;;  %vm882_vm5 = vcmp.gt.f32.partialorder %v3193_v40, 0.0  ;;  %vm885_vm6 = vcmp.gt.f32.partialorder %v3233_v50, 0.0  ;;  %v2588_v18 = vpop.f32.mrf.mxu1 }
 0x10f   : > { %v2772_v47 = vpop.eup %2771  ;;  %vm851_vm7 = vcmp.gt.f32.partialorder %v3236_v53, 0.0  ;;  %v994_v46 = vmul.f32 1.442695, %v918_v35  ;;  %v3298_v1 = vadd.f32 %v2584_v14, %v3088_v36  ;;  %2783 = vpow2.f32 %v1062_v41  ;;  %v654_v24 = vpop.f32.mrf.mxu0 }
 0x110   : > { %v1058_v48 = vmul.f32 1.442695, %v950_v0  ;;  %v1000_v49 = vmul.f32 1.442695, %v921_v42  ;;  %v3301_v54 = vadd.f32 %v3088_v36, %v638_v33  ;;  %v1172_v57 = vsel %vm852_vm1, %v3154_v38, %v2100_v32  ;;  %v782_v32 = vpop.f32.mrf.mxu1 }
 0x111   : > { %v2132_v58 = vadd.f32 -1.0, %v2768_v31  ;;  %2785 = vpow2.f32 %v994_v46  ;;  %v953_v60 = vmin.f32 %v3298_v1, 0.0  ;;  %v2098_v61 = vadd.f32 -1.0, %v2770_v37 }
 0x112   : > { %v2774_v56 = vpop.eup %2773  ;;  %v2130_v2 = vadd.f32 -1.0, %v2772_v47  ;;  %vm883_vm8 = vcmp.gt.f32.partialorder %v3243_v62, 0.0  ;;  %v919_v63 = vmin.f32 %v3301_v54, 0.0  ;;  %2787 = vpow2.f32 %v1000_v49  ;;  %v2559_v47 = vpop.f32.mrf.mxu0 }
 0x113   : > { %v2101_v59 = vadd.f32 -1.0, %v2774_v56  ;;  %v1064_v5 = vmul.f32 1.442695, %v953_v60  ;;  %v3310_v6 = vadd.f32 %v3088_v36, %v766_v17  ;;  %v3313_v7 = vadd.f32 %v2555_v30, %v3088_v36  ;;  %v2591_v56 = vpop.f32.mrf.mxu1 }
 0x114   : > { %2789 = vpow2.f32 %v1058_v48  ;;  %v996_v8 = vmul.f32 1.442695, %v919_v63  ;;  %v3319_v10 = vadd.f32 %v2587_v43, %v3088_v36  ;;  %v1204_v12 = vsel %vm884_vm2, %v3159_v44, %v2132_v58  ;;  %v667_v63 = vpop.f32.mrf.mxu0 }
 0x115   : > { %v2776_v38 = vpop.eup %2775  ;;  %v1173_v4 = vsel %vm853_vm4, %v3201_v25, %v2101_v59  ;;  %2791 = vpow2.f32 %v1064_v5  ;;  %v951_v15 = vmin.f32 %v3310_v6, 0.0  ;;  %v3326_v25 = vadd.f32 %v3088_v36, %v651_v55 }
 0x116   : > { %v2778_v39 = vpop.eup %2777  ;;  %v2330_v13 = vpack.c.bf16 %v1173_v4, %v1172_v57  ;;  %v2133_v21 = vadd.f32 -1.0, %v2776_v38  ;;  %2793 = vpow2.f32 %v996_v8  ;;  %v1170_v16 = vsel %vm850_vm3, %v3183_v9, %v2098_v61 }
 0x117   : > { %v2099_v14 = vadd.f32 -1.0, %v2778_v39  ;;  %v924_v19 = vmin.f32 %v3313_v7, 0.0  ;;  %v956_v45 = vmin.f32 %v3319_v10, 0.0  ;;  %v1202_v20 = vsel %vm882_vm5, %v3193_v40, %v2130_v2 }
 0x118   : > { %2466 = vst [vmem:[%s3206_s12 + $0x28] sm:$0xff] %v2330_v13   ;;  %v1205_v44 = vsel %vm885_vm6, %v3233_v50, %v2133_v21  ;;  %v2780_v33 = vpop.eup %2779  ;;  %v1060_v51 = vmul.f32 1.442695, %v951_v15  ;;  %v922_v30 = vmin.f32 %v3326_v25, 0.0  ;;  %v3346_v31 = vadd.f32 %v3088_v36, %v779_v3 }
 0x119   : > { %v2410_v23 = vpack.c.bf16 %v1205_v44, %v1204_v12  ;;  %v1171_v9 = vsel %vm851_vm7, %v3236_v53, %v2099_v14  ;;  %v2131_v28 = vadd.f32 -1.0, %v2780_v33  ;;  %v1006_v50 = vmul.f32 1.442695, %v924_v19  ;;  %v795_v12 = vpop.f32.mrf.mxu1  ;;  %v2560_v44 = vpop.f32.mrf.mxu0 }
 0x11a   : > { %v2325_v17 = vpack.c.bf16 %v1171_v9, %v1170_v16  ;;  %v1070_v29 = vmul.f32 1.442695, %v956_v45  ;;  %2795 = vpow2.f32 %v1060_v51  ;;  %v3349_v40 = vadd.f32 %v2556_v11, %v3088_v36 }
 0x11b   : > { %2482 = vst [vmem:[%s3206_s12 + $0xa8] sm:$0xff] %v2410_v23   ;;  %v2782_v35 = vpop.eup %2781  ;;  %v1203_v53 = vsel %vm883_vm8, %v3243_v62, %v2131_v28  ;;  %2797 = vpow2.f32 %v1006_v50  ;;  %v3356_v0 = vadd.f32 %v2588_v18, %v3088_v36  ;;  %v3359_v37 = vadd.f32 %v3088_v36, %v654_v24  ;;  %v2592_v51 = vpop.f32.mrf.mxu1 }
 0x11c   : > { %2465 = vst [vmem:[%s3206_s12 + $0x20] sm:$0xff] %v2325_v17   ;;  %v2405_v41 = vpack.c.bf16 %v1203_v53, %v1202_v20  ;;  %v2104_v42 = vadd.f32 -1.0, %v2782_v35  ;;  %2799 = vpow2.f32 %v1070_v29  ;;  %v1002_v43 = vmul.f32 1.442695, %v922_v30  ;;  %v2784_v46 = vpop.eup %2783 }
 0x11d   : > { %vm856_vm9 = vcmp.gt.f32.partialorder %v3262_v22, 0.0  ;;  %v954_v48 = vmin.f32 %v3346_v31, 0.0  ;;  %v925_v49 = vmin.f32 %v3349_v40, 0.0  ;;  %vm888_vm10 = vcmp.gt.f32.partialorder %v3274_v26, 0.0 }
 0x11e   : > { %v2786_v62 = vpop.eup %2785  ;;  %2481 = vst [vmem:[%s3206_s12 + $0xa0] sm:$0xff] %v2405_v41   ;;  %v2136_v55 = vadd.f32 -1.0, %v2784_v46  ;;  %vm854_vm11 = vcmp.gt.f32.partialorder %v3277_v27, 0.0  ;;  %2801 = vpow2.f32 %v1002_v43  ;;  %vm857_vm12 = vcmp.gt.f32.partialorder %v3284_v34, 0.0  ;;  %v798_v46 = vpop.f32.mrf.mxu1 }
 0x11f   : > { %v1066_v57 = vmul.f32 1.442695, %v954_v48  ;;  %v1008_v58 = vmul.f32 1.442695, %v925_v49  ;;  %v957_v60 = vmin.f32 %v3356_v0, 0.0  ;;  %v2788_v61 = vpop.eup %2787  ;;  %v1176_v2 = vsel %vm856_vm9, %v3262_v22, %v2104_v42 }
 0x120   : > { %vm886_vm13 = vcmp.gt.f32.partialorder %v3281_v52, 0.0  ;;  %vm889_vm14 = vcmp.gt.f32.partialorder %v3298_v1, 0.0  ;;  %vm855_vm15 = vcmp.gt.f32.partialorder %v3301_v54, 0.0  ;;  %v923_v59 = vmin.f32 %v3359_v37, 0.0 }
 0x121   : > { %v2790_v3 = vpop.eup %2789  ;;  %v2102_v5 = vadd.f32 -1.0, %v2786_v62  ;;  %v2105_v38 = vadd.f32 -1.0, %v2788_v61  ;;  %2803 = vpow2.f32 %v1066_v57  ;;  %v1072_v4 = vmul.f32 1.442695, %v957_v60 }
 0x122   : > { %v2792_v8 = vpop.eup %2791  ;;  %v1208_v11 = vsel %vm888_vm10, %v3274_v26, %v2136_v55  ;;  %2805 = vpow2.f32 %v1008_v58  ;;  %v1004_v22 = vmul.f32 1.442695, %v923_v59  ;;  %v3378_v39 = vadd.f32 %v3088_v36, %v782_v32  ;;  %v670_v32 = vpop.f32.mrf.mxu0 }
 0x123   : > { %v2794_v13 = vpop.eup %2793  ;;  %v1177_v21 = vsel %vm857_vm12, %v3284_v34, %v2105_v38  ;;  %v2137_v14 = vadd.f32 -1.0, %v2792_v8  ;;  %2807 = vpow2.f32 %v1072_v4  ;;  %v3384_v15 = vadd.f32 %v2559_v47, %v3088_v36 }
 0x124   : > { %v2134_v18 = vadd.f32 -1.0, %v2790_v3  ;;  %v2340_v16 = vpack.c.bf16 %v1177_v21, %v1176_v2  ;;  %v2103_v26 = vadd.f32 -1.0, %v2794_v13  ;;  %2809 = vpow2.f32 %v1004_v22  ;;  %v2563_v58 = vpop.f32.mrf.mxu0 }
 0x125   : > { %v1174_v19 = vsel %vm854_vm11, %v3277_v27, %v2102_v5  ;;  %v1209_v45 = vsel %vm889_vm14, %v3298_v1, %v2137_v14  ;;  %v955_v34 = vmin.f32 %v3378_v39, 0.0  ;;  %v928_v33 = vmin.f32 %v3384_v15, 0.0 }
 0x126   : > { %2468 = vst [vmem:[%s3206_s12 + $0x38] sm:$0xff] %v2340_v16   ;;  %v2420_v20 = vpack.c.bf16 %v1209_v45, %v1208_v11  ;;  %v1175_v23 = vsel %vm855_vm15, %v3301_v54, %v2103_v26  ;;  %v3399_v9 = vadd.f32 %v2591_v56, %v3088_v36  ;;  %v3402_v27 = vadd.f32 %v3088_v36, %v667_v63  ;;  %v2595_v63 = vpop.f32.mrf.mxu1  ;;  %v683_v14 = vpop.f32.mrf.mxu0 }
 0x127   : > { %v2796_v24 = vpop.eup %2795  ;;  %v2335_v1 = vpack.c.bf16 %v1175_v23, %v1174_v19  ;;  %v1068_v17 = vmul.f32 1.442695, %v955_v34  ;;  %v1014_v28 = vmul.f32 1.442695, %v928_v33  ;;  %v3405_v50 = vadd.f32 %v3088_v36, %v795_v12 }
 0x128   : > { %v2798_v29 = vpop.eup %2797  ;;  %2484 = vst [vmem:[%s3206_s12 + $0xb8] sm:$0xff] %v2420_v20   ;;  %vm887_vm0 = vcmp.gt.f32.partialorder %v3310_v6, 0.0  ;;  %v2135_v54 = vadd.f32 -1.0, %v2796_v24  ;;  %vm860_vm1 = vcmp.gt.f32.partialorder %v3313_v7, 0.0  ;;  %v960_v30 = vmin.f32 %v3399_v9, 0.0  ;;  %v811_v45 = vpop.f32.mrf.mxu1 }
 0x129   : > { %v2800_v35 = vpop.eup %2799  ;;  %v1206_v53 = vsel %vm886_vm13, %v3281_v52, %v2134_v18  ;;  %2467 = vst [vmem:[%s3206_s12 + $0x30] sm:$0xff] %v2335_v1   ;;  %vm892_vm2 = vcmp.gt.f32.partialorder %v3319_v10, 0.0  ;;  %2811 = vpow2.f32 %v1068_v17  ;;  %v926_v41 = vmin.f32 %v3402_v27, 0.0 }
 0x12a   : > { %v1207_v42 = vsel %vm887_vm0, %v3310_v6, %v2135_v54  ;;  %v2108_v43 = vadd.f32 -1.0, %v2798_v29  ;;  %2813 = vpow2.f32 %v1014_v28  ;;  %v1078_v47 = vmul.f32 1.442695, %v960_v30  ;;  %v2596_v54 = vpop.f32.mrf.mxu1 }
 0x12b   : > { %v2802_v48 = vpop.eup %2801  ;;  %v2415_v49 = vpack.c.bf16 %v1207_v42, %v1206_v53  ;;  %v2140_v62 = vadd.f32 -1.0, %v2800_v35  ;;  %v1010_v55 = vmul.f32 1.442695, %v926_v41  ;;  %v958_v56 = vmin.f32 %v3405_v50, 0.0 }
 0x12c   : > { %vm858_vm3 = vcmp.gt.f32.partialorder %v3326_v25, 0.0  ;;  %v2106_v52 = vadd.f32 -1.0, %v2802_v48  ;;  %2815 = vpow2.f32 %v1078_v47  ;;  %v3421_v57 = vadd.f32 %v2560_v44, %v3088_v36 }
 0x12d   : > { %2483 = vst [vmem:[%s3206_s12 + $0xb0] sm:$0xff] %v2415_v49   ;;  %2817 = vpow2.f32 %v1010_v55  ;;  %v1074_v6 = vmul.f32 1.442695, %v958_v56  ;;  %v3425_v60 = vadd.f32 %v2592_v51, %v3088_v36  ;;  %v3428_v61 = vadd.f32 %v3088_v36, %v670_v32  ;;  %v2564_v51 = vpop.f32.mrf.mxu0 }
 0x12e   : > { %v2804_v2 = vpop.eup %2803  ;;  %vm861_vm4 = vcmp.gt.f32.partialorder %v3349_v40, 0.0  ;;  %vm893_vm5 = vcmp.gt.f32.partialorder %v3356_v0, 0.0  ;;  %vm859_vm6 = vcmp.gt.f32.partialorder %v3359_v37, 0.0  ;;  %v929_v59 = vmin.f32 %v3421_v57, 0.0 }
 0x12f   : > { %v2806_v3 = vpop.eup %2805  ;;  %v1180_v5 = vsel %vm860_vm1, %v3313_v7, %v2108_v43  ;;  %v1212_v38 = vsel %vm892_vm2, %v3319_v10, %v2140_v62  ;;  %v961_v4 = vmin.f32 %v3425_v60, 0.0  ;;  %v3442_v8 = vadd.f32 %v3088_v36, %v798_v46  ;;  %v686_v43 = vpop.f32.mrf.mxu0 }
 0x130   : > { %v2808_v11 = vpop.eup %2807  ;;  %v1178_v22 = vsel %vm858_vm3, %v3326_v25, %v2106_v52  ;;  %v2109_v12 = vadd.f32 -1.0, %v2806_v3  ;;  %v1016_v13 = vmul.f32 1.442695, %v929_v59  ;;  %v927_v21 = vmin.f32 %v3428_v61, 0.0 }
 0x131   : > { %v2810_v7 = vpop.eup %2809  ;;  %v2138_v18 = vadd.f32 -1.0, %v2804_v2  ;;  %v2141_v16 = vadd.f32 -1.0, %v2808_v11  ;;  %2819 = vpow2.f32 %v1074_v6  ;;  %v1080_v10 = vmul.f32 1.442695, %v961_v4 }
 0x132   : > { %v1181_v26 = vsel %vm861_vm4, %v3349_v40, %v2109_v12  ;;  %v2107_v44 = vadd.f32 -1.0, %v2810_v7  ;;  %2821 = vpow2.f32 %v1016_v13  ;;  %v1012_v19 = vmul.f32 1.442695, %v927_v21 }
 0x133   : > { %v2350_v25 = vpack.c.bf16 %v1181_v26, %v1180_v5  ;;  %v1213_v34 = vsel %vm893_vm5, %v3356_v0, %v2141_v16  ;;  %2823 = vpow2.f32 %v1080_v10  ;;  %v959_v33 = vmin.f32 %v3442_v8, 0.0 }
 0x134   : > { %v2430_v20 = vpack.c.bf16 %v1213_v34, %v1212_v38  ;;  %v1179_v23 = vsel %vm859_vm6, %v3359_v37, %v2107_v44  ;;  %2825 = vpow2.f32 %v1012_v19  ;;  %v3459_v40 = vadd.f32 %v2563_v58, %v3088_v36  ;;  %v814_v58 = vpop.f32.mrf.mxu1 }
 0x135   : > { %2470 = vst [vmem:[%s3206_s12 + $0x48] sm:$0xff] %v2350_v25   ;;  %v2345_v24 = vpack.c.bf16 %v1179_v23, %v1178_v22  ;;  %v1076_v1 = vmul.f32 1.442695, %v959_v33  ;;  %v3463_v17 = vadd.f32 %v2595_v63, %v3088_v36  ;;  %v3466_v0 = vadd.f32 %v3088_v36, %v683_v14  ;;  %v2567_v63 = vpop.f32.mrf.mxu0 }
 0x136   : > { %v2812_v28 = vpop.eup %2811  ;;  %vm890_vm7 = vcmp.gt.f32.partialorder %v3346_v31, 0.0  ;;  %2486 = vst [vmem:[%s3206_s12 + $0xc8] sm:$0xff] %v2430_v20   ;;  %v932_v37 = vmin.f32 %v3459_v40, 0.0  ;;  %v3472_v29 = vadd.f32 %v3088_v36, %v811_v45  ;;  %vm891_vm8 = vcmp.gt.f32.partialorder %v3378_v39, 0.0  ;;  %v2599_v12 = vpop.f32.mrf.mxu1 }
 0x137   : > { %v2814_v30 = vpop.eup %2813  ;;  %2469 = vst [vmem:[%s3206_s12 + $0x40] sm:$0xff] %v2345_v24   ;;  %v2139_v32 = vadd.f32 -1.0, %v2812_v28  ;;  %2827 = vpow2.f32 %v1076_v1  ;;  %v964_v35 = vmin.f32 %v3463_v17, 0.0  ;;  %vm864_vm9 = vcmp.gt.f32.partialorder %v3384_v15, 0.0  ;;  %v699_v26 = vpop.f32.mrf.mxu0 }
 0x138   : > { %v1022_v53 = vmul.f32 1.442695, %v932_v37  ;;  %v930_v41 = vmin.f32 %v3466_v0, 0.0  ;;  %v3480_v42 = vadd.f32 %v2564_v51, %v3088_v36  ;;  %v1210_v46 = vsel %vm890_vm7, %v3346_v31, %v2138_v18 }
 0x139   : > { %v2816_v47 = vpop.eup %2815  ;;  %v1211_v48 = vsel %vm891_vm8, %v3378_v39, %v2139_v32  ;;  %v1086_v49 = vmul.f32 1.442695, %v964_v35  ;;  %v962_v62 = vmin.f32 %v3472_v29, 0.0  ;;  %v2112_v52 = vadd.f32 -1.0, %v2814_v30  ;;  %v2568_v30 = vpop.f32.mrf.mxu0 }
 0x13a   : > { %v2818_v55 = vpop.eup %2817  ;;  %v2425_v56 = vpack.c.bf16 %v1211_v48, %v1210_v46  ;;  %vm896_vm10 = vcmp.gt.f32.partialorder %v3399_v9, 0.0  ;;  %2829 = vpow2.f32 %v1022_v53  ;;  %v2144_v6 = vadd.f32 -1.0, %v2816_v47 }
 0x13b   : > { %vm862_vm11 = vcmp.gt.f32.partialorder %v3402_v27, 0.0  ;;  %v1018_v2 = vmul.f32 1.442695, %v930_v41  ;;  %v1082_v59 = vmul.f32 1.442695, %v962_v62  ;;  %vm865_vm12 = vcmp.gt.f32.partialorder %v3421_v57, 0.0 }
 0x13c   : > { %2485 = vst [vmem:[%s3206_s12 + $0xc0] sm:$0xff] %v2425_v56   ;;  %vm897_vm13 = vcmp.gt.f32.partialorder %v3425_v60, 0.0  ;;  %v933_v31 = vmin.f32 %v3480_v42, 0.0  ;;  %v3494_v39 = vadd.f32 %v2596_v54, %v3088_v36  ;;  %v2110_v3 = vadd.f32 -1.0, %v2818_v55 }
 0x13d   : > { %vm863_vm14 = vcmp.gt.f32.partialorder %v3428_v61, 0.0  ;;  %2831 = vpow2.f32 %v1086_v49  ;;  %v3498_v5 = vadd.f32 %v3088_v36, %v686_v43  ;;  %v1184_v4 = vsel %vm864_vm9, %v3384_v15, %v2112_v52 }
 0x13e   : > { %v2820_v38 = vpop.eup %2819  ;;  %vm894_vm15 = vcmp.gt.f32.partialorder %v3405_v50, 0.0  ;;  %2833 = vpow2.f32 %v1018_v2  ;;  %v1024_v11 = vmul.f32 1.442695, %v933_v31  ;;  %v965_v22 = vmin.f32 %v3494_v39, 0.0 }
 0x13f   : > { %v2822_v13 = vpop.eup %2821  ;;  %v1216_v21 = vsel %vm896_vm10, %v3399_v9, %v2144_v6  ;;  %2835 = vpow2.f32 %v1082_v59  ;;  %v931_v14 = vmin.f32 %v3498_v5, 0.0  ;;  %v3510_v7 = vadd.f32 %v3088_v36, %v814_v58  ;;  %v702_v58 = vpop.f32.mrf.mxu0 }
 0x140   : > { %v2824_v18 = vpop.eup %2823  ;;  %v2113_v15 = vadd.f32 -1.0, %v2822_v13  ;;  %2837 = vpow2.f32 %v1024_v11  ;;  %v1088_v16 = vmul.f32 1.442695, %v965_v22  ;;  %v3513_v10 = vadd.f32 %v2567_v63, %v3088_v36  ;;  %v827_v36 = vpop.f32.mrf.mxu1 }
 0x141   : > { %v2826_v44 = vpop.eup %2825  ;;  %v1182_v19 = vsel %vm862_vm11, %v3402_v27, %v2110_v3  ;;  %v2145_v9 = vadd.f32 -1.0, %v2824_v18  ;;  %v1020_v45 = vmul.f32 1.442695, %v931_v14  ;;  %v963_v25 = vmin.f32 %v3510_v7, 0.0 }
 0x142   : > { %v2142_v34 = vadd.f32 -1.0, %v2820_v38  ;;  %v1185_v33 = vsel %vm865_vm12, %v3421_v57, %v2113_v15  ;;  %v2111_v20 = vadd.f32 -1.0, %v2826_v44  ;;  %2839 = vpow2.f32 %v1088_v16  ;;  %v2861_v57 = vld [vmem:[%s3815_s2] ss:$0 sm:$0xff]  ;;  %v2600_v43 = vpop.f32.mrf.mxu1 }
 0x143   : > { %v2360_v23 = vpack.c.bf16 %v1185_v33, %v1184_v4  ;;  %v1217_v51 = vsel %vm897_vm13, %v3425_v60, %v2145_v9  ;;  %2841 = vpow2.f32 %v1020_v45  ;;  %v1084_v27 = vmul.f32 1.442695, %v963_v25 }
 0x144   : > { %v2828_v24 = vpop.eup %2827  ;;  %v2440_v1 = vpack.c.bf16 %v1217_v51, %v1216_v21  ;;  %v1183_v28 = vsel %vm863_vm14, %v3428_v61, %v2111_v20  ;;  %v936_v37 = vmin.f32 %v3513_v10, 0.0  ;;  %v3532_v54 = vadd.f32 %v2861_v57, %v2599_v12 }
 0x145   : > { %2472 = vst [vmem:[%s3206_s12 + $0x58] sm:$0xff] %v2360_v23   ;;  %v2355_v60 = vpack.c.bf16 %v1183_v28, %v1182_v19  ;;  %v2143_v32 = vadd.f32 -1.0, %v2828_v24  ;;  %2843 = vpow2.f32 %v1084_v27  ;;  %v3535_v35 = vadd.f32 %v2861_v57, %v699_v26 }
 0x146   : > { %2488 = vst [vmem:[%s3206_s12 + $0xd8] sm:$0xff] %v2440_v1   ;;  %vm895_vm0 = vcmp.gt.f32.partialorder %v3442_v8, 0.0  ;;  %v1030_v61 = vmul.f32 1.442695, %v936_v37  ;;  %v968_v53 = vmin.f32 %v3532_v54, 0.0  ;;  %v3540_v41 = vadd.f32 %v2861_v57, %v827_v36 }
 0x147   : > { %v2830_v47 = vpop.eup %2829  ;;  %v1214_v46 = vsel %vm894_vm15, %v3405_v50, %v2142_v34  ;;  %2471 = vst [vmem:[%s3206_s12 + $0x50] sm:$0xff] %v2355_v60   ;;  %v1215_v48 = vsel %vm895_vm0, %v3442_v8, %v2143_v32  ;;  %v934_v49 = vmin.f32 %v3535_v35, 0.0  ;;  %v3548_v62 = vadd.f32 %v2861_v57, %v2568_v30  ;;  %v830_v8 = vpop.f32.mrf.mxu1 }
 0x148   : > { %v2435_v55 = vpack.c.bf16 %v1215_v48, %v1214_v46  ;;  %vm868_vm1 = vcmp.gt.f32.partialorder %v3459_v40, 0.0  ;;  %v1094_v56 = vmul.f32 1.442695, %v968_v53  ;;  %v966_v52 = vmin.f32 %v3540_v41, 0.0 }
 0x149   : > { %v2116_v2 = vadd.f32 -1.0, %v2830_v47  ;;  %vm900_vm2 = vcmp.gt.f32.partialorder %v3463_v17, 0.0  ;;  %2845 = vpow2.f32 %v1030_v61  ;;  %v937_v50 = vmin.f32 %v3548_v62, 0.0 }
 0x14a   : > { %v2832_v6 = vpop.eup %2831  ;;  %2487 = vst [vmem:[%s3206_s12 + $0xd0] sm:$0xff] %v2435_v55   ;;  %vm866_vm3 = vcmp.gt.f32.partialorder %v3466_v0, 0.0  ;;  %vm869_vm4 = vcmp.gt.f32.partialorder %v3480_v42, 0.0  ;;  %vm901_vm5 = vcmp.gt.f32.partialorder %v3494_v39, 0.0  ;;  %v1026_v31 = vmul.f32 1.442695, %v934_v49 }
 0x14b   : > { %v2834_v59 = vpop.eup %2833  ;;  %v1090_v3 = vmul.f32 1.442695, %v966_v52  ;;  %v1032_v38 = vmul.f32 1.442695, %v937_v50  ;;  %v3558_v4 = vadd.f32 %v2861_v57, %v2600_v43  ;;  %v3560_v11 = vadd.f32 %v2861_v57, %v702_v58 }
 0x14c   : > { %v2836_v63 = vpop.eup %2835  ;;  %v2148_v12 = vadd.f32 -1.0, %v2832_v6  ;;  %vm867_vm6 = vcmp.gt.f32.partialorder %v3498_v5, 0.0  ;;  %2847 = vpow2.f32 %v1094_v56  ;;  %v3563_v13 = vadd.f32 %v2861_v57, %v830_v8 }
 0x14d   : > { %v2838_v22 = vpop.eup %2837  ;;  %v1188_v21 = vsel %vm868_vm1, %v3459_v40, %v2116_v2  ;;  %v2114_v14 = vadd.f32 -1.0, %v2834_v59  ;;  %2849 = vpow2.f32 %v1032_v38  ;;  %v2146_v16 = vadd.f32 -1.0, %v2836_v63 }
 0x14e   : > { %v2117_v18 = vadd.f32 -1.0, %v2838_v22  ;;  %2851 = vpow2.f32 %v1026_v31  ;;  %v969_v26 = vmin.f32 %v3558_v4, 0.0  ;;  %v935_v44 = vmin.f32 %v3560_v11, 0.0 }
 0x14f   : > { %v2840_v15 = vpop.eup %2839  ;;  %2853 = vpow2.f32 %v1090_v3  ;;  %v967_v40 = vmin.f32 %v3563_v13, 0.0  ;;  %v1220_v23 = vsel %vm900_vm2, %v3463_v17, %v2148_v12  ;;  %v1186_v51 = vsel %vm866_vm3, %v3466_v0, %v2114_v14 }
 0x150   : > { %v2842_v19 = vpop.eup %2841  ;;  %v1189_v9 = vsel %vm869_vm4, %v3480_v42, %v2117_v18  ;;  %v2149_v45 = vadd.f32 -1.0, %v2840_v15  ;;  %v1096_v33 = vmul.f32 1.442695, %v969_v26  ;;  %v1028_v20 = vmul.f32 1.442695, %v935_v44 }
 0x151   : > { %v2370_v25 = vpack.c.bf16 %v1189_v9, %v1188_v21  ;;  %v2115_v34 = vadd.f32 -1.0, %v2842_v19  ;;  %v1092_v27 = vmul.f32 1.442695, %v967_v40  ;;  %vm898_vm7 = vcmp.gt.f32.partialorder %v3472_v29, 0.0 }
 0x152   : > { %v2844_v36 = vpop.eup %2843  ;;  %v1221_v42 = vsel %vm901_vm5, %v3494_v39, %v2149_v45  ;;  %2855 = vpow2.f32 %v1096_v33  ;;  %vm899_vm8 = vcmp.gt.f32.partialorder %v3510_v7, 0.0  ;;  %v1218_v0 = vsel %vm898_vm7, %v3472_v29, %v2146_v16 }
 0x153   : > { %2474 = vst [vmem:[%s3206_s12 + $0x68] sm:$0xff] %v2370_v25   ;;  %v2450_v24 = vpack.c.bf16 %v1221_v42, %v1220_v23  ;;  %v1187_v1 = vsel %vm867_vm6, %v3498_v5, %v2115_v34  ;;  %v2147_v28 = vadd.f32 -1.0, %v2844_v36  ;;  %2857 = vpow2.f32 %v1028_v20 }
 0x154   : > { %v2365_v17 = vpack.c.bf16 %v1187_v1, %v1186_v51  ;;  %2859 = vpow2.f32 %v1092_v27  ;;  %vm872_vm9 = vcmp.gt.f32.partialorder %v3513_v10, 0.0  ;;  %vm873_vm10 = vcmp.gt.f32.partialorder %v3548_v62, 0.0 }
 0x155   : > { %2490 = vst [vmem:[%s3206_s12 + $0xe8] sm:$0xff] %v2450_v24   ;;  %v1219_v39 = vsel %vm899_vm8, %v3510_v7, %v2147_v28  ;;  %vm904_vm11 = vcmp.gt.f32.partialorder %v3532_v54, 0.0  ;;  %vm870_vm12 = vcmp.gt.f32.partialorder %v3535_v35, 0.0  ;;  %vm902_vm13 = vcmp.gt.f32.partialorder %v3540_v41, 0.0 }
 0x156   : > { %2473 = vst [vmem:[%s3206_s12 + $0x60] sm:$0xff] %v2365_v17   ;;  %v2445_v37 = vpack.c.bf16 %v1219_v39, %v1218_v0  ;;  %v2846_v57 = vpop.eup %2845  ;;  %vm905_vm14 = vcmp.gt.f32.partialorder %v3558_v4, 0.0  ;;  %vm871_vm15 = vcmp.gt.f32.partialorder %v3560_v11, 0.0  ;;  %vm903_vm0 = vcmp.gt.f32.partialorder %v3563_v13, 0.0 }
 0x157   : > { %v2120_v5 = vadd.f32 -1.0, %v2846_v57 }
 0x158   : > { %2489 = vst [vmem:[%s3206_s12 + $0xe0] sm:$0xff] %v2445_v37  }
 0x159   : > { %v2848_v30 = vpop.eup %2847  ;;  %v1192_v29 = vsel %vm872_vm9, %v3513_v10, %v2120_v5 }
 0x15a   : > { %v2850_v60 = vpop.eup %2849  ;;  %v2152_v43 = vadd.f32 -1.0, %v2848_v30 }
 0x15b   : > { %v2852_v32 = vpop.eup %2851  ;;  %v2121_v61 = vadd.f32 -1.0, %v2850_v60 }
 0x15c   : > { %v2854_v53 = vpop.eup %2853  ;;  %v2118_v48 = vadd.f32 -1.0, %v2852_v32 }
 0x15d   : > { %v1193_v7 = vsel %vm873_vm10, %v3548_v62, %v2121_v61  ;;  %v2150_v55 = vadd.f32 -1.0, %v2854_v53  ;;  %v1224_v62 = vsel %vm904_vm11, %v3532_v54, %v2152_v43 }
 0x15e   : > { %v2380_v47 = vpack.c.bf16 %v1193_v7, %v1192_v29  ;;  %v1190_v2 = vsel %vm870_vm12, %v3535_v35, %v2118_v48 }
 0x15f   : > { %v2856_v46 = vpop.eup %2855  ;;  %v1222_v59 = vsel %vm902_vm13, %v3540_v41, %v2150_v55 }
 0x160   : > { %v2858_v49 = vpop.eup %2857  ;;  %2476 = vst [vmem:[%s3206_s12 + $0x78] sm:$0xff] %v2380_v47   ;;  %v2153_v56 = vadd.f32 -1.0, %v2856_v46 }
 0x161   : > { %v2860_v52 = vpop.eup %2859  ;;  %v2119_v10 = vadd.f32 -1.0, %v2858_v49 }
 0x162   : > { %v1225_v58 = vsel %vm905_vm14, %v3558_v4, %v2153_v56  ;;  %v2151_v6 = vadd.f32 -1.0, %v2860_v52 }
 0x163   : > { %v2460_v50 = vpack.c.bf16 %v1225_v58, %v1224_v62  ;;  %v1191_v8 = vsel %vm871_vm15, %v3560_v11, %v2119_v10  ;;  %1552 = sbr.rel (!%p2995_p4) target bundleno = 441 (0x1b9), region = 36 }
 0x164   : > { %v2375_v31 = vpack.c.bf16 %v1191_v8, %v1190_v2  ;;  %v1223_v63 = vsel %vm903_vm0, %v3563_v13, %v2151_v6 }
 0x165   : > { %2492 = vst [vmem:[%s3206_s12 + $0xf8] sm:$0xff] %v2460_v50   ;;  %v2455_v3 = vpack.c.bf16 %v1223_v63, %v1222_v59 }
 0x166   : > { %2475 = vst [vmem:[%s3206_s12 + $0x70] sm:$0xff] %v2375_v31  }
 0x167   : > { %2491 = vst [vmem:[%s3206_s12 + $0xf0] sm:$0xff] %v2455_v3  }
 0x168   : > { %s3825_s18 = smov (!%p1555_p8, %s1554_s18), 64 }
 0x169   : > { %s2220_s26 = sshll.u32 %s3825_s18, 6 }
 0x16a   : > { %p2223_p9 = scmp.eq.s32.totalorder %s2220_s26, 0 }
 0x16b   : > { %s3627_s27 = sshrl.u32 (!%p2223_p9), %s3825_s18, 6 }
 0x16c   : > { %1563 = sbr.rel (%p2223_p9) target bundleno = 441 (0x1b9), region = 40  ;;  %p2224_p10 = scmp.le.s32.totalorder (!%p2223_p9), %s3627_s27, 0 }
 0x171   : > { %1970 = sbr.rel (%p2224_p10) target bundleno = 424 (0x1a8), region = 112  ;;  %s3818_s15 = smov (!%p2224_p10), %s3621_s25 }
 0x172   : > { %s3819_s20 = smov (!%p2224_p10), %s3206_s12  ;;  %s3636_s23 = smov (!%p2224_p10), 0  }
 0x173   : > { %s3638_s28 = smov (!%p2224_p10), 0  }
 0x176 LB: >> { %v1580_v54 = vld [vmem:[%s2924_s20] sm:$0xf]  ;;  %v1582_v35 = vld [vmem:[%s2924_s20 + $0x4] sm:$0xf]  ;;  %v1584_v41 = vld [vmem:[%s2924_s20 + $0x8] sm:$0xf]  ;;  %s2932_s28 = sphi %s3638_s28, %s1574_s28   ;;  %s2928_s23 = sphi %s3636_s23, %s3820_s23   ;;  %s2924_s20 = sphi %s3819_s20, %s1713_s20   ;;  %s2920_s15 = sphi %s3818_s15, %s1714_s15  }
 0x177   : >> { %1581 = vst [vmem:[%s2920_s15] sm:$0xf] %v1580_v54  ;;  %1583 = vst [vmem:[%s2920_s15 + $0x4] sm:$0xf] %v1582_v35  ;;  %v1586_v38 = vld [vmem:[%s2924_s20 + $0xc] sm:$0xf]  ;;  %s1708_s29 = sadd.s32 1, %s2928_s23 }
 0x178   : >> { %1585 = vst [vmem:[%s2920_s15 + $0x8] sm:$0xf] %v1584_v41  ;;  %v1588_v4 = vld [vmem:[%s2924_s20 + $0x10] sm:$0xf]  ;;  %v1590_v11 = vld [vmem:[%s2924_s20 + $0x14] sm:$0xf]  ;;  %p1709_p11 = scmp.ge.s32.totalorder %s1708_s29, %s3627_s27 }
 0x179   : >> { %1587 = vst [vmem:[%s2920_s15 + $0xc] sm:$0xf] %v1586_v38  ;;  %1589 = vst [vmem:[%s2920_s15 + $0x10] sm:$0xf] %v1588_v4  ;;  %v1592_v22 = vld [vmem:[%s2924_s20 + $0x18] sm:$0xf] }
 0x17a   : >> { %1591 = vst [vmem:[%s2920_s15 + $0x14] sm:$0xf] %v1590_v11  ;;  %v1594_v12 = vld [vmem:[%s2924_s20 + $0x1c] sm:$0xf]  ;;  %v1596_v13 = vld [vmem:[%s2924_s20 + $0x20] sm:$0xf] }
 0x17b   : >> { %1593 = vst [vmem:[%s2920_s15 + $0x18] sm:$0xf] %v1592_v22  ;;  %1595 = vst [vmem:[%s2920_s15 + $0x1c] sm:$0xf] %v1594_v12  ;;  %v1598_v21 = vld [vmem:[%s2924_s20 + $0x24] sm:$0xf] }
 0x17c   : >> { %1597 = vst [vmem:[%s2920_s15 + $0x20] sm:$0xf] %v1596_v13  ;;  %v1600_v14 = vld [vmem:[%s2924_s20 + $0x28] sm:$0xf]  ;;  %v1602_v18 = vld [vmem:[%s2924_s20 + $0x2c] sm:$0xf] }
 0x17d   : >> { %1599 = vst [vmem:[%s2920_s15 + $0x24] sm:$0xf] %v1598_v21  ;;  %1601 = vst [vmem:[%s2920_s15 + $0x28] sm:$0xf] %v1600_v14  ;;  %v1604_v15 = vld [vmem:[%s2924_s20 + $0x30] sm:$0xf] }
 0x17e   : >> { %1603 = vst [vmem:[%s2920_s15 + $0x2c] sm:$0xf] %v1602_v18  ;;  %v1606_v16 = vld [vmem:[%s2924_s20 + $0x34] sm:$0xf]  ;;  %v1608_v26 = vld [vmem:[%s2924_s20 + $0x38] sm:$0xf] }
 0x17f   : >> { %1605 = vst [vmem:[%s2920_s15 + $0x30] sm:$0xf] %v1604_v15  ;;  %1607 = vst [vmem:[%s2920_s15 + $0x34] sm:$0xf] %v1606_v16  ;;  %v1610_v44 = vld [vmem:[%s2924_s20 + $0x3c] sm:$0xf] }
 0x180   : >> { %1609 = vst [vmem:[%s2920_s15 + $0x38] sm:$0xf] %v1608_v26  ;;  %v1612_v19 = vld [vmem:[%s2924_s20 + $0x40] sm:$0xf]  ;;  %v1614_v9 = vld [vmem:[%s2924_s20 + $0x44] sm:$0xf] }
 0x181   : >> { %1611 = vst [vmem:[%s2920_s15 + $0x3c] sm:$0xf] %v1610_v44  ;;  %1613 = vst [vmem:[%s2920_s15 + $0x40] sm:$0xf] %v1612_v19  ;;  %v1616_v45 = vld [vmem:[%s2924_s20 + $0x48] sm:$0xf] }
 0x182   : >> { %1615 = vst [vmem:[%s2920_s15 + $0x44] sm:$0xf] %v1614_v9  ;;  %v1618_v40 = vld [vmem:[%s2924_s20 + $0x4c] sm:$0xf]  ;;  %v1620_v25 = vld [vmem:[%s2924_s20 + $0x50] sm:$0xf] }
 0x183   : >> { %1617 = vst [vmem:[%s2920_s15 + $0x48] sm:$0xf] %v1616_v45  ;;  %1619 = vst [vmem:[%s2920_s15 + $0x4c] sm:$0xf] %v1618_v40  ;;  %v1622_v34 = vld [vmem:[%s2924_s20 + $0x54] sm:$0xf] }
 0x184   : >> { %1621 = vst [vmem:[%s2920_s15 + $0x50] sm:$0xf] %v1620_v25  ;;  %v1624_v33 = vld [vmem:[%s2924_s20 + $0x58] sm:$0xf]  ;;  %v1626_v20 = vld [vmem:[%s2924_s20 + $0x5c] sm:$0xf] }
 0x185   : >> { %1623 = vst [vmem:[%s2920_s15 + $0x54] sm:$0xf] %v1622_v34  ;;  %1625 = vst [vmem:[%s2920_s15 + $0x58] sm:$0xf] %v1624_v33  ;;  %v1628_v36 = vld [vmem:[%s2924_s20 + $0x60] sm:$0xf] }
 0x186   : >> { %1627 = vst [vmem:[%s2920_s15 + $0x5c] sm:$0xf] %v1626_v20  ;;  %v1630_v23 = vld [vmem:[%s2924_s20 + $0x64] sm:$0xf]  ;;  %v1632_v51 = vld [vmem:[%s2924_s20 + $0x68] sm:$0xf] }
 0x187   : >> { %1629 = vst [vmem:[%s2920_s15 + $0x60] sm:$0xf] %v1628_v36  ;;  %1631 = vst [vmem:[%s2920_s15 + $0x64] sm:$0xf] %v1630_v23  ;;  %v1634_v42 = vld [vmem:[%s2924_s20 + $0x6c] sm:$0xf] }
 0x188   : >> { %1633 = vst [vmem:[%s2920_s15 + $0x68] sm:$0xf] %v1632_v51  ;;  %v1636_v27 = vld [vmem:[%s2924_s20 + $0x70] sm:$0xf]  ;;  %v1638_v24 = vld [vmem:[%s2924_s20 + $0x74] sm:$0xf] }
 0x189   : >> { %1635 = vst [vmem:[%s2920_s15 + $0x6c] sm:$0xf] %v1634_v42  ;;  %1637 = vst [vmem:[%s2920_s15 + $0x70] sm:$0xf] %v1636_v27  ;;  %v1640_v1 = vld [vmem:[%s2924_s20 + $0x78] sm:$0xf] }
 0x18a   : >> { %1639 = vst [vmem:[%s2920_s15 + $0x74] sm:$0xf] %v1638_v24  ;;  %v1642_v28 = vld [vmem:[%s2924_s20 + $0x7c] sm:$0xf]  ;;  %v1644_v17 = vld [vmem:[%s2924_s20 + $0x80] sm:$0xf] }
 0x18b   : >> { %1641 = vst [vmem:[%s2920_s15 + $0x78] sm:$0xf] %v1640_v1  ;;  %1643 = vst [vmem:[%s2920_s15 + $0x7c] sm:$0xf] %v1642_v28  ;;  %v1646_v0 = vld [vmem:[%s2924_s20 + $0x84] sm:$0xf] }
 0x18c   : >> { %1645 = vst [vmem:[%s2920_s15 + $0x80] sm:$0xf] %v1644_v17  ;;  %v1648_v39 = vld [vmem:[%s2924_s20 + $0x88] sm:$0xf]  ;;  %v1650_v37 = vld [vmem:[%s2924_s20 + $0x8c] sm:$0xf] }
 0x18d   : >> { %1647 = vst [vmem:[%s2920_s15 + $0x84] sm:$0xf] %v1646_v0  ;;  %1649 = vst [vmem:[%s2920_s15 + $0x88] sm:$0xf] %v1648_v39  ;;  %v1652_v57 = vld [vmem:[%s2924_s20 + $0x90] sm:$0xf] }
 0x18e   : >> { %1651 = vst [vmem:[%s2920_s15 + $0x8c] sm:$0xf] %v1650_v37  ;;  %v1654_v30 = vld [vmem:[%s2924_s20 + $0x94] sm:$0xf]  ;;  %v1656_v5 = vld [vmem:[%s2924_s20 + $0x98] sm:$0xf] }
 0x18f   : >> { %1653 = vst [vmem:[%s2920_s15 + $0x90] sm:$0xf] %v1652_v57  ;;  %1655 = vst [vmem:[%s2920_s15 + $0x94] sm:$0xf] %v1654_v30  ;;  %v1658_v60 = vld [vmem:[%s2924_s20 + $0x9c] sm:$0xf] }
 0x190   : >> { %1657 = vst [vmem:[%s2920_s15 + $0x98] sm:$0xf] %v1656_v5  ;;  %v1660_v32 = vld [vmem:[%s2924_s20 + $0xa0] sm:$0xf]  ;;  %v1662_v61 = vld [vmem:[%s2924_s20 + $0xa4] sm:$0xf] }
 0x191   : >> { %1659 = vst [vmem:[%s2920_s15 + $0x9c] sm:$0xf] %v1658_v60  ;;  %1661 = vst [vmem:[%s2920_s15 + $0xa0] sm:$0xf] %v1660_v32  ;;  %v1664_v53 = vld [vmem:[%s2924_s20 + $0xa8] sm:$0xf] }
 0x192   : >> { %1663 = vst [vmem:[%s2920_s15 + $0xa4] sm:$0xf] %v1662_v61  ;;  %v1666_v29 = vld [vmem:[%s2924_s20 + $0xac] sm:$0xf]  ;;  %v1668_v7 = vld [vmem:[%s2924_s20 + $0xb0] sm:$0xf] }
 0x193   : >> { %1665 = vst [vmem:[%s2920_s15 + $0xa8] sm:$0xf] %v1664_v53  ;;  %1667 = vst [vmem:[%s2920_s15 + $0xac] sm:$0xf] %v1666_v29  ;;  %v1670_v43 = vld [vmem:[%s2924_s20 + $0xb4] sm:$0xf] }
 0x194   : >> { %1669 = vst [vmem:[%s2920_s15 + $0xb0] sm:$0xf] %v1668_v7  ;;  %v1672_v47 = vld [vmem:[%s2924_s20 + $0xb8] sm:$0xf]  ;;  %v1674_v46 = vld [vmem:[%s2924_s20 + $0xbc] sm:$0xf] }
 0x195   : >> { %1671 = vst [vmem:[%s2920_s15 + $0xb4] sm:$0xf] %v1670_v43  ;;  %1673 = vst [vmem:[%s2920_s15 + $0xb8] sm:$0xf] %v1672_v47  ;;  %v1676_v48 = vld [vmem:[%s2924_s20 + $0xc0] sm:$0xf] }
 0x196   : >> { %1675 = vst [vmem:[%s2920_s15 + $0xbc] sm:$0xf] %v1674_v46  ;;  %v1678_v49 = vld [vmem:[%s2924_s20 + $0xc4] sm:$0xf]  ;;  %v1680_v55 = vld [vmem:[%s2924_s20 + $0xc8] sm:$0xf] }
 0x197   : >> { %1677 = vst [vmem:[%s2920_s15 + $0xc0] sm:$0xf] %v1676_v48  ;;  %1679 = vst [vmem:[%s2920_s15 + $0xc4] sm:$0xf] %v1678_v49  ;;  %v1682_v56 = vld [vmem:[%s2924_s20 + $0xcc] sm:$0xf] }
 0x198   : >> { %1681 = vst [vmem:[%s2920_s15 + $0xc8] sm:$0xf] %v1680_v55  ;;  %v1684_v52 = vld [vmem:[%s2924_s20 + $0xd0] sm:$0xf]  ;;  %v1686_v10 = vld [vmem:[%s2924_s20 + $0xd4] sm:$0xf] }
 0x199   : >> { %1683 = vst [vmem:[%s2920_s15 + $0xcc] sm:$0xf] %v1682_v56  ;;  %1685 = vst [vmem:[%s2920_s15 + $0xd0] sm:$0xf] %v1684_v52  ;;  %v1688_v62 = vld [vmem:[%s2924_s20 + $0xd8] sm:$0xf] }
 0x19a   : >> { %1687 = vst [vmem:[%s2920_s15 + $0xd4] sm:$0xf] %v1686_v10  ;;  %v1690_v58 = vld [vmem:[%s2924_s20 + $0xdc] sm:$0xf]  ;;  %v1692_v6 = vld [vmem:[%s2924_s20 + $0xe0] sm:$0xf] }
 0x19b   : >> { %1689 = vst [vmem:[%s2920_s15 + $0xd8] sm:$0xf] %v1688_v62  ;;  %1691 = vst [vmem:[%s2920_s15 + $0xdc] sm:$0xf] %v1690_v58  ;;  %v1694_v2 = vld [vmem:[%s2924_s20 + $0xe4] sm:$0xf] }
 0x19c   : >> { %1693 = vst [vmem:[%s2920_s15 + $0xe0] sm:$0xf] %v1692_v6  ;;  %v1696_v50 = vld [vmem:[%s2924_s20 + $0xe8] sm:$0xf]  ;;  %v1698_v8 = vld [vmem:[%s2924_s20 + $0xec] sm:$0xf] }
 0x19d   : >> { %1695 = vst [vmem:[%s2920_s15 + $0xe4] sm:$0xf] %v1694_v2  ;;  %1697 = vst [vmem:[%s2920_s15 + $0xe8] sm:$0xf] %v1696_v50  ;;  %v1700_v59 = vld [vmem:[%s2924_s20 + $0xf0] sm:$0xf] }
 0x19e   : >> { %1699 = vst [vmem:[%s2920_s15 + $0xec] sm:$0xf] %v1698_v8  ;;  %v1702_v31 = vld [vmem:[%s2924_s20 + $0xf4] sm:$0xf]  ;;  %v1704_v63 = vld [vmem:[%s2924_s20 + $0xf8] sm:$0xf] }
 0x19f   : >> { %1701 = vst [vmem:[%s2920_s15 + $0xf0] sm:$0xf] %v1700_v59  ;;  %1703 = vst [vmem:[%s2920_s15 + $0xf4] sm:$0xf] %v1702_v31  ;;  %v1706_v3 = vld [vmem:[%s2924_s20 + $0xfc] sm:$0xf] }
 0x1a0   : >> { %1705 = vst [vmem:[%s2920_s15 + $0xf8] sm:$0xf] %v1704_v63  ;;  %1707 = vst [vmem:[%s2920_s15 + $0xfc] sm:$0xf] %v1706_v3  ;;  %s3827_s29 = smov (%p1709_p11, %s1708_s29), 0  ;;  %s1574_s28 = sadd.s32 1, %s2932_s28  }
 0x1a1   : >> { %s2225_s30 = sshll.u32 %s3827_s29, 8  ;;  %p1573_p12 = scmp.ge.s32.totalorder %s1574_s28, %s3627_s27 }
 0x1a2   : >> { %s1713_s20 = scalar_lea.vmem %s3206_s12, %s2225_s30 [#allocation2]   ;;  %s1714_s15 = scalar_lea.vmem %s3621_s25, %s2225_s30  }
 0x1a3   : >> { %s3820_s23 = smov %s3827_s29  ;;  %1576 = sbr.rel (!%p1573_p12) target bundleno = 374 (0x176), region = 118 }
 0x1a8 PF: > { %s3795_s4 = sand.u32 63, %s3825_s18   ;;  %s2300_s5 = sshll.u32 %s3627_s27, 8 }
 0x1a9   : > { %s1719_s6 = scalar_lea.vmem %s3206_s12, %s2300_s5 [#allocation2]   ;;  %s1721_s7 = scalar_lea.vmem %s3621_s25, %s2300_s5  }
 0x1aa   : > { %p2230_p13 = scmp.le.s32.totalorder %s3795_s4, 0 }
 0x1ab   : > { %s2934_s8 = smov (!%p2230_p13), %s1721_s7   ;;  %s2938_s9 = smov (!%p2230_p13), %s1719_s6  }
 0x1ac   : > { %1984 = sbr.rel (%p2230_p13) target bundleno = 441 (0x1b9), region = 123  ;;  %s2942_s10 = smov (!%p2230_p13), 0  }
 0x1ad   : > { %s2946_s11 = smov (!%p2230_p13), 0  }
 0x1b1 LB: >> { %v1731_v54 = vld [vmem:[%s2940_s9] sm:$0xf]  ;;  %s1733_s14 = sadd.s32 1, %s2944_s10  ;;  %s1725_s11 = sadd.s32 1, %s2948_s11   ;;  %s2948_s11 = sphi %s2946_s11, %s1725_s11   ;;  %s2944_s10 = sphi %s2942_s10, %s2943_s10   ;;  %s2940_s9 = sphi %s2938_s9, %s1738_s9   ;;  %s2936_s8 = sphi %s2934_s8, %s1739_s8  }
 0x1b2   : >> { %1732 = vst [vmem:[%s2936_s8] sm:$0xf] %v1731_v54  ;;  %p1734_p0 = scmp.ge.s32.totalorder %s1733_s14, %s3795_s4  ;;  %p1724_p1 = scmp.ge.s32.totalorder %s1725_s11, %s3795_s4 }
 0x1b4   : >> { %s3829_s14 = smov (%p1734_p0, %s1733_s14), 0  ;;  %1727 = sbr.rel (!%p1724_p1) target bundleno = 433 (0x1b1), region = 129 }
 0x1b5   : >> { %s2231_s12 = sshll.u32 %s3829_s14, 2  ;;  %s2943_s10 = smov %s3829_s14  }
 0x1b6   : >> { %s1738_s9 = scalar_lea.vmem %s1719_s6, %s2231_s12 [#allocation2]   ;;  %s1739_s8 = scalar_lea.vmem %s1721_s7, %s2231_s12  }
 0x1b9 PF: > { %p10_p2 = scmp.ge.s32.totalorder %s2985_s16, 8   ;;  %s3821_s12 = smov %s2912_s13 }
 0x1ba   : > { %s3822_s13 = smov %s2993_s19  ;;  %s3823_s14 = smov %s2985_s16 }
 0x1bb   :  { %12 = sbr.rel (!%p10_p2) target bundleno = 2 (0x2), region = 140 }

// kernel: sac_actor_forward.5
= control target key start
LH: loop header
LB: loop body
LE: loop exit
PB: predicated region body
PF: predicated region fallthrough
CT: control target
= control target key end

     0   :  { %s6070_s12 = smov 0   ;;  %s6072_s13 = smov 0   ;;  %s7653_s0 = inlined_call_operand.vmem [shape: bf16[578,1568], index: 0, kind: input, shape index: {}]   ;;  %s7654_s1 = inlined_call_operand.vmem [shape: bf16[1568,128], index: 1, kind: input, shape index: {}]   ;;  %s7655_s2 = inlined_call_operand.vmem [shape: f32[1,128], index: 2, kind: input, shape index: {}]   ;;  %s7656_s3 = inlined_call_operand.vmem [shape: bf16[578,128], index: 3, kind: output, shape index: {}]  }
   0x1   :  { %s6074_s14 = smov 0  }
   0x2 LB: > { %s6083_s15 = sadd.s32 4294967295, %s6016_s14   ;;  %s6085_s16 = sadd.s32 1, %s6016_s14   ;;  %s6016_s14 = sphi %s6074_s14, %s7683_s14   ;;  %s6012_s13 = sphi %s6072_s13, %s7682_s13   ;;  %s6008_s12 = sphi %s6070_s12, %s7681_s12  }
   0x3   : > { %s85_s17 = ssub.s32 %s6016_s14, %s6085_s16  ;;  %s88_s18 = sadd.s32 1, %s6012_s13 }
   0x4   : > { %p86_p0 = scmp.eq.s32.totalorder %s85_s17, 0  ;;  %p98_p1 = scmp.ne.s32.totalorder %s6012_s13, %s6008_s12 }
   0x5   : > { %p99_p2 = scmp.eq.s32.totalorder %s6083_s15, 2  ;;  %p4127_p3 = scmp.ge.s32.totalorder %s6016_s14, 1 }
   0x6   : > { %s6093_s19 = scalar_select %p86_p0, %s6012_s13, %s88_s18  }
   0x7   : > { %p6095_p4 = por %p99_p2, %p98_p1  ;;  %p149_p5 = scmp.lt.s32.totalorder %s6016_s14, 4 }
   0x9   : > { %p150_p6 = pnand %p4127_p3, %p149_p5 }
   0xb   : > { %153 = sbr.rel (%p150_p6) target bundleno = 746 (0x2ea), region = 32 }
  0x10   : > { %v5496_v0 = vld [vmem:[%s7654_s1 + $0x78] sm:$0xff]   ;;  %s6103_s23 = sshll.u32 %s6083_s15, 5  ;;  %v5498_v2 = vld [vmem:[%s7654_s1 + $0x70] sm:$0xff]   ;;  %v5500_v4 = vld [vmem:[%s7654_s1 + $0x68] sm:$0xff]   ;;  %vm2256_vm0 = vcmask 261120   ;;  %s4567_s9 = sshll.u32 (%p6095_p4), %s6083_s15, 7 }
  0x11   : > { %v5497_v1 = vld [vmem:[%s7654_s1 + $0x38] sm:$0xff]   ;;  %4665 = vmatprep.subr.bf16.mxu0 %v5496_v0  ;;  %5391 = vmatprep.subr.bf16.mxu1 %v5496_v0  ;;  %p184_p7 = scmp.lt.s32.totalorder %s6103_s23, 72  ;;  %v5499_v3 = vld [vmem:[%s7654_s1 + $0x30] sm:$0xff]   ;;  %v5501_v5 = vld [vmem:[%s7654_s1 + $0x28] sm:$0xff]   ;;  %s3792_s8 = ssub.s32 (%p6095_p4), 73, %s6103_s23 }
  0x12   : > { %4666 = vmatpush3.bf16.msra.mxu0 %v5497_v1  ;;  %5399 = vmatpush3.bf16.msra.mxu1 %v5497_v1  ;;  %v5502_v6 = vld [vmem:[%s7654_s1 + $0x60] sm:$0xff]   ;;  %v5504_v8 = vld [vmem:[%s7654_s1 + $0x58] sm:$0xff]   ;;  %v5506_v10 = vld [vmem:[%s7654_s1 + $0x50] sm:$0xff]   ;;  %p3793_p8 = scmp.lt.s32.totalorder (%p6095_p4), %s3792_s8, 32  ;;  %s7525_s14 = scalar_lea.vmem (%p6095_p4), %s7656_s3, %s4567_s9  }
  0x13   : > { %4667 = vmatprep.subr.bf16.mxu0 %v5498_v2  ;;  %5392 = vmatprep.subr.bf16.mxu1 %v5498_v2  ;;  %s185_s5 = scalar_select %p184_p7, %s6103_s23, 72  ;;  %v5503_v7 = vld [vmem:[%s7654_s1 + $0x20] sm:$0xff]   ;;  %v5505_v9 = vld [vmem:[%s7654_s1 + $0x18] sm:$0xff]   ;;  %v5507_v13 = vld [vmem:[%s7654_s1 + $0x10] sm:$0xff]  }
  0x14   : > { %v5508_v14 = vld [vmem:[%s7654_s1 + $0x48] sm:$0xff]   ;;  %v5510_v16 = vld [vmem:[%s7654_s1 + $0x40] sm:$0xff]   ;;  %v5518_v18 = vld [vmem:[%s7654_s1 + $0xf8] sm:$0xff]  }
  0x15   : > { %s5407_s10 = smul.u32 52, %s185_s5  ;;  %v5509_v15 = vld [vmem:[%s7654_s1 + $0x8] sm:$0xff]   ;;  %v5511_v17 = vld [vmem:[%s7654_s1] sm:$0xff]   ;;  %v5521_v21 = vld [vmem:[%s7654_s1 + $0x178] sm:$0xff]  }
  0x16   : > { %4668 = vmatpush3.bf16.msra.mxu0 %v5499_v3  ;;  %5400 = vmatpush3.bf16.msra.mxu1 %v5499_v3  ;;  %v5519_v22 = vld [vmem:[%s7654_s1 + $0xb8] sm:$0xff]   ;;  %v5520_v23 = vld [vmem:[%s7654_s1 + $0xf0] sm:$0xff]   ;;  %v5530_v31 = vld [vmem:[%s7654_s1 + $0xe8] sm:$0xff]  }
  0x17   : > { %4669 = vmatprep.subr.bf16.mxu0 %v5500_v4  ;;  %5393 = vmatprep.subr.bf16.mxu1 %v5500_v4  ;;  %s6134_s24 = scalar_lea.vmem %s7653_s0, %s5407_s10  ;;  %v5523_v24 = vld [vmem:[%s7654_s1 + $0x138] sm:$0xff]   ;;  %v5522_v27 = vld [vmem:[%s7654_s1 + $0xb0] sm:$0xff]   ;;  %v5531_v32 = vld [vmem:[%s7654_s1 + $0xa8] sm:$0xff]  }
  0x18   : > { %v5514_v11 = vld [vmem:[%s6134_s24 + $0x4] ss:$52 sps:$4 sm:$0xff]   ;;  %v5512_v19 = vld [vmem:[%s6134_s24] ss:$52 sps:$4 sm:$0xff]   ;;  %v5528_v29 = vld [vmem:[%s6134_s24 + $0x68] ss:$52 sps:$4 sm:$0xff]  }
  0x19   : > { %v5517_v12 = vld [vmem:[%s6134_s24 + $0x4e4] ss:$52 sps:$4 sm:$0xff]   ;;  %2337 = vmatprep.mubr.bf16.mxu0 %v5514_v11  ;;  %v5515_v20 = vld [vmem:[%s6134_s24 + $0x4e0] ss:$52 sps:$4 sm:$0xff]   ;;  %v5529_v30 = vld [vmem:[%s6134_s24 + $0x548] ss:$52 sps:$4 sm:$0xff]  }
  0x1a   : > { %4670 = vmatpush3.bf16.msra.mxu0 %v5501_v5  ;;  %5401 = vmatpush3.bf16.msra.mxu1 %v5501_v5  ;;  %v5524_v25 = vld [vmem:[%s6134_s24 + $0x6c] ss:$52 sps:$4 sm:$0xff]   ;;  %v5541_v28 = vld [vmem:[%s7654_s1 + $0x170] sm:$0xff]   ;;  %v5540_v40 = vld [vmem:[%s7654_s1 + $0xd8] sm:$0xff]  }
  0x1b   : > { %4671 = vmatprep.subr.bf16.mxu0 %v5502_v6  ;;  %5394 = vmatprep.subr.bf16.mxu1 %v5502_v6  ;;  %v5526_v26 = vld [vmem:[%s6134_s24 + $0x54c] ss:$52 sps:$4 sm:$0xff]   ;;  %v5543_v33 = vld [vmem:[%s7654_s1 + $0x130] sm:$0xff]   ;;  %v5542_v41 = vld [vmem:[%s7654_s1 + $0x98] sm:$0xff]  }
  0x1c   : > { %2433 = vmatprep.mubr.bf16.mxu1 %v5517_v12  ;;  %v5532_v34 = vld [vmem:[%s7654_s1 + $0xe0] sm:$0xff]   ;;  %v5534_v35 = vld [vmem:[%s6134_s24 + $0xd4] ss:$52 sps:$4 sm:$0xff]   ;;  %v5546_v44 = vld [vmem:[%s6134_s24 + $0x13c] ss:$52 sps:$4 sm:$0xff]  }
  0x1d   : > { %v5536_v36 = vld [vmem:[%s6134_s24 + $0x5b4] ss:$52 sps:$4 sm:$0xff]   ;;  %v5533_v37 = vld [vmem:[%s7654_s1 + $0xa0] sm:$0xff]   ;;  %v5548_v45 = vld [vmem:[%s6134_s24 + $0x61c] ss:$52 sps:$4 sm:$0xff]  }
  0x1e   : > { %4672 = vmatpush3.bf16.msra.mxu0 %v5503_v7  ;;  %5402 = vmatpush3.bf16.msra.mxu1 %v5503_v7  ;;  %v5538_v38 = vld [vmem:[%s6134_s24 + $0xd0] ss:$52 sps:$4 sm:$0xff]   ;;  %v5555_v43 = vld [vmem:[%s7654_s1 + $0x168] sm:$0xff]   ;;  %v5563_v59 = vld [vmem:[%s6134_s24 + $0x1a0] ss:$52 sps:$4 sm:$0xff]  }
  0x1f   : > { %4673 = vmatprep.subr.bf16.mxu0 %v5504_v8  ;;  %5395 = vmatprep.subr.bf16.mxu1 %v5504_v8  ;;  %v5539_v39 = vld [vmem:[%s6134_s24 + $0x5b0] ss:$52 sps:$4 sm:$0xff]   ;;  %v5557_v46 = vld [vmem:[%s7654_s1 + $0x128] sm:$0xff]   ;;  %v5564_v60 = vld [vmem:[%s7654_s1 + $0x1f8] sm:$0xff]  }
  0x20   : > { %v5544_v42 = vld [vmem:[%s7654_s1 + $0xd0] sm:$0xff]   ;;  %v5552_v48 = vld [vmem:[%s7654_s1 + $0xc8] sm:$0xff]   ;;  %v5554_v52 = vld [vmem:[%s7654_s1 + $0xc0] sm:$0xff]  }
  0x21   : > { %v5545_v47 = vld [vmem:[%s7654_s1 + $0x90] sm:$0xff]   ;;  %v5550_v49 = vld [vmem:[%s6134_s24 + $0x138] ss:$52 sps:$4 sm:$0xff]   ;;  %v5572_v55 = vld [vmem:[%s7654_s1 + $0x160] sm:$0xff]  }
  0x22   : > { %4674 = vmatpush3.bf16.msra.mxu0 %v5505_v9  ;;  %5403 = vmatpush3.bf16.msra.mxu1 %v5505_v9  ;;  %v5551_v50 = vld [vmem:[%s6134_s24 + $0x618] ss:$52 sps:$4 sm:$0xff]   ;;  %v5573_v56 = vld [vmem:[%s7654_s1 + $0x120] sm:$0xff]   ;;  %v5560_v58 = vld [vmem:[%s6134_s24 + $0x8] ss:$52 sps:$4 sm:$0xff]  }
  0x23   : > { %4675 = vmatprep.subr.bf16.mxu0 %v5506_v10  ;;  %5396 = vmatprep.subr.bf16.mxu1 %v5506_v10  ;;  %v5553_v51 = vld [vmem:[%s7654_s1 + $0x88] sm:$0xff]   ;;  %v5558_v53 = vld [vmem:[%s6134_s24 + $0x1a4] ss:$52 sps:$4 sm:$0xff]   ;;  %v5580_v1 = vld [vmem:[%s7654_s1 + $0x1f0] sm:$0xff]  }
  0x24   : > { %v5562_v54 = vld [vmem:[%s6134_s24 + $0xc] ss:$52 sps:$4 sm:$0xff]   ;;  %v5565_v61 = vld [vmem:[%s7654_s1 + $0x1b8] sm:$0xff]   ;;  %v5568_v63 = vld [vmem:[%s6134_s24 + $0x74] ss:$52 sps:$4 sm:$0xff]  }
  0x25   : > { %v5556_v57 = vld [vmem:[%s7654_s1 + $0x80] sm:$0xff]   ;;  %v5582_v0 = vld [vmem:[%s7654_s1 + $0x158] sm:$0xff]   ;;  %v5581_v3 = vld [vmem:[%s7654_s1 + $0x1b0] sm:$0xff]  }
  0x26   : > { %4676 = vmatpush3.bf16.msra.mxu0 %v5507_v13  ;;  %5404 = vmatpush3.bf16.msra.mxu1 %v5507_v13  ;;  %v5566_v62 = vld [vmem:[%s6134_s24 + $0x20c] ss:$52 sps:$4 sm:$0xff]   ;;  %v5583_v2 = vld [vmem:[%s7654_s1 + $0x118] sm:$0xff]   ;;  %v5571_v5 = vld [vmem:[%s6134_s24 + $0x70] ss:$52 sps:$4 sm:$0xff]  }
  0x27   : > { %4677 = vmatprep.subr.bf16.mxu0 %v5508_v14  ;;  %5397 = vmatprep.subr.bf16.mxu1 %v5508_v14  ;;  %v5570_v4 = vld [vmem:[%s6134_s24 + $0x208] ss:$52 sps:$4 sm:$0xff]   ;;  %v5596_v8 = vld [vmem:[%s7654_s1 + $0x150] sm:$0xff]   ;;  %v5579_v13 = vld [vmem:[%s6134_s24 + $0xd8] ss:$52 sps:$4 sm:$0xff]  }
  0x28   : > { %v5574_v6 = vld [vmem:[%s6134_s24 + $0x274] ss:$52 sps:$4 sm:$0xff]   ;;  %v5576_v7 = vld [vmem:[%s6134_s24 + $0xdc] ss:$52 sps:$4 sm:$0xff]  }
  0x29   : > { %v5597_v9 = vld [vmem:[%s7654_s1 + $0x1e8] sm:$0xff]   ;;  %v5598_v10 = vld [vmem:[%s7654_s1 + $0x110] sm:$0xff]  }
  0x2a   : > { %4678 = vmatpush3.bf16.msra.mxu0 %v5509_v15  ;;  %5405 = vmatpush3.bf16.msra.mxu1 %v5509_v15  ;;  %v5599_v11 = vld [vmem:[%s7654_s1 + $0x1a8] sm:$0xff]   ;;  %v5578_v12 = vld [vmem:[%s6134_s24 + $0x270] ss:$52 sps:$4 sm:$0xff]  }
  0x2b   : > { %4679 = vmatprep.subr.bf16.mxu0 %v5510_v16  ;;  %5398 = vmatprep.subr.bf16.mxu1 %v5510_v16  ;;  %v5584_v14 = vld [vmem:[%s6134_s24 + $0x2dc] ss:$52 sps:$4 sm:$0xff]   ;;  %v5606_v15 = vld [vmem:[%s7654_s1 + $0x148] sm:$0xff]  }
  0x2c   : > { %v5607_v16 = vld [vmem:[%s7654_s1 + $0x108] sm:$0xff]  }
  0x2e   : > { %4680 = vmatpush3.bf16.msra.mxu0 %v5511_v17  ;;  %5406 = vmatpush3.bf16.msra.mxu1 %v5511_v17  ;;  %v5586_v17 = vld [vmem:[%s6134_s24 + $0x144] ss:$52 sps:$4 sm:$0xff]  }
  0x2f   : > { %4777 = vmatprep.subr.bf16.mxu1 %v5518_v18  ;;  %4889 = vmatprep.subr.bf16.mxu0 %v5521_v21  ;;  %v5614_v18 = vld [vmem:[%s7654_s1 + $0x1e0] sm:$0xff]  }
  0x30   : > { %v5589_v21 = vld [vmem:[%s6134_s24 + $0x140] ss:$52 sps:$4 sm:$0xff]  }
  0x31   : > { %2338 = vmatmul.mubr.bf16.vlgmr.msra.gmra.mxu0 %v5512_v19  ;;  %2434 = vmatmul.mubr.bf16.vlgmr.msra.gmra.mxu1 %v5515_v20  ;;  %v5615_v19 = vld [vmem:[%s7654_s1 + $0x1a0] sm:$0xff]   ;;  %v5588_v20 = vld [vmem:[%s6134_s24 + $0x2d8] ss:$52 sps:$4 sm:$0xff]  }
  0x32   : > { %4778 = vmatpush3.bf16.msra.mxu1 %v5519_v22  ;;  %4890 = vmatpush3.bf16.msra.mxu0 %v5523_v24  ;;  %v5590_v22 = vld [vmem:[%s6134_s24 + $0x344] ss:$52 sps:$4 sm:$0xff]  }
  0x33   : > { %4779 = vmatprep.subr.bf16.mxu1 %v5520_v23  ;;  %2345 = vmatprep.mubr.bf16.mxu0 %v5524_v25  ;;  %v5592_v23 = vld [vmem:[%s6134_s24 + $0x1ac] ss:$52 sps:$4 sm:$0xff]  }
  0x34   : > { %2441 = vmatprep.mubr.bf16.mxu1 %v5526_v26  ;;  %4891 = vmatprep.subr.bf16.mxu0 %v5541_v28  ;;  %v5622_v24 = vld [vmem:[%s7654_s1 + $0x140] sm:$0xff]   ;;  %v5630_v26 = vld [vmem:[%s7654_s1 + $0x1d8] sm:$0xff]  }
  0x35   : > { %v5623_v25 = vld [vmem:[%s7654_s1 + $0x100] sm:$0xff]   ;;  %v5595_v28 = vld [vmem:[%s6134_s24 + $0x1a8] ss:$52 sps:$4 sm:$0xff]  }
  0x36   : > { %4780 = vmatpush3.bf16.msra.mxu1 %v5522_v27  ;;  %4892 = vmatpush3.bf16.msra.mxu0 %v5543_v33  ;;  %v5594_v27 = vld [vmem:[%s6134_s24 + $0x340] ss:$52 sps:$4 sm:$0xff]   ;;  %v5604_v33 = vld [vmem:[%s6134_s24 + $0x3a8] ss:$52 sps:$4 sm:$0xff]  }
  0x37   : > { %4781 = vmatprep.subr.bf16.mxu1 %v5530_v31  ;;  %4893 = vmatprep.subr.bf16.mxu0 %v5555_v43  ;;  %v5600_v31 = vld [vmem:[%s6134_s24 + $0x3ac] ss:$52 sps:$4 sm:$0xff]  }
  0x38   : > { %v5662_v43 = vld [vmem:[%s7654_s1 + $0x1c8] sm:$0xff]  }
  0x39   : > { %2346 = vmatmul.mubr.bf16.gmra.mxu0 %v5528_v29  ;;  %2442 = vmatmul.mubr.bf16.gmra.mxu1 %v5529_v30  ;;  %v5631_v29 = vld [vmem:[%s7654_s1 + $0x198] sm:$0xff]  }
  0x3a   : > { %4782 = vmatpush3.bf16.msra.mxu1 %v5531_v32  ;;  %2353 = vmatprep.mubr.bf16.mxu0 %v5534_v35  ;;  %v5632_v30 = vld [vmem:[%s7654_s1 + $0x278] sm:$0xff]   ;;  %v5602_v32 = vld [vmem:[%s6134_s24 + $0x214] ss:$52 sps:$4 sm:$0xff]  }
  0x3b   : > { %4783 = vmatprep.subr.bf16.mxu1 %v5532_v34  ;;  %2449 = vmatprep.mubr.bf16.mxu1 %v5536_v36  ;;  %v5605_v34 = vld [vmem:[%s6134_s24 + $0x210] ss:$52 sps:$4 sm:$0xff]  }
  0x3c   : > { %4894 = vmatpush3.bf16.msra.mxu0 %v5557_v46  ;;  %v5646_v35 = vld [vmem:[%s7654_s1 + $0x1d0] sm:$0xff]  }
  0x3d   : > { %4895 = vmatprep.subr.bf16.mxu0 %v5572_v55  ;;  %v5647_v36 = vld [vmem:[%s7654_s1 + $0x190] sm:$0xff]  }
  0x3e   : > { %4784 = vmatpush3.bf16.msra.mxu1 %v5533_v37  ;;  %v5608_v37 = vld [vmem:[%s6134_s24 + $0x414] ss:$52 sps:$4 sm:$0xff]   ;;  %v5636_v55 = vld [vmem:[%s6134_s24 + $0x7c] ss:$52 sps:$4 sm:$0xff]  }
  0x3f   : > { %4785 = vmatprep.subr.bf16.mxu1 %v5540_v40  ;;  %v5613_v40 = vld [vmem:[%s6134_s24 + $0x278] ss:$52 sps:$4 sm:$0xff]   ;;  %v5621_v46 = vld [vmem:[%s6134_s24 + $0x2e0] ss:$52 sps:$4 sm:$0xff]  }
  0x40   : > { %4896 = vmatpush3.bf16.msra.mxu0 %v5573_v56  ;;  %v5648_v56 = vld [vmem:[%s7654_s1 + $0x270] sm:$0xff]  }
  0x41   : > { %2354 = vmatmul.mubr.bf16.gmra.mxu0 %v5538_v38  ;;  %2450 = vmatmul.mubr.bf16.gmra.mxu1 %v5539_v39  ;;  %v5610_v38 = vld [vmem:[%s6134_s24 + $0x27c] ss:$52 sps:$4 sm:$0xff]  }
  0x42   : > { %4786 = vmatpush3.bf16.msra.mxu1 %v5542_v41  ;;  %2361 = vmatprep.mubr.bf16.mxu0 %v5546_v44  ;;  %v5612_v39 = vld [vmem:[%s6134_s24 + $0x410] ss:$52 sps:$4 sm:$0xff]   ;;  %v5663_v44 = vld [vmem:[%s7654_s1 + $0x188] sm:$0xff]  }
  0x43   : > { %4787 = vmatprep.subr.bf16.mxu1 %v5544_v42  ;;  %2457 = vmatprep.mubr.bf16.mxu1 %v5548_v45  ;;  %v5616_v41 = vld [vmem:[%s6134_s24 + $0x47c] ss:$52 sps:$4 sm:$0xff]   ;;  %v5618_v42 = vld [vmem:[%s6134_s24 + $0x2e4] ss:$52 sps:$4 sm:$0xff]  }
  0x44   : > { %4897 = vmatprep.subr.bf16.mxu0 %v5582_v0  ;;  %v5620_v45 = vld [vmem:[%s6134_s24 + $0x478] ss:$52 sps:$4 sm:$0xff]  }
  0x45   : > { %4898 = vmatpush3.bf16.msra.mxu0 %v5583_v2  ;;  %v5665_v0 = vld [vmem:[%s7654_s1 + $0x228] sm:$0xff]  }
  0x46   : > { %4788 = vmatpush3.bf16.msra.mxu1 %v5545_v47  ;;  %4899 = vmatprep.subr.bf16.mxu0 %v5596_v8  ;;  %v5624_v47 = vld [vmem:[%s6134_s24 + $0x34c] ss:$52 sps:$4 sm:$0xff]   ;;  %v5697_v8 = vld [vmem:[%s7654_s1 + $0x218] sm:$0xff]  }
  0x47   : > { %4789 = vmatprep.subr.bf16.mxu1 %v5552_v48  ;;  %v5628_v48 = vld [vmem:[%s6134_s24 + $0x14] ss:$52 sps:$4 sm:$0xff]   ;;  %v5644_v2 = vld [vmem:[%s6134_s24 + $0x418] ss:$52 sps:$4 sm:$0xff]  }
  0x49   : > { %2362 = vmatmul.mubr.bf16.gmra.mxu0 %v5550_v49  ;;  %2458 = vmatmul.mubr.bf16.gmra.mxu1 %v5551_v50  ;;  %v5678_v49 = vld [vmem:[%s7654_s1 + $0x1c0] sm:$0xff]  }
  0x4a   : > { %4790 = vmatpush3.bf16.msra.mxu1 %v5553_v51  ;;  %2369 = vmatprep.mubr.bf16.mxu0 %v5558_v53  ;;  %v5679_v50 = vld [vmem:[%s7654_s1 + $0x180] sm:$0xff]   ;;  %v5633_v53 = vld [vmem:[%s7654_s1 + $0x238] sm:$0xff]  }
  0x4b   : > { %4791 = vmatprep.subr.bf16.mxu1 %v5554_v52  ;;  %2498 = vmatprep.mubr.bf16.mxu1 %v5562_v54  ;;  %v5626_v51 = vld [vmem:[%s6134_s24 + $0x10] ss:$52 sps:$4 sm:$0xff]   ;;  %v5629_v52 = vld [vmem:[%s6134_s24 + $0x348] ss:$52 sps:$4 sm:$0xff]  }
  0x4c   : > { %4900 = vmatpush3.bf16.msra.mxu0 %v5598_v10  ;;  %v5634_v54 = vld [vmem:[%s6134_s24 + $0x3b4] ss:$52 sps:$4 sm:$0xff]  }
  0x4d   : > { %4901 = vmatprep.subr.bf16.mxu0 %v5606_v15  ;;  %v5654_v10 = vld [vmem:[%s6134_s24 + $0x480] ss:$52 sps:$4 sm:$0xff]  }
  0x4e   : > { %4792 = vmatpush3.bf16.msra.mxu1 %v5556_v57  ;;  %v5694_v57 = vld [vmem:[%s7654_s1 + $0x2f8] sm:$0xff]   ;;  %v5658_v15 = vld [vmem:[%s6134_s24 + $0x1b4] ss:$52 sps:$4 sm:$0xff]  }
  0x4f   : > { %5001 = vmatprep.subr.bf16.mxu1 %v5564_v60  ;;  %v5638_v60 = vld [vmem:[%s6134_s24 + $0x3b0] ss:$52 sps:$4 sm:$0xff]  }
  0x50   : > { %4902 = vmatpush3.bf16.msra.mxu0 %v5607_v16  ;;  %v5729_v16 = vld [vmem:[%s7654_s1 + $0x208] sm:$0xff]  }
  0x51   : > { %2370 = vmatmul.mubr.bf16.gmra.mxu0 %v5563_v59  ;;  %2499 = vmatmul.mubr.bf16.vlgmr.msra.gmra.mxu1 %v5560_v58  ;;  %v5649_v58 = vld [vmem:[%s7654_s1 + $0x230] sm:$0xff]   ;;  %v5664_v59 = vld [vmem:[%s7654_s1 + $0x268] sm:$0xff]  }
  0x52   : > { %5002 = vmatpush3.bf16.msra.mxu1 %v5565_v61  ;;  %2377 = vmatprep.mubr.bf16.mxu0 %v5566_v62  ;;  %v5639_v61 = vld [vmem:[%s6134_s24 + $0x78] ss:$52 sps:$4 sm:$0xff]   ;;  %v5640_v62 = vld [vmem:[%s6134_s24 + $0x41c] ss:$52 sps:$4 sm:$0xff]  }
  0x53   : > { %2506 = vmatprep.mubr.bf16.mxu1 %v5568_v63  ;;  %5003 = vmatprep.subr.bf16.mxu1 %v5580_v1  ;;  %v5642_v63 = vld [vmem:[%s6134_s24 + $0xe4] ss:$52 sps:$4 sm:$0xff]  }
  0x54   : > { %4903 = vmatprep.subr.bf16.mxu0 %v5622_v24  ;;  %v5680_v1 = vld [vmem:[%s7654_s1 + $0x260] sm:$0xff]   ;;  %v5671_v24 = vld [vmem:[%s6134_s24 + $0x218] ss:$52 sps:$4 sm:$0xff]  }
  0x55   : > { %4904 = vmatpush3.bf16.msra.mxu0 %v5623_v25  ;;  %v5672_v25 = vld [vmem:[%s6134_s24 + $0x5bc] ss:$52 sps:$4 sm:$0xff]  }
  0x56   : > { %5004 = vmatpush3.bf16.msra.mxu1 %v5581_v3  ;;  %5113 = vmatprep.subr.bf16.mxu0 %v5632_v30  ;;  %v5681_v3 = vld [vmem:[%s7654_s1 + $0x220] sm:$0xff]  }
  0x57   : > { %5005 = vmatprep.subr.bf16.mxu1 %v5597_v9  ;;  %v5712_v9 = vld [vmem:[%s7654_s1 + $0x250] sm:$0xff]   ;;  %v5682_v30 = vld [vmem:[%s6134_s24 + $0x624] ss:$52 sps:$4 sm:$0xff]  }
  0x59   : > { %2378 = vmatmul.mubr.bf16.gmra.mxu0 %v5570_v4  ;;  %2507 = vmatmul.mubr.bf16.gmra.mxu1 %v5571_v5  ;;  %v5696_v4 = vld [vmem:[%s7654_s1 + $0x258] sm:$0xff]   ;;  %v5645_v5 = vld [vmem:[%s6134_s24 + $0xe0] ss:$52 sps:$4 sm:$0xff]  }
  0x5a   : > { %2385 = vmatprep.mubr.bf16.mxu0 %v5574_v6  ;;  %2514 = vmatprep.mubr.bf16.mxu1 %v5576_v7  ;;  %v5650_v6 = vld [vmem:[%s6134_s24 + $0x484] ss:$52 sps:$4 sm:$0xff]   ;;  %v5652_v7 = vld [vmem:[%s6134_s24 + $0x14c] ss:$52 sps:$4 sm:$0xff]  }
  0x5b   : > { %5006 = vmatpush3.bf16.msra.mxu1 %v5599_v11  ;;  %v5655_v11 = vld [vmem:[%s6134_s24 + $0x148] ss:$52 sps:$4 sm:$0xff]  }
  0x5c   : > { %5007 = vmatprep.subr.bf16.mxu1 %v5614_v18  ;;  %v5661_v18 = vld [vmem:[%s6134_s24 + $0x1b0] ss:$52 sps:$4 sm:$0xff]  }
  0x5f   : > { %5008 = vmatpush3.bf16.msra.mxu1 %v5615_v19  ;;  %v5666_v19 = vld [vmem:[%s6134_s24 + $0x554] ss:$52 sps:$4 sm:$0xff]  }
  0x60   : > { %5009 = vmatprep.subr.bf16.mxu1 %v5630_v26  ;;  %v5674_v26 = vld [vmem:[%s6134_s24 + $0x284] ss:$52 sps:$4 sm:$0xff]  }
  0x61   : > { %2386 = vmatmul.mubr.bf16.gmra.mxu0 %v5578_v12  ;;  %2515 = vmatmul.mubr.bf16.gmra.mxu1 %v5579_v13  ;;  %v5713_v12 = vld [vmem:[%s7654_s1 + $0x210] sm:$0xff]   ;;  %v5728_v13 = vld [vmem:[%s7654_s1 + $0x248] sm:$0xff]  }
  0x62   : > { %2393 = vmatprep.mubr.bf16.mxu0 %v5584_v14  ;;  %2522 = vmatprep.mubr.bf16.mxu1 %v5586_v17  ;;  %v5656_v14 = vld [vmem:[%s6134_s24 + $0x4ec] ss:$52 sps:$4 sm:$0xff]   ;;  %v5660_v17 = vld [vmem:[%s6134_s24 + $0x4e8] ss:$52 sps:$4 sm:$0xff]  }
  0x63   : > { %5010 = vmatpush3.bf16.msra.mxu1 %v5631_v29  ;;  %v5677_v29 = vld [vmem:[%s6134_s24 + $0x280] ss:$52 sps:$4 sm:$0xff]  }
  0x64   : > { %5011 = vmatprep.subr.bf16.mxu1 %v5646_v35  ;;  %v5692_v35 = vld [vmem:[%s6134_s24 + $0x1c] ss:$52 sps:$4 sm:$0xff]  }
  0x67   : > { %5012 = vmatpush3.bf16.msra.mxu1 %v5647_v36  ;;  %v5690_v36 = vld [vmem:[%s6134_s24 + $0x18] ss:$52 sps:$4 sm:$0xff]  }
  0x68   : > { %5013 = vmatprep.subr.bf16.mxu1 %v5662_v43  ;;  %v5726_v43 = vld [vmem:[%s7654_s1 + $0x2e8] sm:$0xff]  }
  0x69   : > { %2394 = vmatmul.mubr.bf16.gmra.mxu0 %v5588_v20  ;;  %2523 = vmatmul.mubr.bf16.gmra.mxu1 %v5589_v21  ;;  %v5668_v20 = vld [vmem:[%s6134_s24 + $0x21c] ss:$52 sps:$4 sm:$0xff]   ;;  %v5744_v21 = vld [vmem:[%s7654_s1 + $0x240] sm:$0xff]  }
  0x6a   : > { %2401 = vmatprep.mubr.bf16.mxu0 %v5590_v22  ;;  %2530 = vmatprep.mubr.bf16.mxu1 %v5592_v23  ;;  %v5745_v22 = vld [vmem:[%s7654_s1 + $0x200] sm:$0xff]  }
  0x6b   : > { %5014 = vmatpush3.bf16.msra.mxu1 %v5663_v44  ;;  %v5670_v23 = vld [vmem:[%s6134_s24 + $0x550] ss:$52 sps:$4 sm:$0xff]   ;;  %v5702_v44 = vld [vmem:[%s6134_s24 + $0x3b8] ss:$52 sps:$4 sm:$0xff]  }
  0x6c   : > { %5015 = vmatprep.subr.bf16.mxu1 %v5678_v49  ;;  %v5742_v49 = vld [vmem:[%s7654_s1 + $0x2e0] sm:$0xff]  }
  0x6f   : > { %5016 = vmatpush3.bf16.msra.mxu1 %v5679_v50  ;;  %v5743_v50 = vld [vmem:[%s7654_s1 + $0x2a0] sm:$0xff]  }
  0x70   : > { %5225 = vmatprep.subr.bf16.mxu1 %v5694_v57  ;;  %v5773_v57 = vld [vmem:[%s7654_s1 + $0x2d0] sm:$0xff]  }
  0x71   : > { %2402 = vmatmul.mubr.bf16.gmra.mxu0 %v5594_v27  ;;  %2531 = vmatmul.mubr.bf16.gmra.mxu1 %v5595_v28  ;;  %v6429_v27 = vld [vmem:[%s7654_s1 + $0x308] sm:$0xff]  }
  0x72   : > { %2409 = vmatprep.mubr.bf16.mxu0 %v5600_v31  ;;  %2538 = vmatprep.mubr.bf16.mxu1 %v5602_v32  ;;  %v5676_v28 = vld [vmem:[%s6134_s24 + $0x5b8] ss:$52 sps:$4 sm:$0xff]   ;;  %v5686_v32 = vld [vmem:[%s6134_s24 + $0x620] ss:$52 sps:$4 sm:$0xff]  }
  0x73   : > { %v5684_v31 = vld [vmem:[%s6134_s24 + $0x2ec] ss:$52 sps:$4 sm:$0xff]  }
  0x79   : > { %2410 = vmatmul.mubr.bf16.gmra.mxu0 %v5604_v33  ;;  %2539 = vmatmul.mubr.bf16.gmra.mxu1 %v5605_v34  ;;  %v5687_v33 = vld [vmem:[%s6134_s24 + $0x2e8] ss:$52 sps:$4 sm:$0xff]  }
  0x7a   : > { %2417 = vmatprep.mubr.bf16.mxu0 %v5608_v37  ;;  %2546 = vmatprep.mubr.bf16.mxu1 %v5610_v38  ;;  %v5688_v34 = vld [vmem:[%s6134_s24 + $0x354] ss:$52 sps:$4 sm:$0xff]   ;;  %v5693_v37 = vld [vmem:[%s6134_s24 + $0x350] ss:$52 sps:$4 sm:$0xff]   ;;  %v5695_v38 = vld [vmem:[%s7654_s1 + $0x2b8] sm:$0xff]  }
  0x81   : > { %2418 = vmatmul.mubr.bf16.gmra.mxu0 %v5612_v39  ;;  %2547 = vmatmul.mubr.bf16.gmra.mxu1 %v5613_v40  ;;  %v5698_v39 = vld [vmem:[%s6134_s24 + $0x3bc] ss:$52 sps:$4 sm:$0xff]   ;;  %v5700_v40 = vld [vmem:[%s6134_s24 + $0x84] ss:$52 sps:$4 sm:$0xff]  }
  0x82   : > { %2425 = vmatprep.mubr.bf16.mxu0 %v5616_v41  ;;  %2554 = vmatprep.mubr.bf16.mxu1 %v5618_v42  ;;  %v5710_v41 = vld [vmem:[%s7654_s1 + $0x2f0] sm:$0xff]  }
  0x83   : > { %v5711_v42 = vld [vmem:[%s7654_s1 + $0x2b0] sm:$0xff]  }
  0x89   : > { %2426 = vmatmul.mubr.bf16.gmra.mxu0 %v5620_v45  ;;  %2555 = vmatmul.mubr.bf16.gmra.mxu1 %v5621_v46  ;;  %v5703_v45 = vld [vmem:[%s6134_s24 + $0x80] ss:$52 sps:$4 sm:$0xff]   ;;  %v5704_v46 = vld [vmem:[%s6134_s24 + $0x424] ss:$52 sps:$4 sm:$0xff]  }
  0x8a   : > { %2562 = vmatprep.mubr.bf16.mxu1 %v5624_v47  ;;  %2659 = vmatprep.mubr.bf16.mxu0 %v5628_v48  ;;  %v5706_v47 = vld [vmem:[%s6134_s24 + $0xec] ss:$52 sps:$4 sm:$0xff]  }
  0x8b   : > { %v5727_v48 = vld [vmem:[%s7654_s1 + $0x2a8] sm:$0xff]  }
  0x91   : > { %2563 = vmatmul.mubr.bf16.gmra.mxu1 %v5629_v52  ;;  %2660 = vmatmul.mubr.bf16.vlgmr.msra.gmra.mxu0 %v5626_v51  ;;  %v5758_v51 = vld [vmem:[%s7654_s1 + $0x2d8] sm:$0xff]   ;;  %v5708_v52 = vld [vmem:[%s6134_s24 + $0x420] ss:$52 sps:$4 sm:$0xff]  }
  0x92   : > { %5114 = vmatpush3.bf16.msra.mxu0 %v5633_v53  ;;  %2570 = vmatprep.mubr.bf16.mxu1 %v5634_v54  ;;  %v5709_v53 = vld [vmem:[%s6134_s24 + $0xe8] ss:$52 sps:$4 sm:$0xff]   ;;  %v5714_v54 = vld [vmem:[%s6134_s24 + $0x48c] ss:$52 sps:$4 sm:$0xff]  }
  0x93   : > { %2667 = vmatprep.mubr.bf16.mxu0 %v5636_v55  ;;  %5115 = vmatprep.subr.bf16.mxu0 %v5648_v56  ;;  %v5716_v55 = vld [vmem:[%s6134_s24 + $0x154] ss:$52 sps:$4 sm:$0xff]   ;;  %v5759_v56 = vld [vmem:[%s7654_s1 + $0x298] sm:$0xff]  }
  0x96   : > { %5116 = vmatpush3.bf16.msra.mxu0 %v5649_v58  ;;  %v5774_v58 = vld [vmem:[%s7654_s1 + $0x290] sm:$0xff]  }
  0x97   : > { %5117 = vmatprep.subr.bf16.mxu0 %v5664_v59  ;;  %v5787_v59 = vld [vmem:[%s7654_s1 + $0x2c8] sm:$0xff]  }
  0x99   : > { %2571 = vmatmul.mubr.bf16.gmra.mxu1 %v5638_v60  ;;  %2668 = vmatmul.mubr.bf16.gmra.mxu0 %v5639_v61  ;;  %v5718_v60 = vld [vmem:[%s6134_s24 + $0x488] ss:$52 sps:$4 sm:$0xff]   ;;  %v5719_v61 = vld [vmem:[%s6134_s24 + $0x150] ss:$52 sps:$4 sm:$0xff]  }
  0x9a   : > { %2578 = vmatprep.mubr.bf16.mxu1 %v5640_v62  ;;  %2675 = vmatprep.mubr.bf16.mxu0 %v5642_v63  ;;  %v5720_v62 = vld [vmem:[%s6134_s24 + $0x4f4] ss:$52 sps:$4 sm:$0xff]   ;;  %v5722_v63 = vld [vmem:[%s6134_s24 + $0x1bc] ss:$52 sps:$4 sm:$0xff]  }
  0x9b   : > { %5118 = vmatpush3.bf16.msra.mxu0 %v5665_v0  ;;  %v5788_v0 = vld [vmem:[%s7654_s1 + $0x288] sm:$0xff]  }
  0x9c   : > { %5119 = vmatprep.subr.bf16.mxu0 %v5680_v1  ;;  %v5801_v1 = vld [vmem:[%s7654_s1 + $0x2c0] sm:$0xff]  }
  0x9f   : > { %5120 = vmatpush3.bf16.msra.mxu0 %v5681_v3  ;;  %v5724_v3 = vld [vmem:[%s6134_s24 + $0x4f0] ss:$52 sps:$4 sm:$0xff]  }
  0xa0   : > { %5121 = vmatprep.subr.bf16.mxu0 %v5696_v4  ;;  %v5725_v4 = vld [vmem:[%s6134_s24 + $0x1b8] ss:$52 sps:$4 sm:$0xff]  }
  0xa1   : > { %2579 = vmatmul.mubr.bf16.gmra.mxu1 %v5644_v2  ;;  %2676 = vmatmul.mubr.bf16.gmra.mxu0 %v5645_v5  ;;  %v5802_v2 = vld [vmem:[%s7654_s1 + $0x280] sm:$0xff]   ;;  %v5730_v5 = vld [vmem:[%s6134_s24 + $0x55c] ss:$52 sps:$4 sm:$0xff]  }
  0xa2   : > { %2586 = vmatprep.mubr.bf16.mxu1 %v5650_v6  ;;  %2683 = vmatprep.mubr.bf16.mxu0 %v5652_v7  ;;  %v5732_v6 = vld [vmem:[%s6134_s24 + $0x224] ss:$52 sps:$4 sm:$0xff]  }
  0xa3   : > { %5122 = vmatpush3.bf16.msra.mxu0 %v5697_v8 }
  0xa4   : > { %5123 = vmatprep.subr.bf16.mxu0 %v5712_v9 }
  0xa7   : > { %5124 = vmatpush3.bf16.msra.mxu0 %v5713_v12 }
  0xa8   : > { %5125 = vmatprep.subr.bf16.mxu0 %v5728_v13 }
  0xa9   : > { %2587 = vmatmul.mubr.bf16.gmra.mxu1 %v5654_v10  ;;  %2684 = vmatmul.mubr.bf16.gmra.mxu0 %v5655_v11 }
  0xaa   : > { %2594 = vmatprep.mubr.bf16.mxu1 %v5656_v14  ;;  %2691 = vmatprep.mubr.bf16.mxu0 %v5658_v15  ;;  %v5734_v15 = vld [vmem:[%s6134_s24 + $0x558] ss:$52 sps:$4 sm:$0xff]  }
  0xab   : > { %5126 = vmatpush3.bf16.msra.mxu0 %v5729_v16  ;;  %v5735_v16 = vld [vmem:[%s6134_s24 + $0x220] ss:$52 sps:$4 sm:$0xff]  }
  0xac   : > { %5127 = vmatprep.subr.bf16.mxu0 %v5744_v21 }
  0xaf   : > { %5128 = vmatpush3.bf16.msra.mxu0 %v5745_v22 }
  0xb0   : > { %5355 = vmatprep.subr.bf16.mxu0 %v6429_v27 }
  0xb1   : > { %2595 = vmatmul.mubr.bf16.gmra.mxu1 %v5660_v17  ;;  %2692 = vmatmul.mubr.bf16.gmra.mxu0 %v5661_v18  ;;  %v5736_v17 = vld [vmem:[%s6134_s24 + $0x5c4] ss:$52 sps:$4 sm:$0xff]   ;;  %v5738_v18 = vld [vmem:[%s6134_s24 + $0x28c] ss:$52 sps:$4 sm:$0xff]  }
  0xb2   : > { %2602 = vmatprep.mubr.bf16.mxu1 %v5666_v19  ;;  %2699 = vmatprep.mubr.bf16.mxu0 %v5668_v20 }
  0xb9   : > { %2603 = vmatmul.mubr.bf16.gmra.mxu1 %v5670_v23  ;;  %2700 = vmatmul.mubr.bf16.gmra.mxu0 %v5671_v24 }
  0xba   : > { %2610 = vmatprep.mubr.bf16.mxu1 %v5672_v25  ;;  %2707 = vmatprep.mubr.bf16.mxu0 %v5674_v26 }
  0xc1   : > { %2611 = vmatmul.mubr.bf16.gmra.mxu1 %v5676_v28  ;;  %2708 = vmatmul.mubr.bf16.gmra.mxu0 %v5677_v29 }
  0xc2   : > { %2618 = vmatprep.mubr.bf16.mxu1 %v5682_v30  ;;  %2715 = vmatprep.mubr.bf16.mxu0 %v5684_v31 }
  0xc9   : > { %2619 = vmatmul.mubr.bf16.gmra.mxu1 %v5686_v32  ;;  %2716 = vmatmul.mubr.bf16.gmra.mxu0 %v5687_v33  ;;  %v5740_v32 = vld [vmem:[%s6134_s24 + $0x5c0] ss:$52 sps:$4 sm:$0xff]   ;;  %v5741_v33 = vld [vmem:[%s6134_s24 + $0x288] ss:$52 sps:$4 sm:$0xff]  }
  0xca   : > { %2723 = vmatprep.mubr.bf16.mxu0 %v5688_v34  ;;  %2820 = vmatprep.mubr.bf16.mxu1 %v5692_v35  ;;  %v5746_v34 = vld [vmem:[%s6134_s24 + $0x62c] ss:$52 sps:$4 sm:$0xff]   ;;  %v5748_v35 = vld [vmem:[%s6134_s24 + $0x2f4] ss:$52 sps:$4 sm:$0xff]  }
  0xd1   : > { %2724 = vmatmul.mubr.bf16.gmra.mxu0 %v5693_v37  ;;  %2821 = vmatmul.mubr.bf16.vlgmr.msra.gmra.mxu1 %v5690_v36 }
  0xd2   : > { %5226 = vmatpush3.bf16.msra.mxu1 %v5695_v38  ;;  %2731 = vmatprep.mubr.bf16.mxu0 %v5698_v39 }
  0xd3   : > { %2828 = vmatprep.mubr.bf16.mxu1 %v5700_v40  ;;  %5227 = vmatprep.subr.bf16.mxu1 %v5710_v41 }
  0xd6   : > { %5228 = vmatpush3.bf16.msra.mxu1 %v5711_v42 }
  0xd7   : > { %5229 = vmatprep.subr.bf16.mxu1 %v5726_v43 }
  0xd9   : > { %2732 = vmatmul.mubr.bf16.gmra.mxu0 %v5702_v44  ;;  %2829 = vmatmul.mubr.bf16.gmra.mxu1 %v5703_v45 }
  0xda   : > { %2739 = vmatprep.mubr.bf16.mxu0 %v5704_v46  ;;  %2836 = vmatprep.mubr.bf16.mxu1 %v5706_v47 }
  0xdb   : > { %5230 = vmatpush3.bf16.msra.mxu1 %v5727_v48  ;;  %v5750_v48 = vld [vmem:[%s6134_s24 + $0x628] ss:$52 sps:$4 sm:$0xff]  }
  0xdc   : > { %5231 = vmatprep.subr.bf16.mxu1 %v5742_v49  ;;  %v5751_v49 = vld [vmem:[%s6134_s24 + $0x2f0] ss:$52 sps:$4 sm:$0xff]  }
  0xdf   : > { %5232 = vmatpush3.bf16.msra.mxu1 %v5743_v50  ;;  %v5754_v50 = vld [vmem:[%s6134_s24 + $0x35c] ss:$52 sps:$4 sm:$0xff]  }
  0xe0   : > { %5233 = vmatprep.subr.bf16.mxu1 %v5758_v51  ;;  %v5757_v51 = vld [vmem:[%s6134_s24 + $0x24] ss:$52 sps:$4 sm:$0xff]  }
  0xe1   : > { %2740 = vmatmul.mubr.bf16.gmra.mxu0 %v5708_v52  ;;  %2837 = vmatmul.mubr.bf16.gmra.mxu1 %v5709_v53 }
  0xe2   : > { %2747 = vmatprep.mubr.bf16.mxu0 %v5714_v54  ;;  %2844 = vmatprep.mubr.bf16.mxu1 %v5716_v55 }
  0xe3   : > { %5234 = vmatpush3.bf16.msra.mxu1 %v5759_v56 }
  0xe4   : > { %5235 = vmatprep.subr.bf16.mxu1 %v5773_v57 }
  0xe7   : > { %5236 = vmatpush3.bf16.msra.mxu1 %v5774_v58 }
  0xe8   : > { %5237 = vmatprep.subr.bf16.mxu1 %v5787_v59 }
  0xe9   : > { %2748 = vmatmul.mubr.bf16.gmra.mxu0 %v5718_v60  ;;  %2845 = vmatmul.mubr.bf16.gmra.mxu1 %v5719_v61 }
  0xea   : > { %2755 = vmatprep.mubr.bf16.mxu0 %v5720_v62  ;;  %2852 = vmatprep.mubr.bf16.mxu1 %v5722_v63 }
  0xeb   : > { %5238 = vmatpush3.bf16.msra.mxu1 %v5788_v0  ;;  %v5752_v0 = vld [vmem:[%s6134_s24 + $0x358] ss:$52 sps:$4 sm:$0xff]  }
  0xec   : > { %5239 = vmatprep.subr.bf16.mxu1 %v5801_v1  ;;  %v5755_v1 = vld [vmem:[%s6134_s24 + $0x20] ss:$52 sps:$4 sm:$0xff]  }
  0xef   : > { %5240 = vmatpush3.bf16.msra.mxu1 %v5802_v2  ;;  %v5763_v2 = vld [vmem:[%s6134_s24 + $0x3c4] ss:$52 sps:$4 sm:$0xff]  }
  0xf1   : > { %v4681_v7 = vpop.f32.mrf.mxu0  ;;  %v4753_v8 = vpop.f32.mrf.mxu1  ;;  %2756 = vmatmul.mubr.bf16.gmra.mxu0 %v5724_v3  ;;  %2853 = vmatmul.mubr.bf16.gmra.mxu1 %v5725_v4 }
  0xf2   : > { %2763 = vmatprep.mubr.bf16.mxu0 %v5730_v5  ;;  %2860 = vmatprep.mubr.bf16.mxu1 %v5732_v6  ;;  %v5766_v5 = vld [vmem:[%s6134_s24 + $0x8c] ss:$52 sps:$4 sm:$0xff]  }
  0xf3   : > { %v4682_v9 = vpop.f32.mrf.mxu0  ;;  %v4754_v10 = vpop.f32.mrf.mxu1  ;;  %v5815_v6 = vld [vmem:[%s7654_s1 + $0x300] sm:$0xff]  }
  0xf4   : > { %v6505_v11 = vadd.f32 %v4682_v9, %v4681_v7  ;;  %v6507_v12 = vadd.f32 %v4754_v10, %v4753_v8 }
  0xf5   : > { %v4684_v13 = vpop.f32.mrf.mxu0  ;;  %v4756_v14 = vpop.f32.mrf.mxu1 }
  0xf7   : > { %v4685_v19 = vpop.f32.mrf.mxu0  ;;  %v4757_v20 = vpop.f32.mrf.mxu1 }
  0xf8   : > { %v6513_v21 = vadd.f32 %v4685_v19, %v4684_v13  ;;  %v6515_v22 = vadd.f32 %v4757_v20, %v4756_v14  ;;  %v6560_v13 = vld [vmem:[%s7655_s2] ss:$0 sm:$0xff] }
  0xf9   : > { %v4687_v23 = vpop.f32.mrf.mxu0  ;;  %v4759_v24 = vpop.f32.mrf.mxu1  ;;  %2764 = vmatmul.mubr.bf16.gmra.mxu0 %v5734_v15  ;;  %2861 = vmatmul.mubr.bf16.gmra.mxu1 %v5735_v16  ;;  %v2340_v16 = vadd.f32 %v6505_v11, %v6560_v13 }
  0xfa   : > { %2771 = vmatprep.mubr.bf16.mxu0 %v5736_v17  ;;  %2868 = vmatprep.mubr.bf16.mxu1 %v5738_v18 }
  0xfb   : > { %v4688_v25 = vpop.f32.mrf.mxu0  ;;  %v4760_v26 = vpop.f32.mrf.mxu1 }
  0xfc   : > { %v6517_v28 = vadd.f32 %v4688_v25, %v4687_v23  ;;  %v6519_v29 = vadd.f32 %v4760_v26, %v4759_v24  ;;  %v5764_v23 = vld [vmem:[%s6134_s24 + $0x88] ss:$52 sps:$4 sm:$0xff]   ;;  %v5769_v25 = vld [vmem:[%s6134_s24 + $0x42c] ss:$52 sps:$4 sm:$0xff]  }
  0xfd   : > { %v4690_v30 = vpop.f32.mrf.mxu0  ;;  %v4762_v31 = vpop.f32.mrf.mxu1  ;;  %v5772_v26 = vld [vmem:[%s6134_s24 + $0xf4] ss:$52 sps:$4 sm:$0xff]  }
  0xff   : > { %v4691_v36 = vpop.f32.mrf.mxu0  ;;  %v4763_v37 = vpop.f32.mrf.mxu1 }
 0x100   : > { %v6525_v38 = vadd.f32 %v4691_v36, %v4690_v30  ;;  %v6527_v39 = vadd.f32 %v4763_v37, %v4762_v31 }
 0x101   : > { %v4693_v40 = vpop.f32.mrf.mxu0  ;;  %v4765_v41 = vpop.f32.mrf.mxu1  ;;  %2772 = vmatmul.mubr.bf16.gmra.mxu0 %v5740_v32  ;;  %2869 = vmatmul.mubr.bf16.gmra.mxu1 %v5741_v33  ;;  %v2343_v32 = vadd.f32 %v6513_v21, %v6560_v13  ;;  %v2348_v21 = vadd.f32 %v6517_v28, %v6560_v13 }
 0x102   : > { %2779 = vmatprep.mubr.bf16.mxu0 %v5746_v34  ;;  %2876 = vmatprep.mubr.bf16.mxu1 %v5748_v35 }
 0x103   : > { %v4694_v42 = vpop.f32.mrf.mxu0  ;;  %v4766_v43 = vpop.f32.mrf.mxu1 }
 0x104   : > { %v6529_v44 = vadd.f32 %v4694_v42, %v4693_v40  ;;  %v6531_v45 = vadd.f32 %v4766_v43, %v4765_v41 }
 0x105   : > { %v4696_v46 = vpop.f32.mrf.mxu0  ;;  %v4768_v47 = vpop.f32.mrf.mxu1 }
 0x107   : > { %v4697_v52 = vpop.f32.mrf.mxu0  ;;  %v4769_v53 = vpop.f32.mrf.mxu1 }
 0x108   : > { %v6537_v54 = vadd.f32 %v4697_v52, %v4696_v46  ;;  %v6539_v55 = vadd.f32 %v4769_v53, %v4768_v47  ;;  %v5767_v47 = vld [vmem:[%s6134_s24 + $0x428] ss:$52 sps:$4 sm:$0xff]  }
 0x109   : > { %v4699_v56 = vpop.f32.mrf.mxu0  ;;  %v4771_v57 = vpop.f32.mrf.mxu1  ;;  %2780 = vmatmul.mubr.bf16.gmra.mxu0 %v5750_v48  ;;  %2877 = vmatmul.mubr.bf16.gmra.mxu1 %v5751_v49  ;;  %v5770_v48 = vld [vmem:[%s6134_s24 + $0xf0] ss:$52 sps:$4 sm:$0xff]  }
 0x10a   : > { %2884 = vmatprep.mubr.bf16.mxu1 %v5754_v50  ;;  %2981 = vmatprep.mubr.bf16.mxu0 %v5757_v51  ;;  %v5777_v50 = vld [vmem:[%s6134_s24 + $0x494] ss:$52 sps:$4 sm:$0xff]   ;;  %v5780_v51 = vld [vmem:[%s6134_s24 + $0x15c] ss:$52 sps:$4 sm:$0xff]  }
 0x10b   : > { %v4700_v58 = vpop.f32.mrf.mxu0  ;;  %v4772_v59 = vpop.f32.mrf.mxu1 }
 0x10c   : > { %v6541_v60 = vadd.f32 %v4700_v58, %v4699_v56  ;;  %v6543_v61 = vadd.f32 %v4772_v59, %v4771_v57  ;;  %v2351_v56 = vadd.f32 %v6525_v38, %v6560_v13  ;;  %v2356_v38 = vadd.f32 %v6529_v44, %v6560_v13 }
 0x10d   : > { %v4702_v62 = vpop.f32.mrf.mxu0  ;;  %v4774_v63 = vpop.f32.mrf.mxu1 }
 0x10f   : > { %v4703_v3 = vpop.f32.mrf.mxu0  ;;  %v4775_v4 = vpop.f32.mrf.mxu1 }
 0x110   : > { %v6552_v7 = vadd.f32 %v4703_v3, %v4702_v62  ;;  %v6554_v8 = vadd.f32 %v4775_v4, %v4774_v63 }
 0x111   : > { %v4705_v9 = vpop.f32.mrf.mxu0  ;;  %v4793_v10 = vpop.f32.mrf.mxu1  ;;  %2885 = vmatmul.mubr.bf16.gmra.mxu1 %v5752_v0  ;;  %2982 = vmatmul.mubr.bf16.vlgmr.msra.gmra.mxu0 %v5755_v1 }
 0x112   : > { %5356 = vmatpush3.bf16.msra.mxu0 %v6429_v27  ;;  %2892 = vmatprep.mubr.bf16.mxu1 %v5763_v2  ;;  %v5761_v27 = vld [vmem:[%s6134_s24 + $0x3c0] ss:$52 sps:$4 sm:$0xff]  }
 0x113   : > { %v4706_v14 = vpop.f32.mrf.mxu0  ;;  %v4794_v15 = vpop.f32.mrf.mxu1  ;;  %2989 = vmatprep.mubr.bf16.mxu0 %v5766_v5  ;;  %5357 = vmatprep.subr.bf16.mxu0 %v5815_v6  ;;  %v5775_v5 = vld [vmem:[%s6134_s24 + $0x490] ss:$52 sps:$4 sm:$0xff]  }
 0x114   : > { %v6564_v17 = vadd.f32 %v4706_v14, %v4705_v9  ;;  %v4795_v18 = vadd.f32 %v4794_v15, %v4793_v10  ;;  %v5783_v10 = vld [vmem:[%s6134_s24 + $0x4fc] ss:$52 sps:$4 sm:$0xff]   ;;  %v5786_v14 = vld [vmem:[%s6134_s24 + $0x1c4] ss:$52 sps:$4 sm:$0xff]  }
 0x115   : > { %v4708_v19 = vpop.f32.mrf.mxu0  ;;  %v4796_v20 = vpop.f32.mrf.mxu1 }
 0x116   : > { %v6568_v24 = vadd.f32 %v4795_v18, %v2340_v16  ;;  %5358 = vmatpush3.bf16.msra.mxu0 %v5815_v6  ;;  %v5778_v6 = vld [vmem:[%s6134_s24 + $0x158] ss:$52 sps:$4 sm:$0xff]   ;;  %v2359_v18 = vadd.f32 %v6537_v54, %v6560_v13  ;;  %v2364_v54 = vadd.f32 %v6541_v60, %v6560_v13 }
 0x117   : > { %v4709_v30 = vpop.f32.mrf.mxu0  ;;  %v4797_v31 = vpop.f32.mrf.mxu1 }
 0x118   : > { %v6574_v33 = vadd.f32 %v4709_v30, %v4708_v19  ;;  %v4798_v11 = vadd.f32 %v4797_v31, %v4796_v20 }
 0x119   : > { %v4711_v34 = vpop.f32.mrf.mxu0  ;;  %v4799_v35 = vpop.f32.mrf.mxu1  ;;  %2893 = vmatmul.mubr.bf16.gmra.mxu1 %v5761_v27  ;;  %2990 = vmatmul.mubr.bf16.gmra.mxu0 %v5764_v23 }
 0x11a   : > { %v6576_v36 = vadd.f32 %v4798_v11, %v2343_v32  ;;  %2900 = vmatprep.mubr.bf16.mxu1 %v5769_v25  ;;  %2997 = vmatprep.mubr.bf16.mxu0 %v5772_v26 }
 0x11b   : > { %v4712_v37 = vpop.f32.mrf.mxu0  ;;  %v4800_v40 = vpop.f32.mrf.mxu1 }
 0x11c   : > { %v6580_v41 = vadd.f32 %v4712_v37, %v4711_v34  ;;  %v4801_v42 = vadd.f32 %v4800_v40, %v4799_v35  ;;  %v5781_v34 = vld [vmem:[%s6134_s24 + $0x4f8] ss:$52 sps:$4 sm:$0xff]   ;;  %v5784_v35 = vld [vmem:[%s6134_s24 + $0x1c0] ss:$52 sps:$4 sm:$0xff]  }
 0x11d   : > { %v4714_v43 = vpop.f32.mrf.mxu0  ;;  %v4802_v46 = vpop.f32.mrf.mxu1  ;;  %v5791_v40 = vld [vmem:[%s6134_s24 + $0x564] ss:$52 sps:$4 sm:$0xff]  }
 0x11e   : > { %v6584_v49 = vadd.f32 %v4801_v42, %v2348_v21  ;;  %v5794_v21 = vld [vmem:[%s6134_s24 + $0x22c] ss:$52 sps:$4 sm:$0xff]  }
 0x11f   : > { %v4715_v52 = vpop.f32.mrf.mxu0  ;;  %v4803_v53 = vpop.f32.mrf.mxu1 }
 0x120   : > { %v6590_v57 = vadd.f32 %v4715_v52, %v4714_v43  ;;  %v4804_v28 = vadd.f32 %v4803_v53, %v4802_v46  ;;  %v2367_v46 = vadd.f32 %v6552_v7, %v6560_v13  ;;  %v2372_v7 = vadd.f32 %v6564_v17, %v6560_v13 }
 0x121   : > { %v4717_v58 = vpop.f32.mrf.mxu0  ;;  %v4805_v59 = vpop.f32.mrf.mxu1  ;;  %2901 = vmatmul.mubr.bf16.gmra.mxu1 %v5767_v47  ;;  %2998 = vmatmul.mubr.bf16.gmra.mxu0 %v5770_v48 }
 0x122   : > { %v6592_v62 = vadd.f32 %v4804_v28, %v2351_v56  ;;  %2908 = vmatprep.mubr.bf16.mxu1 %v5777_v50  ;;  %3005 = vmatprep.mubr.bf16.mxu0 %v5780_v51 }
 0x123   : > { %v4718_v63 = vpop.f32.mrf.mxu0  ;;  %v4806_v0 = vpop.f32.mrf.mxu1 }
 0x124   : > { %v6596_v1 = vadd.f32 %v4718_v63, %v4717_v58  ;;  %v4807_v2 = vadd.f32 %v4806_v0, %v4805_v59  ;;  %v5789_v63 = vld [vmem:[%s6134_s24 + $0x560] ss:$52 sps:$4 sm:$0xff]   ;;  %v5792_v0 = vld [vmem:[%s6134_s24 + $0x228] ss:$52 sps:$4 sm:$0xff]  }
 0x125   : > { %v4720_v3 = vpop.f32.mrf.mxu0  ;;  %v4808_v4 = vpop.f32.mrf.mxu1 }
 0x126   : > { %v6600_v9 = vadd.f32 %v4807_v2, %v2356_v38  ;;  %v5797_v2 = vld [vmem:[%s6134_s24 + $0x5cc] ss:$52 sps:$4 sm:$0xff]  }
 0x127   : > { %v4721_v15 = vpop.f32.mrf.mxu0  ;;  %v4809_v16 = vpop.f32.mrf.mxu1 }
 0x128   : > { %v6606_v19 = vadd.f32 %v4721_v15, %v4720_v3  ;;  %v4810_v44 = vadd.f32 %v4809_v16, %v4808_v4  ;;  %v5800_v3 = vld [vmem:[%s6134_s24 + $0x294] ss:$52 sps:$4 sm:$0xff]  }
 0x129   : > { %v4723_v20 = vpop.f32.mrf.mxu0  ;;  %v4811_v27 = vpop.f32.mrf.mxu1  ;;  %2909 = vmatmul.mubr.bf16.gmra.mxu1 %v5775_v5  ;;  %3006 = vmatmul.mubr.bf16.gmra.mxu0 %v5778_v6  ;;  %v2375_v6 = vadd.f32 %v6574_v33, %v6560_v13  ;;  %v2380_v33 = vadd.f32 %v6580_v41, %v6560_v13 }
 0x12a   : > { %v6608_v23 = vadd.f32 %v4810_v44, %v2359_v18  ;;  %2916 = vmatprep.mubr.bf16.mxu1 %v5783_v10  ;;  %3013 = vmatprep.mubr.bf16.mxu0 %v5786_v14 }
 0x12b   : > { %v4724_v25 = vpop.f32.mrf.mxu0  ;;  %v4812_v26 = vpop.f32.mrf.mxu1 }
 0x12c   : > { %v6612_v30 = vadd.f32 %v4724_v25, %v4723_v20  ;;  %v4813_v31 = vadd.f32 %v4812_v26, %v4811_v27 }
 0x12d   : > { %v4726_v32 = vpop.f32.mrf.mxu0  ;;  %v4814_v11 = vpop.f32.mrf.mxu1 }
 0x12e   : > { %v6616_v37 = vadd.f32 %v4813_v31, %v2364_v54  ;;  %v5795_v54 = vld [vmem:[%s6134_s24 + $0x5c8] ss:$52 sps:$4 sm:$0xff]   ;;  %v5798_v31 = vld [vmem:[%s6134_s24 + $0x290] ss:$52 sps:$4 sm:$0xff]  }
 0x12f   : > { %v4727_v42 = vpop.f32.mrf.mxu0  ;;  %v4815_v43 = vpop.f32.mrf.mxu1 }
 0x130   : > { %v6622_v47 = vadd.f32 %v4727_v42, %v4726_v32  ;;  %v4816_v60 = vadd.f32 %v4815_v43, %v4814_v11  ;;  %v5805_v11 = vld [vmem:[%s6134_s24 + $0x634] ss:$52 sps:$4 sm:$0xff]  }
 0x131   : > { %v4729_v48 = vpop.f32.mrf.mxu0  ;;  %v4817_v50 = vpop.f32.mrf.mxu1  ;;  %2917 = vmatmul.mubr.bf16.gmra.mxu1 %v5781_v34  ;;  %3014 = vmatmul.mubr.bf16.gmra.mxu0 %v5784_v35  ;;  %v5808_v34 = vld [vmem:[%s6134_s24 + $0x2fc] ss:$52 sps:$4 sm:$0xff]  }
 0x132   : > { %v6624_v51 = vadd.f32 %v4816_v60, %v2367_v46  ;;  %2924 = vmatprep.mubr.bf16.mxu1 %v5791_v40  ;;  %3021 = vmatprep.mubr.bf16.mxu0 %v5794_v21  ;;  %v2383_v21 = vadd.f32 %v6590_v57, %v6560_v13  ;;  %v2388_v57 = vadd.f32 %v6596_v1, %v6560_v13 }
 0x133   : > { %v4730_v52 = vpop.f32.mrf.mxu0  ;;  %v4818_v53 = vpop.f32.mrf.mxu1 }
 0x134   : > { %v6628_v56 = vadd.f32 %v4730_v52, %v4729_v48  ;;  %v4819_v28 = vadd.f32 %v4818_v53, %v4817_v50 }
 0x135   : > { %v4732_v58 = vpop.f32.mrf.mxu0  ;;  %v4820_v59 = vpop.f32.mrf.mxu1 }
 0x136   : > { %v6632_v38 = vadd.f32 %v4819_v28, %v2372_v7 }
 0x137   : > { %v4733_v4 = vpop.f32.mrf.mxu0  ;;  %v4821_v5 = vpop.f32.mrf.mxu1 }
 0x138   : > { %v6638_v10 = vadd.f32 %v4733_v4, %v4732_v58  ;;  %v4822_v17 = vadd.f32 %v4821_v5, %v4820_v59  ;;  %v5803_v58 = vld [vmem:[%s6134_s24 + $0x630] ss:$52 sps:$4 sm:$0xff]   ;;  %v5806_v59 = vld [vmem:[%s6134_s24 + $0x2f8] ss:$52 sps:$4 sm:$0xff]   ;;  %v2391_v5 = vadd.f32 %v6606_v19, %v6560_v13  ;;  %v2396_v19 = vadd.f32 %v6612_v30, %v6560_v13 }
 0x139   : > { %v4735_v14 = vpop.f32.mrf.mxu0  ;;  %v4823_v15 = vpop.f32.mrf.mxu1  ;;  %2925 = vmatmul.mubr.bf16.gmra.mxu1 %v5789_v63  ;;  %3022 = vmatmul.mubr.bf16.gmra.mxu0 %v5792_v0  ;;  %v5811_v0 = vld [vmem:[%s6134_s24 + $0x364] ss:$52 sps:$4 sm:$0xff]  }
 0x13a   : > { %v6640_v16 = vadd.f32 %v4822_v17, %v2375_v6  ;;  %2932 = vmatprep.mubr.bf16.mxu1 %v5797_v2  ;;  %3029 = vmatprep.mubr.bf16.mxu0 %v5800_v3  ;;  %v5814_v2 = vld [vmem:[%s6134_s24 + $0x2c] ss:$52 sps:$4 sm:$0xff]  }
 0x13b   : > { %v4736_v18 = vpop.f32.mrf.mxu0  ;;  %v4824_v44 = vpop.f32.mrf.mxu1 }
 0x13c   : > { %v6644_v20 = vadd.f32 %v4736_v18, %v4735_v14  ;;  %v4825_v27 = vadd.f32 %v4824_v44, %v4823_v15 }
 0x13d   : > { %v4738_v25 = vpop.f32.mrf.mxu0  ;;  %v4826_v26 = vpop.f32.mrf.mxu1 }
 0x13e   : > { %v6648_v32 = vadd.f32 %v4825_v27, %v2380_v33 }
 0x13f   : > { %v4739_v35 = vpop.f32.mrf.mxu0  ;;  %v4827_v40 = vpop.f32.mrf.mxu1 }
 0x140   : > { %v6654_v42 = vadd.f32 %v4739_v35, %v4738_v25  ;;  %v4828_v41 = vadd.f32 %v4827_v40, %v4826_v26  ;;  %v5821_v35 = vld [vmem:[%s6134_s24 + $0x94] ss:$52 sps:$4 sm:$0xff]  }
 0x141   : > { %v4741_v43 = vpop.f32.mrf.mxu0  ;;  %v4829_v46 = vpop.f32.mrf.mxu1  ;;  %2933 = vmatmul.mubr.bf16.gmra.mxu1 %v5795_v54  ;;  %3030 = vmatmul.mubr.bf16.gmra.mxu0 %v5798_v31  ;;  %v5809_v54 = vld [vmem:[%s6134_s24 + $0x360] ss:$52 sps:$4 sm:$0xff]   ;;  %v5812_v31 = vld [vmem:[%s6134_s24 + $0x28] ss:$52 sps:$4 sm:$0xff]  }
 0x142   : > { %v6656_v60 = vadd.f32 %v4828_v41, %v2383_v21  ;;  %2940 = vmatprep.mubr.bf16.mxu1 %v5805_v11  ;;  %3037 = vmatprep.mubr.bf16.mxu0 %v5808_v34  ;;  %v5818_v34 = vld [vmem:[%s6134_s24 + $0x3cc] ss:$52 sps:$4 sm:$0xff]   ;;  %v2399_v41 = vadd.f32 %v6622_v47, %v6560_v13  ;;  %v2404_v47 = vadd.f32 %v6628_v56, %v6560_v13 }
 0x143   : > { %v4742_v48 = vpop.f32.mrf.mxu0  ;;  %v4830_v50 = vpop.f32.mrf.mxu1 }
 0x144   : > { %v6660_v52 = vadd.f32 %v4742_v48, %v4741_v43  ;;  %v4831_v53 = vadd.f32 %v4830_v50, %v4829_v46 }
 0x145   : > { %v4744_v7 = vpop.f32.mrf.mxu0  ;;  %v4832_v28 = vpop.f32.mrf.mxu1 }
 0x146   : > { %v6664_v63 = vadd.f32 %v4831_v53, %v2388_v57 }
 0x147   : > { %v4745_v3 = vpop.f32.mrf.mxu0  ;;  %v4833_v4 = vpop.f32.mrf.mxu1 }
 0x148   : > { %v6670_v6 = vadd.f32 %v4745_v3, %v4744_v7  ;;  %v4834_v1 = vadd.f32 %v4833_v4, %v4832_v28 }
 0x149   : > { %v4747_v17 = vpop.f32.mrf.mxu0  ;;  %v4835_v14 = vpop.f32.mrf.mxu1  ;;  %2941 = vmatmul.mubr.bf16.gmra.mxu1 %v5803_v58  ;;  %3038 = vmatmul.mubr.bf16.gmra.mxu0 %v5806_v59 }
 0x14a   : > { %v6672_v15 = vadd.f32 %v4834_v1, %v2391_v5  ;;  %3045 = vmatprep.mubr.bf16.mxu0 %v5811_v0  ;;  %3142 = vmatprep.mubr.bf16.mxu1 %v5814_v2  ;;  %v5816_v0 = vld [vmem:[%s6134_s24 + $0x3c8] ss:$52 sps:$4 sm:$0xff]   ;;  %v5819_v2 = vld [vmem:[%s6134_s24 + $0x90] ss:$52 sps:$4 sm:$0xff]  }
 0x14b   : > { %v4748_v18 = vpop.f32.mrf.mxu0  ;;  %v4836_v44 = vpop.f32.mrf.mxu1  ;;  %v5824_v5 = vld [vmem:[%s6134_s24 + $0x434] ss:$52 sps:$4 sm:$0xff]   ;;  %v5827_v1 = vld [vmem:[%s6134_s24 + $0xfc] ss:$52 sps:$4 sm:$0xff]  }
 0x14c   : > { %v6676_v33 = vadd.f32 %v4748_v18, %v4747_v17  ;;  %v4837_v27 = vadd.f32 %v4836_v44, %v4835_v14  ;;  %v2407_v18 = vadd.f32 %v6638_v10, %v6560_v13  ;;  %v2412_v10 = vadd.f32 %v6644_v20, %v6560_v13 }
 0x14d   : > { %v4750_v25 = vpop.f32.mrf.mxu0  ;;  %v4838_v26 = vpop.f32.mrf.mxu1 }
 0x14e   : > { %v6680_v11 = vadd.f32 %v4837_v27, %v2396_v19 }
 0x14f   : > { %v4751_v40 = vpop.f32.mrf.mxu0  ;;  %v4839_v21 = vpop.f32.mrf.mxu1 }
 0x150   : > { %v6686_v43 = vadd.f32 %v4751_v40, %v4750_v25  ;;  %v4840_v30 = vadd.f32 %v4839_v21, %v4838_v26  ;;  %v5822_v21 = vld [vmem:[%s6134_s24 + $0x430] ss:$52 sps:$4 sm:$0xff]  }
 0x151   : > { %v4841_v46 = vpop.f32.mrf.mxu1  ;;  %v4905_v48 = vpop.f32.mrf.mxu0  ;;  %3046 = vmatmul.mubr.bf16.gmra.mxu0 %v5809_v54  ;;  %3143 = vmatmul.mubr.bf16.vlgmr.msra.gmra.mxu1 %v5812_v31 }
 0x152   : > { %v6688_v50 = vadd.f32 %v4840_v30, %v2399_v41  ;;  %3053 = vmatprep.mubr.bf16.mxu0 %v5818_v34  ;;  %3150 = vmatprep.mubr.bf16.mxu1 %v5821_v35  ;;  %v5825_v41 = vld [vmem:[%s6134_s24 + $0xf8] ss:$52 sps:$4 sm:$0xff]  }
 0x153   : > { %v4842_v57 = vpop.f32.mrf.mxu1  ;;  %v4906_v53 = vpop.f32.mrf.mxu0 }
 0x154   : > { %v4843_v7 = vadd.f32 %v4842_v57, %v4841_v46  ;;  %v4907_v28 = vadd.f32 %v4906_v53, %v4905_v48  ;;  %v5833_v48 = vld [vmem:[%s6134_s24 + $0x164] ss:$52 sps:$4 sm:$0xff]  }
 0x155   : > { %v4844_v58 = vpop.f32.mrf.mxu1  ;;  %v4908_v59 = vpop.f32.mrf.mxu0 }
 0x156   : > { %v6694_v3 = vadd.f32 %v4843_v7, %v2404_v47  ;;  %v6697_v4 = vadd.f32 %v4907_v28, %v6568_v24  ;;  %v2415_v47 = vadd.f32 %v6654_v42, %v6560_v13  ;;  %v2420_v42 = vadd.f32 %v6660_v52, %v6560_v13 }
 0x157   : > { %v4845_v17 = vpop.f32.mrf.mxu1  ;;  %v4909_v14 = vpop.f32.mrf.mxu0 }
 0x158   : > { %v4846_v44 = vadd.f32 %v4845_v17, %v4844_v58  ;;  %v4910_v56 = vadd.f32 %v4909_v14, %v4908_v59 }
 0x159   : > { %v4847_v19 = vpop.f32.mrf.mxu1  ;;  %v4911_v27 = vpop.f32.mrf.mxu0  ;;  %3054 = vmatmul.mubr.bf16.gmra.mxu0 %v5816_v0  ;;  %3151 = vmatmul.mubr.bf16.gmra.mxu1 %v5819_v2 }
 0x15a   : > { %v6703_v25 = vadd.f32 %v4846_v44, %v2407_v18  ;;  %v6706_v24 = vadd.f32 %v4910_v56, %v6576_v36  ;;  %3061 = vmatprep.mubr.bf16.mxu0 %v5824_v5  ;;  %3158 = vmatprep.mubr.bf16.mxu1 %v5827_v1  ;;  %v5830_v36 = vld [vmem:[%s6134_s24 + $0x49c] ss:$52 sps:$4 sm:$0xff]   ;;  %v5828_v18 = vld [vmem:[%s6134_s24 + $0x498] ss:$52 sps:$4 sm:$0xff]   ;;  %v5831_v44 = vld [vmem:[%s6134_s24 + $0x160] ss:$52 sps:$4 sm:$0xff]  }
 0x15b   : > { %v4848_v26 = vpop.f32.mrf.mxu1  ;;  %v4912_v54 = vpop.f32.mrf.mxu0 }
 0x15c   : > { %v4849_v31 = vadd.f32 %v4848_v26, %v4847_v19  ;;  %v4913_v34 = vadd.f32 %v4912_v54, %v4911_v27  ;;  %v5839_v27 = vld [vmem:[%s6134_s24 + $0x1cc] ss:$52 sps:$4 sm:$0xff]  }
 0x15d   : > { %v4850_v35 = vpop.f32.mrf.mxu1  ;;  %v4914_v40 = vpop.f32.mrf.mxu0 }
 0x15e   : > { %v6712_v30 = vadd.f32 %v4849_v31, %v2412_v10  ;;  %v6715_v46 = vadd.f32 %v4913_v34, %v6584_v49  ;;  %v2423_v10 = vadd.f32 %v6670_v6, %v6560_v13  ;;  %v2428_v6 = vadd.f32 %v6676_v33, %v6560_v13 }
 0x15f   : > { %v4851_v57 = vpop.f32.mrf.mxu1  ;;  %v4915_v53 = vpop.f32.mrf.mxu0 }
 0x160   : > { %v4852_v7 = vadd.f32 %v4851_v57, %v4850_v35  ;;  %v4916_v20 = vadd.f32 %v4915_v53, %v4914_v40 }
 0x161   : > { %v4853_v28 = vpop.f32.mrf.mxu1  ;;  %v4917_v58 = vpop.f32.mrf.mxu0  ;;  %3062 = vmatmul.mubr.bf16.gmra.mxu0 %v5822_v21  ;;  %3159 = vmatmul.mubr.bf16.gmra.mxu1 %v5825_v41 }
 0x162   : > { %v6721_v59 = vadd.f32 %v4852_v7, %v2415_v47  ;;  %v6724_v49 = vadd.f32 %v4916_v20, %v6592_v62  ;;  %3069 = vmatprep.mubr.bf16.mxu0 %v5830_v36  ;;  %3166 = vmatprep.mubr.bf16.mxu1 %v5833_v48  ;;  %v5836_v62 = vld [vmem:[%s6134_s24 + $0x504] ss:$52 sps:$4 sm:$0xff]   ;;  %v5834_v47 = vld [vmem:[%s6134_s24 + $0x500] ss:$52 sps:$4 sm:$0xff]   ;;  %v5837_v7 = vld [vmem:[%s6134_s24 + $0x1c8] ss:$52 sps:$4 sm:$0xff]  }
 0x163   : > { %v4854_v0 = vpop.f32.mrf.mxu1  ;;  %v4918_v2 = vpop.f32.mrf.mxu0 }
 0x164   : > { %v4855_v5 = vadd.f32 %v4854_v0, %v4853_v28  ;;  %v4919_v1 = vadd.f32 %v4918_v2, %v4917_v58  ;;  %v5845_v58 = vld [vmem:[%s6134_s24 + $0x234] ss:$52 sps:$4 sm:$0xff]  }
 0x165   : > { %v4856_v17 = vpop.f32.mrf.mxu1  ;;  %v4920_v14 = vpop.f32.mrf.mxu0 }
 0x166   : > { %v6730_v56 = vadd.f32 %v4855_v5, %v2420_v42  ;;  %v6733_v19 = vadd.f32 %v4919_v1, %v6600_v9  ;;  %v2431_v42 = vadd.f32 %v6686_v43, %v6560_v13  ;;  %v2436_v43 = vadd.f32 %v6507_v12, %v6560_v13 }
 0x167   : > { %v4857_v26 = vpop.f32.mrf.mxu1  ;;  %v4921_v54 = vpop.f32.mrf.mxu0 }
 0x168   : > { %v4858_v31 = vadd.f32 %v4857_v26, %v4856_v17  ;;  %v4922_v52 = vadd.f32 %v4921_v54, %v4920_v14 }
 0x169   : > { %v4859_v34 = vpop.f32.mrf.mxu1  ;;  %v4923_v35 = vpop.f32.mrf.mxu0  ;;  %3070 = vmatmul.mubr.bf16.gmra.mxu0 %v5828_v18  ;;  %3167 = vmatmul.mubr.bf16.gmra.mxu1 %v5831_v44 }
 0x16a   : > { %v6739_v40 = vadd.f32 %v4858_v31, %v2423_v10  ;;  %v6742_v9 = vadd.f32 %v4922_v52, %v6608_v23  ;;  %3077 = vmatprep.mubr.bf16.mxu0 %v5836_v62  ;;  %3174 = vmatprep.mubr.bf16.mxu1 %v5839_v27  ;;  %v5842_v23 = vld [vmem:[%s6134_s24 + $0x56c] ss:$52 sps:$4 sm:$0xff]   ;;  %v5840_v10 = vld [vmem:[%s6134_s24 + $0x568] ss:$52 sps:$4 sm:$0xff]   ;;  %v5843_v31 = vld [vmem:[%s6134_s24 + $0x230] ss:$52 sps:$4 sm:$0xff]  }
 0x16b   : > { %v4860_v21 = vpop.f32.mrf.mxu1  ;;  %v4924_v41 = vpop.f32.mrf.mxu0 }
 0x16c   : > { %v4861_v36 = vadd.f32 %v4860_v21, %v4859_v34  ;;  %v4925_v48 = vadd.f32 %v4924_v41, %v4923_v35  ;;  %v5851_v35 = vld [vmem:[%s6134_s24 + $0x29c] ss:$52 sps:$4 sm:$0xff]  }
 0x16d   : > { %v4862_v57 = vpop.f32.mrf.mxu1  ;;  %v4926_v53 = vpop.f32.mrf.mxu0 }
 0x16e   : > { %v6748_v20 = vadd.f32 %v4861_v36, %v2428_v6  ;;  %v6751_v28 = vadd.f32 %v4925_v48, %v6616_v37  ;;  %v2439_v6 = vadd.f32 %v6515_v22, %v6560_v13  ;;  %v2444_v22 = vadd.f32 %v6519_v29, %v6560_v13 }
 0x16f   : > { %v4863_v0 = vpop.f32.mrf.mxu1  ;;  %v4927_v2 = vpop.f32.mrf.mxu0 }
 0x170   : > { %v4864_v5 = vadd.f32 %v4863_v0, %v4862_v57  ;;  %v4928_v33 = vadd.f32 %v4927_v2, %v4926_v53 }
 0x171   : > { %v4865_v1 = vpop.f32.mrf.mxu1  ;;  %v4929_v17 = vpop.f32.mrf.mxu0  ;;  %3078 = vmatmul.mubr.bf16.gmra.mxu0 %v5834_v47  ;;  %3175 = vmatmul.mubr.bf16.gmra.mxu1 %v5837_v7 }
 0x172   : > { %v6757_v14 = vadd.f32 %v4864_v5, %v2431_v42  ;;  %v6760_v37 = vadd.f32 %v4928_v33, %v6624_v51  ;;  %3085 = vmatprep.mubr.bf16.mxu0 %v5842_v23  ;;  %3182 = vmatprep.mubr.bf16.mxu1 %v5845_v58  ;;  %v5848_v51 = vld [vmem:[%s6134_s24 + $0x5d4] ss:$52 sps:$4 sm:$0xff]   ;;  %v5846_v42 = vld [vmem:[%s6134_s24 + $0x5d0] ss:$52 sps:$4 sm:$0xff]   ;;  %v5849_v5 = vld [vmem:[%s6134_s24 + $0x298] ss:$52 sps:$4 sm:$0xff]  }
 0x173   : > { %v4866_v18 = vpop.f32.mrf.mxu1  ;;  %v4930_v44 = vpop.f32.mrf.mxu0 }
 0x174   : > { %v4867_v62 = vadd.f32 %v4866_v18, %v4865_v1  ;;  %v4931_v27 = vadd.f32 %v4930_v44, %v4929_v17  ;;  %v5857_v17 = vld [vmem:[%s6134_s24 + $0x304] ss:$52 sps:$4 sm:$0xff]  }
 0x175   : > { %v4868_v26 = vpop.f32.mrf.mxu1  ;;  %v4932_v54 = vpop.f32.mrf.mxu0 }
 0x176   : > { %v6766_v52 = vadd.f32 %v4867_v62, %v2436_v43  ;;  %v6769_v34 = vadd.f32 %v4931_v27, %v6632_v38  ;;  %v2447_v43 = vadd.f32 %v6527_v39, %v6560_v13  ;;  %v2452_v39 = vadd.f32 %v6531_v45, %v6560_v13 }
 0x177   : > { %v4869_v21 = vpop.f32.mrf.mxu1  ;;  %v4933_v41 = vpop.f32.mrf.mxu0 }
 0x178   : > { %v4870_v36 = vadd.f32 %v4869_v21, %v4868_v26  ;;  %v4934_v12 = vadd.f32 %v4933_v41, %v4932_v54 }
 0x179   : > { %v4871_v48 = vpop.f32.mrf.mxu1  ;;  %v4935_v57 = vpop.f32.mrf.mxu0  ;;  %3086 = vmatmul.mubr.bf16.gmra.mxu0 %v5840_v10  ;;  %3183 = vmatmul.mubr.bf16.gmra.mxu1 %v5843_v31 }
 0x17a   : > { %v6775_v53 = vadd.f32 %v4870_v36, %v2439_v6  ;;  %v6778_v38 = vadd.f32 %v4934_v12, %v6640_v16  ;;  %3093 = vmatprep.mubr.bf16.mxu0 %v5848_v51  ;;  %3190 = vmatprep.mubr.bf16.mxu1 %v5851_v35  ;;  %v5854_v16 = vld [vmem:[%s6134_s24 + $0x63c] ss:$52 sps:$4 sm:$0xff]   ;;  %v5852_v6 = vld [vmem:[%s6134_s24 + $0x638] ss:$52 sps:$4 sm:$0xff]   ;;  %v5855_v36 = vld [vmem:[%s6134_s24 + $0x300] ss:$52 sps:$4 sm:$0xff]  }
 0x17b   : > { %v4872_v47 = vpop.f32.mrf.mxu1  ;;  %v4936_v7 = vpop.f32.mrf.mxu0 }
 0x17c   : > { %v4873_v23 = vadd.f32 %v4872_v47, %v4871_v48  ;;  %v4937_v58 = vadd.f32 %v4936_v7, %v4935_v57  ;;  %v5861_v57 = vld [vmem:[%s6134_s24 + $0x30] ss:$52 sps:$4 sm:$0xff]  }
 0x17d   : > { %v4874_v0 = vpop.f32.mrf.mxu1  ;;  %v4938_v2 = vpop.f32.mrf.mxu0 }
 0x17e   : > { %v6784_v33 = vadd.f32 %v4873_v23, %v2444_v22  ;;  %v6787_v1 = vadd.f32 %v4937_v58, %v6648_v32  ;;  %v2455_v22 = vadd.f32 %v6539_v55, %v6560_v13 }
 0x17f   : > { %v4875_v18 = vpop.f32.mrf.mxu1  ;;  %v4939_v44 = vpop.f32.mrf.mxu0 }
 0x180   : > { %v4876_v62 = vadd.f32 %v4875_v18, %v4874_v0  ;;  %v4940_v29 = vadd.f32 %v4939_v44, %v4938_v2 }
 0x181   : > { %v4877_v27 = vpop.f32.mrf.mxu1  ;;  %v4941_v26 = vpop.f32.mrf.mxu0  ;;  %3094 = vmatmul.mubr.bf16.gmra.mxu0 %v5846_v42  ;;  %3191 = vmatmul.mubr.bf16.gmra.mxu1 %v5849_v5  ;;  %v2460_v5 = vadd.f32 %v6543_v61, %v6560_v13 }
 0x182   : > { %v6793_v54 = vadd.f32 %v4876_v62, %v2447_v43  ;;  %v6796_v32 = vadd.f32 %v4940_v29, %v6656_v60  ;;  %3101 = vmatprep.mubr.bf16.mxu0 %v5854_v16  ;;  %3198 = vmatprep.mubr.bf16.mxu1 %v5857_v17  ;;  %v5860_v60 = vld [vmem:[%s6134_s24 + $0x36c] ss:$52 sps:$4 sm:$0xff]   ;;  %v5858_v43 = vld [vmem:[%s6134_s24 + $0x368] ss:$52 sps:$4 sm:$0xff]  }
 0x183   : > { %v4878_v10 = vpop.f32.mrf.mxu1  ;;  %v4942_v31 = vpop.f32.mrf.mxu0  ;;  %v5862_v62 = vld [vmem:[%s6134_s24 + $0x98] ss:$52 sps:$4 sm:$0xff]  }
 0x184   : > { %v4879_v51 = vadd.f32 %v4878_v10, %v4877_v27  ;;  %v4943_v35 = vadd.f32 %v4942_v31, %v4941_v26  ;;  %v5866_v26 = vld [vmem:[%s6134_s24 + $0x100] ss:$52 sps:$4 sm:$0xff]  }
 0x185   : > { %v4880_v21 = vpop.f32.mrf.mxu1  ;;  %v4944_v41 = vpop.f32.mrf.mxu0 }
 0x186   : > { %v6802_v12 = vadd.f32 %v4879_v51, %v2452_v39  ;;  %v6805_v48 = vadd.f32 %v4943_v35, %v6664_v63  ;;  %v2463_v39 = vadd.f32 %v6554_v8, %v6560_v13 }
 0x187   : > { %v4881_v47 = vpop.f32.mrf.mxu1  ;;  %v4945_v7 = vpop.f32.mrf.mxu0 }
 0x188   : > { %v4882_v45 = vadd.f32 %v4881_v47, %v4880_v21  ;;  %v4946_v23 = vadd.f32 %v4945_v7, %v4944_v41  ;;  %v5863_v47 = vld [vmem:[%s6134_s24 + $0x3d0] ss:$52 sps:$4 sm:$0xff]   ;;  %v5867_v7 = vld [vmem:[%s6134_s24 + $0x168] ss:$52 sps:$4 sm:$0xff]  }
 0x189   : > { %v4883_v58 = vpop.f32.mrf.mxu1  ;;  %v4947_v0 = vpop.f32.mrf.mxu0  ;;  %3102 = vmatmul.mubr.bf16.gmra.mxu0 %v5852_v6  ;;  %3199 = vmatmul.mubr.bf16.gmra.mxu1 %v5855_v36 }
 0x18a   : > { %v6811_v2 = vadd.f32 %v4882_v45, %v2455_v22  ;;  %v6814_v63 = vadd.f32 %v4946_v23, %v6672_v15  ;;  %3206 = vmatprep.mubr.bf16.mxu1 %v5860_v60  ;;  %5359 = vmatprep.mubr.msk.bf16.mxu0 %vm2256_vm0, %v5861_v57  ;;  %v5865_v15 = vld [vmem:[%s6134_s24 + $0x3d4] ss:$52 sps:$4 sm:$0xff]   ;;  %v5870_v23 = vld [vmem:[%s6134_s24 + $0x43c] ss:$52 sps:$4 sm:$0xff]  }
 0x18b   : > { %v4884_v42 = vpop.f32.mrf.mxu1  ;;  %v4948_v55 = vpop.f32.mrf.mxu0 }
 0x18c   : > { %v4885_v16 = vadd.f32 %v4884_v42, %v4883_v58  ;;  %v4949_v17 = vadd.f32 %v4948_v55, %v4947_v0 }
 0x18d   : > { %v4886_v18 = vpop.f32.mrf.mxu1  ;;  %v4950_v44 = vpop.f32.mrf.mxu0 }
 0x18e   : > { %v6821_v29 = vadd.f32 %v4885_v16, %v2460_v5  ;;  %v6824_v27 = vadd.f32 %v4949_v17, %v6680_v11 }
 0x18f   : > { %v4887_v10 = vpop.f32.mrf.mxu1  ;;  %v4951_v31 = vpop.f32.mrf.mxu0 }
 0x190   : > { %v4888_v51 = vadd.f32 %v4887_v10, %v4886_v18  ;;  %v4952_v61 = vadd.f32 %v4951_v31, %v4950_v44  ;;  %v5872_v10 = vld [vmem:[%s6134_s24 + $0x238] ss:$52 sps:$4 sm:$0xff]  }
 0x191   : > { %v4953_v35 = vpop.f32.mrf.mxu0  ;;  %v5017_v21 = vpop.f32.mrf.mxu1  ;;  %3207 = vmatmul.mubr.bf16.gmra.mxu1 %v5858_v43  ;;  %5360 = vmatmul.mubr.msk.bf16.vlgmr.msra.gmra.mxu0 %vm2256_vm0, %v5862_v62 }
 0x192   : > { %v6831_v11 = vadd.f32 %v4888_v51, %v2463_v39  ;;  %v6834_v41 = vadd.f32 %v4952_v61, %v6688_v50  ;;  %3214 = vmatprep.mubr.bf16.mxu1 %v5865_v15  ;;  %5363 = vmatprep.mubr.msk.bf16.mxu0 %vm2256_vm0, %v5866_v26  ;;  %v5871_v50 = vld [vmem:[%s6134_s24 + $0x1d0] ss:$52 sps:$4 sm:$0xff]   ;;  %v5868_v26 = vld [vmem:[%s6134_s24 + $0x438] ss:$52 sps:$4 sm:$0xff]  }
 0x193   : > { %v4954_v8 = vpop.f32.mrf.mxu0  ;;  %v5018_v13 = vpop.f32.mrf.mxu1  ;;  %v5875_v39 = vld [vmem:[%s6134_s24 + $0x4a4] ss:$52 sps:$4 sm:$0xff]  }
 0x194   : > { %v4955_v6 = vadd.f32 %v4954_v8, %v4953_v35  ;;  %v5019_v36 = vadd.f32 %v5018_v13, %v5017_v21 }
 0x195   : > { %v4956_v60 = vpop.f32.mrf.mxu0  ;;  %v5020_v57 = vpop.f32.mrf.mxu1 }
 0x196   : > { %v6840_v22 = vadd.f32 %v4955_v6, %v6694_v3  ;;  %v6843_v45 = vadd.f32 %v5019_v36, %v6697_v4 }
 0x197   : > { %v4957_v58 = vpop.f32.mrf.mxu0  ;;  %v5021_v0 = vpop.f32.mrf.mxu1 }
 0x198   : > { %v4958_v42 = vadd.f32 %v4957_v58, %v4956_v60  ;;  %v5022_v55 = vadd.f32 %v5021_v0, %v5020_v57  ;;  %v5880_v0 = vld [vmem:[%s6134_s24 + $0x50c] ss:$52 sps:$4 sm:$0xff]  }
 0x199   : > { %v4959_v5 = vpop.f32.mrf.mxu0  ;;  %v5023_v16 = vpop.f32.mrf.mxu1  ;;  %3215 = vmatmul.mubr.bf16.gmra.mxu1 %v5863_v47  ;;  %5364 = vmatmul.mubr.msk.bf16.gmra.mxu0 %vm2256_vm0, %v5867_v7 }
 0x19a   : > { %v6849_v3 = vadd.f32 %v4958_v42, %v6703_v25  ;;  %v6852_v4 = vadd.f32 %v5022_v55, %v6706_v24  ;;  %3222 = vmatprep.mubr.bf16.mxu1 %v5870_v23  ;;  %5367 = vmatprep.mubr.msk.bf16.mxu0 %vm2256_vm0, %v5871_v50  ;;  %v5876_v24 = vld [vmem:[%s6134_s24 + $0x2a0] ss:$52 sps:$4 sm:$0xff]   ;;  %v5877_v50 = vld [vmem:[%s6134_s24 + $0x308] ss:$52 sps:$4 sm:$0xff]  }
 0x19b   : > { %v4960_v17 = vpop.f32.mrf.mxu0  ;;  %v5024_v18 = vpop.f32.mrf.mxu1  ;;  %v5873_v23 = vld [vmem:[%s6134_s24 + $0x4a0] ss:$52 sps:$4 sm:$0xff]  }
 0x19c   : > { %v4961_v44 = vadd.f32 %v4960_v17, %v4959_v5  ;;  %v5025_v43 = vadd.f32 %v5024_v18, %v5023_v16 }
 0x19d   : > { %v4962_v62 = vpop.f32.mrf.mxu0  ;;  %v5026_v15 = vpop.f32.mrf.mxu1 }
 0x19e   : > { %v6858_v31 = vadd.f32 %v4961_v44, %v6712_v30  ;;  %v6861_v25 = vadd.f32 %v5025_v43, %v6715_v46 }
 0x19f   : > { %v4963_v51 = vpop.f32.mrf.mxu0  ;;  %v5027_v61 = vpop.f32.mrf.mxu1 }
 0x1a0   : > { %v4964_v35 = vadd.f32 %v4963_v51, %v4962_v62  ;;  %v5028_v21 = vadd.f32 %v5027_v61, %v5026_v15  ;;  %v5885_v61 = vld [vmem:[%s6134_s24 + $0x574] ss:$52 sps:$4 sm:$0xff]  }
 0x1a1   : > { %v4965_v8 = vpop.f32.mrf.mxu0  ;;  %v5029_v13 = vpop.f32.mrf.mxu1  ;;  %3223 = vmatmul.mubr.bf16.gmra.mxu1 %v5868_v26  ;;  %5368 = vmatmul.mubr.msk.bf16.gmra.mxu0 %vm2256_vm0, %v5872_v10 }
 0x1a2   : > { %v6867_v30 = vadd.f32 %v4964_v35, %v6721_v59  ;;  %v6870_v46 = vadd.f32 %v5028_v21, %v6724_v49  ;;  %3230 = vmatprep.mubr.bf16.mxu1 %v5875_v39  ;;  %5371 = vmatprep.mubr.msk.bf16.mxu0 %vm2256_vm0, %v5876_v24  ;;  %v5881_v49 = vld [vmem:[%s6134_s24 + $0x370] ss:$52 sps:$4 sm:$0xff]   ;;  %v5878_v39 = vld [vmem:[%s6134_s24 + $0x508] ss:$52 sps:$4 sm:$0xff]   ;;  %v5882_v24 = vld [vmem:[%s6134_s24 + $0x3d8] ss:$52 sps:$4 sm:$0xff]  }
 0x1a3   : > { %v4966_v6 = vpop.f32.mrf.mxu0  ;;  %v5030_v36 = vpop.f32.mrf.mxu1 }
 0x1a4   : > { %v4967_v60 = vadd.f32 %v4966_v6, %v4965_v8  ;;  %v5031_v57 = vadd.f32 %v5030_v36, %v5029_v13 }
 0x1a5   : > { %v4968_v47 = vpop.f32.mrf.mxu0  ;;  %v5032_v7 = vpop.f32.mrf.mxu1 }
 0x1a6   : > { %v6876_v58 = vadd.f32 %v4967_v60, %v6730_v56  ;;  %v6879_v59 = vadd.f32 %v5031_v57, %v6733_v19 }
 0x1a7   : > { %v4969_v42 = vpop.f32.mrf.mxu0  ;;  %v5033_v55 = vpop.f32.mrf.mxu1 }
 0x1a8   : > { %v4970_v5 = vadd.f32 %v4969_v42, %v4968_v47  ;;  %v5034_v16 = vadd.f32 %v5033_v55, %v5032_v7  ;;  %v5890_v55 = vld [vmem:[%s6134_s24 + $0x5dc] ss:$52 sps:$4 sm:$0xff]  }
 0x1a9   : > { %v4971_v17 = vpop.f32.mrf.mxu0  ;;  %v5035_v18 = vpop.f32.mrf.mxu1  ;;  %3231 = vmatmul.mubr.bf16.gmra.mxu1 %v5873_v23  ;;  %5372 = vmatmul.mubr.msk.bf16.gmra.mxu0 %vm2256_vm0, %v5877_v50 }
 0x1aa   : > { %v6885_v56 = vadd.f32 %v4970_v5, %v6739_v40  ;;  %v6888_v19 = vadd.f32 %v5034_v16, %v6742_v9  ;;  %3238 = vmatprep.mubr.bf16.mxu1 %v5880_v0  ;;  %5375 = vmatprep.mubr.msk.bf16.mxu0 %vm2256_vm0, %v5881_v49  ;;  %v5886_v9 = vld [vmem:[%s6134_s24 + $0x440] ss:$52 sps:$4 sm:$0xff]   ;;  %v5883_v0 = vld [vmem:[%s6134_s24 + $0x570] ss:$52 sps:$4 sm:$0xff]   ;;  %v5887_v49 = vld [vmem:[%s6134_s24 + $0x4a8] ss:$52 sps:$4 sm:$0xff]  }
 0x1ab   : > { %v4972_v44 = vpop.f32.mrf.mxu0  ;;  %v5036_v43 = vpop.f32.mrf.mxu1 }
 0x1ac   : > { %v4973_v62 = vadd.f32 %v4972_v44, %v4971_v17  ;;  %v5037_v15 = vadd.f32 %v5036_v43, %v5035_v18 }
 0x1ad   : > { %v4974_v26 = vpop.f32.mrf.mxu0  ;;  %v5038_v10 = vpop.f32.mrf.mxu1 }
 0x1ae   : > { %v6894_v51 = vadd.f32 %v4973_v62, %v6748_v20  ;;  %v6897_v40 = vadd.f32 %v5037_v15, %v6751_v28 }
 0x1af   : > { %v4975_v35 = vpop.f32.mrf.mxu0  ;;  %v5039_v21 = vpop.f32.mrf.mxu1 }
 0x1b0   : > { %v4976_v8 = vadd.f32 %v4975_v35, %v4974_v26  ;;  %v5040_v13 = vadd.f32 %v5039_v21, %v5038_v10  ;;  %v5895_v21 = vld [vmem:[%s6134_s24 + $0x644] ss:$52 sps:$4 sm:$0xff]  }
 0x1b1   : > { %v4977_v6 = vpop.f32.mrf.mxu0  ;;  %v5041_v36 = vpop.f32.mrf.mxu1  ;;  %3239 = vmatmul.mubr.bf16.gmra.mxu1 %v5878_v39  ;;  %5376 = vmatmul.mubr.msk.bf16.gmra.mxu0 %vm2256_vm0, %v5882_v24 }
 0x1b2   : > { %v6903_v20 = vadd.f32 %v4976_v8, %v6757_v14  ;;  %v6906_v28 = vadd.f32 %v5040_v13, %v6760_v37  ;;  %3246 = vmatprep.mubr.bf16.mxu1 %v5885_v61  ;;  %5379 = vmatprep.mubr.msk.bf16.mxu0 %vm2256_vm0, %v5886_v9  ;;  %v5891_v37 = vld [vmem:[%s6134_s24 + $0x510] ss:$52 sps:$4 sm:$0xff]   ;;  %v5888_v61 = vld [vmem:[%s6134_s24 + $0x5d8] ss:$52 sps:$4 sm:$0xff]  }
 0x1b3   : > { %v4978_v60 = vpop.f32.mrf.mxu0  ;;  %v5042_v57 = vpop.f32.mrf.mxu1  ;;  %v5892_v9 = vld [vmem:[%s6134_s24 + $0x578] ss:$52 sps:$4 sm:$0xff]  }
 0x1b4   : > { %v4979_v47 = vadd.f32 %v4978_v60, %v4977_v6  ;;  %v5043_v7 = vadd.f32 %v5042_v57, %v5041_v36 }
 0x1b5   : > { %v4980_v23 = vpop.f32.mrf.mxu0  ;;  %v5044_v50 = vpop.f32.mrf.mxu1 }
 0x1b6   : > { %v6912_v42 = vadd.f32 %v4979_v47, %v6766_v52  ;;  %v6915_v14 = vadd.f32 %v5043_v7, %v6769_v34 }
 0x1b7   : > { %v4981_v5 = vpop.f32.mrf.mxu0  ;;  %v5045_v16 = vpop.f32.mrf.mxu1 }
 0x1b8   : > { %v4982_v17 = vadd.f32 %v4981_v5, %v4980_v23  ;;  %v5046_v18 = vadd.f32 %v5045_v16, %v5044_v50 }
 0x1b9   : > { %v4983_v44 = vpop.f32.mrf.mxu0  ;;  %v5047_v43 = vpop.f32.mrf.mxu1  ;;  %3247 = vmatmul.mubr.bf16.gmra.mxu1 %v5883_v0  ;;  %5380 = vmatmul.mubr.msk.bf16.gmra.mxu0 %vm2256_vm0, %v5887_v49 }
 0x1ba   : > { %v6921_v52 = vadd.f32 %v4982_v17, %v6775_v53  ;;  %v6924_v34 = vadd.f32 %v5046_v18, %v6778_v38  ;;  %3254 = vmatprep.mubr.bf16.mxu1 %v5890_v55  ;;  %5383 = vmatprep.mubr.msk.bf16.mxu0 %vm2256_vm0, %v5891_v37  ;;  %v5896_v38 = vld [vmem:[%s6134_s24 + $0x5e0] ss:$52 sps:$4 sm:$0xff]   ;;  %v5897_v37 = vld [vmem:[%s6134_s24 + $0x648] ss:$52 sps:$4 sm:$0xff]  }
 0x1bb   : > { %v4984_v62 = vpop.f32.mrf.mxu0  ;;  %v5048_v15 = vpop.f32.mrf.mxu1  ;;  %v5893_v55 = vld [vmem:[%s6134_s24 + $0x640] ss:$52 sps:$4 sm:$0xff]   ;;  %s175_s24 = sand.u32 1, %s6008_s12  }
 0x1bc   : > { %v4985_v26 = vadd.f32 %v4984_v62, %v4983_v44  ;;  %v5049_v10 = vadd.f32 %v5048_v15, %v5047_v43  ;;  %s7290_s12 = sshll.u32 %s175_s24, 7 }
 0x1bd   : > { %v4986_v39 = vpop.f32.mrf.mxu0  ;;  %v5050_v24 = vpop.f32.mrf.mxu1  ;;  %s7326_s7 = scalar_lea.vmem [#allocation2], %s7290_s12  }
 0x1be   : > { %v6930_v35 = vadd.f32 %v4985_v26, %v6784_v33  ;;  %v6933_v53 = vadd.f32 %v5049_v10, %v6787_v1 }
 0x1bf   : > { %v4987_v8 = vpop.f32.mrf.mxu0  ;;  %v5051_v13 = vpop.f32.mrf.mxu1 }
 0x1c0   : > { %v4988_v6 = vadd.f32 %v4987_v8, %v4986_v39  ;;  %v5052_v36 = vadd.f32 %v5051_v13, %v5050_v24 }
 0x1c1   : > { %v4989_v60 = vpop.f32.mrf.mxu0  ;;  %v5053_v57 = vpop.f32.mrf.mxu1  ;;  %3255 = vmatmul.mubr.bf16.gmra.mxu1 %v5888_v61  ;;  %5384 = vmatmul.mubr.msk.bf16.gmra.mxu0 %vm2256_vm0, %v5892_v9 }
 0x1c2   : > { %v6939_v47 = vadd.f32 %v4988_v6, %v6793_v54  ;;  %v6942_v33 = vadd.f32 %v5052_v36, %v6796_v32  ;;  %3262 = vmatprep.mubr.bf16.mxu1 %v5895_v21  ;;  %5387 = vmatprep.mubr.msk.bf16.mxu0 %vm2256_vm0, %v5896_v38 }
 0x1c3   : > { %v4990_v1 = vpop.f32.mrf.mxu0  ;;  %v5054_v7 = vpop.f32.mrf.mxu1 }
 0x1c4   : > { %v4991_v23 = vadd.f32 %v4990_v1, %v4989_v60  ;;  %v5055_v50 = vadd.f32 %v5054_v7, %v5053_v57 }
 0x1c5   : > { %v4992_v0 = vpop.f32.mrf.mxu0  ;;  %v5056_v49 = vpop.f32.mrf.mxu1 }
 0x1c6   : > { %v6948_v5 = vadd.f32 %v4991_v23, %v6802_v12  ;;  %v6951_v54 = vadd.f32 %v5055_v50, %v6805_v48 }
 0x1c7   : > { %v4993_v16 = vpop.f32.mrf.mxu0  ;;  %v5057_v32 = vpop.f32.mrf.mxu1 }
 0x1c8   : > { %v4994_v17 = vadd.f32 %v4993_v16, %v4992_v0  ;;  %v5058_v18 = vadd.f32 %v5057_v32, %v5056_v49 }
 0x1c9   : > { %v4995_v44 = vpop.f32.mrf.mxu0  ;;  %v5059_v43 = vpop.f32.mrf.mxu1  ;;  %3263 = vmatmul.mubr.bf16.gmra.mxu1 %v5893_v55  ;;  %5388 = vmatmul.mubr.msk.bf16.gmra.mxu0 %vm2256_vm0, %v5897_v37 }
 0x1ca   : > { %v6955_v62 = vadd.f32 %v4994_v17, %v6811_v2  ;;  %v6958_v15 = vadd.f32 %v5058_v18, %v6814_v63 }
 0x1cb   : > { %v4996_v12 = vpop.f32.mrf.mxu0  ;;  %v5060_v26 = vpop.f32.mrf.mxu1 }
 0x1cc   : > { %v4997_v10 = vadd.f32 %v4996_v12, %v4995_v44  ;;  %v5061_v48 = vadd.f32 %v5060_v26, %v5059_v43 }
 0x1cd   : > { %v4998_v39 = vpop.f32.mrf.mxu0  ;;  %v5062_v24 = vpop.f32.mrf.mxu1 }
 0x1ce   : > { %v6961_v61 = vadd.f32 %v4997_v10, %v6821_v29  ;;  %v6964_v9 = vadd.f32 %v5061_v48, %v6824_v27 }
 0x1cf   : > { %v4999_v21 = vpop.f32.mrf.mxu0  ;;  %v5063_v38 = vpop.f32.mrf.mxu1 }
 0x1d0   : > { %v5000_v8 = vadd.f32 %v4999_v21, %v4998_v39  ;;  %v5064_v2 = vadd.f32 %v5063_v38, %v5062_v24 }
 0x1d1   : > { %v5065_v13 = vpop.f32.mrf.mxu1  ;;  %v5129_v6 = vpop.f32.mrf.mxu0 }
 0x1d2   : > { %v6967_v63 = vadd.f32 %v5000_v8, %v6831_v11  ;;  %v6970_v36 = vadd.f32 %v5064_v2, %v6834_v41 }
 0x1d3   : > { %v5066_v60 = vpop.f32.mrf.mxu1  ;;  %v5130_v57 = vpop.f32.mrf.mxu0 }
 0x1d4   : > { %v5067_v1 = vadd.f32 %v5066_v60, %v5065_v13  ;;  %v5131_v29 = vadd.f32 %v5130_v57, %v5129_v6 }
 0x1d5   : > { %v5068_v7 = vpop.f32.mrf.mxu1  ;;  %v5132_v23 = vpop.f32.mrf.mxu0 }
 0x1d6   : > { %v6973_v27 = vadd.f32 %v5067_v1, %v6840_v22  ;;  %v6976_v50 = vadd.f32 %v5131_v29, %v6843_v45 }
 0x1d7   : > { %v5069_v0 = vpop.f32.mrf.mxu1  ;;  %v5133_v49 = vpop.f32.mrf.mxu0 }
 0x1d8   : > { %v5070_v55 = vadd.f32 %v5069_v0, %v5068_v7  ;;  %v5134_v11 = vadd.f32 %v5133_v49, %v5132_v23 }
 0x1d9   : > { %v5071_v37 = vpop.f32.mrf.mxu1  ;;  %v5135_v16 = vpop.f32.mrf.mxu0 }
 0x1da   : > { %v6979_v41 = vadd.f32 %v5070_v55, %v6849_v3  ;;  %v6982_v32 = vadd.f32 %v5134_v11, %v6852_v4 }
 0x1db   : > { %v5072_v17 = vpop.f32.mrf.mxu1  ;;  %v5136_v18 = vpop.f32.mrf.mxu0 }
 0x1dc   : > { %v5073_v44 = vadd.f32 %v5072_v17, %v5071_v37  ;;  %v5137_v22 = vadd.f32 %v5136_v18, %v5135_v16 }
 0x1dd   : > { %v5074_v43 = vpop.f32.mrf.mxu1  ;;  %v5138_v12 = vpop.f32.mrf.mxu0 }
 0x1de   : > { %v6985_v45 = vadd.f32 %v5073_v44, %v6858_v31  ;;  %v6988_v26 = vadd.f32 %v5137_v22, %v6861_v25 }
 0x1df   : > { %v5075_v10 = vpop.f32.mrf.mxu1  ;;  %v5139_v48 = vpop.f32.mrf.mxu0 }
 0x1e0   : > { %v5076_v39 = vadd.f32 %v5075_v10, %v5074_v43  ;;  %v5140_v3 = vadd.f32 %v5139_v48, %v5138_v12 }
 0x1e1   : > { %v5077_v24 = vpop.f32.mrf.mxu1  ;;  %v5141_v21 = vpop.f32.mrf.mxu0 }
 0x1e2   : > { %v6991_v4 = vadd.f32 %v5076_v39, %v6867_v30  ;;  %v6994_v38 = vadd.f32 %v5140_v3, %v6870_v46 }
 0x1e3   : > { %v5078_v8 = vpop.f32.mrf.mxu1  ;;  %v5142_v2 = vpop.f32.mrf.mxu0 }
 0x1e4   : > { %v5079_v13 = vadd.f32 %v5078_v8, %v5077_v24  ;;  %v5143_v31 = vadd.f32 %v5142_v2, %v5141_v21 }
 0x1e5   : > { %v5080_v6 = vpop.f32.mrf.mxu1  ;;  %v5144_v60 = vpop.f32.mrf.mxu0 }
 0x1e6   : > { %v6997_v25 = vadd.f32 %v5079_v13, %v6876_v58  ;;  %v7000_v57 = vadd.f32 %v5143_v31, %v6879_v59 }
 0x1e7   : > { %v5081_v1 = vpop.f32.mrf.mxu1  ;;  %v5145_v29 = vpop.f32.mrf.mxu0 }
 0x1e8   : > { %v5082_v7 = vadd.f32 %v5081_v1, %v5080_v6  ;;  %v5146_v30 = vadd.f32 %v5145_v29, %v5144_v60 }
 0x1e9   : > { %v5083_v23 = vpop.f32.mrf.mxu1  ;;  %v5147_v0 = vpop.f32.mrf.mxu0 }
 0x1ea   : > { %v7003_v46 = vadd.f32 %v5082_v7, %v6885_v56  ;;  %v7006_v49 = vadd.f32 %v5146_v30, %v6888_v19 }
 0x1eb   : > { %v5084_v55 = vpop.f32.mrf.mxu1  ;;  %v5148_v11 = vpop.f32.mrf.mxu0 }
 0x1ec   : > { %v5085_v37 = vadd.f32 %v5084_v55, %v5083_v23  ;;  %v5149_v58 = vadd.f32 %v5148_v11, %v5147_v0 }
 0x1ed   : > { %v5086_v16 = vpop.f32.mrf.mxu1  ;;  %v5150_v17 = vpop.f32.mrf.mxu0 }
 0x1ee   : > { %v7009_v59 = vadd.f32 %v5085_v37, %v6894_v51  ;;  %v7012_v18 = vadd.f32 %v5149_v58, %v6897_v40 }
 0x1ef   : > { %v5087_v44 = vpop.f32.mrf.mxu1  ;;  %v5151_v22 = vpop.f32.mrf.mxu0 }
 0x1f0   : > { %v5088_v43 = vadd.f32 %v5087_v44, %v5086_v16  ;;  %v5152_v56 = vadd.f32 %v5151_v22, %v5150_v17 }
 0x1f1   : > { %v5089_v12 = vpop.f32.mrf.mxu1  ;;  %v5153_v10 = vpop.f32.mrf.mxu0 }
 0x1f2   : > { %v7015_v19 = vadd.f32 %v5088_v43, %v6903_v20  ;;  %v7018_v48 = vadd.f32 %v5152_v56, %v6906_v28 }
 0x1f3   : > { %v5090_v39 = vpop.f32.mrf.mxu1  ;;  %v5154_v3 = vpop.f32.mrf.mxu0 }
 0x1f4   : > { %v5091_v24 = vadd.f32 %v5090_v39, %v5089_v12  ;;  %v5155_v51 = vadd.f32 %v5154_v3, %v5153_v10 }
 0x1f5   : > { %v5092_v21 = vpop.f32.mrf.mxu1  ;;  %v5156_v8 = vpop.f32.mrf.mxu0 }
 0x1f6   : > { %v7021_v40 = vadd.f32 %v5091_v24, %v6912_v42  ;;  %v7024_v2 = vadd.f32 %v5155_v51, %v6915_v14 }
 0x1f7   : > { %v5093_v13 = vpop.f32.mrf.mxu1  ;;  %v5157_v31 = vpop.f32.mrf.mxu0 }
 0x1f8   : > { %v5094_v6 = vadd.f32 %v5093_v13, %v5092_v21  ;;  %v5158_v20 = vadd.f32 %v5157_v31, %v5156_v8 }
 0x1f9   : > { %v5095_v60 = vpop.f32.mrf.mxu1  ;;  %v5159_v1 = vpop.f32.mrf.mxu0 }
 0x1fa   : > { %v7027_v28 = vadd.f32 %v5094_v6, %v6921_v52  ;;  %v7030_v29 = vadd.f32 %v5158_v20, %v6924_v34 }
 0x1fb   : > { %v5096_v7 = vpop.f32.mrf.mxu1  ;;  %v5160_v30 = vpop.f32.mrf.mxu0 }
 0x1fc   : > { %v5097_v23 = vadd.f32 %v5096_v7, %v5095_v60  ;;  %v5161_v42 = vadd.f32 %v5160_v30, %v5159_v1 }
 0x1fd   : > { %v5098_v0 = vpop.f32.mrf.mxu1  ;;  %v5162_v55 = vpop.f32.mrf.mxu0 }
 0x1fe   : > { %v7033_v14 = vadd.f32 %v5097_v23, %v6930_v35  ;;  %v7036_v11 = vadd.f32 %v5161_v42, %v6933_v53 }
 0x1ff   : > { %v5099_v37 = vpop.f32.mrf.mxu1  ;;  %v5163_v58 = vpop.f32.mrf.mxu0 }
 0x200   : > { %v5100_v16 = vadd.f32 %v5099_v37, %v5098_v0  ;;  %v5164_v52 = vadd.f32 %v5163_v58, %v5162_v55 }
 0x201   : > { %v5101_v17 = vpop.f32.mrf.mxu1  ;;  %v5165_v44 = vpop.f32.mrf.mxu0 }
 0x202   : > { %v7039_v34 = vadd.f32 %v5100_v16, %v6939_v47  ;;  %v7042_v22 = vadd.f32 %v5164_v52, %v6942_v33 }
 0x203   : > { %v5102_v43 = vpop.f32.mrf.mxu1  ;;  %v5166_v56 = vpop.f32.mrf.mxu0 }
 0x204   : > { %v5103_v12 = vadd.f32 %v5102_v43, %v5101_v17  ;;  %v5167_v35 = vadd.f32 %v5166_v56, %v5165_v44 }
 0x205   : > { %v5104_v10 = vpop.f32.mrf.mxu1  ;;  %v5168_v39 = vpop.f32.mrf.mxu0 }
 0x206   : > { %v7045_v53 = vadd.f32 %v5103_v12, %v6948_v5  ;;  %v7048_v3 = vadd.f32 %v5167_v35, %v6951_v54 }
 0x207   : > { %v5105_v24 = vpop.f32.mrf.mxu1  ;;  %v5169_v51 = vpop.f32.mrf.mxu0 }
 0x208   : > { %v5106_v21 = vadd.f32 %v5105_v24, %v5104_v10  ;;  %v5170_v47 = vadd.f32 %v5169_v51, %v5168_v39 }
 0x209   : > { %v5107_v8 = vpop.f32.mrf.mxu1  ;;  %v5171_v13 = vpop.f32.mrf.mxu0 }
 0x20a   : > { %v7051_v33 = vadd.f32 %v5106_v21, %v6955_v62  ;;  %v7054_v31 = vadd.f32 %v5170_v47, %v6958_v15 }
 0x20b   : > { %v5108_v6 = vpop.f32.mrf.mxu1  ;;  %v5172_v20 = vpop.f32.mrf.mxu0 }
 0x20c   : > { %v5109_v60 = vadd.f32 %v5108_v6, %v5107_v8  ;;  %v5173_v5 = vadd.f32 %v5172_v20, %v5171_v13 }
 0x20d   : > { %v5110_v1 = vpop.f32.mrf.mxu1  ;;  %v5174_v7 = vpop.f32.mrf.mxu0 }
 0x20e   : > { %v7057_v54 = vadd.f32 %v5109_v60, %v6961_v61  ;;  %v7060_v30 = vadd.f32 %v5173_v5, %v6964_v9 }
 0x20f   : > { %v5111_v23 = vpop.f32.mrf.mxu1  ;;  %v5175_v42 = vpop.f32.mrf.mxu0 }
 0x210   : > { %v5112_v0 = vadd.f32 %v5111_v23, %v5110_v1  ;;  %v5176_v62 = vadd.f32 %v5175_v42, %v5174_v7 }
 0x211   : > { %v5177_v55 = vpop.f32.mrf.mxu0  ;;  %v5241_v37 = vpop.f32.mrf.mxu1 }
 0x212   : > { %v7063_v15 = vadd.f32 %v5112_v0, %v6967_v63  ;;  %v7066_v58 = vadd.f32 %v5176_v62, %v6970_v36 }
 0x213   : > { %v5178_v16 = vpop.f32.mrf.mxu0  ;;  %v5242_v52 = vpop.f32.mrf.mxu1 }
 0x214   : > { %v5179_v17 = vadd.f32 %v5178_v16, %v5177_v55  ;;  %v5243_v61 = vadd.f32 %v5242_v52, %v5241_v37 }
 0x215   : > { %v5180_v44 = vpop.f32.mrf.mxu0  ;;  %v7068_v43 = vpop.f32.mrf.mxu1 }
 0x216   : > { %v7071_v9 = vadd.f32 %v5179_v17, %v6973_v27  ;;  %v7074_v56 = vadd.f32 %v5243_v61, %v6976_v50 }
 0x217   : > { %v5181_v12 = vpop.f32.mrf.mxu0  ;;  %v7076_v35 = vpop.f32.mrf.mxu1 }
 0x218   : > { %v5182_v63 = vadd.f32 %v5181_v12, %v5180_v44 }
 0x219   : > { %v5183_v10 = vpop.f32.mrf.mxu0  ;;  %v7078_v36 = vpop.f32.mrf.mxu1 }
 0x21a   : > { %v7081_v39 = vadd.f32 %v5182_v63, %v6979_v41 }
 0x21b   : > { %v5184_v24 = vpop.f32.mrf.mxu0  ;;  %v7083_v51 = vpop.f32.mrf.mxu1 }
 0x21c   : > { %v5185_v21 = vadd.f32 %v5184_v24, %v5183_v10 }
 0x21d   : > { %v5186_v47 = vpop.f32.mrf.mxu0  ;;  %v7085_v27 = vpop.f32.mrf.mxu1 }
 0x21e   : > { %v7088_v50 = vadd.f32 %v5185_v21, %v6985_v45 }
 0x21f   : > { %v5187_v8 = vpop.f32.mrf.mxu0  ;;  %v7090_v13 = vpop.f32.mrf.mxu1 }
 0x220   : > { %v5188_v6 = vadd.f32 %v5187_v8, %v5186_v47 }
 0x221   : > { %v5189_v20 = vpop.f32.mrf.mxu0  ;;  %v7092_v60 = vpop.f32.mrf.mxu1 }
 0x222   : > { %v7095_v41 = vadd.f32 %v5188_v6, %v6991_v4 }
 0x223   : > { %v5190_v5 = vpop.f32.mrf.mxu0  ;;  %v7097_v1 = vpop.f32.mrf.mxu1 }
 0x224   : > { %v5191_v7 = vadd.f32 %v5190_v5, %v5189_v20 }
 0x225   : > { %v5192_v23 = vpop.f32.mrf.mxu0  ;;  %v7099_v42 = vpop.f32.mrf.mxu1 }
 0x226   : > { %v7102_v45 = vadd.f32 %v5191_v7, %v6997_v25 }
 0x227   : > { %v5193_v0 = vpop.f32.mrf.mxu0  ;;  %v7104_v62 = vpop.f32.mrf.mxu1 }
 0x228   : > { %7658 = vst [vmem:[#allocation3_spill] sm:$0xff] %v7102_v45  ;;  %v5194_v55 = vadd.f32 %v5193_v0, %v5192_v23 }
 0x229   : > { %v5195_v37 = vpop.f32.mrf.mxu0  ;;  %v7106_v16 = vpop.f32.mrf.mxu1 }
 0x22a   : > { %v7109_v4 = vadd.f32 %v5194_v55, %v7003_v46 }
 0x22b   : > { %v5196_v52 = vpop.f32.mrf.mxu0  ;;  %v7111_v17 = vpop.f32.mrf.mxu1 }
 0x22c   : > { %7659 = vst [vmem:[#allocation4_spill] sm:$0xff] %v7109_v4  ;;  %v5197_v61 = vadd.f32 %v5196_v52, %v5195_v37 }
 0x22d   : > { %v5198_v44 = vpop.f32.mrf.mxu0  ;;  %v7113_v12 = vpop.f32.mrf.mxu1 }
 0x22e   : > { %v7116_v25 = vadd.f32 %v5197_v61, %v7009_v59 }
 0x22f   : > { %v5199_v63 = vpop.f32.mrf.mxu0  ;;  %v7118_v10 = vpop.f32.mrf.mxu1 }
 0x230   : > { %7660 = vst [vmem:[#allocation5_spill] sm:$0xff] %v7116_v25  ;;  %v5200_v24 = vadd.f32 %v5199_v63, %v5198_v44 }
 0x231   : > { %v5201_v21 = vpop.f32.mrf.mxu0  ;;  %v7120_v47 = vpop.f32.mrf.mxu1 }
 0x232   : > { %v7123_v46 = vadd.f32 %v5200_v24, %v7015_v19 }
 0x233   : > { %v5202_v8 = vpop.f32.mrf.mxu0  ;;  %v7125_v6 = vpop.f32.mrf.mxu1 }
 0x234   : > { %7661 = vst [vmem:[#allocation6_spill] sm:$0xff] %v7123_v46  ;;  %v5203_v20 = vadd.f32 %v5202_v8, %v5201_v21 }
 0x235   : > { %v5204_v5 = vpop.f32.mrf.mxu0  ;;  %v7127_v7 = vpop.f32.mrf.mxu1 }
 0x236   : > { %v7130_v59 = vadd.f32 %v5203_v20, %v7021_v40 }
 0x237   : > { %v5205_v23 = vpop.f32.mrf.mxu0  ;;  %v7132_v0 = vpop.f32.mrf.mxu1 }
 0x238   : > { %7662 = vst [vmem:[#allocation7_spill] sm:$0xff] %v7130_v59  ;;  %v5206_v55 = vadd.f32 %v5205_v23, %v5204_v5 }
 0x239   : > { %v5207_v37 = vpop.f32.mrf.mxu0  ;;  %v7134_v52 = vpop.f32.mrf.mxu1 }
 0x23a   : > { %v7137_v19 = vadd.f32 %v5206_v55, %v7027_v28 }
 0x23b   : > { %v5208_v61 = vpop.f32.mrf.mxu0  ;;  %v7139_v44 = vpop.f32.mrf.mxu1 }
 0x23c   : > { %7663 = vst [vmem:[#allocation8_spill] sm:$0xff] %v7137_v19  ;;  %v5209_v63 = vadd.f32 %v5208_v61, %v5207_v37 }
 0x23d   : > { %v5210_v24 = vpop.f32.mrf.mxu0  ;;  %v7141_v21 = vpop.f32.mrf.mxu1 }
 0x23e   : > { %v7144_v40 = vadd.f32 %v5209_v63, %v7033_v14 }
 0x23f   : > { %v5211_v8 = vpop.f32.mrf.mxu0  ;;  %v7146_v20 = vpop.f32.mrf.mxu1 }
 0x240   : > { %7664 = vst [vmem:[#allocation9_spill] sm:$0xff] %v7144_v40  ;;  %v5212_v5 = vadd.f32 %v5211_v8, %v5210_v24 }
 0x241   : > { %v5213_v23 = vpop.f32.mrf.mxu0  ;;  %v7148_v59 = vpop.f32.mrf.mxu1 }
 0x242   : > { %v7151_v28 = vadd.f32 %v5212_v5, %v7039_v34 }
 0x243   : > { %v5214_v55 = vpop.f32.mrf.mxu0  ;;  %v7153_v19 = vpop.f32.mrf.mxu1 }
 0x244   : > { %7665 = vst [vmem:[#allocation10_spill] sm:$0xff] %v7151_v28  ;;  %v5215_v37 = vadd.f32 %v5214_v55, %v5213_v23  ;;  %v5249_v23 = vadd.f32 %v7083_v51, %v7078_v36 }
 0x245   : > { %v5216_v61 = vpop.f32.mrf.mxu0  ;;  %v7155_v46 = vpop.f32.mrf.mxu1 }
 0x246   : > { %v7158_v14 = vadd.f32 %v5215_v37, %v7045_v53 }
 0x247   : > { %v5217_v63 = vpop.f32.mrf.mxu0  ;;  %v7160_v40 = vpop.f32.mrf.mxu1 }
 0x248   : > { %7666 = vst [vmem:[#allocation11_spill] sm:$0xff] %v7158_v14  ;;  %v5218_v24 = vadd.f32 %v5217_v63, %v5216_v61 }
 0x249   : > { %v5219_v8 = vpop.f32.mrf.mxu0  ;;  %v7162_v4 = vpop.f32.mrf.mxu1 }
 0x24a   : > { %v7165_v34 = vadd.f32 %v5218_v24, %v7051_v33  ;;  %v5252_v33 = vadd.f32 %v7090_v13, %v7085_v27 }
 0x24b   : > { %v5220_v5 = vpop.f32.mrf.mxu0  ;;  %v7167_v28 = vpop.f32.mrf.mxu1 }
 0x24c   : > { %7667 = vst [vmem:[#allocation12_spill] sm:$0xff] %v7165_v34  ;;  %v5221_v55 = vadd.f32 %v5220_v5, %v5219_v8  ;;  %v3153_v34 = vadd.f32 %v5249_v23, %v6988_v26  ;;  %v5261_v8 = vadd.f32 %v7111_v17, %v7106_v16 }
 0x24d   : > { %v5222_v25 = vpop.f32.mrf.mxu0  ;;  %v7171_v53 = vpop.f32.mrf.mxu1 }
 0x24e   : > { %v7174_v37 = vadd.f32 %v5221_v55, %v7057_v54  ;;  %v5246_v54 = vadd.f32 %v7076_v35, %v7068_v43  ;;  %v5255_v35 = vadd.f32 %v7097_v1, %v7092_v60 }
 0x24f   : > { %v5223_v61 = vpop.f32.mrf.mxu0  ;;  %v7176_v63 = vpop.f32.mrf.mxu1 }
 0x250   : > { %v5224_v24 = vadd.f32 %v5223_v61, %v5222_v25  ;;  %v3156_v25 = vadd.f32 %v5252_v33, %v6994_v38  ;;  %v3148_v17 = vadd.f32 %v5246_v54, %v6982_v32  ;;  %v5264_v38 = vadd.f32 %v7118_v10, %v7113_v12 }
 0x251   : > { %v7181_v14 = vpop.f32.mrf.mxu1  ;;  %v5361_v45 = vpop.f32.mrf.mxu0  ;;  %v3161_v12 = vadd.f32 %v5255_v35, %v7000_v57  ;;  %v5273_v54 = vadd.f32 %v7139_v44, %v7134_v52  ;;  %v5267_v57 = vadd.f32 %v7125_v6, %v7120_v47  ;;  %v5270_v35 = vadd.f32 %v7132_v0, %v7127_v7 }
 0x252   : > { %v7184_v36 = vadd.f32 %v5224_v24, %v7063_v15  ;;  %v7186_v51 = vadd.f32 %v5361_v45, %v3153_v34  ;;  %v5258_v24 = vadd.f32 %v7104_v62, %v7099_v42  ;;  %v3172_v62 = vadd.f32 %v5264_v38, %v7018_v48 }
 0x253   : > { %v7192_v5 = vpop.f32.mrf.mxu1  ;;  %v3305_v27 = vpop.f32.mrf.mxu0  ;;  %v5276_v48 = vadd.f32 %v7146_v20, %v7141_v21  ;;  %v5282_v47 = vadd.f32 %v7160_v40, %v7155_v46  ;;  %v3185_v7 = vadd.f32 %v5273_v54, %v7036_v11  ;;  %v5285_v0 = vadd.f32 %v7167_v28, %v7162_v4 }
 0x254   : > { %v3466_v13 = vmin.f32 %v7186_v51, 0.0  ;;  %v7196_v26 = vadd.f32 %v3305_v27, %v7074_v56  ;;  %v3169_v56 = vadd.f32 %v5261_v8, %v7012_v18  ;;  %v3177_v46 = vadd.f32 %v5267_v57, %v7024_v2 }
 0x255   : > { %v7199_v15 = vpop.f32.mrf.mxu1  ;;  %v5362_v45 = vpop.f32.mrf.mxu0  ;;  %v3180_v40 = vadd.f32 %v5270_v35, %v7030_v29  ;;  %v7268_v2 = vadd.f32 %v5282_v47, %v7054_v31  ;;  %vm3434_vm1 = vcmp.gt.f32.partialorder %v7186_v51, 0.0 }
 0x256   : > { %v3500_v34 = vmul.f32 1.442695, %v3466_v13  ;;  %v3464_v23 = vmin.f32 %v7196_v26, 0.0  ;;  %v7202_v43 = vadd.f32 %v5362_v45, %v3156_v25  ;;  %vm3432_vm2 = vcmp.gt.f32.partialorder %v7196_v26, 0.0 }
 0x257   : > { %v7206_v16 = vpop.f32.mrf.mxu1  ;;  %v3308_v55 = vpop.f32.mrf.mxu0 }
 0x258   : > { %5898 = vpow2.f32 %v3500_v34  ;;  %v3496_v61 = vmul.f32 1.442695, %v3464_v23  ;;  %v3467_v33 = vmin.f32 %v7202_v43, 0.0  ;;  %v7215_v27 = vadd.f32 %v3308_v55, %v3148_v17 }
 0x259   : > { %v5295_v60 = vpop.f32.mrf.mxu1  ;;  %v5365_v1 = vpop.f32.mrf.mxu0  ;;  %v3164_v17 = vadd.f32 %v5258_v24, %v7006_v49  ;;  %v5279_v55 = vadd.f32 %v7153_v19, %v7148_v59  ;;  %v5288_v59 = vadd.f32 %v7176_v63, %v7171_v53  ;;  %v3188_v53 = vadd.f32 %v5276_v48, %v7042_v22 }
 0x25a   : > { %v3502_v13 = vmul.f32 1.442695, %v3467_v33  ;;  %v7217_v25 = vadd.f32 %v5365_v1, %v3169_v56  ;;  %5900 = vpow2.f32 %v3496_v61  ;;  %v3465_v32 = vmin.f32 %v7215_v27, 0.0 }
 0x25b   : > { %v5296_v18 = vpop.f32.mrf.mxu1  ;;  %v3321_v10 = vpop.f32.mrf.mxu0  ;;  %v3193_v63 = vadd.f32 %v5279_v55, %v7048_v3  ;;  %v5291_v1 = vadd.f32 %v7192_v5, %v7181_v14  ;;  %v3201_v22 = vadd.f32 %v5285_v0, %v7060_v30  ;;  %v3204_v3 = vadd.f32 %v5288_v59, %v7066_v58 }
 0x25c   : > { %5902 = vpow2.f32 %v3502_v13  ;;  %v3470_v42 = vmin.f32 %v7217_v25, 0.0  ;;  %v3498_v8 = vmul.f32 1.442695, %v3465_v32  ;;  %v7225_v45 = vadd.f32 %v3321_v10, %v3161_v12 }
 0x25d   : > { %v7227_v34 = vpop.f32.mrf.mxu1  ;;  %v5366_v23 = vpop.f32.mrf.mxu0  ;;  %v5294_v14 = vadd.f32 %v7206_v16, %v7199_v15  ;;  %v5297_v5 = vadd.f32 %v5296_v18, %v5295_v60  ;;  %vm3435_vm3 = vcmp.gt.f32.partialorder %v7202_v43, 0.0  ;;  %v7288_v15 = vadd.f32 %v5291_v1, %v7071_v9 }
 0x25e   : > { %v3508_v52 = vmul.f32 1.442695, %v3470_v42  ;;  %v7234_v44 = vadd.f32 %v5366_v23, %v3172_v62  ;;  %5904 = vpow2.f32 %v3498_v8  ;;  %v3468_v56 = vmin.f32 %v7225_v45, 0.0 }
 0x25f   : > { %v7241_v38 = vpop.f32.mrf.mxu1  ;;  %v3324_v49 = vpop.f32.mrf.mxu0  ;;  %vm3433_vm4 = vcmp.gt.f32.partialorder %v7215_v27, 0.0  ;;  %v3217_v55 = vadd.f32 %v5297_v5, %v7088_v50  ;;  %v7302_v9 = vadd.f32 %v5294_v14, %v7081_v39  ;;  %vm3438_vm5 = vcmp.gt.f32.partialorder %v7217_v25, 0.0 }
 0x260   : > { %5906 = vpow2.f32 %v3508_v52  ;;  %v3471_v6 = vmin.f32 %v7234_v44, 0.0  ;;  %v3504_v19 = vmul.f32 1.442695, %v3468_v56  ;;  %v7251_v21 = vadd.f32 %v3324_v49, %v3164_v17 }
 0x261   : > { %v7253_v20 = vpop.f32.mrf.mxu1  ;;  %v5369_v61 = vpop.f32.mrf.mxu0  ;;  %v5300_v50 = vadd.f32 %v7241_v38, %v7227_v34  ;;  %vm3436_vm6 = vcmp.gt.f32.partialorder %v7225_v45, 0.0  ;;  %vm3439_vm7 = vcmp.gt.f32.partialorder %v7234_v44, 0.0 }
 0x262   : > { %v3510_v33 = vmul.f32 1.442695, %v3471_v6  ;;  %v7255_v24 = vadd.f32 %v5369_v61, %v3185_v7  ;;  %5908 = vpow2.f32 %v3504_v19  ;;  %v3469_v11 = vmin.f32 %v7251_v21, 0.0 }
 0x263   : > { %v7260_v4 = vpop.f32.mrf.mxu1  ;;  %v3337_v28 = vpop.f32.mrf.mxu0  ;;  %vm3437_vm8 = vcmp.gt.f32.partialorder %v7251_v21, 0.0 }
 0x264   : > { %5910 = vpow2.f32 %v3510_v33  ;;  %v3474_v13 = vmin.f32 %v7255_v24, 0.0  ;;  %v3506_v32 = vmul.f32 1.442695, %v3469_v11  ;;  %v7270_v12 = vadd.f32 %v3337_v28, %v3177_v46 }
 0x265   : > { %v5899_v29 = vpop.eup %5898  ;;  %v7272_v10 = vpop.f32.mrf.mxu1  ;;  %v5303_v38 = vadd.f32 %v7260_v4, %v7253_v20  ;;  %v3220_v4 = vadd.f32 %v5300_v50, %v7095_v41  ;;  %vm3442_vm9 = vcmp.gt.f32.partialorder %v7255_v24, 0.0 }
 0x266   : > { %v5370_v54 = vpop.f32.mrf.mxu0  ;;  %v3516_v42 = vmul.f32 1.442695, %v3474_v13  ;;  %5912 = vpow2.f32 %v3506_v32  ;;  %v3472_v31 = vmin.f32 %v7270_v12, 0.0  ;;  %v4456_v58 = vadd.f32 -1.0, %v5899_v29 }
 0x267   : > { %v7279_v62 = vadd.f32 %v5370_v54, %v3188_v53  ;;  %v7284_v8 = vpop.f32.mrf.mxu1  ;;  %v5901_v23 = vpop.eup %5900  ;;  %vm3440_vm10 = vcmp.gt.f32.partialorder %v7270_v12, 0.0 }
 0x268   : > { %v3340_v30 = vpop.f32.mrf.mxu0  ;;  %5914 = vpow2.f32 %v3516_v42  ;;  %v3512_v60 = vmul.f32 1.442695, %v3472_v31  ;;  %v4454_v56 = vadd.f32 -1.0, %v5901_v23  ;;  %v3594_v59 = vsel %vm3434_vm1, %v7186_v51, %v4456_v58 }
 0x269   : > { %v5903_v16 = vpop.eup %5902  ;;  %v3475_v18 = vmin.f32 %v7279_v62, 0.0  ;;  %v7294_v17 = vadd.f32 %v3340_v30, %v3180_v40  ;;  %v7296_v57 = vpop.f32.mrf.mxu1  ;;  %vm3443_vm11 = vcmp.gt.f32.partialorder %v7279_v62, 0.0 }
 0x26a   : > { %v5373_v35 = vpop.f32.mrf.mxu0  ;;  %v4457_v52 = vadd.f32 -1.0, %v5903_v16  ;;  %5916 = vpow2.f32 %v3512_v60  ;;  %v7668_v60 = vld [vmem:[#allocation3_spill] sm:$0xff] }
 0x26b   : > { %v7298_v48 = vadd.f32 %v5373_v35, %v3201_v22  ;;  %v3518_v49 = vmul.f32 1.442695, %v3475_v18  ;;  %v3473_v47 = vmin.f32 %v7294_v17, 0.0  ;;  %v5308_v6 = vpop.f32.mrf.mxu1  ;;  %v5905_v0 = vpop.eup %5904  ;;  %v7352_v18 = vadd.f32 %v5303_v38, %v7668_v60 }
 0x26c   : > { %v3353_v7 = vpop.f32.mrf.mxu0  ;;  %v3595_v39 = vsel %vm3435_vm3, %v7202_v43, %v4457_v52  ;;  %v4455_v46 = vadd.f32 -1.0, %v5905_v0  ;;  %v3592_v43 = vsel %vm3432_vm2, %v7196_v26, %v4454_v56  ;;  %v5309_v52 = vadd.f32 %v5308_v6, %v7296_v57 }
 0x26d   : > { %v3478_v19 = vmin.f32 %v7298_v48, 0.0  ;;  %v5907_v61 = vpop.eup %5906  ;;  %v4578_v33 = vpack.c.bf16 %v3595_v39, %v3594_v59  ;;  %5918 = vpow2.f32 %v3518_v49  ;;  %v3514_v40 = vmul.f32 1.442695, %v3473_v47  ;;  %v7315_v11 = vpop.f32.mrf.mxu1 }
 0x26e   : > { %v5374_v28 = vpop.f32.mrf.mxu0  ;;  %v7318_v53 = vadd.f32 %v3353_v7, %v3193_v63  ;;  %v3593_v34 = vsel %vm3433_vm4, %v7215_v27, %v4455_v46  ;;  %v4460_v54 = vadd.f32 -1.0, %v5907_v61  ;;  %vm3441_vm12 = vcmp.gt.f32.partialorder %v7294_v17, 0.0 }
 0x26f   : > { %v3524_v51 = vmul.f32 1.442695, %v3478_v19  ;;  %v7320_v1 = vadd.f32 %v5374_v28, %v3204_v3  ;;  %4650 = vst [vmem:[%s7326_s7 + $0x8] sm:$0xff] %v4578_v33   ;;  %5920 = vpow2.f32 %v3514_v40  ;;  %v5311_v63 = vpop.f32.mrf.mxu1  ;;  %v5909_v29 = vpop.eup %5908  ;;  %v4573_v32 = vpack.c.bf16 %v3593_v34, %v3592_v43 }
 0x270   : > { %v3356_v13 = vpop.f32.mrf.mxu0  ;;  %v3476_v22 = vmin.f32 %v7318_v53, 0.0  ;;  %v4458_v14 = vadd.f32 -1.0, %v5909_v29  ;;  %vm3446_vm13 = vcmp.gt.f32.partialorder %v7298_v48, 0.0  ;;  %vm3444_vm14 = vcmp.gt.f32.partialorder %v7318_v53, 0.0 }
 0x271   : > { %5922 = vpow2.f32 %v3524_v51  ;;  %v5911_v26 = vpop.eup %5910  ;;  %v3479_v27 = vmin.f32 %v7320_v1, 0.0  ;;  %v7338_v3 = vpop.f32.mrf.mxu1  ;;  %4574 = vst [vmem:[%s7326_s7] sm:$0xff] %v4573_v32   ;;  %v7343_v42 = vadd.f32 %v3356_v13, %v7268_v2  ;;  %v3598_v2 = vsel %vm3438_vm5, %v7217_v25, %v4460_v54 }
 0x272   : > { %v5377_v20 = vpop.f32.mrf.mxu0  ;;  %v4461_v5 = vadd.f32 -1.0, %v5911_v26  ;;  %v3520_v30 = vmul.f32 1.442695, %v3476_v22  ;;  %v3596_v59 = vsel %vm3436_vm6, %v7225_v45, %v4458_v14  ;;  %vm3447_vm15 = vcmp.gt.f32.partialorder %v7320_v1, 0.0 }
 0x273   : > { %v7345_v31 = vadd.f32 %v5377_v20, %v3217_v55  ;;  %v3526_v23 = vmul.f32 1.442695, %v3479_v27  ;;  %v7349_v58 = vpop.f32.mrf.mxu1  ;;  %v5913_v41 = vpop.eup %5912  ;;  %v3477_v55 = vmin.f32 %v7343_v42, 0.0  ;;  %vm3445_vm0 = vcmp.gt.f32.partialorder %v7343_v42, 0.0 }
 0x274   : > { %v3369_v16 = vpop.f32.mrf.mxu0  ;;  %v3599_v35 = vsel %vm3439_vm7, %v7234_v44, %v4461_v5  ;;  %v4459_v47 = vadd.f32 -1.0, %v5913_v41  ;;  %5924 = vpow2.f32 %v3520_v30  ;;  %v5306_v44 = vadd.f32 %v7284_v8, %v7272_v10  ;;  %v7669_v8 = vld [vmem:[#allocation5_spill] sm:$0xff] }
 0x275   : > { %v5915_v56 = vpop.eup %5914  ;;  %v4588_v49 = vpack.c.bf16 %v3599_v35, %v3598_v2  ;;  %v3482_v7 = vmin.f32 %v7345_v31, 0.0  ;;  %v7364_v0 = vpop.f32.mrf.mxu1  ;;  %5926 = vpow2.f32 %v3526_v23  ;;  %v3522_v57 = vmul.f32 1.442695, %v3477_v55  ;;  %v7671_v2 = vld [vmem:[#allocation6_spill] sm:$0xff] }
 0x276   : > { %v5378_v25 = vpop.f32.mrf.mxu0  ;;  %v3597_v6 = vsel %vm3437_vm8, %v7251_v21, %v4459_v47  ;;  %v7376_v50 = vadd.f32 %v3369_v16, %v7288_v15  ;;  %v4464_v10 = vadd.f32 -1.0, %v5915_v56  ;;  %v3233_v40 = vadd.f32 %v5309_v52, %v7669_v8 }
 0x277   : > { %4652 = vst [vmem:[%s7326_s7 + $0x18] sm:$0xff] %v4588_v49   ;;  %v3532_v39 = vmul.f32 1.442695, %v3482_v7  ;;  %v7378_v19 = vadd.f32 %v5378_v25, %v3220_v4  ;;  %v7380_v61 = vpop.f32.mrf.mxu1  ;;  %v5917_v33 = vpop.eup %5916  ;;  %v4583_v46 = vpack.c.bf16 %v3597_v6, %v3596_v59  ;;  %5928 = vpow2.f32 %v3522_v57 }
 0x278   : > { %v3372_v45 = vpop.f32.mrf.mxu0  ;;  %v4462_v28 = vadd.f32 -1.0, %v5917_v33  ;;  %v5312_v21 = vadd.f32 %v5311_v63, %v7315_v11  ;;  %v3480_v15 = vmin.f32 %v7376_v50, 0.0  ;;  %v7670_v63 = vld [vmem:[#allocation4_spill] sm:$0xff]  ;;  %v3602_v20 = vsel %vm3442_vm9, %v7255_v24, %v4464_v10 }
 0x279   : > { %v5319_v51 = vpop.f32.mrf.mxu1  ;;  %4651 = vst [vmem:[%s7326_s7 + $0x10] sm:$0xff] %v4583_v46   ;;  %5930 = vpow2.f32 %v3532_v39  ;;  %v3483_v38 = vmin.f32 %v7378_v19, 0.0  ;;  %v7389_v13 = vadd.f32 %v3372_v45, %v7302_v9  ;;  %v3228_v22 = vadd.f32 %v5306_v44, %v7670_v63 }
 0x27a   : > { %v5381_v43 = vpop.f32.mrf.mxu0  ;;  %v5919_v34 = vpop.eup %5918  ;;  %v3528_v54 = vmul.f32 1.442695, %v3480_v15  ;;  %v3600_v9 = vsel %vm3440_vm10, %v7270_v12, %v4462_v28  ;;  %v3236_v35 = vadd.f32 %v5312_v21, %v7671_v2  ;;  %v5315_v44 = vadd.f32 %v7349_v58, %v7338_v3  ;;  %v7672_v58 = vld [vmem:[#allocation9_spill] sm:$0xff] }
 0x27b   : > { %v7391_v29 = vadd.f32 %v5381_v43, %v3233_v40  ;;  %v4465_v32 = vadd.f32 -1.0, %v5919_v34  ;;  %v5320_v26 = vpop.f32.mrf.mxu1  ;;  %v3534_v4 = vmul.f32 1.442695, %v3483_v38  ;;  %v3481_v14 = vmin.f32 %v7389_v13, 0.0 }
 0x27c   : > { %v3385_v11 = vpop.f32.mrf.mxu0  ;;  %v5921_v27 = vpop.eup %5920  ;;  %5932 = vpow2.f32 %v3528_v54  ;;  %v5318_v8 = vadd.f32 %v7380_v61, %v7364_v0  ;;  %v7673_v54 = vld [vmem:[#allocation7_spill] sm:$0xff]  ;;  %v7674_v61 = vld [vmem:[#allocation10_spill] sm:$0xff]  ;;  %vm3450_vm1 = vcmp.gt.f32.partialorder %v7345_v31, 0.0  ;;  %vm3448_vm2 = vcmp.gt.f32.partialorder %v7376_v50, 0.0 }
 0x27d   : > { %v3603_v30 = vsel %vm3443_vm11, %v7279_v62, %v4465_v32  ;;  %v4463_v23 = vadd.f32 -1.0, %v5921_v27  ;;  %v3486_v16 = vmin.f32 %v7391_v29, 0.0  ;;  %v5322_v60 = vpop.f32.mrf.mxu1  ;;  %5934 = vpow2.f32 %v3534_v4 }
 0x27e   : > { %v5923_v5 = vpop.eup %5922  ;;  %v5382_v41 = vpop.f32.mrf.mxu0  ;;  %v4598_v24 = vpack.c.bf16 %v3603_v30, %v3602_v20  ;;  %v3530_v12 = vmul.f32 1.442695, %v3481_v14  ;;  %v5321_v62 = vadd.f32 %v5320_v26, %v5319_v51  ;;  %v7412_v56 = vadd.f32 %v3385_v11, %v7352_v18 }
 0x27f   : > { %v3601_v52 = vsel %vm3441_vm12, %v7294_v17, %v4463_v23  ;;  %v3540_v55 = vmul.f32 1.442695, %v3486_v16  ;;  %v5323_v49 = vpop.f32.mrf.mxu1  ;;  %v4468_v25 = vadd.f32 -1.0, %v5923_v5  ;;  %v7415_v59 = vadd.f32 %v5382_v41, %v3236_v35 }
 0x280   : > { %v3388_v47 = vpop.f32.mrf.mxu0  ;;  %4654 = vst [vmem:[%s7326_s7 + $0x28] sm:$0xff] %v4598_v24   ;;  %v4593_v7 = vpack.c.bf16 %v3601_v52, %v3600_v9  ;;  %5936 = vpow2.f32 %v3530_v12  ;;  %v3484_v17 = vmin.f32 %v7412_v56, 0.0  ;;  %v5324_v57 = vadd.f32 %v5323_v49, %v5322_v60 }
 0x281   : > { %v5325_v6 = vpop.f32.mrf.mxu1  ;;  %v5925_v18 = vpop.eup %5924  ;;  %5938 = vpow2.f32 %v3540_v55  ;;  %v3487_v45 = vmin.f32 %v7415_v59, 0.0  ;;  %v7424_v33 = vadd.f32 %v3388_v47, %v3228_v22  ;;  %v3249_v40 = vadd.f32 %v5321_v62, %v7672_v58  ;;  %v7675_v47 = vld [vmem:[#allocation8_spill] sm:$0xff] }
 0x282   : > { %v5385_v39 = vpop.f32.mrf.mxu0  ;;  %4653 = vst [vmem:[%s7326_s7 + $0x20] sm:$0xff] %v4593_v7   ;;  %v5927_v46 = vpop.eup %5926  ;;  %v4466_v10 = vadd.f32 -1.0, %v5925_v18  ;;  %v3536_v3 = vmul.f32 1.442695, %v3484_v17  ;;  %v3606_v15 = vsel %vm3446_vm13, %v7298_v48, %v4468_v25  ;;  %v3241_v26 = vadd.f32 %v5315_v44, %v7673_v54  ;;  %v7676_v44 = vld [vmem:[#allocation11_spill] sm:$0xff]  ;;  %v7677_v54 = vld [vmem:[#allocation12_spill] sm:$0xff] }
 0x283   : > { %v5326_v28 = vpop.f32.mrf.mxu1  ;;  %v4469_v51 = vadd.f32 -1.0, %v5927_v46  ;;  %v3542_v43 = vmul.f32 1.442695, %v3487_v45  ;;  %v3485_v34 = vmin.f32 %v7424_v33, 0.0  ;;  %v7433_v32 = vadd.f32 %v5385_v39, %v3249_v40 }
 0x284   : > { %v3401_v21 = vpop.f32.mrf.mxu0  ;;  %v5929_v38 = vpop.eup %5928  ;;  %5940 = vpow2.f32 %v3536_v3  ;;  %v3252_v11 = vadd.f32 %v5324_v57, %v7674_v61  ;;  %v3604_v9 = vsel %vm3444_vm14, %v7318_v53, %v4466_v10  ;;  %v5327_v5 = vadd.f32 %v5326_v28, %v5325_v6 }
 0x285   : > { %v5328_v0 = vpop.f32.mrf.mxu1  ;;  %v3607_v22 = vsel %vm3447_vm15, %v7320_v1, %v4469_v51  ;;  %v4467_v48 = vadd.f32 -1.0, %v5929_v38  ;;  %5942 = vpow2.f32 %v3542_v43  ;;  %v3538_v27 = vmul.f32 1.442695, %v3485_v34 }
 0x286   : > { %v5386_v63 = vpop.f32.mrf.mxu0  ;;  %v5931_v20 = vpop.eup %5930  ;;  %v4608_v4 = vpack.c.bf16 %v3607_v22, %v3606_v15  ;;  %v3490_v14 = vmin.f32 %v7433_v32, 0.0  ;;  %v7447_v1 = vadd.f32 %v3401_v21, %v3241_v26  ;;  %v3244_v7 = vadd.f32 %v5318_v8, %v7675_v47 }
 0x287   : > { %v5329_v30 = vpop.f32.mrf.mxu1  ;;  %v3605_v16 = vsel %vm3445_vm0, %v7343_v42, %v4467_v48  ;;  %5944 = vpow2.f32 %v3538_v27  ;;  %v7449_v60 = vadd.f32 %v5386_v63, %v3252_v11  ;;  %v4472_v35 = vadd.f32 -1.0, %v5931_v20 }
 0x288   : > { %v3404_v23 = vpop.f32.mrf.mxu0  ;;  %4656 = vst [vmem:[%s7326_s7 + $0x38] sm:$0xff] %v4608_v4   ;;  %v4603_v41 = vpack.c.bf16 %v3605_v16, %v3604_v9  ;;  %v3548_v53 = vmul.f32 1.442695, %v3490_v14  ;;  %v3488_v52 = vmin.f32 %v7447_v1, 0.0  ;;  %v5330_v55 = vadd.f32 %v5329_v30, %v5328_v0 }
 0x289   : > { %v5331_v24 = vpop.f32.mrf.mxu1  ;;  %v5933_v2 = vpop.eup %5932  ;;  %v3491_v42 = vmin.f32 %v7449_v60, 0.0  ;;  %v3257_v17 = vadd.f32 %v5327_v5, %v7676_v44  ;;  %vm3451_vm3 = vcmp.gt.f32.partialorder %v7378_v19, 0.0  ;;  %vm3449_vm4 = vcmp.gt.f32.partialorder %v7389_v13, 0.0 }
 0x28a   : > { %v5389_v12 = vpop.f32.mrf.mxu0  ;;  %v5935_v62 = vpop.eup %5934  ;;  %4655 = vst [vmem:[%s7326_s7 + $0x30] sm:$0xff] %v4603_v41   ;;  %v4470_v49 = vadd.f32 -1.0, %v5933_v2  ;;  %5946 = vpow2.f32 %v3548_v53  ;;  %v3544_v39 = vmul.f32 1.442695, %v3488_v52  ;;  %v7461_v10 = vadd.f32 %v3404_v23, %v3244_v7 }
 0x28b   : > { %v5332_v25 = vpop.f32.mrf.mxu1  ;;  %v4473_v6 = vadd.f32 -1.0, %v5935_v62  ;;  %v3550_v18 = vmul.f32 1.442695, %v3491_v42  ;;  %v3610_v8 = vsel %vm3450_vm1, %v7345_v31, %v4472_v35  ;;  %v3260_v26 = vadd.f32 %v5330_v55, %v7677_v54 }
 0x28c   : > { %v3417_v57 = vpop.f32.mrf.mxu0  ;;  %v5333_v45 = vadd.f32 %v5332_v25, %v5331_v24  ;;  %v3608_v43 = vsel %vm3448_vm2, %v7376_v50, %v4470_v49  ;;  %vm3454_vm5 = vcmp.gt.f32.partialorder %v7391_v29, 0.0  ;;  %vm3452_vm6 = vcmp.gt.f32.partialorder %v7412_v56, 0.0 }
 0x28d   : > { %v5937_v46 = vpop.eup %5936  ;;  %v7463_v3 = vadd.f32 %v3417_v57, %v3257_v17  ;;  %v5334_v58 = vpop.f32.mrf.mxu1  ;;  %v3611_v28 = vsel %vm3451_vm3, %v7378_v19, %v4473_v6  ;;  %5948 = vpow2.f32 %v3550_v18  ;;  %v3489_v19 = vmin.f32 %v7461_v10, 0.0 }
 0x28e   : > { %v5390_v40 = vpop.f32.mrf.mxu0  ;;  %v4471_v21 = vadd.f32 -1.0, %v5937_v46  ;;  %v3265_v15 = vadd.f32 %v5333_v45, %v7174_v37  ;;  %v5939_v51 = vpop.eup %5938  ;;  %v4618_v34 = vpack.c.bf16 %v3611_v28, %v3610_v8  ;;  %5950 = vpow2.f32 %v3544_v39 }
 0x28f   : > { %v5335_v38 = vpop.f32.mrf.mxu1  ;;  %v3492_v50 = vmin.f32 %v7463_v3, 0.0  ;;  %v4476_v22 = vadd.f32 -1.0, %v5939_v51  ;;  %v3546_v48 = vmul.f32 1.442695, %v3489_v19  ;;  %vm3455_vm7 = vcmp.gt.f32.partialorder %v7415_v59, 0.0 }
 0x290   : > { %v3420_v0 = vpop.f32.mrf.mxu0  ;;  %v3609_v31 = vsel %vm3449_vm4, %v7389_v13, %v4471_v21  ;;  %v7478_v37 = vadd.f32 %v5389_v12, %v3265_v15  ;;  %4658 = vst [vmem:[%s7326_s7 + $0x48] sm:$0xff] %v4618_v34   ;;  %v5336_v11 = vadd.f32 %v5335_v38, %v5334_v58  ;;  %vm3453_vm8 = vcmp.gt.f32.partialorder %v7424_v33, 0.0 }
 0x291   : > { %v4613_v61 = vpack.c.bf16 %v3609_v31, %v3608_v43  ;;  %v5941_v63 = vpop.eup %5940  ;;  %v7483_v20 = vadd.f32 %v3420_v0, %v3260_v26  ;;  %v3552_v13 = vmul.f32 1.442695, %v3492_v50  ;;  %5952 = vpow2.f32 %v3546_v48 }
 0x292   : > { %v3494_v27 = vmin.f32 %v7478_v37, 0.0  ;;  %v5943_v9 = vpop.eup %5942  ;;  %v3268_v4 = vadd.f32 %v5336_v11, %v7184_v36  ;;  %v4474_v14 = vadd.f32 -1.0, %v5941_v63  ;;  %v3614_v53 = vsel %vm3454_vm5, %v7391_v29, %v4476_v22 }
 0x293   : > { %4657 = vst [vmem:[%s7326_s7 + $0x40] sm:$0xff] %v4613_v61   ;;  %v4477_v5 = vadd.f32 -1.0, %v5943_v9  ;;  %5954 = vpow2.f32 %v3552_v13  ;;  %v3493_v41 = vmin.f32 %v7483_v20, 0.0  ;;  %vm3458_vm9 = vcmp.gt.f32.partialorder %v7433_v32, 0.0 }
 0x294   : > { %v3556_v30 = vmul.f32 1.442695, %v3494_v27  ;;  %v5945_v23 = vpop.eup %5944  ;;  %v3429_v16 = vadd.f32 %v5390_v40, %v3268_v4  ;;  %v3612_v42 = vsel %vm3452_vm6, %v7412_v56, %v4474_v14  ;;  %vm3459_vm10 = vcmp.gt.f32.partialorder %v7449_v60, 0.0 }
 0x295   : > { %v3615_v24 = vsel %vm3455_vm7, %v7415_v59, %v4477_v5  ;;  %v4475_v36 = vadd.f32 -1.0, %v5945_v23  ;;  %v3554_v35 = vmul.f32 1.442695, %v3493_v41  ;;  %vm3456_vm11 = vcmp.gt.f32.partialorder %v7447_v1, 0.0 }
 0x296   : > { %v4628_v12 = vpack.c.bf16 %v3615_v24, %v3614_v53  ;;  %5956 = vpow2.f32 %v3556_v30  ;;  %v3495_v2 = vmin.f32 %v3429_v16, 0.0  ;;  %vm3457_vm12 = vcmp.gt.f32.partialorder %v7461_v10, 0.0 }
 0x297   : > { %v5947_v52 = vpop.eup %5946  ;;  %v3613_v55 = vsel %vm3453_vm8, %v7424_v33, %v4475_v36  ;;  %5958 = vpow2.f32 %v3554_v35  ;;  %vm3460_vm13 = vcmp.gt.f32.partialorder %v7463_v3, 0.0  ;;  %vm3461_vm14 = vcmp.gt.f32.partialorder %v7483_v20, 0.0 }
 0x298   : > { %4660 = vst [vmem:[%s7326_s7 + $0x58] sm:$0xff] %v4628_v12   ;;  %v4623_v62 = vpack.c.bf16 %v3613_v55, %v3612_v42  ;;  %v3558_v49 = vmul.f32 1.442695, %v3495_v2  ;;  %v4480_v29 = vadd.f32 -1.0, %v5947_v52  ;;  %vm3462_vm15 = vcmp.gt.f32.partialorder %v7478_v37, 0.0 }
 0x299   : > { %vm3463_vm0 = vcmp.gt.f32.partialorder %v3429_v16, 0.0 }
 0x29a   : > { %4659 = vst [vmem:[%s7326_s7 + $0x50] sm:$0xff] %v4623_v62   ;;  %5960 = vpow2.f32 %v3558_v49  ;;  %v5949_v59 = vpop.eup %5948  ;;  %v3618_v25 = vsel %vm3458_vm9, %v7433_v32, %v4480_v29 }
 0x29b   : > { %v5951_v47 = vpop.eup %5950  ;;  %v4481_v7 = vadd.f32 -1.0, %v5949_v59 }
 0x29c   : > { %v4478_v33 = vadd.f32 -1.0, %v5951_v47 }
 0x29d   : > { %v3619_v56 = vsel %vm3459_vm10, %v7449_v60, %v4481_v7 }
 0x29e   : > { %v4638_v44 = vpack.c.bf16 %v3619_v56, %v3618_v25  ;;  %v5953_v17 = vpop.eup %5952  ;;  %v3616_v18 = vsel %vm3456_vm11, %v7447_v1, %v4478_v33 }
 0x29f   : > { %v4479_v6 = vadd.f32 -1.0, %v5953_v17 }
 0x2a0   : > { %v5955_v57 = vpop.eup %5954  ;;  %4662 = vst [vmem:[%s7326_s7 + $0x68] sm:$0xff] %v4638_v44  }
 0x2a1   : > { %v3617_v45 = vsel %vm3457_vm12, %v7461_v10, %v4479_v6  ;;  %v4482_v32 = vadd.f32 -1.0, %v5955_v57 }
 0x2a2   : > { %v4633_v46 = vpack.c.bf16 %v3617_v45, %v3616_v18 }
 0x2a3   : > { %v5957_v39 = vpop.eup %5956  ;;  %v3620_v28 = vsel %vm3460_vm13, %v7463_v3, %v4482_v32 }
 0x2a4   : > { %v5959_v58 = vpop.eup %5958  ;;  %4661 = vst [vmem:[%s7326_s7 + $0x60] sm:$0xff] %v4633_v46   ;;  %v4484_v60 = vadd.f32 -1.0, %v5957_v39 }
 0x2a5   : > { %v4483_v40 = vadd.f32 -1.0, %v5959_v58 }
 0x2a6   : > { %v3622_v15 = vsel %vm3462_vm15, %v7478_v37, %v4484_v60 }
 0x2a7   : > { %v5961_v8 = vpop.eup %5960  ;;  %v3621_v1 = vsel %vm3461_vm14, %v7483_v20, %v4483_v40 }
 0x2a8   : > { %v4485_v21 = vadd.f32 -1.0, %v5961_v8  ;;  %v4643_v10 = vpack.c.bf16 %v3621_v1, %v3620_v28 }
 0x2a9   : > { %3790 = sbr.rel (!%p6095_p4) target bundleno = 746 (0x2ea), region = 36 }
 0x2aa   : > { %v3623_v51 = vsel %vm3463_vm0, %v3429_v16, %v4485_v21  ;;  %4663 = vst [vmem:[%s7326_s7 + $0x70] sm:$0xff] %v4643_v10  }
 0x2ab   : > { %v4648_v43 = vpack.c.bf16 %v3623_v51, %v3622_v15 }
 0x2ad   : > { %4664 = vst [vmem:[%s7326_s7 + $0x78] sm:$0xff] %v4648_v43  }
 0x2ae   : > { %s7685_s8 = smov (!%p3793_p8, %s3792_s8), 32 }
 0x2af   : > { %s4520_s17 = sshll.u32 %s7685_s8, 6 }
 0x2b0   : > { %p4523_p9 = scmp.eq.s32.totalorder %s4520_s17, 0 }
 0x2b1   : > { %s7531_s18 = sshrl.u32 (!%p4523_p9), %s7685_s8, 5 }
 0x2b2   : > { %3801 = sbr.rel (%p4523_p9) target bundleno = 746 (0x2ea), region = 40  ;;  %p4524_p10 = scmp.le.s32.totalorder (!%p4523_p9), %s7531_s18, 0 }
 0x2b7   : > { %4080 = sbr.rel (%p4524_p10) target bundleno = 729 (0x2d9), region = 112  ;;  %s7678_s15 = smov (!%p4524_p10), %s7525_s14 }
 0x2b8   : > { %s7679_s20 = smov (!%p4524_p10), %s7326_s7  ;;  %s7540_s23 = smov (!%p4524_p10), 0  }
 0x2b9   : > { %s7542_s21 = smov (!%p4524_p10), 0  }
 0x2bc LB: >> { %v3818_v3 = vld [vmem:[%s6024_s20] sm:$0xf]  ;;  %v3820_v34 = vld [vmem:[%s6024_s20 + $0x4] sm:$0xf]  ;;  %v3822_v38 = vld [vmem:[%s6024_s20 + $0x8] sm:$0xf]  ;;  %s6032_s21 = sphi %s7542_s21, %s3812_s21   ;;  %s6028_s23 = sphi %s7540_s23, %s7680_s23   ;;  %s6024_s20 = sphi %s7679_s20, %s3887_s20   ;;  %s6020_s15 = sphi %s7678_s15, %s3888_s15  }
 0x2bd   : >> { %3819 = vst [vmem:[%s6020_s15] sm:$0xf] %v3818_v3  ;;  %3821 = vst [vmem:[%s6020_s15 + $0x4] sm:$0xf] %v3820_v34  ;;  %v3824_v54 = vld [vmem:[%s6024_s20 + $0xc] sm:$0xf]  ;;  %s3882_s22 = sadd.s32 1, %s6028_s23 }
 0x2be   : >> { %3823 = vst [vmem:[%s6020_s15 + $0x8] sm:$0xf] %v3822_v38  ;;  %v3826_v26 = vld [vmem:[%s6024_s20 + $0x10] sm:$0xf]  ;;  %v3828_v0 = vld [vmem:[%s6024_s20 + $0x14] sm:$0xf]  ;;  %p3883_p11 = scmp.ge.s32.totalorder %s3882_s22, %s7531_s18 }
 0x2bf   : >> { %3825 = vst [vmem:[%s6020_s15 + $0xc] sm:$0xf] %v3824_v54  ;;  %3827 = vst [vmem:[%s6020_s15 + $0x10] sm:$0xf] %v3826_v26  ;;  %v3830_v31 = vld [vmem:[%s6024_s20 + $0x18] sm:$0xf] }
 0x2c0   : >> { %3829 = vst [vmem:[%s6020_s15 + $0x14] sm:$0xf] %v3828_v0  ;;  %v3832_v19 = vld [vmem:[%s6024_s20 + $0x1c] sm:$0xf]  ;;  %v3834_v37 = vld [vmem:[%s6024_s20 + $0x20] sm:$0xf] }
 0x2c1   : >> { %3831 = vst [vmem:[%s6020_s15 + $0x18] sm:$0xf] %v3830_v31  ;;  %3833 = vst [vmem:[%s6020_s15 + $0x1c] sm:$0xf] %v3832_v19  ;;  %v3836_v61 = vld [vmem:[%s6024_s20 + $0x24] sm:$0xf] }
 0x2c2   : >> { %3835 = vst [vmem:[%s6020_s15 + $0x20] sm:$0xf] %v3834_v37  ;;  %v3838_v50 = vld [vmem:[%s6024_s20 + $0x28] sm:$0xf]  ;;  %v3840_v11 = vld [vmem:[%s6024_s20 + $0x2c] sm:$0xf] }
 0x2c3   : >> { %3837 = vst [vmem:[%s6020_s15 + $0x24] sm:$0xf] %v3836_v61  ;;  %3839 = vst [vmem:[%s6020_s15 + $0x28] sm:$0xf] %v3838_v50  ;;  %v3842_v63 = vld [vmem:[%s6024_s20 + $0x30] sm:$0xf] }
 0x2c4   : >> { %3841 = vst [vmem:[%s6020_s15 + $0x2c] sm:$0xf] %v3840_v11  ;;  %v3844_v22 = vld [vmem:[%s6024_s20 + $0x34] sm:$0xf]  ;;  %v3846_v48 = vld [vmem:[%s6024_s20 + $0x38] sm:$0xf] }
 0x2c5   : >> { %3843 = vst [vmem:[%s6020_s15 + $0x30] sm:$0xf] %v3842_v63  ;;  %3845 = vst [vmem:[%s6020_s15 + $0x34] sm:$0xf] %v3844_v22  ;;  %v3848_v27 = vld [vmem:[%s6024_s20 + $0x3c] sm:$0xf] }
 0x2c6   : >> { %3847 = vst [vmem:[%s6020_s15 + $0x38] sm:$0xf] %v3846_v48  ;;  %v3850_v20 = vld [vmem:[%s6024_s20 + $0x40] sm:$0xf]  ;;  %v3852_v9 = vld [vmem:[%s6024_s20 + $0x44] sm:$0xf] }
 0x2c7   : >> { %3849 = vst [vmem:[%s6020_s15 + $0x3c] sm:$0xf] %v3848_v27  ;;  %3851 = vst [vmem:[%s6020_s15 + $0x40] sm:$0xf] %v3850_v20  ;;  %v3854_v13 = vld [vmem:[%s6024_s20 + $0x48] sm:$0xf] }
 0x2c8   : >> { %3853 = vst [vmem:[%s6020_s15 + $0x44] sm:$0xf] %v3852_v9  ;;  %v3856_v4 = vld [vmem:[%s6024_s20 + $0x4c] sm:$0xf]  ;;  %v3858_v14 = vld [vmem:[%s6024_s20 + $0x50] sm:$0xf] }
 0x2c9   : >> { %3855 = vst [vmem:[%s6020_s15 + $0x48] sm:$0xf] %v3854_v13  ;;  %3857 = vst [vmem:[%s6020_s15 + $0x4c] sm:$0xf] %v3856_v4  ;;  %v3860_v5 = vld [vmem:[%s6024_s20 + $0x54] sm:$0xf] }
 0x2ca   : >> { %3859 = vst [vmem:[%s6020_s15 + $0x50] sm:$0xf] %v3858_v14  ;;  %v3862_v30 = vld [vmem:[%s6024_s20 + $0x58] sm:$0xf]  ;;  %v3864_v23 = vld [vmem:[%s6024_s20 + $0x5c] sm:$0xf] }
 0x2cb   : >> { %3861 = vst [vmem:[%s6020_s15 + $0x54] sm:$0xf] %v3860_v5  ;;  %3863 = vst [vmem:[%s6020_s15 + $0x58] sm:$0xf] %v3862_v30  ;;  %v3866_v16 = vld [vmem:[%s6024_s20 + $0x60] sm:$0xf] }
 0x2cc   : >> { %3865 = vst [vmem:[%s6020_s15 + $0x5c] sm:$0xf] %v3864_v23  ;;  %v3868_v41 = vld [vmem:[%s6024_s20 + $0x64] sm:$0xf]  ;;  %v3870_v53 = vld [vmem:[%s6024_s20 + $0x68] sm:$0xf] }
 0x2cd   : >> { %3867 = vst [vmem:[%s6020_s15 + $0x60] sm:$0xf] %v3866_v16  ;;  %3869 = vst [vmem:[%s6020_s15 + $0x64] sm:$0xf] %v3868_v41  ;;  %v3872_v24 = vld [vmem:[%s6024_s20 + $0x6c] sm:$0xf] }
 0x2ce   : >> { %3871 = vst [vmem:[%s6020_s15 + $0x68] sm:$0xf] %v3870_v53  ;;  %v3874_v36 = vld [vmem:[%s6024_s20 + $0x70] sm:$0xf]  ;;  %v3876_v12 = vld [vmem:[%s6024_s20 + $0x74] sm:$0xf] }
 0x2cf   : >> { %3873 = vst [vmem:[%s6020_s15 + $0x6c] sm:$0xf] %v3872_v24  ;;  %3875 = vst [vmem:[%s6020_s15 + $0x70] sm:$0xf] %v3874_v36  ;;  %v3878_v2 = vld [vmem:[%s6024_s20 + $0x78] sm:$0xf] }
 0x2d0   : >> { %3877 = vst [vmem:[%s6020_s15 + $0x74] sm:$0xf] %v3876_v12  ;;  %v3880_v35 = vld [vmem:[%s6024_s20 + $0x7c] sm:$0xf]  ;;  %3879 = vst [vmem:[%s6020_s15 + $0x78] sm:$0xf] %v3878_v2 }
 0x2d1   : >> { %3881 = vst [vmem:[%s6020_s15 + $0x7c] sm:$0xf] %v3880_v35  ;;  %s7687_s22 = smov (%p3883_p11, %s3882_s22), 0  ;;  %s3812_s21 = sadd.s32 1, %s6032_s21  }
 0x2d2   : >> { %s4525_s25 = sshll.u32 %s7687_s22, 7  ;;  %p3811_p12 = scmp.ge.s32.totalorder %s3812_s21, %s7531_s18 }
 0x2d3   : >> { %s3887_s20 = scalar_lea.vmem %s7326_s7, %s4525_s25 [#allocation2]   ;;  %s3888_s15 = scalar_lea.vmem %s7525_s14, %s4525_s25  }
 0x2d4   : >> { %s7680_s23 = smov %s7687_s22  ;;  %3814 = sbr.rel (!%p3811_p12) target bundleno = 700 (0x2bc), region = 118 }
 0x2d9 PF: > { %s7635_s26 = sand.u32 31, %s7685_s8   ;;  %s4568_s27 = sshll.u32 %s7531_s18, 7 }
 0x2da   : > { %s3893_s28 = scalar_lea.vmem %s7326_s7, %s4568_s27 [#allocation2]   ;;  %s3895_s29 = scalar_lea.vmem %s7525_s14, %s4568_s27  }
 0x2db   : > { %p4530_p13 = scmp.le.s32.totalorder %s7635_s26, 0 }
 0x2dc   : > { %s6034_s30 = smov (!%p4530_p13), %s3895_s29   ;;  %s6038_s4 = smov (!%p4530_p13), %s3893_s28  }
 0x2dd   : > { %4094 = sbr.rel (%p4530_p13) target bundleno = 746 (0x2ea), region = 123  ;;  %s6042_s5 = smov (!%p4530_p13), 0  }
 0x2de   : > { %s6046_s6 = smov (!%p4530_p13), 0  }
 0x2e2 LB: >> { %v3905_v52 = vld [vmem:[%s6040_s4] sm:$0xf]  ;;  %s3907_s24 = sadd.s32 1, %s6044_s5  ;;  %s3899_s6 = sadd.s32 1, %s6048_s6   ;;  %s6048_s6 = sphi %s6046_s6, %s3899_s6   ;;  %s6044_s5 = sphi %s6042_s5, %s6043_s5   ;;  %s6040_s4 = sphi %s6038_s4, %s3912_s4   ;;  %s6036_s30 = sphi %s6034_s30, %s3913_s30  }
 0x2e3   : >> { %3906 = vst [vmem:[%s6036_s30] sm:$0xf] %v3905_v52  ;;  %p3908_p0 = scmp.ge.s32.totalorder %s3907_s24, %s7635_s26  ;;  %p3898_p1 = scmp.ge.s32.totalorder %s3899_s6, %s7635_s26 }
 0x2e5   : >> { %s7689_s24 = smov (%p3908_p0, %s3907_s24), 0  ;;  %3901 = sbr.rel (!%p3898_p1) target bundleno = 738 (0x2e2), region = 129 }
 0x2e6   : >> { %s4531_s12 = sshll.u32 %s7689_s24, 2  ;;  %s6043_s5 = smov %s7689_s24  }
 0x2e7   : >> { %s3912_s4 = scalar_lea.vmem %s3893_s28, %s4531_s12 [#allocation2]   ;;  %s3913_s30 = scalar_lea.vmem %s3895_s29, %s4531_s12  }
 0x2ea PF: > { %p10_p2 = scmp.ge.s32.totalorder %s6085_s16, 5   ;;  %s7681_s12 = smov %s6012_s13 }
 0x2eb   : > { %s7682_s13 = smov %s6093_s19  ;;  %s7683_s14 = smov %s6085_s16 }
 0x2ec   :  { %12 = sbr.rel (!%p10_p2) target bundleno = 2 (0x2), region = 140 }

// kernel: sac_actor_forward.6
= control target key start
LH: loop header
LB: loop body
LE: loop exit
PB: predicated region body
PF: predicated region fallthrough
CT: control target
= control target key end

     0   :  { %s6574_s12 = smov 0   ;;  %s6576_s13 = smov 0   ;;  %s8647_s0 = inlined_call_operand.vmem [shape: bf16[338,1600], index: 0, kind: input, shape index: {}]   ;;  %s8648_s1 = inlined_call_operand.vmem [shape: bf16[1600,256], index: 1, kind: input, shape index: {}]   ;;  %s8649_s2 = inlined_call_operand.vmem [shape: f32[1,256], index: 2, kind: input, shape index: {}]   ;;  %s8650_s3 = inlined_call_operand.vmem [shape: bf16[338,256], index: 3, kind: output, shape index: {}]  }
   0x1   :  { %s6578_s14 = smov 0  }
   0x2 LB: > { %s6587_s15 = sadd.s32 4294967295, %s6519_s14   ;;  %s6589_s16 = sadd.s32 1, %s6519_s14   ;;  %s6519_s14 = sphi %s6578_s14, %s8776_s14   ;;  %s6515_s13 = sphi %s6576_s13, %s8775_s13   ;;  %s6511_s12 = sphi %s6574_s12, %s8774_s12  }
   0x3   : > { %s85_s17 = ssub.s32 %s6519_s14, %s6589_s16  ;;  %s88_s18 = sadd.s32 1, %s6515_s13 }
   0x4   : > { %p86_p0 = scmp.eq.s32.totalorder %s85_s17, 0  ;;  %p98_p1 = scmp.ne.s32.totalorder %s6515_s13, %s6511_s12 }
   0x5   : > { %p99_p2 = scmp.eq.s32.totalorder %s6587_s15, 1  ;;  %p5031_p3 = scmp.ge.s32.totalorder %s6519_s14, 1 }
   0x6   : > { %s6597_s19 = scalar_select %p86_p0, %s6515_s13, %s88_s18  }
   0x7   : > { %p6599_p4 = por %p99_p2, %p98_p1  ;;  %p149_p5 = scmp.lt.s32.totalorder %s6519_s14, 3 }
   0x9   : > { %p150_p6 = pnand %p5031_p3, %p149_p5 }
   0xb   : > { %153 = sbr.rel (%p150_p6) target bundleno = 801 (0x321), region = 32 }
  0x10   : > { %v5733_v0 = vld [vmem:[%s8648_s1 + $0x74] ss:$8 sps:$4 sm:$0xff]   ;;  %v5735_v1 = vld [vmem:[%s8648_s1 + $0x70] ss:$8 sps:$4 sm:$0xff]   ;;  %v5736_v2 = vld [vmem:[%s8648_s1 + $0x64] ss:$8 sps:$4 sm:$0xff]  }
  0x11   : > { %2727 = vmatprep.subr.bf16.mxu0 %v5733_v0  ;;  %5611 = vmatprep.subr.bf16.mxu1 %v5733_v0  ;;  %v5738_v3 = vld [vmem:[%s8648_s1 + $0x60] ss:$8 sps:$4 sm:$0xff]   ;;  %v5739_v4 = vld [vmem:[%s8648_s1 + $0x54] ss:$8 sps:$4 sm:$0xff]   ;;  %s6619_s4 = sshll.u32 %s6587_s15, 5  ;;  %vm2678_vm0 = vcmask 523264  }
  0x12   : > { %2728 = vmatpush1.bf16.msra.mxu0 %v5735_v1  ;;  %5627 = vmatpush1.bf16.msra.mxu1 %v5735_v1  ;;  %v5741_v5 = vld [vmem:[%s8648_s1 + $0x50] ss:$8 sps:$4 sm:$0xff]   ;;  %p184_p7 = scmp.lt.s32.totalorder %s6619_s4, 42  ;;  %v5742_v6 = vld [vmem:[%s8648_s1 + $0x44] ss:$8 sps:$4 sm:$0xff]   ;;  %s4694_s28 = ssub.s32 (%p6599_p4), 43, %s6619_s4 }
  0x13   : > { %2729 = vmatprep.subr.bf16.mxu0 %v5736_v2  ;;  %5612 = vmatprep.subr.bf16.mxu1 %v5736_v2  ;;  %v5744_v7 = vld [vmem:[%s8648_s1 + $0x40] ss:$8 sps:$4 sm:$0xff]   ;;  %v5745_v8 = vld [vmem:[%s8648_s1 + $0x34] ss:$8 sps:$4 sm:$0xff]   ;;  %v5747_v9 = vld [vmem:[%s8648_s1 + $0x30] ss:$8 sps:$4 sm:$0xff]  }
  0x14   : > { %s185_s11 = scalar_select %p184_p7, %s6619_s4, 42  ;;  %v5748_v10 = vld [vmem:[%s8648_s1 + $0x24] ss:$8 sps:$4 sm:$0xff]   ;;  %v5750_v11 = vld [vmem:[%s8648_s1 + $0x20] ss:$8 sps:$4 sm:$0xff]  }
  0x15   : > { %v5751_v12 = vld [vmem:[%s8648_s1 + $0x14] ss:$8 sps:$4 sm:$0xff]   ;;  %v5753_v14 = vld [vmem:[%s8648_s1 + $0x10] ss:$8 sps:$4 sm:$0xff]   ;;  %v5754_v16 = vld [vmem:[%s8648_s1 + $0x4] ss:$8 sps:$4 sm:$0xff]  }
  0x16   : > { %2730 = vmatpush1.bf16.msra.mxu0 %v5738_v3  ;;  %5628 = vmatpush1.bf16.msra.mxu1 %v5738_v3  ;;  %s5643_s22 = smul.u32 52, %s185_s11  ;;  %v5756_v17 = vld [vmem:[%s8648_s1] ss:$8 sps:$4 sm:$0xff]   ;;  %v5757_v18 = vld [vmem:[%s8648_s1 + $0xf4] ss:$8 sps:$4 sm:$0xff]   ;;  %s5608_s30 = sshll.u32 (%p6599_p4), %s6587_s15, 8 }
  0x17   : > { %2731 = vmatprep.subr.bf16.mxu0 %v5739_v4  ;;  %5613 = vmatprep.subr.bf16.mxu1 %v5739_v4  ;;  %v5759_v19 = vld [vmem:[%s8648_s1 + $0xf0] ss:$8 sps:$4 sm:$0xff]   ;;  %v5760_v20 = vld [vmem:[%s8648_s1 + $0xe4] ss:$8 sps:$4 sm:$0xff]   ;;  %v5762_v21 = vld [vmem:[%s8648_s1 + $0xe0] ss:$8 sps:$4 sm:$0xff]   ;;  %s8515_s7 = scalar_lea.vmem (%p6599_p4), %s8650_s3, %s5608_s30  }
  0x18   : > { %s6647_s29 = scalar_lea.vmem %s8647_s0, %s5643_s22  ;;  %v5763_v22 = vld [vmem:[%s8648_s1 + $0xd4] ss:$8 sps:$4 sm:$0xff]   ;;  %v5765_v23 = vld [vmem:[%s8648_s1 + $0xd0] ss:$8 sps:$4 sm:$0xff]   ;;  %v5766_v24 = vld [vmem:[%s8648_s1 + $0xc4] ss:$8 sps:$4 sm:$0xff]  }
  0x19   : > { %v5783_v13 = vld [vmem:[%s6647_s29 + $0x4] ss:$52 sps:$4 sm:$0xff]   ;;  %v5768_v25 = vld [vmem:[%s8648_s1 + $0xc0] ss:$8 sps:$4 sm:$0xff]   ;;  %v5769_v26 = vld [vmem:[%s8648_s1 + $0xb4] ss:$8 sps:$4 sm:$0xff]  }
  0x1a   : > { %2732 = vmatpush1.bf16.msra.mxu0 %v5741_v5  ;;  %5629 = vmatpush1.bf16.msra.mxu1 %v5741_v5  ;;  %v5786_v15 = vld [vmem:[%s6647_s29 + $0x344] ss:$52 sps:$4 sm:$0xff]   ;;  %v5774_v29 = vld [vmem:[%s8648_s1 + $0xa0] ss:$8 sps:$4 sm:$0xff]   ;;  %v5775_v30 = vld [vmem:[%s8648_s1 + $0x94] ss:$8 sps:$4 sm:$0xff]  }
  0x1b   : > { %2733 = vmatprep.subr.bf16.mxu0 %v5742_v6  ;;  %5614 = vmatprep.subr.bf16.mxu1 %v5742_v6  ;;  %v5771_v27 = vld [vmem:[%s8648_s1 + $0xb0] ss:$8 sps:$4 sm:$0xff]   ;;  %v5772_v28 = vld [vmem:[%s8648_s1 + $0xa4] ss:$8 sps:$4 sm:$0xff]   ;;  %v5780_v33 = vld [vmem:[%s8648_s1 + $0x80] ss:$8 sps:$4 sm:$0xff]  }
  0x1c   : > { %2759 = vmatprep.mubr.bf16.mxu0 %v5783_v13  ;;  %2839 = vmatprep.mubr.bf16.mxu1 %v5786_v15  ;;  %v5777_v31 = vld [vmem:[%s8648_s1 + $0x90] ss:$8 sps:$4 sm:$0xff]   ;;  %v5778_v32 = vld [vmem:[%s8648_s1 + $0x84] ss:$8 sps:$4 sm:$0xff]   ;;  %v5789_v34 = vld [vmem:[%s8648_s1 + $0x174] ss:$8 sps:$4 sm:$0xff]  }
  0x1d   : > { %v5781_v35 = vld [vmem:[%s6647_s29] ss:$52 sps:$4 sm:$0xff]   ;;  %v5787_v38 = vld [vmem:[%s8648_s1 + $0x170] ss:$8 sps:$4 sm:$0xff]   ;;  %v5795_v40 = vld [vmem:[%s8648_s1 + $0x164] ss:$8 sps:$4 sm:$0xff]  }
  0x1e   : > { %2734 = vmatpush1.bf16.msra.mxu0 %v5744_v7  ;;  %5630 = vmatpush1.bf16.msra.mxu1 %v5744_v7  ;;  %v5792_v36 = vld [vmem:[%s8648_s1 + $0x274] ss:$8 sps:$4 sm:$0xff]   ;;  %v5790_v39 = vld [vmem:[%s8648_s1 + $0x270] ss:$8 sps:$4 sm:$0xff]   ;;  %v5798_v41 = vld [vmem:[%s8648_s1 + $0x264] ss:$8 sps:$4 sm:$0xff]  }
  0x1f   : > { %2735 = vmatprep.subr.bf16.mxu0 %v5745_v8  ;;  %5615 = vmatprep.subr.bf16.mxu1 %v5745_v8  ;;  %v5784_v37 = vld [vmem:[%s6647_s29 + $0x340] ss:$52 sps:$4 sm:$0xff]   ;;  %v5803_v47 = vld [vmem:[%s6647_s29 + $0x68] ss:$52 sps:$4 sm:$0xff]   ;;  %v5805_v50 = vld [vmem:[%s8648_s1 + $0x150] ss:$8 sps:$4 sm:$0xff]  }
  0x20   : > { %v5799_v42 = vld [vmem:[%s6647_s29 + $0x6c] ss:$52 sps:$4 sm:$0xff]   ;;  %v5807_v46 = vld [vmem:[%s8648_s1 + $0x154] ss:$8 sps:$4 sm:$0xff]   ;;  %v5808_v51 = vld [vmem:[%s8648_s1 + $0x250] ss:$8 sps:$4 sm:$0xff]  }
  0x21   : > { %v5801_v43 = vld [vmem:[%s6647_s29 + $0x3ac] ss:$52 sps:$4 sm:$0xff]   ;;  %v5810_v48 = vld [vmem:[%s8648_s1 + $0x254] ss:$8 sps:$4 sm:$0xff]   ;;  %v5821_v59 = vld [vmem:[%s6647_s29 + $0xd0] ss:$52 sps:$4 sm:$0xff]  }
  0x22   : > { %2736 = vmatpush1.bf16.msra.mxu0 %v5747_v9  ;;  %5631 = vmatpush1.bf16.msra.mxu1 %v5747_v9  ;;  %v5793_v44 = vld [vmem:[%s8648_s1 + $0x160] ss:$8 sps:$4 sm:$0xff]   ;;  %v5813_v52 = vld [vmem:[%s8648_s1 + $0x144] ss:$8 sps:$4 sm:$0xff]   ;;  %v5825_v58 = vld [vmem:[%s8648_s1 + $0x134] ss:$8 sps:$4 sm:$0xff]  }
  0x23   : > { %2737 = vmatprep.subr.bf16.mxu0 %v5748_v10  ;;  %5616 = vmatprep.subr.bf16.mxu1 %v5748_v10  ;;  %v5796_v45 = vld [vmem:[%s8648_s1 + $0x260] ss:$8 sps:$4 sm:$0xff]   ;;  %v5816_v53 = vld [vmem:[%s8648_s1 + $0x244] ss:$8 sps:$4 sm:$0xff]   ;;  %v5828_v60 = vld [vmem:[%s8648_s1 + $0x234] ss:$8 sps:$4 sm:$0xff]  }
  0x24   : > { %v5804_v49 = vld [vmem:[%s6647_s29 + $0x3a8] ss:$52 sps:$4 sm:$0xff]   ;;  %v5822_v61 = vld [vmem:[%s6647_s29 + $0x410] ss:$52 sps:$4 sm:$0xff]   ;;  %v5839_v7 = vld [vmem:[%s6647_s29 + $0x138] ss:$52 sps:$4 sm:$0xff]  }
  0x25   : > { %v5817_v54 = vld [vmem:[%s6647_s29 + $0xd4] ss:$52 sps:$4 sm:$0xff]   ;;  %v5823_v62 = vld [vmem:[%s8648_s1 + $0x130] ss:$8 sps:$4 sm:$0xff]   ;;  %v5831_v0 = vld [vmem:[%s8648_s1 + $0x124] ss:$8 sps:$4 sm:$0xff]  }
  0x26   : > { %2738 = vmatpush1.bf16.msra.mxu0 %v5750_v11  ;;  %5632 = vmatpush1.bf16.msra.mxu1 %v5750_v11  ;;  %v5819_v55 = vld [vmem:[%s6647_s29 + $0x414] ss:$52 sps:$4 sm:$0xff]   ;;  %v5826_v63 = vld [vmem:[%s8648_s1 + $0x230] ss:$8 sps:$4 sm:$0xff]   ;;  %v5834_v1 = vld [vmem:[%s8648_s1 + $0x224] ss:$8 sps:$4 sm:$0xff]  }
  0x27   : > { %2739 = vmatprep.subr.bf16.mxu0 %v5751_v12  ;;  %5617 = vmatprep.subr.bf16.mxu1 %v5751_v12  ;;  %v5811_v56 = vld [vmem:[%s8648_s1 + $0x140] ss:$8 sps:$4 sm:$0xff]   ;;  %v5835_v2 = vld [vmem:[%s6647_s29 + $0x13c] ss:$52 sps:$4 sm:$0xff]   ;;  %v5840_v9 = vld [vmem:[%s6647_s29 + $0x478] ss:$52 sps:$4 sm:$0xff]  }
  0x28   : > { %v5814_v57 = vld [vmem:[%s8648_s1 + $0x240] ss:$8 sps:$4 sm:$0xff]   ;;  %v5837_v3 = vld [vmem:[%s6647_s29 + $0x47c] ss:$52 sps:$4 sm:$0xff]   ;;  %v5849_v12 = vld [vmem:[%s8648_s1 + $0x104] ss:$8 sps:$4 sm:$0xff]  }
  0x29   : > { %v5829_v4 = vld [vmem:[%s8648_s1 + $0x120] ss:$8 sps:$4 sm:$0xff]   ;;  %v5843_v6 = vld [vmem:[%s8648_s1 + $0x114] ss:$8 sps:$4 sm:$0xff]   ;;  %v5841_v10 = vld [vmem:[%s8648_s1 + $0x110] ss:$8 sps:$4 sm:$0xff]  }
  0x2a   : > { %2740 = vmatpush1.bf16.msra.mxu0 %v5753_v14  ;;  %5633 = vmatpush1.bf16.msra.mxu1 %v5753_v14  ;;  %v5832_v5 = vld [vmem:[%s8648_s1 + $0x220] ss:$8 sps:$4 sm:$0xff]   ;;  %v5846_v8 = vld [vmem:[%s8648_s1 + $0x214] ss:$8 sps:$4 sm:$0xff]   ;;  %v5844_v11 = vld [vmem:[%s8648_s1 + $0x210] ss:$8 sps:$4 sm:$0xff]  }
  0x2b   : > { %2741 = vmatprep.subr.bf16.mxu0 %v5754_v16  ;;  %5618 = vmatprep.subr.bf16.mxu1 %v5754_v16  ;;  %v5852_v13 = vld [vmem:[%s8648_s1 + $0x204] ss:$8 sps:$4 sm:$0xff]   ;;  %v5847_v16 = vld [vmem:[%s8648_s1 + $0x100] ss:$8 sps:$4 sm:$0xff]   ;;  %p4695_p8 = scmp.lt.s32.totalorder (%p6599_p4), %s4694_s28, 32 }
  0x2c   : > { %v5853_v14 = vld [vmem:[%s6647_s29 + $0x1a4] ss:$52 sps:$4 sm:$0xff]  }
  0x2d   : > { %v5855_v15 = vld [vmem:[%s6647_s29 + $0x4e4] ss:$52 sps:$4 sm:$0xff]  }
  0x2e   : > { %2742 = vmatpush1.bf16.msra.mxu0 %v5756_v17  ;;  %5634 = vmatpush1.bf16.msra.mxu1 %v5756_v17  ;;  %v5850_v17 = vld [vmem:[%s8648_s1 + $0x200] ss:$8 sps:$4 sm:$0xff]  }
  0x2f   : > { %2743 = vmatprep.subr.bf16.mxu0 %v5757_v18  ;;  %5619 = vmatprep.subr.bf16.mxu1 %v5757_v18  ;;  %v5857_v18 = vld [vmem:[%s6647_s29 + $0x1a0] ss:$52 sps:$4 sm:$0xff]  }
  0x32   : > { %2744 = vmatpush2.bf16.msra.mxu0 %v5759_v19  ;;  %5635 = vmatpush2.bf16.msra.mxu1 %v5759_v19  ;;  %v5861_v19 = vld [vmem:[%s8648_s1 + $0x1f4] ss:$8 sps:$4 sm:$0xff]  }
  0x33   : > { %2745 = vmatprep.subr.bf16.mxu0 %v5760_v20  ;;  %5620 = vmatprep.subr.bf16.mxu1 %v5760_v20  ;;  %v5864_v20 = vld [vmem:[%s8648_s1 + $0x2f4] ss:$8 sps:$4 sm:$0xff]  }
  0x36   : > { %2746 = vmatpush2.bf16.msra.mxu0 %v5762_v21  ;;  %5636 = vmatpush2.bf16.msra.mxu1 %v5762_v21  ;;  %v5858_v21 = vld [vmem:[%s6647_s29 + $0x4e0] ss:$52 sps:$4 sm:$0xff]  }
  0x37   : > { %2747 = vmatprep.subr.bf16.mxu0 %v5763_v22  ;;  %5621 = vmatprep.subr.bf16.mxu1 %v5763_v22  ;;  %v5859_v22 = vld [vmem:[%s8648_s1 + $0x1f0] ss:$8 sps:$4 sm:$0xff]  }
  0x3a   : > { %2748 = vmatpush2.bf16.msra.mxu0 %v5765_v23  ;;  %5637 = vmatpush2.bf16.msra.mxu1 %v5765_v23  ;;  %v5862_v23 = vld [vmem:[%s8648_s1 + $0x2f0] ss:$8 sps:$4 sm:$0xff]  }
  0x3b   : > { %2749 = vmatprep.subr.bf16.mxu0 %v5766_v24  ;;  %5622 = vmatprep.subr.bf16.mxu1 %v5766_v24  ;;  %v5867_v24 = vld [vmem:[%s8648_s1 + $0x1e4] ss:$8 sps:$4 sm:$0xff]  }
  0x3e   : > { %2750 = vmatpush2.bf16.msra.mxu0 %v5768_v25  ;;  %5638 = vmatpush2.bf16.msra.mxu1 %v5768_v25  ;;  %v5870_v25 = vld [vmem:[%s8648_s1 + $0x2e4] ss:$8 sps:$4 sm:$0xff]  }
  0x3f   : > { %2751 = vmatprep.subr.bf16.mxu0 %v5769_v26  ;;  %5623 = vmatprep.subr.bf16.mxu1 %v5769_v26  ;;  %v5871_v26 = vld [vmem:[%s6647_s29 + $0x20c] ss:$52 sps:$4 sm:$0xff]  }
  0x42   : > { %2752 = vmatpush2.bf16.msra.mxu0 %v5771_v27  ;;  %5639 = vmatpush2.bf16.msra.mxu1 %v5771_v27  ;;  %v5873_v27 = vld [vmem:[%s6647_s29 + $0x54c] ss:$52 sps:$4 sm:$0xff]  }
  0x43   : > { %2753 = vmatprep.subr.bf16.mxu0 %v5772_v28  ;;  %5624 = vmatprep.subr.bf16.mxu1 %v5772_v28  ;;  %v5865_v28 = vld [vmem:[%s8648_s1 + $0x1e0] ss:$8 sps:$4 sm:$0xff]  }
  0x46   : > { %2754 = vmatpush2.bf16.msra.mxu0 %v5774_v29  ;;  %5640 = vmatpush2.bf16.msra.mxu1 %v5774_v29  ;;  %v5868_v29 = vld [vmem:[%s8648_s1 + $0x2e0] ss:$8 sps:$4 sm:$0xff]  }
  0x47   : > { %2755 = vmatprep.subr.bf16.mxu0 %v5775_v30  ;;  %5625 = vmatprep.subr.bf16.mxu1 %v5775_v30  ;;  %v5879_v30 = vld [vmem:[%s8648_s1 + $0x1d4] ss:$8 sps:$4 sm:$0xff]  }
  0x4a   : > { %2756 = vmatpush2.bf16.msra.mxu0 %v5777_v31  ;;  %5641 = vmatpush2.bf16.msra.mxu1 %v5777_v31  ;;  %v5875_v31 = vld [vmem:[%s6647_s29 + $0x208] ss:$52 sps:$4 sm:$0xff]  }
  0x4b   : > { %2757 = vmatprep.subr.bf16.mxu0 %v5778_v32  ;;  %5626 = vmatprep.subr.bf16.mxu1 %v5778_v32  ;;  %v5882_v32 = vld [vmem:[%s8648_s1 + $0x2d4] ss:$8 sps:$4 sm:$0xff]  }
  0x4e   : > { %2758 = vmatpush2.bf16.msra.mxu0 %v5780_v33  ;;  %5642 = vmatpush2.bf16.msra.mxu1 %v5780_v33  ;;  %v5876_v33 = vld [vmem:[%s6647_s29 + $0x548] ss:$52 sps:$4 sm:$0xff]  }
  0x4f   : > { %2920 = vmatprep.subr.bf16.mxu1 %v5789_v34  ;;  %3113 = vmatprep.subr.bf16.mxu0 %v5792_v36  ;;  %v5877_v34 = vld [vmem:[%s8648_s1 + $0x1d0] ss:$8 sps:$4 sm:$0xff]   ;;  %v5885_v36 = vld [vmem:[%s8648_s1 + $0x1c4] ss:$8 sps:$4 sm:$0xff]  }
  0x51   : > { %2760 = vmatmul.mubr.bf16.vlgmr.msra.gmra.mxu0 %v5781_v35  ;;  %2840 = vmatmul.mubr.bf16.vlgmr.msra.gmra.mxu1 %v5784_v37  ;;  %v5880_v35 = vld [vmem:[%s8648_s1 + $0x2d0] ss:$8 sps:$4 sm:$0xff]   ;;  %v5888_v37 = vld [vmem:[%s8648_s1 + $0x2c4] ss:$8 sps:$4 sm:$0xff]  }
  0x52   : > { %2921 = vmatpush1.bf16.msra.mxu1 %v5787_v38  ;;  %3114 = vmatpush1.bf16.msra.mxu0 %v5790_v39  ;;  %v5889_v38 = vld [vmem:[%s6647_s29 + $0x274] ss:$52 sps:$4 sm:$0xff]  }
  0x53   : > { %2922 = vmatprep.subr.bf16.mxu1 %v5795_v40  ;;  %3115 = vmatprep.subr.bf16.mxu0 %v5798_v41  ;;  %v5891_v39 = vld [vmem:[%s6647_s29 + $0x5b4] ss:$52 sps:$4 sm:$0xff]  }
  0x54   : > { %2769 = vmatprep.mubr.bf16.mxu0 %v5799_v42  ;;  %2849 = vmatprep.mubr.bf16.mxu1 %v5801_v43  ;;  %v5883_v40 = vld [vmem:[%s8648_s1 + $0x1c0] ss:$8 sps:$4 sm:$0xff]   ;;  %v5893_v42 = vld [vmem:[%s6647_s29 + $0x270] ss:$52 sps:$4 sm:$0xff]   ;;  %v5897_v43 = vld [vmem:[%s8648_s1 + $0x1b4] ss:$8 sps:$4 sm:$0xff]  }
  0x55   : > { %v5886_v41 = vld [vmem:[%s8648_s1 + $0x2c0] ss:$8 sps:$4 sm:$0xff]  }
  0x56   : > { %2923 = vmatpush1.bf16.msra.mxu1 %v5793_v44  ;;  %3116 = vmatpush1.bf16.msra.mxu0 %v5796_v45  ;;  %v5900_v44 = vld [vmem:[%s8648_s1 + $0x2b4] ss:$8 sps:$4 sm:$0xff]   ;;  %v5894_v45 = vld [vmem:[%s6647_s29 + $0x5b0] ss:$52 sps:$4 sm:$0xff]  }
  0x57   : > { %2924 = vmatprep.subr.bf16.mxu1 %v5807_v46  ;;  %3117 = vmatprep.subr.bf16.mxu0 %v5810_v48  ;;  %v5895_v46 = vld [vmem:[%s8648_s1 + $0x1b0] ss:$8 sps:$4 sm:$0xff]   ;;  %v5903_v48 = vld [vmem:[%s8648_s1 + $0x1a4] ss:$8 sps:$4 sm:$0xff]  }
  0x59   : > { %2770 = vmatmul.mubr.bf16.gmra.mxu0 %v5803_v47  ;;  %2850 = vmatmul.mubr.bf16.gmra.mxu1 %v5804_v49  ;;  %v5898_v47 = vld [vmem:[%s8648_s1 + $0x2b0] ss:$8 sps:$4 sm:$0xff]   ;;  %v5906_v49 = vld [vmem:[%s8648_s1 + $0x2a4] ss:$8 sps:$4 sm:$0xff]  }
  0x5a   : > { %2925 = vmatpush1.bf16.msra.mxu1 %v5805_v50  ;;  %3118 = vmatpush1.bf16.msra.mxu0 %v5808_v51  ;;  %v5907_v50 = vld [vmem:[%s6647_s29 + $0x2dc] ss:$52 sps:$4 sm:$0xff]  }
  0x5b   : > { %2926 = vmatprep.subr.bf16.mxu1 %v5813_v52  ;;  %3119 = vmatprep.subr.bf16.mxu0 %v5816_v53  ;;  %v5909_v51 = vld [vmem:[%s6647_s29 + $0x61c] ss:$52 sps:$4 sm:$0xff]   ;;  %v5901_v52 = vld [vmem:[%s8648_s1 + $0x1a0] ss:$8 sps:$4 sm:$0xff]  }
  0x5c   : > { %2779 = vmatprep.mubr.bf16.mxu0 %v5817_v54  ;;  %2859 = vmatprep.mubr.bf16.mxu1 %v5819_v55  ;;  %v5904_v53 = vld [vmem:[%s8648_s1 + $0x2a0] ss:$8 sps:$4 sm:$0xff]   ;;  %v5915_v54 = vld [vmem:[%s8648_s1 + $0x194] ss:$8 sps:$4 sm:$0xff]   ;;  %v5911_v55 = vld [vmem:[%s6647_s29 + $0x2d8] ss:$52 sps:$4 sm:$0xff]  }
  0x5e   : > { %2927 = vmatpush1.bf16.msra.mxu1 %v5811_v56  ;;  %3120 = vmatpush1.bf16.msra.mxu0 %v5814_v57  ;;  %v5918_v56 = vld [vmem:[%s8648_s1 + $0x294] ss:$8 sps:$4 sm:$0xff]   ;;  %v5912_v57 = vld [vmem:[%s6647_s29 + $0x618] ss:$52 sps:$4 sm:$0xff]  }
  0x5f   : > { %2928 = vmatprep.subr.bf16.mxu1 %v5825_v58  ;;  %3121 = vmatprep.subr.bf16.mxu0 %v5828_v60  ;;  %v5913_v58 = vld [vmem:[%s8648_s1 + $0x190] ss:$8 sps:$4 sm:$0xff]   ;;  %v5921_v60 = vld [vmem:[%s8648_s1 + $0x184] ss:$8 sps:$4 sm:$0xff]  }
  0x61   : > { %2780 = vmatmul.mubr.bf16.gmra.mxu0 %v5821_v59  ;;  %2860 = vmatmul.mubr.bf16.gmra.mxu1 %v5822_v61  ;;  %v5916_v59 = vld [vmem:[%s8648_s1 + $0x290] ss:$8 sps:$4 sm:$0xff]   ;;  %v5924_v61 = vld [vmem:[%s8648_s1 + $0x284] ss:$8 sps:$4 sm:$0xff]  }
  0x62   : > { %2929 = vmatpush1.bf16.msra.mxu1 %v5823_v62  ;;  %3122 = vmatpush1.bf16.msra.mxu0 %v5826_v63  ;;  %v5927_v62 = vld [vmem:[%s6647_s29 + $0xc] ss:$52 sps:$4 sm:$0xff]   ;;  %v5930_v63 = vld [vmem:[%s6647_s29 + $0x14] ss:$52 sps:$4 sm:$0xff]  }
  0x63   : > { %2930 = vmatprep.subr.bf16.mxu1 %v5831_v0  ;;  %3123 = vmatprep.subr.bf16.mxu0 %v5834_v1  ;;  %v5919_v0 = vld [vmem:[%s8648_s1 + $0x180] ss:$8 sps:$4 sm:$0xff]  }
  0x64   : > { %2789 = vmatprep.mubr.bf16.mxu0 %v5835_v2  ;;  %2869 = vmatprep.mubr.bf16.mxu1 %v5837_v3  ;;  %v5922_v1 = vld [vmem:[%s8648_s1 + $0x280] ss:$8 sps:$4 sm:$0xff]   ;;  %v5933_v3 = vld [vmem:[%s8648_s1 + $0x374] ss:$8 sps:$4 sm:$0xff]  }
  0x65   : > { %v5925_v2 = vld [vmem:[%s6647_s29 + $0x8] ss:$52 sps:$4 sm:$0xff]  }
  0x66   : > { %2931 = vmatpush1.bf16.msra.mxu1 %v5829_v4  ;;  %3124 = vmatpush1.bf16.msra.mxu0 %v5832_v5  ;;  %v5936_v4 = vld [vmem:[%s8648_s1 + $0x474] ss:$8 sps:$4 sm:$0xff]   ;;  %v5928_v5 = vld [vmem:[%s6647_s29 + $0x10] ss:$52 sps:$4 sm:$0xff]  }
  0x67   : > { %2932 = vmatprep.subr.bf16.mxu1 %v5843_v6  ;;  %3125 = vmatprep.subr.bf16.mxu0 %v5846_v8  ;;  %v5931_v6 = vld [vmem:[%s8648_s1 + $0x370] ss:$8 sps:$4 sm:$0xff]   ;;  %v5937_v8 = vld [vmem:[%s6647_s29 + $0x74] ss:$52 sps:$4 sm:$0xff]  }
  0x69   : > { %2790 = vmatmul.mubr.bf16.gmra.mxu0 %v5839_v7  ;;  %2870 = vmatmul.mubr.bf16.gmra.mxu1 %v5840_v9  ;;  %v5934_v7 = vld [vmem:[%s8648_s1 + $0x470] ss:$8 sps:$4 sm:$0xff]  }
  0x6a   : > { %2933 = vmatpush1.bf16.msra.mxu1 %v5841_v10  ;;  %3126 = vmatpush1.bf16.msra.mxu0 %v5844_v11  ;;  %v5939_v9 = vld [vmem:[%s6647_s29 + $0x7c] ss:$52 sps:$4 sm:$0xff]   ;;  %v5945_v10 = vld [vmem:[%s8648_s1 + $0x364] ss:$8 sps:$4 sm:$0xff]  }
  0x6b   : > { %2934 = vmatprep.subr.bf16.mxu1 %v5849_v12  ;;  %3127 = vmatprep.subr.bf16.mxu0 %v5852_v13  ;;  %v5948_v11 = vld [vmem:[%s8648_s1 + $0x464] ss:$8 sps:$4 sm:$0xff]   ;;  %v5943_v12 = vld [vmem:[%s8648_s1 + $0x360] ss:$8 sps:$4 sm:$0xff]  }
  0x6c   : > { %2799 = vmatprep.mubr.bf16.mxu0 %v5853_v14  ;;  %2879 = vmatprep.mubr.bf16.mxu1 %v5855_v15  ;;  %v5946_v13 = vld [vmem:[%s8648_s1 + $0x460] ss:$8 sps:$4 sm:$0xff]   ;;  %v5957_v14 = vld [vmem:[%s8648_s1 + $0x354] ss:$8 sps:$4 sm:$0xff]   ;;  %v5941_v15 = vld [vmem:[%s6647_s29 + $0x70] ss:$52 sps:$4 sm:$0xff]  }
  0x6e   : > { %2935 = vmatpush1.bf16.msra.mxu1 %v5847_v16  ;;  %3128 = vmatpush1.bf16.msra.mxu0 %v5850_v17  ;;  %v5960_v16 = vld [vmem:[%s8648_s1 + $0x454] ss:$8 sps:$4 sm:$0xff]   ;;  %v5942_v17 = vld [vmem:[%s6647_s29 + $0x78] ss:$52 sps:$4 sm:$0xff]  }
  0x6f   : > { %2936 = vmatprep.subr.bf16.mxu1 %v5861_v19  ;;  %3129 = vmatprep.subr.bf16.mxu0 %v5864_v20  ;;  %v5951_v19 = vld [vmem:[%s6647_s29 + $0xe4] ss:$52 sps:$4 sm:$0xff]  }
  0x70   : > { %v5955_v20 = vld [vmem:[%s8648_s1 + $0x350] ss:$8 sps:$4 sm:$0xff]  }
  0x71   : > { %2800 = vmatmul.mubr.bf16.gmra.mxu0 %v5857_v18  ;;  %2880 = vmatmul.mubr.bf16.gmra.mxu1 %v5858_v21  ;;  %v5949_v18 = vld [vmem:[%s6647_s29 + $0xdc] ss:$52 sps:$4 sm:$0xff]  }
  0x72   : > { %2937 = vmatpush2.bf16.msra.mxu1 %v5859_v22  ;;  %3130 = vmatpush2.bf16.msra.mxu0 %v5862_v23  ;;  %v5958_v21 = vld [vmem:[%s8648_s1 + $0x450] ss:$8 sps:$4 sm:$0xff]   ;;  %v5969_v22 = vld [vmem:[%s8648_s1 + $0x344] ss:$8 sps:$4 sm:$0xff]  }
  0x73   : > { %2938 = vmatprep.subr.bf16.mxu1 %v5867_v24  ;;  %3131 = vmatprep.subr.bf16.mxu0 %v5870_v25  ;;  %v5972_v23 = vld [vmem:[%s8648_s1 + $0x444] ss:$8 sps:$4 sm:$0xff]   ;;  %v5967_v24 = vld [vmem:[%s8648_s1 + $0x340] ss:$8 sps:$4 sm:$0xff]  }
  0x74   : > { %2809 = vmatprep.mubr.bf16.mxu0 %v5871_v26  ;;  %2889 = vmatprep.mubr.bf16.mxu1 %v5873_v27  ;;  %v5953_v25 = vld [vmem:[%s6647_s29 + $0xd8] ss:$52 sps:$4 sm:$0xff]   ;;  %v5954_v26 = vld [vmem:[%s6647_s29 + $0xe0] ss:$52 sps:$4 sm:$0xff]  }
  0x75   : > { %v5970_v27 = vld [vmem:[%s8648_s1 + $0x440] ss:$8 sps:$4 sm:$0xff]  }
  0x76   : > { %2939 = vmatpush2.bf16.msra.mxu1 %v5865_v28  ;;  %3132 = vmatpush2.bf16.msra.mxu0 %v5868_v29  ;;  %v5981_v28 = vld [vmem:[%s8648_s1 + $0x334] ss:$8 sps:$4 sm:$0xff]  }
  0x77   : > { %2940 = vmatprep.subr.bf16.mxu1 %v5879_v30  ;;  %3133 = vmatprep.subr.bf16.mxu0 %v5882_v32  ;;  %v5984_v29 = vld [vmem:[%s8648_s1 + $0x434] ss:$8 sps:$4 sm:$0xff]   ;;  %v5961_v30 = vld [vmem:[%s6647_s29 + $0x144] ss:$52 sps:$4 sm:$0xff]  }
  0x78   : > { %v5979_v32 = vld [vmem:[%s8648_s1 + $0x330] ss:$8 sps:$4 sm:$0xff]  }
  0x79   : > { %2810 = vmatmul.mubr.bf16.gmra.mxu0 %v5875_v31  ;;  %2890 = vmatmul.mubr.bf16.gmra.mxu1 %v5876_v33  ;;  %v5963_v31 = vld [vmem:[%s6647_s29 + $0x14c] ss:$52 sps:$4 sm:$0xff]   ;;  %v5982_v33 = vld [vmem:[%s8648_s1 + $0x430] ss:$8 sps:$4 sm:$0xff]  }
  0x7a   : > { %2941 = vmatpush2.bf16.msra.mxu1 %v5877_v34  ;;  %3134 = vmatpush2.bf16.msra.mxu0 %v5880_v35  ;;  %v5993_v34 = vld [vmem:[%s8648_s1 + $0x324] ss:$8 sps:$4 sm:$0xff]  }
  0x7b   : > { %2942 = vmatprep.subr.bf16.mxu1 %v5885_v36  ;;  %3135 = vmatprep.subr.bf16.mxu0 %v5888_v37  ;;  %v5996_v35 = vld [vmem:[%s8648_s1 + $0x424] ss:$8 sps:$4 sm:$0xff]   ;;  %v5991_v36 = vld [vmem:[%s8648_s1 + $0x320] ss:$8 sps:$4 sm:$0xff]  }
  0x7c   : > { %2819 = vmatprep.mubr.bf16.mxu0 %v5889_v38  ;;  %2899 = vmatprep.mubr.bf16.mxu1 %v5891_v39  ;;  %v5994_v37 = vld [vmem:[%s8648_s1 + $0x420] ss:$8 sps:$4 sm:$0xff]  }
  0x7d   : > { %v5965_v38 = vld [vmem:[%s6647_s29 + $0x140] ss:$52 sps:$4 sm:$0xff]   ;;  %v5966_v39 = vld [vmem:[%s6647_s29 + $0x148] ss:$52 sps:$4 sm:$0xff]  }
  0x7e   : > { %2943 = vmatpush2.bf16.msra.mxu1 %v5883_v40  ;;  %3136 = vmatpush2.bf16.msra.mxu0 %v5886_v41  ;;  %v6005_v40 = vld [vmem:[%s8648_s1 + $0x314] ss:$8 sps:$4 sm:$0xff]  }
  0x7f   : > { %2944 = vmatprep.subr.bf16.mxu1 %v5897_v43  ;;  %3137 = vmatprep.subr.bf16.mxu0 %v5900_v44  ;;  %v6008_v41 = vld [vmem:[%s8648_s1 + $0x414] ss:$8 sps:$4 sm:$0xff]   ;;  %v6003_v44 = vld [vmem:[%s8648_s1 + $0x310] ss:$8 sps:$4 sm:$0xff]  }
  0x80   : > { %v5975_v43 = vld [vmem:[%s6647_s29 + $0x1b4] ss:$52 sps:$4 sm:$0xff]  }
  0x81   : > { %2820 = vmatmul.mubr.bf16.gmra.mxu0 %v5893_v42  ;;  %2900 = vmatmul.mubr.bf16.gmra.mxu1 %v5894_v45  ;;  %v5973_v42 = vld [vmem:[%s6647_s29 + $0x1ac] ss:$52 sps:$4 sm:$0xff]   ;;  %v6006_v45 = vld [vmem:[%s8648_s1 + $0x410] ss:$8 sps:$4 sm:$0xff]  }
  0x82   : > { %2945 = vmatpush2.bf16.msra.mxu1 %v5895_v46  ;;  %3138 = vmatpush2.bf16.msra.mxu0 %v5898_v47  ;;  %v6017_v46 = vld [vmem:[%s8648_s1 + $0x304] ss:$8 sps:$4 sm:$0xff]  }
  0x83   : > { %2946 = vmatprep.subr.bf16.mxu1 %v5903_v48  ;;  %3139 = vmatprep.subr.bf16.mxu0 %v5906_v49  ;;  %v6020_v47 = vld [vmem:[%s8648_s1 + $0x404] ss:$8 sps:$4 sm:$0xff]   ;;  %v6015_v48 = vld [vmem:[%s8648_s1 + $0x300] ss:$8 sps:$4 sm:$0xff]  }
  0x84   : > { %2829 = vmatprep.mubr.bf16.mxu0 %v5907_v50  ;;  %2909 = vmatprep.mubr.bf16.mxu1 %v5909_v51  ;;  %v5977_v49 = vld [vmem:[%s6647_s29 + $0x1a8] ss:$52 sps:$4 sm:$0xff]   ;;  %v5978_v50 = vld [vmem:[%s6647_s29 + $0x1b0] ss:$52 sps:$4 sm:$0xff]  }
  0x85   : > { %v6018_v51 = vld [vmem:[%s8648_s1 + $0x400] ss:$8 sps:$4 sm:$0xff]  }
  0x86   : > { %2947 = vmatpush2.bf16.msra.mxu1 %v5901_v52  ;;  %3140 = vmatpush2.bf16.msra.mxu0 %v5904_v53  ;;  %v6029_v52 = vld [vmem:[%s8648_s1 + $0x3f4] ss:$8 sps:$4 sm:$0xff]  }
  0x87   : > { %2948 = vmatprep.subr.bf16.mxu1 %v5915_v54  ;;  %3141 = vmatprep.subr.bf16.mxu0 %v5918_v56  ;;  %v6032_v53 = vld [vmem:[%s8648_s1 + $0x4f4] ss:$8 sps:$4 sm:$0xff]   ;;  %v6027_v56 = vld [vmem:[%s8648_s1 + $0x3f0] ss:$8 sps:$4 sm:$0xff]  }
  0x88   : > { %v5985_v54 = vld [vmem:[%s6647_s29 + $0x214] ss:$52 sps:$4 sm:$0xff]  }
  0x89   : > { %2830 = vmatmul.mubr.bf16.gmra.mxu0 %v5911_v55  ;;  %2910 = vmatmul.mubr.bf16.gmra.mxu1 %v5912_v57  ;;  %v5987_v55 = vld [vmem:[%s6647_s29 + $0x21c] ss:$52 sps:$4 sm:$0xff]  }
  0x8a   : > { %2949 = vmatpush2.bf16.msra.mxu1 %v5913_v58  ;;  %3142 = vmatpush2.bf16.msra.mxu0 %v5916_v59  ;;  %v6030_v57 = vld [vmem:[%s8648_s1 + $0x4f0] ss:$8 sps:$4 sm:$0xff]   ;;  %v6041_v58 = vld [vmem:[%s8648_s1 + $0x3e4] ss:$8 sps:$4 sm:$0xff]  }
  0x8b   : > { %2950 = vmatprep.subr.bf16.mxu1 %v5921_v60  ;;  %3143 = vmatprep.subr.bf16.mxu0 %v5924_v61  ;;  %v6044_v59 = vld [vmem:[%s8648_s1 + $0x4e4] ss:$8 sps:$4 sm:$0xff]   ;;  %v6039_v60 = vld [vmem:[%s8648_s1 + $0x3e0] ss:$8 sps:$4 sm:$0xff]  }
  0x8c   : > { %2952 = vmatprep.mubr.bf16.mxu1 %v5927_v62  ;;  %3145 = vmatprep.mubr.bf16.mxu0 %v5930_v63  ;;  %v6042_v61 = vld [vmem:[%s8648_s1 + $0x4e0] ss:$8 sps:$4 sm:$0xff]   ;;  %v5989_v62 = vld [vmem:[%s6647_s29 + $0x210] ss:$52 sps:$4 sm:$0xff]   ;;  %v5990_v63 = vld [vmem:[%s6647_s29 + $0x218] ss:$52 sps:$4 sm:$0xff]  }
  0x8e   : > { %2951 = vmatpush2.bf16.msra.mxu1 %v5919_v0  ;;  %3144 = vmatpush2.bf16.msra.mxu0 %v5922_v1  ;;  %v6053_v0 = vld [vmem:[%s8648_s1 + $0x3d4] ss:$8 sps:$4 sm:$0xff]  }
  0x8f   : > { %3306 = vmatprep.subr.bf16.mxu1 %v5933_v3  ;;  %3499 = vmatprep.subr.bf16.mxu0 %v5936_v4  ;;  %v6056_v1 = vld [vmem:[%s8648_s1 + $0x4d4] ss:$8 sps:$4 sm:$0xff]   ;;  %v5999_v3 = vld [vmem:[%s6647_s29 + $0x284] ss:$52 sps:$4 sm:$0xff]  }
  0x90   : > { %v6051_v4 = vld [vmem:[%s8648_s1 + $0x3d0] ss:$8 sps:$4 sm:$0xff]  }
  0x91   : > { %2953 = vmatmul.mubr.bf16.vlgmr.msra.gmra.mxu1 %v5925_v2  ;;  %3146 = vmatmul.mubr.bf16.vlgmr.msra.gmra.mxu0 %v5928_v5  ;;  %v5997_v2 = vld [vmem:[%s6647_s29 + $0x27c] ss:$52 sps:$4 sm:$0xff]  }
  0x92   : > { %3307 = vmatpush1.bf16.msra.mxu1 %v5931_v6  ;;  %3500 = vmatpush1.bf16.msra.mxu0 %v5934_v7  ;;  %v6054_v5 = vld [vmem:[%s8648_s1 + $0x4d0] ss:$8 sps:$4 sm:$0xff]   ;;  %v6065_v6 = vld [vmem:[%s8648_s1 + $0x3c4] ss:$8 sps:$4 sm:$0xff]  }
  0x93   : > { %2962 = vmatprep.mubr.bf16.mxu1 %v5937_v8  ;;  %3155 = vmatprep.mubr.bf16.mxu0 %v5939_v9  ;;  %v6068_v7 = vld [vmem:[%s8648_s1 + $0x4c4] ss:$8 sps:$4 sm:$0xff]   ;;  %v6063_v8 = vld [vmem:[%s8648_s1 + $0x3c0] ss:$8 sps:$4 sm:$0xff]  }
  0x94   : > { %3308 = vmatprep.subr.bf16.mxu1 %v5945_v10  ;;  %3501 = vmatprep.subr.bf16.mxu0 %v5948_v11  ;;  %v6001_v9 = vld [vmem:[%s6647_s29 + $0x278] ss:$52 sps:$4 sm:$0xff]   ;;  %v6002_v10 = vld [vmem:[%s6647_s29 + $0x280] ss:$52 sps:$4 sm:$0xff]  }
  0x95   : > { %v6066_v11 = vld [vmem:[%s8648_s1 + $0x4c0] ss:$8 sps:$4 sm:$0xff]  }
  0x96   : > { %3309 = vmatpush1.bf16.msra.mxu1 %v5943_v12  ;;  %3502 = vmatpush1.bf16.msra.mxu0 %v5946_v13  ;;  %v6009_v12 = vld [vmem:[%s6647_s29 + $0x2e4] ss:$52 sps:$4 sm:$0xff]   ;;  %v6077_v13 = vld [vmem:[%s8648_s1 + $0x3b4] ss:$8 sps:$4 sm:$0xff]  }
  0x97   : > { %3310 = vmatprep.subr.bf16.mxu1 %v5957_v14  ;;  %3503 = vmatprep.subr.bf16.mxu0 %v5960_v16  ;;  %v6080_v14 = vld [vmem:[%s8648_s1 + $0x4b4] ss:$8 sps:$4 sm:$0xff]   ;;  %v6075_v16 = vld [vmem:[%s8648_s1 + $0x3b0] ss:$8 sps:$4 sm:$0xff]  }
  0x99   : > { %2963 = vmatmul.mubr.bf16.gmra.mxu1 %v5941_v15  ;;  %3156 = vmatmul.mubr.bf16.gmra.mxu0 %v5942_v17  ;;  %v6011_v15 = vld [vmem:[%s6647_s29 + $0x2ec] ss:$52 sps:$4 sm:$0xff]   ;;  %v6078_v17 = vld [vmem:[%s8648_s1 + $0x4b0] ss:$8 sps:$4 sm:$0xff]  }
  0x9a   : > { %2972 = vmatprep.mubr.bf16.mxu1 %v5949_v18  ;;  %3165 = vmatprep.mubr.bf16.mxu0 %v5951_v19  ;;  %v6089_v18 = vld [vmem:[%s8648_s1 + $0x3a4] ss:$8 sps:$4 sm:$0xff]  }
  0x9b   : > { %3311 = vmatpush1.bf16.msra.mxu1 %v5955_v20  ;;  %3504 = vmatpush1.bf16.msra.mxu0 %v5958_v21  ;;  %v6092_v19 = vld [vmem:[%s8648_s1 + $0x4a4] ss:$8 sps:$4 sm:$0xff]   ;;  %v6087_v20 = vld [vmem:[%s8648_s1 + $0x3a0] ss:$8 sps:$4 sm:$0xff]  }
  0x9c   : > { %3312 = vmatprep.subr.bf16.mxu1 %v5969_v22  ;;  %3505 = vmatprep.subr.bf16.mxu0 %v5972_v23  ;;  %v6090_v21 = vld [vmem:[%s8648_s1 + $0x4a0] ss:$8 sps:$4 sm:$0xff]  }
  0x9d   : > { %v6013_v22 = vld [vmem:[%s6647_s29 + $0x2e0] ss:$52 sps:$4 sm:$0xff]   ;;  %v6014_v23 = vld [vmem:[%s6647_s29 + $0x2e8] ss:$52 sps:$4 sm:$0xff]  }
  0x9f   : > { %3313 = vmatpush1.bf16.msra.mxu1 %v5967_v24  ;;  %3506 = vmatpush1.bf16.msra.mxu0 %v5970_v27  ;;  %v6101_v24 = vld [vmem:[%s8648_s1 + $0x394] ss:$8 sps:$4 sm:$0xff]  }
  0xa0   : > { %3314 = vmatprep.subr.bf16.mxu1 %v5981_v28  ;;  %3507 = vmatprep.subr.bf16.mxu0 %v5984_v29  ;;  %v6023_v27 = vld [vmem:[%s6647_s29 + $0x354] ss:$52 sps:$4 sm:$0xff]   ;;  %v6099_v28 = vld [vmem:[%s8648_s1 + $0x390] ss:$8 sps:$4 sm:$0xff]  }
  0xa1   : > { %2973 = vmatmul.mubr.bf16.gmra.mxu1 %v5953_v25  ;;  %3166 = vmatmul.mubr.bf16.gmra.mxu0 %v5954_v26  ;;  %v6104_v25 = vld [vmem:[%s8648_s1 + $0x494] ss:$8 sps:$4 sm:$0xff]   ;;  %v6021_v26 = vld [vmem:[%s6647_s29 + $0x34c] ss:$52 sps:$4 sm:$0xff]   ;;  %v6102_v29 = vld [vmem:[%s8648_s1 + $0x490] ss:$8 sps:$4 sm:$0xff]  }
  0xa2   : > { %2982 = vmatprep.mubr.bf16.mxu1 %v5961_v30  ;;  %3175 = vmatprep.mubr.bf16.mxu0 %v5963_v31  ;;  %v6113_v30 = vld [vmem:[%s8648_s1 + $0x384] ss:$8 sps:$4 sm:$0xff]  }
  0xa3   : > { %3315 = vmatpush1.bf16.msra.mxu1 %v5979_v32  ;;  %3508 = vmatpush1.bf16.msra.mxu0 %v5982_v33  ;;  %v6116_v31 = vld [vmem:[%s8648_s1 + $0x484] ss:$8 sps:$4 sm:$0xff]   ;;  %v6111_v32 = vld [vmem:[%s8648_s1 + $0x380] ss:$8 sps:$4 sm:$0xff]  }
  0xa4   : > { %3316 = vmatprep.subr.bf16.mxu1 %v5993_v34  ;;  %3509 = vmatprep.subr.bf16.mxu0 %v5996_v35  ;;  %v6025_v33 = vld [vmem:[%s6647_s29 + $0x348] ss:$52 sps:$4 sm:$0xff]  }
  0xa5   : > { %v6114_v34 = vld [vmem:[%s8648_s1 + $0x480] ss:$8 sps:$4 sm:$0xff]   ;;  %v6125_v35 = vld [vmem:[%s8648_s1 + $0x574] ss:$8 sps:$4 sm:$0xff]  }
  0xa7   : > { %3317 = vmatpush1.bf16.msra.mxu1 %v5991_v36  ;;  %3510 = vmatpush1.bf16.msra.mxu0 %v5994_v37  ;;  %v6128_v36 = vld [vmem:[%s8648_s1 + $0x634] ss:$8 sps:$4 sm:$0xff]   ;;  %v6026_v37 = vld [vmem:[%s6647_s29 + $0x350] ss:$52 sps:$4 sm:$0xff]  }
  0xa8   : > { %3318 = vmatprep.subr.bf16.mxu1 %v6005_v40  ;;  %3511 = vmatprep.subr.bf16.mxu0 %v6008_v41  ;;  %v6037_v40 = vld [vmem:[%s6647_s29 + $0x3b0] ss:$52 sps:$4 sm:$0xff]   ;;  %v6038_v41 = vld [vmem:[%s6647_s29 + $0x3b8] ss:$52 sps:$4 sm:$0xff]  }
  0xa9   : > { %2983 = vmatmul.mubr.bf16.gmra.mxu1 %v5965_v38  ;;  %3176 = vmatmul.mubr.bf16.gmra.mxu0 %v5966_v39  ;;  %v6033_v38 = vld [vmem:[%s6647_s29 + $0x3b4] ss:$52 sps:$4 sm:$0xff]   ;;  %v6035_v39 = vld [vmem:[%s6647_s29 + $0x3bc] ss:$52 sps:$4 sm:$0xff]  }
  0xaa   : > { %2992 = vmatprep.mubr.bf16.mxu1 %v5973_v42  ;;  %3185 = vmatprep.mubr.bf16.mxu0 %v5975_v43  ;;  %v6045_v42 = vld [vmem:[%s6647_s29 + $0x41c] ss:$52 sps:$4 sm:$0xff]   ;;  %v6047_v43 = vld [vmem:[%s6647_s29 + $0x424] ss:$52 sps:$4 sm:$0xff]  }
  0xab   : > { %3319 = vmatpush1.bf16.msra.mxu1 %v6003_v44  ;;  %3512 = vmatpush1.bf16.msra.mxu0 %v6006_v45  ;;  %v6049_v44 = vld [vmem:[%s6647_s29 + $0x418] ss:$52 sps:$4 sm:$0xff]   ;;  %v6050_v45 = vld [vmem:[%s6647_s29 + $0x420] ss:$52 sps:$4 sm:$0xff]  }
  0xac   : > { %3320 = vmatprep.subr.bf16.mxu1 %v6017_v46  ;;  %3513 = vmatprep.subr.bf16.mxu0 %v6020_v47  ;;  %v6057_v46 = vld [vmem:[%s6647_s29 + $0x484] ss:$52 sps:$4 sm:$0xff]   ;;  %v6059_v47 = vld [vmem:[%s6647_s29 + $0x48c] ss:$52 sps:$4 sm:$0xff]  }
  0xaf   : > { %3321 = vmatpush1.bf16.msra.mxu1 %v6015_v48  ;;  %3514 = vmatpush1.bf16.msra.mxu0 %v6018_v51  ;;  %v6061_v48 = vld [vmem:[%s6647_s29 + $0x480] ss:$52 sps:$4 sm:$0xff]  }
  0xb0   : > { %3322 = vmatprep.subr.bf16.mxu1 %v6029_v52  ;;  %3515 = vmatprep.subr.bf16.mxu0 %v6032_v53  ;;  %v6071_v51 = vld [vmem:[%s6647_s29 + $0x4f4] ss:$52 sps:$4 sm:$0xff]   ;;  %v6074_v53 = vld [vmem:[%s6647_s29 + $0x4f0] ss:$52 sps:$4 sm:$0xff]  }
  0xb1   : > { %2993 = vmatmul.mubr.bf16.gmra.mxu1 %v5977_v49  ;;  %3186 = vmatmul.mubr.bf16.gmra.mxu0 %v5978_v50  ;;  %v6062_v49 = vld [vmem:[%s6647_s29 + $0x488] ss:$52 sps:$4 sm:$0xff]   ;;  %v6069_v50 = vld [vmem:[%s6647_s29 + $0x4ec] ss:$52 sps:$4 sm:$0xff]  }
  0xb2   : > { %3002 = vmatprep.mubr.bf16.mxu1 %v5985_v54  ;;  %3195 = vmatprep.mubr.bf16.mxu0 %v5987_v55  ;;  %v6073_v52 = vld [vmem:[%s6647_s29 + $0x4e8] ss:$52 sps:$4 sm:$0xff]  }
  0xb3   : > { %3323 = vmatpush2.bf16.msra.mxu1 %v6027_v56  ;;  %3516 = vmatpush2.bf16.msra.mxu0 %v6030_v57  ;;  %v6081_v54 = vld [vmem:[%s6647_s29 + $0x554] ss:$52 sps:$4 sm:$0xff]   ;;  %v6083_v55 = vld [vmem:[%s6647_s29 + $0x55c] ss:$52 sps:$4 sm:$0xff]   ;;  %v6086_v57 = vld [vmem:[%s6647_s29 + $0x558] ss:$52 sps:$4 sm:$0xff]  }
  0xb4   : > { %3324 = vmatprep.subr.bf16.mxu1 %v6041_v58  ;;  %3517 = vmatprep.subr.bf16.mxu0 %v6044_v59  ;;  %v6085_v56 = vld [vmem:[%s6647_s29 + $0x550] ss:$52 sps:$4 sm:$0xff]  }
  0xb5   : > { %v6093_v58 = vld [vmem:[%s6647_s29 + $0x5bc] ss:$52 sps:$4 sm:$0xff]   ;;  %v6095_v59 = vld [vmem:[%s6647_s29 + $0x5c4] ss:$52 sps:$4 sm:$0xff]  }
  0xb7   : > { %3325 = vmatpush2.bf16.msra.mxu1 %v6039_v60  ;;  %3518 = vmatpush2.bf16.msra.mxu0 %v6042_v61  ;;  %v6097_v60 = vld [vmem:[%s6647_s29 + $0x5b8] ss:$52 sps:$4 sm:$0xff]   ;;  %v6098_v61 = vld [vmem:[%s6647_s29 + $0x5c0] ss:$52 sps:$4 sm:$0xff]  }
  0xb8   : > { %3326 = vmatprep.subr.bf16.mxu1 %v6053_v0  ;;  %3519 = vmatprep.subr.bf16.mxu0 %v6056_v1  ;;  %v628_v0 = vlaneseq  ;;  %v6109_v1 = vld [vmem:[%s6647_s29 + $0x620] ss:$52 sps:$4 sm:$0xff]  }
  0xb9   : > { %3003 = vmatmul.mubr.bf16.gmra.mxu1 %v5989_v62  ;;  %3196 = vmatmul.mubr.bf16.gmra.mxu0 %v5990_v63  ;;  %v6105_v62 = vld [vmem:[%s6647_s29 + $0x624] ss:$52 sps:$4 sm:$0xff]   ;;  %v6107_v63 = vld [vmem:[%s6647_s29 + $0x62c] ss:$52 sps:$4 sm:$0xff]  }
  0xba   : > { %3012 = vmatprep.mubr.bf16.mxu1 %v5997_v2  ;;  %3205 = vmatprep.mubr.bf16.mxu0 %v5999_v3  ;;  %v6110_v2 = vld [vmem:[%s6647_s29 + $0x628] ss:$52 sps:$4 sm:$0xff]   ;;  %v629_v3 = vshrl.u32 %v628_v0, 7 }
  0xbb   : > { %3327 = vmatpush2.bf16.msra.mxu1 %v6051_v4  ;;  %3520 = vmatpush2.bf16.msra.mxu0 %v6054_v5  ;;  %v6119_v4 = vld [vmem:[%s6647_s29 + $0x1c] ss:$52 sps:$4 sm:$0xff]   ;;  %v6122_v5 = vld [vmem:[%s6647_s29 + $0x24] ss:$52 sps:$4 sm:$0xff]  }
  0xbc   : > { %3328 = vmatprep.subr.bf16.mxu1 %v6065_v6  ;;  %3521 = vmatprep.subr.bf16.mxu0 %v6068_v7  ;;  %v630_v6 = vsub.s32 0, %v629_v3  ;;  %v6117_v7 = vld [vmem:[%s6647_s29 + $0x18] ss:$52 sps:$4 sm:$0xff]  }
  0xbf   : > { %3329 = vmatpush2.bf16.msra.mxu1 %v6063_v8  ;;  %3522 = vmatpush2.bf16.msra.mxu0 %v6066_v11  ;;  %v6120_v8 = vld [vmem:[%s6647_s29 + $0x20] ss:$52 sps:$4 sm:$0xff]   ;;  %v634_v11 = vsub.s32 1, %v629_v3 }
  0xc0   : > { %3330 = vmatprep.subr.bf16.mxu1 %v6077_v13  ;;  %3523 = vmatprep.subr.bf16.mxu0 %v6080_v14  ;;  %v6129_v13 = vld [vmem:[%s6647_s29 + $0x84] ss:$52 sps:$4 sm:$0xff]  }
  0xc1   : > { %3013 = vmatmul.mubr.bf16.gmra.mxu1 %v6001_v9  ;;  %3206 = vmatmul.mubr.bf16.gmra.mxu0 %v6002_v10  ;;  %v626_v9 = vld [vmem:[%s8649_s2] sm:$0x3]  ;;  %v6123_v10 = vld [vmem:[%s8648_s1 + $0x570] ss:$8 sps:$4 sm:$0xff]  }
  0xc2   : > { %3022 = vmatprep.mubr.bf16.mxu1 %v6009_v12  ;;  %3215 = vmatprep.mubr.bf16.mxu0 %v6011_v15  ;;  %v6126_v12 = vld [vmem:[%s8648_s1 + $0x630] ss:$8 sps:$4 sm:$0xff]   ;;  %v7209_v14 = vrot.slane %v626_v9, %v630_v6  ;;  %v6131_v15 = vld [vmem:[%s6647_s29 + $0x8c] ss:$52 sps:$4 sm:$0xff]  }
  0xc3   : > { %3331 = vmatpush2.bf16.msra.mxu1 %v6075_v16  ;;  %3524 = vmatpush2.bf16.msra.mxu0 %v6078_v17  ;;  %v6137_v16 = vld [vmem:[%s8648_s1 + $0x564] ss:$8 sps:$4 sm:$0xff]  }
  0xc4   : > { %3332 = vmatprep.subr.bf16.mxu1 %v6089_v18  ;;  %3525 = vmatprep.subr.bf16.mxu0 %v6092_v19  ;;  %v6167_v17 = vld [vmem:[%s8648_s1 + $0x624] ss:$8 sps:$4 sm:$0xff]   ;;  %v7218_v18 = vrot.slane %v626_v9, %v634_v11  ;;  %v6135_v19 = vld [vmem:[%s8648_s1 + $0x560] ss:$8 sps:$4 sm:$0xff]  }
  0xc5   : > { %v6152_v11 = vld [vmem:[%s6647_s29 + $0x158] ss:$52 sps:$4 sm:$0xff]  }
  0xc7   : > { %3333 = vmatpush2.bf16.msra.mxu1 %v6087_v20  ;;  %3526 = vmatpush2.bf16.msra.mxu0 %v6090_v21  ;;  %v6165_v20 = vld [vmem:[%s8648_s1 + $0x620] ss:$8 sps:$4 sm:$0xff]  }
  0xc8   : > { %3334 = vmatprep.subr.bf16.mxu1 %v6101_v24  ;;  %3527 = vmatprep.subr.bf16.mxu0 %v6104_v25  ;;  %v6206_v24 = vld [vmem:[%s8648_s1 + $0x614] ss:$8 sps:$4 sm:$0xff]  }
  0xc9   : > { %3023 = vmatmul.mubr.bf16.gmra.mxu1 %v6013_v22  ;;  %3216 = vmatmul.mubr.bf16.gmra.mxu0 %v6014_v23  ;;  %v6146_v23 = vld [vmem:[%s8648_s1 + $0x554] ss:$8 sps:$4 sm:$0xff]  }
  0xca   : > { %3032 = vmatprep.mubr.bf16.mxu1 %v6021_v26  ;;  %3225 = vmatprep.mubr.bf16.mxu0 %v6023_v27 }
  0xcb   : > { %3335 = vmatpush2.bf16.msra.mxu1 %v6099_v28  ;;  %3528 = vmatpush2.bf16.msra.mxu0 %v6102_v29  ;;  %v6133_v28 = vld [vmem:[%s6647_s29 + $0x80] ss:$52 sps:$4 sm:$0xff]  }
  0xcc   : > { %3336 = vmatprep.subr.bf16.mxu1 %v6113_v30  ;;  %3529 = vmatprep.subr.bf16.mxu0 %v6116_v31 }
  0xcf   : > { %3337 = vmatpush2.bf16.msra.mxu1 %v6111_v32  ;;  %3530 = vmatpush2.bf16.msra.mxu0 %v6114_v34  ;;  %v6134_v32 = vld [vmem:[%s6647_s29 + $0x88] ss:$52 sps:$4 sm:$0xff]   ;;  %v6138_v34 = vld [vmem:[%s6647_s29 + $0xec] ss:$52 sps:$4 sm:$0xff]  }
  0xd0   : > { %3692 = vmatprep.subr.bf16.mxu1 %v6125_v35  ;;  %3893 = vmatprep.subr.bf16.mxu0 %v6128_v36  ;;  %v6140_v35 = vld [vmem:[%s6647_s29 + $0xf4] ss:$52 sps:$4 sm:$0xff]  }
  0xd1   : > { %3033 = vmatmul.mubr.bf16.gmra.mxu1 %v6025_v33  ;;  %3226 = vmatmul.mubr.bf16.gmra.mxu0 %v6026_v37 }
  0xd2   : > { %3042 = vmatprep.mubr.bf16.mxu1 %v6033_v38  ;;  %3235 = vmatprep.mubr.bf16.mxu0 %v6035_v39  ;;  %v6144_v38 = vld [vmem:[%s8648_s1 + $0x550] ss:$8 sps:$4 sm:$0xff]  }
  0xd3   : > { %v6204_v39 = vld [vmem:[%s8648_s1 + $0x610] ss:$8 sps:$4 sm:$0xff]  }
  0xd9   : > { %3043 = vmatmul.mubr.bf16.gmra.mxu1 %v6037_v40  ;;  %3236 = vmatmul.mubr.bf16.gmra.mxu0 %v6038_v41  ;;  %v6155_v41 = vld [vmem:[%s8648_s1 + $0x544] ss:$8 sps:$4 sm:$0xff]  }
  0xda   : > { %3052 = vmatprep.mubr.bf16.mxu1 %v6045_v42  ;;  %3245 = vmatprep.mubr.bf16.mxu0 %v6047_v43  ;;  %v6245_v42 = vld [vmem:[%s8648_s1 + $0x604] ss:$8 sps:$4 sm:$0xff]  }
  0xe1   : > { %3053 = vmatmul.mubr.bf16.gmra.mxu1 %v6049_v44  ;;  %3246 = vmatmul.mubr.bf16.gmra.mxu0 %v6050_v45 }
  0xe2   : > { %3062 = vmatprep.mubr.bf16.mxu1 %v6057_v46  ;;  %3255 = vmatprep.mubr.bf16.mxu0 %v6059_v47 }
  0xe9   : > { %3063 = vmatmul.mubr.bf16.gmra.mxu1 %v6061_v48  ;;  %3256 = vmatmul.mubr.bf16.gmra.mxu0 %v6062_v49  ;;  %v6153_v48 = vld [vmem:[%s8648_s1 + $0x540] ss:$8 sps:$4 sm:$0xff]  }
  0xea   : > { %3072 = vmatprep.mubr.bf16.mxu1 %v6069_v50  ;;  %3265 = vmatprep.mubr.bf16.mxu0 %v6071_v51  ;;  %v6243_v49 = vld [vmem:[%s8648_s1 + $0x600] ss:$8 sps:$4 sm:$0xff]   ;;  %v6164_v51 = vld [vmem:[%s8648_s1 + $0x534] ss:$8 sps:$4 sm:$0xff]  }
  0xf1   : > { %3073 = vmatmul.mubr.bf16.gmra.mxu1 %v6073_v52  ;;  %3266 = vmatmul.mubr.bf16.gmra.mxu0 %v6074_v53 }
  0xf2   : > { %3082 = vmatprep.mubr.bf16.mxu1 %v6081_v54  ;;  %3275 = vmatprep.mubr.bf16.mxu0 %v6083_v55  ;;  %v6142_v54 = vld [vmem:[%s6647_s29 + $0xe8] ss:$52 sps:$4 sm:$0xff]   ;;  %v6143_v55 = vld [vmem:[%s6647_s29 + $0xf0] ss:$52 sps:$4 sm:$0xff]  }
  0xf9   : > { %3083 = vmatmul.mubr.bf16.gmra.mxu1 %v6085_v56  ;;  %3276 = vmatmul.mubr.bf16.gmra.mxu0 %v6086_v57  ;;  %v6147_v57 = vld [vmem:[%s6647_s29 + $0x154] ss:$52 sps:$4 sm:$0xff]  }
  0xfa   : > { %3092 = vmatprep.mubr.bf16.mxu1 %v6093_v58  ;;  %3285 = vmatprep.mubr.bf16.mxu0 %v6095_v59  ;;  %v6149_v58 = vld [vmem:[%s6647_s29 + $0x15c] ss:$52 sps:$4 sm:$0xff]  }
 0x101   : > { %3093 = vmatmul.mubr.bf16.gmra.mxu1 %v6097_v60  ;;  %3286 = vmatmul.mubr.bf16.gmra.mxu0 %v6098_v61  ;;  %v6162_v61 = vld [vmem:[%s8648_s1 + $0x530] ss:$8 sps:$4 sm:$0xff]  }
 0x102   : > { %3102 = vmatprep.mubr.bf16.mxu1 %v6105_v62  ;;  %3295 = vmatprep.mubr.bf16.mxu0 %v6107_v63  ;;  %v6176_v63 = vld [vmem:[%s8648_s1 + $0x524] ss:$8 sps:$4 sm:$0xff]  }
 0x109   : > { %3103 = vmatmul.mubr.bf16.gmra.mxu1 %v6109_v1  ;;  %3296 = vmatmul.mubr.bf16.gmra.mxu0 %v6110_v2 }
 0x10a   : > { %3338 = vmatprep.mubr.bf16.mxu1 %v6119_v4  ;;  %3531 = vmatprep.mubr.bf16.mxu0 %v6122_v5  ;;  %v6174_v5 = vld [vmem:[%s8648_s1 + $0x520] ss:$8 sps:$4 sm:$0xff]  }
 0x111   : > { %v7226_v21 = vpop.f32.mrf.mxu0  ;;  %v2841_v22 = vpop.f32.mrf.mxu1  ;;  %3339 = vmatmul.mubr.bf16.vlgmr.msra.gmra.mxu1 %v6117_v7  ;;  %3532 = vmatmul.mubr.bf16.vlgmr.msra.gmra.mxu0 %v6120_v8  ;;  %v6185_v7 = vld [vmem:[%s8648_s1 + $0x514] ss:$8 sps:$4 sm:$0xff]  }
 0x112   : > { %v7235_v25 = vadd.f32 %v2841_v22, %v7209_v14  ;;  %3693 = vmatpush1.bf16.msra.mxu1 %v6123_v10  ;;  %3894 = vmatpush1.bf16.msra.mxu0 %v6126_v12  ;;  %v6151_v10 = vld [vmem:[%s6647_s29 + $0x150] ss:$52 sps:$4 sm:$0xff]  }
 0x113   : > { %v7237_v26 = vpop.f32.mrf.mxu0  ;;  %v2843_v27 = vpop.f32.mrf.mxu1  ;;  %3348 = vmatprep.mubr.bf16.mxu1 %v6129_v13  ;;  %3541 = vmatprep.mubr.bf16.mxu0 %v6131_v15  ;;  %v6158_v13 = vld [vmem:[%s6647_s29 + $0x1bc] ss:$52 sps:$4 sm:$0xff]   ;;  %v6161_v15 = vld [vmem:[%s6647_s29 + $0x1c4] ss:$52 sps:$4 sm:$0xff]  }
 0x114   : > { %v7241_v29 = vadd.f32 %v2843_v27, %v7218_v18  ;;  %3694 = vmatprep.subr.bf16.mxu1 %v6137_v16  ;;  %3895 = vmatprep.subr.bf16.mxu0 %v6167_v17  ;;  %v6194_v22 = vld [vmem:[%s8648_s1 + $0x504] ss:$8 sps:$4 sm:$0xff]  }
 0x115   : > { %v7243_v30 = vpop.f32.mrf.mxu0  ;;  %v2845_v31 = vpop.f32.mrf.mxu1 }
 0x116   : > { %v7247_v33 = vadd.f32 %v2845_v31, %v7209_v14  ;;  %3695 = vmatpush1.bf16.msra.mxu1 %v6135_v19  ;;  %3896 = vmatpush1.bf16.msra.mxu0 %v6165_v20  ;;  %v6183_v19 = vld [vmem:[%s8648_s1 + $0x510] ss:$8 sps:$4 sm:$0xff]  }
 0x117   : > { %v7251_v36 = vpop.f32.mrf.mxu0  ;;  %v2847_v37 = vpop.f32.mrf.mxu1  ;;  %3696 = vmatprep.subr.bf16.mxu1 %v6146_v23  ;;  %3897 = vmatprep.subr.bf16.mxu0 %v6206_v24 }
 0x118   : > { %v7260_v40 = vadd.f32 %v2847_v37, %v7218_v18 }
 0x119   : > { %v7268_v43 = vpop.f32.mrf.mxu0  ;;  %v2851_v44 = vpop.f32.mrf.mxu1  ;;  %3349 = vmatmul.mubr.bf16.gmra.mxu1 %v6133_v28  ;;  %3542 = vmatmul.mubr.bf16.gmra.mxu0 %v6134_v32  ;;  %v6192_v32 = vld [vmem:[%s8648_s1 + $0x500] ss:$8 sps:$4 sm:$0xff]  }
 0x11a   : > { %v7271_v45 = vadd.f32 %v2851_v44, %v7209_v14  ;;  %3358 = vmatprep.mubr.bf16.mxu1 %v6138_v34  ;;  %3551 = vmatprep.mubr.bf16.mxu0 %v6140_v35  ;;  %v6203_v35 = vld [vmem:[%s8648_s1 + $0x5f4] ss:$8 sps:$4 sm:$0xff]   ;;  %v6170_v44 = vld [vmem:[%s6647_s29 + $0x224] ss:$52 sps:$4 sm:$0xff]  }
 0x11b   : > { %v7273_v46 = vpop.f32.mrf.mxu0  ;;  %v2853_v47 = vpop.f32.mrf.mxu1  ;;  %3697 = vmatpush1.bf16.msra.mxu1 %v6144_v38  ;;  %3898 = vmatpush1.bf16.msra.mxu0 %v6204_v39  ;;  %v6156_v39 = vld [vmem:[%s6647_s29 + $0x1b8] ss:$52 sps:$4 sm:$0xff]  }
 0x11c   : > { %v7282_v50 = vadd.f32 %v2853_v47, %v7218_v18  ;;  %3698 = vmatprep.subr.bf16.mxu1 %v6155_v41  ;;  %3899 = vmatprep.subr.bf16.mxu0 %v6245_v42  ;;  %v6159_v41 = vld [vmem:[%s6647_s29 + $0x1c0] ss:$52 sps:$4 sm:$0xff]  }
 0x11d   : > { %v7287_v52 = vpop.f32.mrf.mxu0  ;;  %v2855_v53 = vpop.f32.mrf.mxu1  ;;  %v6173_v47 = vld [vmem:[%s6647_s29 + $0x22c] ss:$52 sps:$4 sm:$0xff]  }
 0x11e   : > { %v7292_v56 = vadd.f32 %v2855_v53, %v7209_v14 }
 0x11f   : > { %v7296_v59 = vpop.f32.mrf.mxu0  ;;  %v2857_v60 = vpop.f32.mrf.mxu1  ;;  %3699 = vmatpush1.bf16.msra.mxu1 %v6153_v48  ;;  %3900 = vmatpush1.bf16.msra.mxu0 %v6243_v49 }
 0x120   : > { %v7302_v62 = vadd.f32 %v2857_v60, %v7218_v18  ;;  %3700 = vmatprep.subr.bf16.mxu1 %v6164_v51  ;;  %v6201_v51 = vld [vmem:[%s8648_s1 + $0x5f0] ss:$8 sps:$4 sm:$0xff]  }
 0x121   : > { %v7307_v0 = vpop.f32.mrf.mxu0  ;;  %v2861_v1 = vpop.f32.mrf.mxu1  ;;  %3359 = vmatmul.mubr.bf16.gmra.mxu1 %v6142_v54  ;;  %3552 = vmatmul.mubr.bf16.gmra.mxu0 %v6143_v55  ;;  %v6215_v54 = vld [vmem:[%s8648_s1 + $0x5e4] ss:$8 sps:$4 sm:$0xff]  }
 0x122   : > { %v7310_v2 = vadd.f32 %v2861_v1, %v7209_v14  ;;  %3368 = vmatprep.mubr.bf16.mxu1 %v6147_v57  ;;  %3561 = vmatprep.mubr.bf16.mxu0 %v6149_v58 }
 0x123   : > { %v7312_v3 = vpop.f32.mrf.mxu0  ;;  %v2863_v4 = vpop.f32.mrf.mxu1  ;;  %3701 = vmatpush1.bf16.msra.mxu1 %v6162_v61 }
 0x124   : > { %v7318_v6 = vadd.f32 %v2863_v4, %v7218_v18  ;;  %3702 = vmatprep.subr.bf16.mxu1 %v6176_v63  ;;  %v6213_v63 = vld [vmem:[%s8648_s1 + $0x5e0] ss:$8 sps:$4 sm:$0xff]   ;;  %v6224_v4 = vld [vmem:[%s8648_s1 + $0x5d4] ss:$8 sps:$4 sm:$0xff]  }
 0x125   : > { %v7323_v8 = vpop.f32.mrf.mxu0  ;;  %v2865_v9 = vpop.f32.mrf.mxu1 }
 0x126   : > { %v7328_v12 = vadd.f32 %v2865_v9, %v7209_v14  ;;  %v6168_v9 = vld [vmem:[%s6647_s29 + $0x220] ss:$52 sps:$4 sm:$0xff]  }
 0x127   : > { %v7332_v16 = vpop.f32.mrf.mxu0  ;;  %v2867_v17 = vpop.f32.mrf.mxu1  ;;  %3703 = vmatpush1.bf16.msra.mxu1 %v6174_v5 }
 0x128   : > { %v7338_v20 = vadd.f32 %v2867_v17, %v7218_v18  ;;  %3704 = vmatprep.subr.bf16.mxu1 %v6185_v7 }
 0x129   : > { %v7343_v23 = vpop.f32.mrf.mxu0  ;;  %v2871_v24 = vpop.f32.mrf.mxu1  ;;  %3369 = vmatmul.mubr.bf16.gmra.mxu1 %v6151_v10  ;;  %3562 = vmatmul.mubr.bf16.gmra.mxu0 %v6152_v11  ;;  %v6171_v10 = vld [vmem:[%s6647_s29 + $0x228] ss:$52 sps:$4 sm:$0xff]  }
 0x12a   : > { %v7346_v27 = vadd.f32 %v2871_v24, %v7209_v14  ;;  %3378 = vmatprep.mubr.bf16.mxu1 %v6158_v13  ;;  %3571 = vmatprep.mubr.bf16.mxu0 %v6161_v15  ;;  %v6179_v13 = vld [vmem:[%s6647_s29 + $0x28c] ss:$52 sps:$4 sm:$0xff]   ;;  %v6182_v15 = vld [vmem:[%s6647_s29 + $0x294] ss:$52 sps:$4 sm:$0xff]  }
 0x12b   : > { %v7348_v28 = vpop.f32.mrf.mxu0  ;;  %v2873_v31 = vpop.f32.mrf.mxu1  ;;  %3705 = vmatpush1.bf16.msra.mxu1 %v6183_v19 }
 0x12c   : > { %v7354_v34 = vadd.f32 %v2873_v31, %v7218_v18  ;;  %3706 = vmatprep.subr.bf16.mxu1 %v6194_v22  ;;  %v6222_v22 = vld [vmem:[%s8648_s1 + $0x5d0] ss:$8 sps:$4 sm:$0xff]   ;;  %v6233_v31 = vld [vmem:[%s8648_s1 + $0x5c4] ss:$8 sps:$4 sm:$0xff]  }
 0x12d   : > { %v7359_v37 = vpop.f32.mrf.mxu0  ;;  %v2875_v38 = vpop.f32.mrf.mxu1 }
 0x12e   : > { %8654 = vst [vmem:[#allocation3_spill] sm:$0xff] %v7354_v34  ;;  %v7364_v42 = vadd.f32 %v2875_v38, %v7209_v14 }
 0x12f   : > { %v7368_v48 = vpop.f32.mrf.mxu0  ;;  %v2877_v49 = vpop.f32.mrf.mxu1  ;;  %3707 = vmatpush1.bf16.msra.mxu1 %v6192_v32 }
 0x130   : > { %8655 = vst [vmem:[#allocation4_spill] sm:$0xff] %v7364_v42  ;;  %v7374_v53 = vadd.f32 %v2877_v49, %v7218_v18  ;;  %3708 = vmatprep.subr.bf16.mxu1 %v6203_v35  ;;  %v6242_v49 = vld [vmem:[%s8648_s1 + $0x5b4] ss:$8 sps:$4 sm:$0xff]  }
 0x131   : > { %v7379_v55 = vpop.f32.mrf.mxu0  ;;  %v2881_v57 = vpop.f32.mrf.mxu1  ;;  %3379 = vmatmul.mubr.bf16.gmra.mxu1 %v6156_v39  ;;  %3572 = vmatmul.mubr.bf16.gmra.mxu0 %v6159_v41 }
 0x132   : > { %8656 = vst [vmem:[#allocation5_spill] sm:$0xff] %v7374_v53  ;;  %v7382_v58 = vadd.f32 %v2881_v57, %v7209_v14  ;;  %3388 = vmatprep.mubr.bf16.mxu1 %v6170_v44  ;;  %3581 = vmatprep.mubr.bf16.mxu0 %v6173_v47  ;;  %v6231_v44 = vld [vmem:[%s8648_s1 + $0x5c0] ss:$8 sps:$4 sm:$0xff]  }
 0x133   : > { %v7384_v60 = vpop.f32.mrf.mxu0  ;;  %v2883_v61 = vpop.f32.mrf.mxu1  ;;  %3709 = vmatpush2.bf16.msra.mxu1 %v6201_v51  ;;  %v6177_v57 = vld [vmem:[%s6647_s29 + $0x288] ss:$52 sps:$4 sm:$0xff]  }
 0x134   : > { %8657 = vst [vmem:[#allocation6_spill] sm:$0xff] %v7382_v58  ;;  %v7390_v1 = vadd.f32 %v2883_v61, %v7218_v18  ;;  %3710 = vmatprep.subr.bf16.mxu1 %v6215_v54  ;;  %v6180_v61 = vld [vmem:[%s6647_s29 + $0x290] ss:$52 sps:$4 sm:$0xff]  }
 0x135   : > { %v7395_v5 = vpop.f32.mrf.mxu0  ;;  %v2885_v7 = vpop.f32.mrf.mxu1 }
 0x136   : > { %8658 = vst [vmem:[#allocation7_spill] sm:$0xff] %v7390_v1  ;;  %v7400_v11 = vadd.f32 %v2885_v7, %v7209_v14  ;;  %v6191_v7 = vld [vmem:[%s6647_s29 + $0x2fc] ss:$52 sps:$4 sm:$0xff]  }
 0x137   : > { %v7404_v17 = vpop.f32.mrf.mxu0  ;;  %v2887_v19 = vpop.f32.mrf.mxu1  ;;  %3711 = vmatpush2.bf16.msra.mxu1 %v6213_v63 }
 0x138   : > { %8659 = vst [vmem:[#allocation8_spill] sm:$0xff] %v7400_v11  ;;  %v7410_v24 = vadd.f32 %v2887_v19, %v7218_v18  ;;  %3712 = vmatprep.subr.bf16.mxu1 %v6224_v4  ;;  %v6188_v4 = vld [vmem:[%s6647_s29 + $0x2f4] ss:$52 sps:$4 sm:$0xff]   ;;  %v6254_v19 = vld [vmem:[%s8648_s1 + $0x5a4] ss:$8 sps:$4 sm:$0xff]  }
 0x139   : > { %v7415_v32 = vpop.f32.mrf.mxu0  ;;  %v2891_v35 = vpop.f32.mrf.mxu1  ;;  %3389 = vmatmul.mubr.bf16.gmra.mxu1 %v6168_v9  ;;  %3582 = vmatmul.mubr.bf16.gmra.mxu0 %v6171_v10 }
 0x13a   : > { %8660 = vst [vmem:[#allocation9_spill] sm:$0xff] %v7410_v24  ;;  %v7418_v38 = vadd.f32 %v2891_v35, %v7209_v14  ;;  %3398 = vmatprep.mubr.bf16.mxu1 %v6179_v13  ;;  %3591 = vmatprep.mubr.bf16.mxu0 %v6182_v15  ;;  %v6240_v13 = vld [vmem:[%s8648_s1 + $0x5b0] ss:$8 sps:$4 sm:$0xff]  }
 0x13b   : > { %v7420_v39 = vpop.f32.mrf.mxu0  ;;  %v2893_v41 = vpop.f32.mrf.mxu1  ;;  %3713 = vmatpush2.bf16.msra.mxu1 %v6222_v22 }
 0x13c   : > { %8661 = vst [vmem:[#allocation10_spill] sm:$0xff] %v7418_v38  ;;  %v7426_v47 = vadd.f32 %v2893_v41, %v7218_v18  ;;  %3714 = vmatprep.subr.bf16.mxu1 %v6233_v31  ;;  %v6195_v38 = vld [vmem:[%s6647_s29 + $0x358] ss:$52 sps:$4 sm:$0xff]  }
 0x13d   : > { %v7431_v51 = vpop.f32.mrf.mxu0  ;;  %v2895_v54 = vpop.f32.mrf.mxu1 }
 0x13e   : > { %8662 = vst [vmem:[#allocation11_spill] sm:$0xff] %v7426_v47  ;;  %v7436_v63 = vadd.f32 %v2895_v54, %v7209_v14 }
 0x13f   : > { %v7440_v9 = vpop.f32.mrf.mxu0  ;;  %v2897_v10 = vpop.f32.mrf.mxu1  ;;  %3715 = vmatpush2.bf16.msra.mxu1 %v6231_v44 }
 0x140   : > { %8663 = vst [vmem:[#allocation12_spill] sm:$0xff] %v7436_v63  ;;  %v7446_v15 = vadd.f32 %v2897_v10, %v7218_v18  ;;  %3716 = vmatprep.subr.bf16.mxu1 %v6242_v49  ;;  %v6252_v49 = vld [vmem:[%s8648_s1 + $0x5a0] ss:$8 sps:$4 sm:$0xff]   ;;  %v6189_v10 = vld [vmem:[%s6647_s29 + $0x2f8] ss:$52 sps:$4 sm:$0xff]  }
 0x141   : > { %v7451_v22 = vpop.f32.mrf.mxu0  ;;  %v2901_v31 = vpop.f32.mrf.mxu1  ;;  %3399 = vmatmul.mubr.bf16.gmra.mxu1 %v6177_v57  ;;  %3592 = vmatmul.mubr.bf16.gmra.mxu0 %v6180_v61  ;;  %v6263_v57 = vld [vmem:[%s8648_s1 + $0x594] ss:$8 sps:$4 sm:$0xff]  }
 0x142   : > { %8664 = vst [vmem:[#allocation13_spill] sm:$0xff] %v7446_v15  ;;  %v7454_v35 = vadd.f32 %v2901_v31, %v7209_v14  ;;  %3408 = vmatprep.mubr.bf16.mxu1 %v6188_v4  ;;  %3601 = vmatprep.mubr.bf16.mxu0 %v6191_v7  ;;  %v6186_v7 = vld [vmem:[%s6647_s29 + $0x2f0] ss:$52 sps:$4 sm:$0xff]  }
 0x143   : > { %v7456_v41 = vpop.f32.mrf.mxu0  ;;  %v2903_v44 = vpop.f32.mrf.mxu1  ;;  %3717 = vmatpush2.bf16.msra.mxu1 %v6240_v13  ;;  %v6197_v13 = vld [vmem:[%s6647_s29 + $0x35c] ss:$52 sps:$4 sm:$0xff]  }
 0x144   : > { %8665 = vst [vmem:[#allocation14_spill] sm:$0xff] %v7454_v35  ;;  %v7462_v54 = vadd.f32 %v2903_v44, %v7218_v18  ;;  %3718 = vmatprep.subr.bf16.mxu1 %v6254_v19  ;;  %v6200_v35 = vld [vmem:[%s6647_s29 + $0x364] ss:$52 sps:$4 sm:$0xff]  }
 0x145   : > { %v7467_v61 = vpop.f32.mrf.mxu0  ;;  %v2905_v4 = vpop.f32.mrf.mxu1  ;;  %v6261_v19 = vld [vmem:[%s8648_s1 + $0x590] ss:$8 sps:$4 sm:$0xff]  }
 0x146   : > { %8666 = vst [vmem:[#allocation15_spill] sm:$0xff] %v7462_v54  ;;  %v7472_v31 = vadd.f32 %v2905_v4, %v7209_v14  ;;  %v6272_v54 = vld [vmem:[%s8648_s1 + $0x584] ss:$8 sps:$4 sm:$0xff]  }
 0x147   : > { %v7476_v15 = vpop.f32.mrf.mxu0  ;;  %v2907_v63 = vpop.f32.mrf.mxu1  ;;  %3719 = vmatpush2.bf16.msra.mxu1 %v6252_v49 }
 0x148   : > { %8667 = vst [vmem:[#allocation16_spill] sm:$0xff] %v7472_v31  ;;  %v7482_v44 = vadd.f32 %v2907_v63, %v7218_v18  ;;  %3720 = vmatprep.subr.bf16.mxu1 %v6263_v57 }
 0x149   : > { %v7487_v4 = vpop.f32.mrf.mxu0  ;;  %v2911_v31 = vpop.f32.mrf.mxu1  ;;  %3409 = vmatmul.mubr.bf16.gmra.mxu1 %v6186_v7  ;;  %3602 = vmatmul.mubr.bf16.gmra.mxu0 %v6189_v10 }
 0x14a   : > { %8668 = vst [vmem:[#allocation17_spill] sm:$0xff] %v7482_v44  ;;  %v7490_v49 = vadd.f32 %v2911_v31, %v7209_v14  ;;  %3418 = vmatprep.mubr.bf16.mxu1 %v6197_v13  ;;  %3611 = vmatprep.mubr.bf16.mxu0 %v6200_v35  ;;  %v6270_v44 = vld [vmem:[%s8648_s1 + $0x580] ss:$8 sps:$4 sm:$0xff]   ;;  %v6209_v13 = vld [vmem:[%s6647_s29 + $0x3c4] ss:$52 sps:$4 sm:$0xff]  }
 0x14b   : > { %v7492_v63 = vpop.f32.mrf.mxu0  ;;  %v2913_v57 = vpop.f32.mrf.mxu1  ;;  %3721 = vmatpush2.bf16.msra.mxu1 %v6261_v19  ;;  %v6198_v31 = vld [vmem:[%s6647_s29 + $0x360] ss:$52 sps:$4 sm:$0xff]  }
 0x14c   : > { %8669 = vst [vmem:[#allocation18_spill] sm:$0xff] %v7490_v49  ;;  %v7498_v47 = vadd.f32 %v2913_v57, %v7218_v18  ;;  %3722 = vmatprep.subr.bf16.mxu1 %v6272_v54  ;;  %v6212_v19 = vld [vmem:[%s6647_s29 + $0x3cc] ss:$52 sps:$4 sm:$0xff]   ;;  %v2762_v57 = vadd.f32 %v7226_v21, %v7209_v14 }
 0x14d   : > { %v2835_v7 = vpop.f32.mrf.mxu0  ;;  %v2915_v10 = vpop.f32.mrf.mxu1 }
 0x14e   : > { %8670 = vst [vmem:[#allocation19_spill] sm:$0xff] %v7498_v47  ;;  %v7503_v49 = vadd.f32 %v2835_v7, %v7209_v14  ;;  %v7506_v35 = vadd.f32 %v2915_v10, %v7209_v14  ;;  %v2764_v10 = vadd.f32 %v7237_v26, %v7218_v18  ;;  %v2768_v26 = vadd.f32 %v7251_v36, %v7218_v18 }
 0x14f   : > { %v2837_v24 = vpop.f32.mrf.mxu0  ;;  %v2917_v11 = vpop.f32.mrf.mxu1  ;;  %3723 = vmatpush2.bf16.msra.mxu1 %v6270_v44  ;;  %v2774_v36 = vadd.f32 %v7273_v46, %v7218_v18  ;;  %v2778_v46 = vadd.f32 %v7296_v59, %v7218_v18  ;;  %v2784_v59 = vadd.f32 %v7312_v3, %v7218_v18  ;;  %v2788_v3 = vadd.f32 %v7332_v16, %v7218_v18 }
 0x150   : > { %8671 = vst [vmem:[#allocation20_spill] sm:$0xff] %v7506_v35  ;;  %v7513_v54 = vadd.f32 %v2837_v24, %v7218_v18  ;;  %v7516_v47 = vadd.f32 %v2917_v11, %v7218_v18  ;;  %v2766_v11 = vadd.f32 %v7243_v30, %v7209_v14  ;;  %v2772_v30 = vadd.f32 %v7268_v43, %v7209_v14 }
 0x151   : > { %v2954_v7 = vpop.f32.mrf.mxu1  ;;  %v3147_v1 = vpop.f32.mrf.mxu0  ;;  %3419 = vmatmul.mubr.bf16.gmra.mxu1 %v6195_v38  ;;  %3612 = vmatmul.mubr.bf16.gmra.mxu0 %v6198_v31  ;;  %v6207_v38 = vld [vmem:[%s6647_s29 + $0x3c0] ss:$52 sps:$4 sm:$0xff]   ;;  %v6210_v31 = vld [vmem:[%s6647_s29 + $0x3c8] ss:$52 sps:$4 sm:$0xff]   ;;  %v2794_v16 = vadd.f32 %v7348_v28, %v7218_v18  ;;  %v2798_v28 = vadd.f32 %v7368_v48, %v7218_v18  ;;  %v2804_v48 = vadd.f32 %v7384_v60, %v7218_v18 }
 0x152   : > { %8672 = vst [vmem:[#allocation21_spill] sm:$0xff] %v7516_v47  ;;  %v2955_v44 = vadd.f32 %v2954_v7, %v2762_v57  ;;  %3428 = vmatprep.mubr.bf16.mxu1 %v6209_v13  ;;  %3621 = vmatprep.mubr.bf16.mxu0 %v6212_v19  ;;  %v6218_v13 = vld [vmem:[%s6647_s29 + $0x42c] ss:$52 sps:$4 sm:$0xff]   ;;  %v6221_v19 = vld [vmem:[%s6647_s29 + $0x434] ss:$52 sps:$4 sm:$0xff]   ;;  %v2808_v60 = vadd.f32 %v7404_v17, %v7218_v18 }
 0x153   : > { %v2956_v21 = vpop.f32.mrf.mxu1  ;;  %v3149_v24 = vpop.f32.mrf.mxu0  ;;  %v2814_v17 = vadd.f32 %v7420_v39, %v7218_v18  ;;  %v2818_v39 = vadd.f32 %v7440_v9, %v7218_v18  ;;  %v2824_v9 = vadd.f32 %v7456_v41, %v7218_v18  ;;  %v2828_v41 = vadd.f32 %v7476_v15, %v7218_v18 }
 0x154   : > { %v7522_v47 = vadd.f32 %v3147_v1, %v2955_v44  ;;  %v2957_v35 = vadd.f32 %v2956_v21, %v2764_v10  ;;  %v2834_v15 = vadd.f32 %v7492_v63, %v7218_v18  ;;  %v6279_v63 = vld [vmem:[%s6647_s29 + $0x94] ss:$52 sps:$4 sm:$0xff]  }
 0x155   : > { %v2958_v58 = vpop.f32.mrf.mxu1  ;;  %v3151_v53 = vpop.f32.mrf.mxu0 }
 0x156   : > { %v7528_v42 = vadd.f32 %v3149_v24, %v2957_v35  ;;  %v2959_v57 = vadd.f32 %v2958_v58, %v2766_v11  ;;  %v2776_v24 = vadd.f32 %v7287_v52, %v7209_v14  ;;  %v2782_v52 = vadd.f32 %v7307_v0, %v7209_v14 }
 0x157   : > { %v2960_v7 = vpop.f32.mrf.mxu1  ;;  %v3153_v34 = vpop.f32.mrf.mxu0 }
 0x158   : > { %v7534_v1 = vadd.f32 %v3151_v53, %v2959_v57  ;;  %v2961_v10 = vadd.f32 %v2960_v7, %v2768_v26  ;;  %v6216_v57 = vld [vmem:[%s6647_s29 + $0x428] ss:$52 sps:$4 sm:$0xff]   ;;  %v6219_v7 = vld [vmem:[%s6647_s29 + $0x430] ss:$52 sps:$4 sm:$0xff]  }
 0x159   : > { %v2964_v44 = vpop.f32.mrf.mxu1  ;;  %v3157_v21 = vpop.f32.mrf.mxu0  ;;  %3429 = vmatmul.mubr.bf16.gmra.mxu1 %v6207_v38  ;;  %3622 = vmatmul.mubr.bf16.gmra.mxu0 %v6210_v31 }
 0x15a   : > { %v7538_v58 = vadd.f32 %v3153_v34, %v2961_v10  ;;  %v2965_v35 = vadd.f32 %v2964_v44, %v2772_v30  ;;  %3438 = vmatprep.mubr.bf16.mxu1 %v6218_v13  ;;  %3631 = vmatprep.mubr.bf16.mxu0 %v6221_v19  ;;  %v6227_v13 = vld [vmem:[%s6647_s29 + $0x494] ss:$52 sps:$4 sm:$0xff]   ;;  %v6230_v19 = vld [vmem:[%s6647_s29 + $0x49c] ss:$52 sps:$4 sm:$0xff]  }
 0x15b   : > { %v2966_v43 = vpop.f32.mrf.mxu1  ;;  %v3159_v53 = vpop.f32.mrf.mxu0 }
 0x15c   : > { %v7542_v11 = vadd.f32 %v3157_v21, %v2965_v35  ;;  %v2967_v26 = vadd.f32 %v2966_v43, %v2774_v36 }
 0x15d   : > { %v2968_v38 = vpop.f32.mrf.mxu1  ;;  %v3161_v31 = vpop.f32.mrf.mxu0 }
 0x15e   : > { %v7548_v34 = vadd.f32 %v3159_v53, %v2967_v26  ;;  %v2969_v30 = vadd.f32 %v2968_v38, %v2776_v24  ;;  %v2786_v38 = vadd.f32 %v7323_v8, %v7209_v14  ;;  %v2792_v8 = vadd.f32 %v7343_v23, %v7209_v14 }
 0x15f   : > { %v2970_v10 = vpop.f32.mrf.mxu1  ;;  %v3163_v44 = vpop.f32.mrf.mxu0 }
 0x160   : > { %v7554_v21 = vadd.f32 %v3161_v31, %v2969_v30  ;;  %v2971_v36 = vadd.f32 %v2970_v10, %v2778_v46  ;;  %v6225_v30 = vld [vmem:[%s6647_s29 + $0x490] ss:$52 sps:$4 sm:$0xff]   ;;  %v6228_v10 = vld [vmem:[%s6647_s29 + $0x498] ss:$52 sps:$4 sm:$0xff]  }
 0x161   : > { %v2974_v35 = vpop.f32.mrf.mxu1  ;;  %v3167_v43 = vpop.f32.mrf.mxu0  ;;  %3439 = vmatmul.mubr.bf16.gmra.mxu1 %v6216_v57  ;;  %3632 = vmatmul.mubr.bf16.gmra.mxu0 %v6219_v7 }
 0x162   : > { %v7558_v53 = vadd.f32 %v3163_v44, %v2971_v36  ;;  %v2975_v24 = vadd.f32 %v2974_v35, %v2782_v52  ;;  %3448 = vmatprep.mubr.bf16.mxu1 %v6227_v13  ;;  %3641 = vmatprep.mubr.bf16.mxu0 %v6230_v19  ;;  %v6236_v13 = vld [vmem:[%s6647_s29 + $0x4fc] ss:$52 sps:$4 sm:$0xff]   ;;  %v6239_v19 = vld [vmem:[%s6647_s29 + $0x504] ss:$52 sps:$4 sm:$0xff]  }
 0x163   : > { %v2976_v0 = vpop.f32.mrf.mxu1  ;;  %v3169_v26 = vpop.f32.mrf.mxu0 }
 0x164   : > { %v7562_v31 = vadd.f32 %v3167_v43, %v2975_v24  ;;  %v2977_v46 = vadd.f32 %v2976_v0, %v2784_v59 }
 0x165   : > { %v2978_v57 = vpop.f32.mrf.mxu1  ;;  %v3171_v7 = vpop.f32.mrf.mxu0 }
 0x166   : > { %v7568_v44 = vadd.f32 %v3169_v26, %v2977_v46  ;;  %v2979_v52 = vadd.f32 %v2978_v57, %v2786_v38  ;;  %v2796_v57 = vadd.f32 %v7359_v37, %v7209_v14  ;;  %v2802_v37 = vadd.f32 %v7379_v55, %v7209_v14 }
 0x167   : > { %v2980_v36 = vpop.f32.mrf.mxu1  ;;  %v3173_v35 = vpop.f32.mrf.mxu0 }
 0x168   : > { %v7574_v43 = vadd.f32 %v3171_v7, %v2979_v52  ;;  %v2981_v59 = vadd.f32 %v2980_v36, %v2788_v3  ;;  %v6234_v52 = vld [vmem:[%s6647_s29 + $0x4f8] ss:$52 sps:$4 sm:$0xff]   ;;  %v6237_v36 = vld [vmem:[%s6647_s29 + $0x500] ss:$52 sps:$4 sm:$0xff]  }
 0x169   : > { %v2984_v24 = vpop.f32.mrf.mxu1  ;;  %v3177_v0 = vpop.f32.mrf.mxu0  ;;  %3449 = vmatmul.mubr.bf16.gmra.mxu1 %v6225_v30  ;;  %3642 = vmatmul.mubr.bf16.gmra.mxu0 %v6228_v10 }
 0x16a   : > { %v7578_v26 = vadd.f32 %v3173_v35, %v2981_v59  ;;  %v2985_v38 = vadd.f32 %v2984_v24, %v2792_v8  ;;  %3458 = vmatprep.mubr.bf16.mxu1 %v6236_v13  ;;  %3651 = vmatprep.mubr.bf16.mxu0 %v6239_v19  ;;  %v6248_v13 = vld [vmem:[%s6647_s29 + $0x564] ss:$52 sps:$4 sm:$0xff]   ;;  %v6251_v19 = vld [vmem:[%s6647_s29 + $0x56c] ss:$52 sps:$4 sm:$0xff]  }
 0x16b   : > { %v2986_v23 = vpop.f32.mrf.mxu1  ;;  %v3179_v46 = vpop.f32.mrf.mxu0 }
 0x16c   : > { %v7582_v7 = vadd.f32 %v3177_v0, %v2985_v38  ;;  %v2987_v3 = vadd.f32 %v2986_v23, %v2794_v16 }
 0x16d   : > { %v2988_v30 = vpop.f32.mrf.mxu1  ;;  %v3181_v10 = vpop.f32.mrf.mxu0 }
 0x16e   : > { %v7588_v35 = vadd.f32 %v3179_v46, %v2987_v3  ;;  %v2989_v8 = vadd.f32 %v2988_v30, %v2796_v57  ;;  %v2806_v30 = vadd.f32 %v7395_v5, %v7209_v14  ;;  %v2812_v5 = vadd.f32 %v7415_v32, %v7209_v14 }
 0x16f   : > { %v2990_v59 = vpop.f32.mrf.mxu1  ;;  %v3183_v24 = vpop.f32.mrf.mxu0 }
 0x170   : > { %v7594_v0 = vadd.f32 %v3181_v10, %v2989_v8  ;;  %v2991_v16 = vadd.f32 %v2990_v59, %v2798_v28  ;;  %v6246_v8 = vld [vmem:[%s6647_s29 + $0x560] ss:$52 sps:$4 sm:$0xff]   ;;  %v6249_v59 = vld [vmem:[%s6647_s29 + $0x568] ss:$52 sps:$4 sm:$0xff]  }
 0x171   : > { %v2994_v38 = vpop.f32.mrf.mxu1  ;;  %v3187_v23 = vpop.f32.mrf.mxu0  ;;  %3459 = vmatmul.mubr.bf16.gmra.mxu1 %v6234_v52  ;;  %3652 = vmatmul.mubr.bf16.gmra.mxu0 %v6237_v36 }
 0x172   : > { %v7598_v46 = vadd.f32 %v3183_v24, %v2991_v16  ;;  %v2995_v57 = vadd.f32 %v2994_v38, %v2802_v37  ;;  %3468 = vmatprep.mubr.bf16.mxu1 %v6248_v13  ;;  %3661 = vmatprep.mubr.bf16.mxu0 %v6251_v19  ;;  %v6257_v13 = vld [vmem:[%s6647_s29 + $0x5cc] ss:$52 sps:$4 sm:$0xff]   ;;  %v6260_v19 = vld [vmem:[%s6647_s29 + $0x5d4] ss:$52 sps:$4 sm:$0xff]  }
 0x173   : > { %v2996_v55 = vpop.f32.mrf.mxu1  ;;  %v3189_v3 = vpop.f32.mrf.mxu0 }
 0x174   : > { %v7602_v10 = vadd.f32 %v3187_v23, %v2995_v57  ;;  %v2997_v28 = vadd.f32 %v2996_v55, %v2804_v48 }
 0x175   : > { %v2998_v52 = vpop.f32.mrf.mxu1  ;;  %v3191_v36 = vpop.f32.mrf.mxu0 }
 0x176   : > { %v7608_v24 = vadd.f32 %v3189_v3, %v2997_v28  ;;  %v2999_v37 = vadd.f32 %v2998_v52, %v2806_v30  ;;  %v2816_v52 = vadd.f32 %v7431_v51, %v7209_v14  ;;  %v2822_v51 = vadd.f32 %v7451_v22, %v7209_v14 }
 0x177   : > { %v3000_v16 = vpop.f32.mrf.mxu1  ;;  %v3193_v38 = vpop.f32.mrf.mxu0 }
 0x178   : > { %v7614_v23 = vadd.f32 %v3191_v36, %v2999_v37  ;;  %v3001_v48 = vadd.f32 %v3000_v16, %v2808_v60  ;;  %v6255_v37 = vld [vmem:[%s6647_s29 + $0x5c8] ss:$52 sps:$4 sm:$0xff]   ;;  %v6258_v16 = vld [vmem:[%s6647_s29 + $0x5d0] ss:$52 sps:$4 sm:$0xff]  }
 0x179   : > { %v3004_v57 = vpop.f32.mrf.mxu1  ;;  %v3197_v55 = vpop.f32.mrf.mxu0  ;;  %3469 = vmatmul.mubr.bf16.gmra.mxu1 %v6246_v8  ;;  %3662 = vmatmul.mubr.bf16.gmra.mxu0 %v6249_v59 }
 0x17a   : > { %v7618_v3 = vadd.f32 %v3193_v38, %v3001_v48  ;;  %v3005_v30 = vadd.f32 %v3004_v57, %v2812_v5  ;;  %3478 = vmatprep.mubr.bf16.mxu1 %v6257_v13  ;;  %3671 = vmatprep.mubr.bf16.mxu0 %v6260_v19  ;;  %v6266_v13 = vld [vmem:[%s6647_s29 + $0x634] ss:$52 sps:$4 sm:$0xff]   ;;  %v6269_v19 = vld [vmem:[%s6647_s29 + $0x63c] ss:$52 sps:$4 sm:$0xff]  }
 0x17b   : > { %v3006_v32 = vpop.f32.mrf.mxu1  ;;  %v3199_v28 = vpop.f32.mrf.mxu0 }
 0x17c   : > { %v7622_v36 = vadd.f32 %v3197_v55, %v3005_v30  ;;  %v3007_v60 = vadd.f32 %v3006_v32, %v2814_v17 }
 0x17d   : > { %v3008_v8 = vpop.f32.mrf.mxu1  ;;  %v3201_v59 = vpop.f32.mrf.mxu0 }
 0x17e   : > { %v7628_v38 = vadd.f32 %v3199_v28, %v3007_v60  ;;  %v3009_v5 = vadd.f32 %v3008_v8, %v2816_v52  ;;  %v2826_v8 = vadd.f32 %v7467_v61, %v7209_v14 }
 0x17f   : > { %v3010_v48 = vpop.f32.mrf.mxu1  ;;  %v3203_v57 = vpop.f32.mrf.mxu0 }
 0x180   : > { %v7634_v55 = vadd.f32 %v3201_v59, %v3009_v5  ;;  %v3011_v17 = vadd.f32 %v3010_v48, %v2818_v39  ;;  %v6267_v48 = vld [vmem:[%s6647_s29 + $0x638] ss:$52 sps:$4 sm:$0xff]  }
 0x181   : > { %v3014_v30 = vpop.f32.mrf.mxu1  ;;  %v3207_v32 = vpop.f32.mrf.mxu0  ;;  %3479 = vmatmul.mubr.bf16.gmra.mxu1 %v6255_v37  ;;  %3672 = vmatmul.mubr.bf16.gmra.mxu0 %v6258_v16  ;;  %v6264_v16 = vld [vmem:[%s6647_s29 + $0x630] ss:$52 sps:$4 sm:$0xff]  }
 0x182   : > { %v7638_v28 = vadd.f32 %v3203_v57, %v3011_v17  ;;  %v3015_v52 = vadd.f32 %v3014_v30, %v2822_v51  ;;  %3488 = vmatprep.mubr.bf16.mxu1 %v6266_v13  ;;  %3681 = vmatprep.mubr.bf16.mxu0 %v6269_v19  ;;  %v6275_v13 = vld [vmem:[%s6647_s29 + $0x2c] ss:$52 sps:$4 sm:$0xff]   ;;  %v2832_v30 = vadd.f32 %v7487_v4, %v7209_v14 }
 0x183   : > { %v3016_v60 = vpop.f32.mrf.mxu1  ;;  %v3209_v22 = vpop.f32.mrf.mxu0 }
 0x184   : > { %v7642_v59 = vadd.f32 %v3207_v32, %v3015_v52  ;;  %v3017_v39 = vadd.f32 %v3016_v60, %v2824_v9 }
 0x185   : > { %v3018_v5 = vpop.f32.mrf.mxu1  ;;  %v3211_v37 = vpop.f32.mrf.mxu0 }
 0x186   : > { %v7648_v57 = vadd.f32 %v3209_v22, %v3017_v39  ;;  %v3019_v51 = vadd.f32 %v3018_v5, %v2826_v8  ;;  %v8651_v8 = vmov 0  }
 0x187   : > { %v3020_v19 = vpop.f32.mrf.mxu1  ;;  %v3213_v17 = vpop.f32.mrf.mxu0 }
 0x188   : > { %v7653_v61 = vadd.f32 %v3211_v37, %v3019_v51  ;;  %v3021_v32 = vadd.f32 %v3020_v19, %v2828_v41 }
 0x189   : > { %v3024_v9 = vpop.f32.mrf.mxu1  ;;  %v3217_v52 = vpop.f32.mrf.mxu0  ;;  %3489 = vmatmul.mubr.bf16.gmra.mxu1 %v6264_v16  ;;  %3682 = vmatmul.mubr.bf16.gmra.mxu0 %v6267_v48  ;;  %v6273_v16 = vld [vmem:[%s6647_s29 + $0x28] ss:$52 sps:$4 sm:$0xff]   ;;  %v6276_v48 = vld [vmem:[%s6647_s29 + $0x30] ss:$52 sps:$4 sm:$0xff]  }
 0x18a   : > { %v7657_v60 = vadd.f32 %v3213_v17, %v3021_v32  ;;  %v3025_v22 = vadd.f32 %v3024_v9, %v2832_v30  ;;  %3724 = vmatprep.mubr.bf16.mxu1 %v6275_v13  ;;  %3917 = vmatprep.mubr.bf16.mxu0 %v8651_v8 }
 0x18b   : > { %v3026_v14 = vpop.f32.mrf.mxu1  ;;  %v3219_v4 = vpop.f32.mrf.mxu0 }
 0x18c   : > { %v7660_v39 = vadd.f32 %v3217_v52, %v3025_v22  ;;  %v3027_v5 = vadd.f32 %v3026_v14, %v2834_v15 }
 0x18d   : > { %v3028_v37 = vpop.f32.mrf.mxu1  ;;  %v3221_v41 = vpop.f32.mrf.mxu0 }
 0x18e   : > { %v7664_v51 = vadd.f32 %v3219_v4, %v3027_v5  ;;  %v3029_v18 = vadd.f32 %v3028_v37, %v7503_v49  ;;  %v6277_v37 = vld [vmem:[%s6647_s29 + $0x90] ss:$52 sps:$4 sm:$0xff]  }
 0x18f   : > { %v3030_v19 = vpop.f32.mrf.mxu1  ;;  %v3223_v13 = vpop.f32.mrf.mxu0 }
 0x190   : > { %v7668_v17 = vadd.f32 %v3221_v41, %v3029_v18  ;;  %v3031_v30 = vadd.f32 %v3030_v19, %v7513_v54  ;;  %v6280_v41 = vld [vmem:[%s6647_s29 + $0x98] ss:$52 sps:$4 sm:$0xff]   ;;  %v6283_v18 = vld [vmem:[%s6647_s29 + $0xfc] ss:$52 sps:$4 sm:$0xff]  }
 0x191   : > { %v3034_v32 = vpop.f32.mrf.mxu1  ;;  %v3227_v9 = vpop.f32.mrf.mxu0  ;;  %3725 = vmatmul.mubr.bf16.vlgmr.msra.gmra.mxu1 %v6273_v16  ;;  %5443 = vmatmul.mubr.msk.bf16.vlgmr.msra.gmra.mxu0 %vm2678_vm0, %v6276_v48 }
 0x192   : > { %v7672_v52 = vadd.f32 %v3223_v13, %v3031_v30  ;;  %v3035_v49 = vadd.f32 %v3034_v32, %v7235_v25  ;;  %3734 = vmatprep.mubr.bf16.mxu1 %v6279_v63  ;;  %3927 = vmatprep.mubr.bf16.mxu0 %v8651_v8 }
 0x193   : > { %v3036_v15 = vpop.f32.mrf.mxu1  ;;  %v3229_v22 = vpop.f32.mrf.mxu0 }
 0x194   : > { %v7676_v14 = vadd.f32 %v3227_v9, %v3035_v49  ;;  %v3037_v54 = vadd.f32 %v3036_v15, %v7241_v29 }
 0x195   : > { %v3038_v4 = vpop.f32.mrf.mxu1  ;;  %v3231_v5 = vpop.f32.mrf.mxu0 }
 0x196   : > { %v7681_v16 = vadd.f32 %v3229_v22, %v3037_v54  ;;  %v3039_v48 = vadd.f32 %v3038_v4, %v7247_v33  ;;  %v6281_v4 = vld [vmem:[%s6647_s29 + $0xf8] ss:$52 sps:$4 sm:$0xff]  }
 0x197   : > { %v3040_v19 = vpop.f32.mrf.mxu1  ;;  %v3233_v25 = vpop.f32.mrf.mxu0 }
 0x198   : > { %v7685_v63 = vadd.f32 %v3231_v5, %v3039_v48  ;;  %v3041_v13 = vadd.f32 %v3040_v19, %v7260_v40  ;;  %v6284_v5 = vld [vmem:[%s6647_s29 + $0x100] ss:$52 sps:$4 sm:$0xff]   ;;  %v6287_v48 = vld [vmem:[%s6647_s29 + $0x164] ss:$52 sps:$4 sm:$0xff]  }
 0x199   : > { %v3044_v30 = vpop.f32.mrf.mxu1  ;;  %v3237_v32 = vpop.f32.mrf.mxu0  ;;  %3735 = vmatmul.mubr.bf16.gmra.mxu1 %v6277_v37  ;;  %5444 = vmatmul.mubr.msk.bf16.gmra.mxu0 %vm2678_vm0, %v6280_v41 }
 0x19a   : > { %v7689_v29 = vadd.f32 %v3233_v25, %v3041_v13  ;;  %v3045_v9 = vadd.f32 %v3044_v30, %v7271_v45  ;;  %3744 = vmatprep.mubr.bf16.mxu1 %v6283_v18  ;;  %3937 = vmatprep.mubr.bf16.mxu0 %v8651_v8 }
 0x19b   : > { %v3046_v33 = vpop.f32.mrf.mxu1  ;;  %v3239_v49 = vpop.f32.mrf.mxu0 }
 0x19c   : > { %v7693_v15 = vadd.f32 %v3237_v32, %v3045_v9  ;;  %v3047_v40 = vadd.f32 %v3046_v33, %v7282_v50 }
 0x19d   : > { %v3048_v22 = vpop.f32.mrf.mxu1  ;;  %v3241_v54 = vpop.f32.mrf.mxu0 }
 0x19e   : > { %v7698_v37 = vadd.f32 %v3239_v49, %v3047_v40  ;;  %v3049_v41 = vadd.f32 %v3048_v22, %v7292_v56  ;;  %v6285_v22 = vld [vmem:[%s6647_s29 + $0x160] ss:$52 sps:$4 sm:$0xff]  }
 0x19f   : > { %v3050_v19 = vpop.f32.mrf.mxu1  ;;  %v3243_v45 = vpop.f32.mrf.mxu0 }
 0x1a0   : > { %v7702_v18 = vadd.f32 %v3241_v54, %v3049_v41  ;;  %v3051_v25 = vadd.f32 %v3050_v19, %v7302_v62  ;;  %v6288_v54 = vld [vmem:[%s6647_s29 + $0x168] ss:$52 sps:$4 sm:$0xff]   ;;  %v6291_v41 = vld [vmem:[%s6647_s29 + $0x1cc] ss:$52 sps:$4 sm:$0xff]  }
 0x1a1   : > { %v3054_v13 = vpop.f32.mrf.mxu1  ;;  %v3247_v30 = vpop.f32.mrf.mxu0  ;;  %3745 = vmatmul.mubr.bf16.gmra.mxu1 %v6281_v4  ;;  %5445 = vmatmul.mubr.msk.bf16.gmra.mxu0 %vm2678_vm0, %v6284_v5 }
 0x1a2   : > { %v7706_v50 = vadd.f32 %v3243_v45, %v3051_v25  ;;  %v3055_v32 = vadd.f32 %v3054_v13, %v7310_v2  ;;  %3754 = vmatprep.mubr.bf16.mxu1 %v6287_v48  ;;  %3947 = vmatprep.mubr.bf16.mxu0 %v8651_v8 }
 0x1a3   : > { %v3056_v56 = vpop.f32.mrf.mxu1  ;;  %v3249_v9 = vpop.f32.mrf.mxu0 }
 0x1a4   : > { %v7710_v33 = vadd.f32 %v3247_v30, %v3055_v32  ;;  %v3057_v62 = vadd.f32 %v3056_v56, %v7318_v6 }
 0x1a5   : > { %v3058_v49 = vpop.f32.mrf.mxu1  ;;  %v3251_v40 = vpop.f32.mrf.mxu0 }
 0x1a6   : > { %v7715_v4 = vadd.f32 %v3249_v9, %v3057_v62  ;;  %v3059_v5 = vadd.f32 %v3058_v49, %v7328_v12  ;;  %v8675_v9 = vld [vmem:[#allocation3_spill] sm:$0xff] }
 0x1a7   : > { %v3060_v19 = vpop.f32.mrf.mxu1  ;;  %v3253_v2 = vpop.f32.mrf.mxu0 }
 0x1a8   : > { %v7719_v48 = vadd.f32 %v3251_v40, %v3059_v5  ;;  %v3061_v45 = vadd.f32 %v3060_v19, %v7338_v20  ;;  %v6289_v40 = vld [vmem:[%s6647_s29 + $0x1c8] ss:$52 sps:$4 sm:$0xff]  }
 0x1a9   : > { %v3064_v25 = vpop.f32.mrf.mxu1  ;;  %v3257_v13 = vpop.f32.mrf.mxu0  ;;  %3755 = vmatmul.mubr.bf16.gmra.mxu1 %v6285_v22  ;;  %5446 = vmatmul.mubr.msk.bf16.gmra.mxu0 %vm2678_vm0, %v6288_v54  ;;  %v6292_v22 = vld [vmem:[%s6647_s29 + $0x1d0] ss:$52 sps:$4 sm:$0xff]   ;;  %v8677_v54 = vld [vmem:[#allocation4_spill] sm:$0xff] }
 0x1aa   : > { %v7723_v6 = vadd.f32 %v3253_v2, %v3061_v45  ;;  %v3065_v30 = vadd.f32 %v3064_v25, %v7346_v27  ;;  %3764 = vmatprep.mubr.bf16.mxu1 %v6291_v41  ;;  %3957 = vmatprep.mubr.bf16.mxu0 %v8651_v8  ;;  %v6295_v2 = vld [vmem:[%s6647_s29 + $0x234] ss:$52 sps:$4 sm:$0xff]  }
 0x1ab   : > { %v3066_v12 = vpop.f32.mrf.mxu1  ;;  %v3259_v32 = vpop.f32.mrf.mxu0  ;;  %v8679_v25 = vld [vmem:[#allocation5_spill] sm:$0xff] }
 0x1ac   : > { %8673 = vst [vmem:[#allocation22_spill] sm:$0xff] %v7723_v6  ;;  %v7727_v56 = vadd.f32 %v3257_v13, %v3065_v30  ;;  %v3067_v20 = vadd.f32 %v3066_v12, %v8675_v9 }
 0x1ad   : > { %v3068_v62 = vpop.f32.mrf.mxu1  ;;  %v3261_v49 = vpop.f32.mrf.mxu0 }
 0x1ae   : > { %8674 = vst [vmem:[#allocation23_spill] sm:$0xff] %v7727_v56  ;;  %v7732_v5 = vadd.f32 %v3259_v32, %v3067_v20  ;;  %v3069_v19 = vadd.f32 %v3068_v62, %v8677_v54  ;;  %v8681_v32 = vld [vmem:[#allocation6_spill] sm:$0xff]  ;;  %v8682_v20 = vmov 0  }
 0x1af   : > { %v3070_v45 = vpop.f32.mrf.mxu1  ;;  %v3263_v27 = vpop.f32.mrf.mxu0 }
 0x1b0   : > { %8676 = vst [vmem:[#allocation3_spill] sm:$0xff] %v7732_v5  ;;  %v7736_v41 = vadd.f32 %v3261_v49, %v3069_v19  ;;  %v3071_v8 = vadd.f32 %v3070_v45, %v8679_v25  ;;  %v8684_v19 = vld [vmem:[#allocation7_spill] sm:$0xff] }
 0x1b1   : > { %v3074_v13 = vpop.f32.mrf.mxu1  ;;  %v3267_v30 = vpop.f32.mrf.mxu0  ;;  %3765 = vmatmul.mubr.bf16.gmra.mxu1 %v6289_v40  ;;  %5447 = vmatmul.mubr.msk.bf16.gmra.mxu0 %vm2678_vm0, %v6292_v22  ;;  %v6293_v5 = vld [vmem:[%s6647_s29 + $0x230] ss:$52 sps:$4 sm:$0xff]   ;;  %v6296_v40 = vld [vmem:[%s6647_s29 + $0x238] ss:$52 sps:$4 sm:$0xff]  }
 0x1b2   : > { %8678 = vst [vmem:[#allocation4_spill] sm:$0xff] %v7736_v41  ;;  %v7740_v12 = vadd.f32 %v3263_v27, %v3071_v8  ;;  %v3075_v9 = vadd.f32 %v3074_v13, %v8681_v32  ;;  %3774 = vmatprep.mubr.bf16.mxu1 %v6295_v2  ;;  %3967 = vmatprep.mubr.bf16.mxu0 %v8682_v20  ;;  %v8686_v22 = vld [vmem:[#allocation8_spill] sm:$0xff]  ;;  %v6299_v27 = vld [vmem:[%s6647_s29 + $0x29c] ss:$52 sps:$4 sm:$0xff]  }
 0x1b3   : > { %v3076_v62 = vpop.f32.mrf.mxu1  ;;  %v3269_v49 = vpop.f32.mrf.mxu0  ;;  %v8688_v32 = vld [vmem:[#allocation9_spill] sm:$0xff] }
 0x1b4   : > { %8680 = vst [vmem:[#allocation5_spill] sm:$0xff] %v7740_v12  ;;  %v7744_v54 = vadd.f32 %v3267_v30, %v3075_v9  ;;  %v3077_v45 = vadd.f32 %v3076_v62, %v8684_v19 }
 0x1b5   : > { %v3078_v25 = vpop.f32.mrf.mxu1  ;;  %v3271_v41 = vpop.f32.mrf.mxu0 }
 0x1b6   : > { %8683 = vst [vmem:[#allocation6_spill] sm:$0xff] %v7744_v54  ;;  %v7749_v56 = vadd.f32 %v3269_v49, %v3077_v45  ;;  %v3079_v8 = vadd.f32 %v3078_v25, %v8686_v22  ;;  %v8690_v49 = vld [vmem:[#allocation10_spill] sm:$0xff]  ;;  %v8692_v22 = vld [vmem:[#allocation11_spill] sm:$0xff] }
 0x1b7   : > { %v3080_v12 = vpop.f32.mrf.mxu1  ;;  %v3273_v13 = vpop.f32.mrf.mxu0 }
 0x1b8   : > { %8685 = vst [vmem:[#allocation7_spill] sm:$0xff] %v7749_v56  ;;  %v7753_v2 = vadd.f32 %v3271_v41, %v3079_v8  ;;  %v3081_v6 = vadd.f32 %v3080_v12, %v8688_v32 }
 0x1b9   : > { %v3084_v30 = vpop.f32.mrf.mxu1  ;;  %v3277_v9 = vpop.f32.mrf.mxu0  ;;  %3775 = vmatmul.mubr.bf16.gmra.mxu1 %v6293_v5  ;;  %5448 = vmatmul.mubr.msk.bf16.gmra.mxu0 %vm2678_vm0, %v6296_v40  ;;  %v6300_v5 = vld [vmem:[%s6647_s29 + $0x2a0] ss:$52 sps:$4 sm:$0xff]   ;;  %v8694_v40 = vld [vmem:[#allocation12_spill] sm:$0xff] }
 0x1ba   : > { %8687 = vst [vmem:[#allocation8_spill] sm:$0xff] %v7753_v2  ;;  %v7757_v62 = vadd.f32 %v3273_v13, %v3081_v6  ;;  %v3085_v19 = vadd.f32 %v3084_v30, %v8690_v49  ;;  %3784 = vmatprep.mubr.bf16.mxu1 %v6299_v27  ;;  %3977 = vmatprep.mubr.bf16.mxu0 %v8682_v20  ;;  %v6297_v2 = vld [vmem:[%s6647_s29 + $0x298] ss:$52 sps:$4 sm:$0xff]   ;;  %v8696_v49 = vld [vmem:[#allocation13_spill] sm:$0xff] }
 0x1bb   : > { %v3086_v45 = vpop.f32.mrf.mxu1  ;;  %v3279_v41 = vpop.f32.mrf.mxu0  ;;  %v6303_v13 = vld [vmem:[%s6647_s29 + $0x304] ss:$52 sps:$4 sm:$0xff]  }
 0x1bc   : > { %8689 = vst [vmem:[#allocation9_spill] sm:$0xff] %v7757_v62  ;;  %v7761_v25 = vadd.f32 %v3277_v9, %v3085_v19  ;;  %v3087_v12 = vadd.f32 %v3086_v45, %v8692_v22 }
 0x1bd   : > { %v3088_v8 = vpop.f32.mrf.mxu1  ;;  %v3281_v32 = vpop.f32.mrf.mxu0 }
 0x1be   : > { %8691 = vst [vmem:[#allocation10_spill] sm:$0xff] %v7761_v25  ;;  %v7766_v56 = vadd.f32 %v3279_v41, %v3087_v12  ;;  %v3089_v6 = vadd.f32 %v3088_v8, %v8694_v40  ;;  %v8698_v41 = vld [vmem:[#allocation14_spill] sm:$0xff]  ;;  %v8700_v40 = vld [vmem:[#allocation15_spill] sm:$0xff] }
 0x1bf   : > { %v3090_v62 = vpop.f32.mrf.mxu1  ;;  %v3283_v30 = vpop.f32.mrf.mxu0 }
 0x1c0   : > { %8693 = vst [vmem:[#allocation11_spill] sm:$0xff] %v7766_v56  ;;  %v7770_v27 = vadd.f32 %v3281_v32, %v3089_v6  ;;  %v3091_v54 = vadd.f32 %v3090_v62, %v8696_v49 }
 0x1c1   : > { %v3094_v9 = vpop.f32.mrf.mxu1  ;;  %v3287_v19 = vpop.f32.mrf.mxu0  ;;  %3785 = vmatmul.mubr.bf16.gmra.mxu1 %v6297_v2  ;;  %5449 = vmatmul.mubr.msk.bf16.gmra.mxu0 %vm2678_vm0, %v6300_v5  ;;  %v6304_v2 = vld [vmem:[%s6647_s29 + $0x308] ss:$52 sps:$4 sm:$0xff]  }
 0x1c2   : > { %8695 = vst [vmem:[#allocation12_spill] sm:$0xff] %v7770_v27  ;;  %v7774_v45 = vadd.f32 %v3283_v30, %v3091_v54  ;;  %v3095_v22 = vadd.f32 %v3094_v9, %v8698_v41  ;;  %3794 = vmatprep.mubr.bf16.mxu1 %v6303_v13  ;;  %3987 = vmatprep.mubr.bf16.mxu0 %v8682_v20  ;;  %v6301_v27 = vld [vmem:[%s6647_s29 + $0x300] ss:$52 sps:$4 sm:$0xff]   ;;  %v8702_v5 = vld [vmem:[#allocation16_spill] sm:$0xff] }
 0x1c3   : > { %v3096_v12 = vpop.f32.mrf.mxu1  ;;  %v3289_v8 = vpop.f32.mrf.mxu0  ;;  %v6307_v30 = vld [vmem:[%s6647_s29 + $0x36c] ss:$52 sps:$4 sm:$0xff]   ;;  %v8704_v41 = vld [vmem:[#allocation17_spill] sm:$0xff] }
 0x1c4   : > { %8697 = vst [vmem:[#allocation13_spill] sm:$0xff] %v7774_v45  ;;  %v7778_v32 = vadd.f32 %v3287_v19, %v3095_v22  ;;  %v3097_v62 = vadd.f32 %v3096_v12, %v8700_v40 }
 0x1c5   : > { %v3098_v6 = vpop.f32.mrf.mxu1  ;;  %v3291_v49 = vpop.f32.mrf.mxu0 }
 0x1c6   : > { %8699 = vst [vmem:[#allocation14_spill] sm:$0xff] %v7778_v32  ;;  %v7783_v56 = vadd.f32 %v3289_v8, %v3097_v62  ;;  %v3099_v54 = vadd.f32 %v3098_v6, %v8702_v5  ;;  %v8706_v8 = vld [vmem:[#allocation18_spill] sm:$0xff]  ;;  %v8707_v5 = vld [vmem:[#allocation19_spill] sm:$0xff] }
 0x1c7   : > { %v3100_v45 = vpop.f32.mrf.mxu1  ;;  %v3293_v9 = vpop.f32.mrf.mxu0 }
 0x1c8   : > { %8701 = vst [vmem:[#allocation15_spill] sm:$0xff] %v7783_v56  ;;  %v7787_v13 = vadd.f32 %v3291_v49, %v3099_v54  ;;  %v3101_v25 = vadd.f32 %v3100_v45, %v8704_v41 }
 0x1c9   : > { %v3104_v19 = vpop.f32.mrf.mxu1  ;;  %v3297_v22 = vpop.f32.mrf.mxu0  ;;  %3795 = vmatmul.mubr.bf16.gmra.mxu1 %v6301_v27  ;;  %5450 = vmatmul.mubr.msk.bf16.gmra.mxu0 %vm2678_vm0, %v6304_v2  ;;  %v6308_v27 = vld [vmem:[%s6647_s29 + $0x370] ss:$52 sps:$4 sm:$0xff]   ;;  %v8708_v2 = vld [vmem:[#allocation20_spill] sm:$0xff] }
 0x1ca   : > { %8703 = vst [vmem:[#allocation16_spill] sm:$0xff] %v7787_v13  ;;  %v7791_v12 = vadd.f32 %v3293_v9, %v3101_v25  ;;  %v3105_v40 = vadd.f32 %v3104_v19, %v8706_v8  ;;  %3804 = vmatprep.mubr.bf16.mxu1 %v6307_v30  ;;  %3997 = vmatprep.mubr.bf16.mxu0 %v8682_v20  ;;  %v6305_v13 = vld [vmem:[%s6647_s29 + $0x368] ss:$52 sps:$4 sm:$0xff]   ;;  %v8709_v8 = vld [vmem:[#allocation21_spill] sm:$0xff] }
 0x1cb   : > { %v3106_v62 = vpop.f32.mrf.mxu1  ;;  %v3299_v6 = vpop.f32.mrf.mxu0  ;;  %v6311_v9 = vld [vmem:[%s6647_s29 + $0x3d4] ss:$52 sps:$4 sm:$0xff]  }
 0x1cc   : > { %8705 = vst [vmem:[#allocation17_spill] sm:$0xff] %v7791_v12  ;;  %v7795_v49 = vadd.f32 %v3297_v22, %v3105_v40  ;;  %v3107_v45 = vadd.f32 %v3106_v62, %v8707_v5 }
 0x1cd   : > { %v3108_v54 = vpop.f32.mrf.mxu1  ;;  %v3301_v41 = vpop.f32.mrf.mxu0 }
 0x1ce   : > { %v7800_v56 = vadd.f32 %v3299_v6, %v3107_v45  ;;  %v3109_v25 = vadd.f32 %v3108_v54, %v8708_v2 }
 0x1cf   : > { %v3110_v12 = vpop.f32.mrf.mxu1  ;;  %v3303_v19 = vpop.f32.mrf.mxu0 }
 0x1d0   : > { %v7804_v30 = vadd.f32 %v3301_v41, %v3109_v25  ;;  %v3111_v32 = vadd.f32 %v3110_v12, %v8709_v8  ;;  %v6309_v25 = vld [vmem:[%s6647_s29 + $0x3d0] ss:$52 sps:$4 sm:$0xff]  }
 0x1d1   : > { %v3340_v22 = vpop.f32.mrf.mxu1  ;;  %v3533_v40 = vpop.f32.mrf.mxu0  ;;  %3805 = vmatmul.mubr.bf16.gmra.mxu1 %v6305_v13  ;;  %5451 = vmatmul.mubr.msk.bf16.gmra.mxu0 %vm2678_vm0, %v6308_v27  ;;  %v6312_v13 = vld [vmem:[%s6647_s29 + $0x3d8] ss:$52 sps:$4 sm:$0xff]   ;;  %v6315_v27 = vld [vmem:[%s6647_s29 + $0x43c] ss:$52 sps:$4 sm:$0xff]  }
 0x1d2   : > { %v7808_v62 = vadd.f32 %v3303_v19, %v3111_v32  ;;  %v3341_v6 = vadd.f32 %v3340_v22, %v7522_v47  ;;  %3814 = vmatprep.mubr.bf16.mxu1 %v6311_v9  ;;  %4007 = vmatprep.mubr.bf16.mxu0 %v8682_v20 }
 0x1d3   : > { %v3342_v5 = vpop.f32.mrf.mxu1  ;;  %v3535_v45 = vpop.f32.mrf.mxu0 }
 0x1d4   : > { %v7812_v54 = vadd.f32 %v3533_v40, %v3341_v6  ;;  %v3343_v12 = vadd.f32 %v3342_v5, %v7528_v42 }
 0x1d5   : > { %v3344_v41 = vpop.f32.mrf.mxu1  ;;  %v3537_v2 = vpop.f32.mrf.mxu0 }
 0x1d6   : > { %v7817_v8 = vadd.f32 %v3535_v45, %v3343_v12  ;;  %v3345_v32 = vadd.f32 %v3344_v41, %v7534_v1 }
 0x1d7   : > { %v3346_v19 = vpop.f32.mrf.mxu1  ;;  %v3539_v47 = vpop.f32.mrf.mxu0 }
 0x1d8   : > { %v7821_v9 = vadd.f32 %v3537_v2, %v3345_v32  ;;  %v3347_v22 = vadd.f32 %v3346_v19, %v7538_v58  ;;  %v6313_v32 = vld [vmem:[%s6647_s29 + $0x438] ss:$52 sps:$4 sm:$0xff]  }
 0x1d9   : > { %v3350_v40 = vpop.f32.mrf.mxu1  ;;  %v3543_v6 = vpop.f32.mrf.mxu0  ;;  %3815 = vmatmul.mubr.bf16.gmra.mxu1 %v6309_v25  ;;  %5452 = vmatmul.mubr.msk.bf16.gmra.mxu0 %vm2678_vm0, %v6312_v13  ;;  %v6316_v25 = vld [vmem:[%s6647_s29 + $0x440] ss:$52 sps:$4 sm:$0xff]  }
 0x1da   : > { %v7825_v42 = vadd.f32 %v3539_v47, %v3347_v22  ;;  %v3351_v5 = vadd.f32 %v3350_v40, %v7542_v11  ;;  %3824 = vmatprep.mubr.bf16.mxu1 %v6315_v27  ;;  %4017 = vmatprep.mubr.bf16.mxu0 %v8682_v20  ;;  %v6319_v47 = vld [vmem:[%s6647_s29 + $0x4a4] ss:$52 sps:$4 sm:$0xff]  }
 0x1db   : > { %v3352_v1 = vpop.f32.mrf.mxu1  ;;  %v3545_v45 = vpop.f32.mrf.mxu0 }
 0x1dc   : > { %v7829_v12 = vadd.f32 %v3543_v6, %v3351_v5  ;;  %v3353_v58 = vadd.f32 %v3352_v1, %v7548_v34 }
 0x1dd   : > { %v3354_v41 = vpop.f32.mrf.mxu1  ;;  %v3547_v2 = vpop.f32.mrf.mxu0 }
 0x1de   : > { %v7834_v19 = vadd.f32 %v3545_v45, %v3353_v58  ;;  %v3355_v13 = vadd.f32 %v3354_v41, %v7554_v21 }
 0x1df   : > { %v3356_v22 = vpop.f32.mrf.mxu1  ;;  %v3549_v11 = vpop.f32.mrf.mxu0 }
 0x1e0   : > { %v7838_v27 = vadd.f32 %v3547_v2, %v3355_v13  ;;  %v3357_v40 = vadd.f32 %v3356_v22, %v7558_v53  ;;  %v6317_v13 = vld [vmem:[%s6647_s29 + $0x4a0] ss:$52 sps:$4 sm:$0xff]  }
 0x1e1   : > { %v3360_v6 = vpop.f32.mrf.mxu1  ;;  %v3553_v5 = vpop.f32.mrf.mxu0  ;;  %3825 = vmatmul.mubr.bf16.gmra.mxu1 %v6313_v32  ;;  %5453 = vmatmul.mubr.msk.bf16.gmra.mxu0 %vm2678_vm0, %v6316_v25  ;;  %v6320_v32 = vld [vmem:[%s6647_s29 + $0x4a8] ss:$52 sps:$4 sm:$0xff]  }
 0x1e2   : > { %v7842_v34 = vadd.f32 %v3549_v11, %v3357_v40  ;;  %v3361_v1 = vadd.f32 %v3360_v6, %v7562_v31  ;;  %3834 = vmatprep.mubr.bf16.mxu1 %v6319_v47  ;;  %4027 = vmatprep.mubr.bf16.mxu0 %v8682_v20  ;;  %v6323_v11 = vld [vmem:[%s6647_s29 + $0x50c] ss:$52 sps:$4 sm:$0xff]  }
 0x1e3   : > { %v3362_v21 = vpop.f32.mrf.mxu1  ;;  %v3555_v45 = vpop.f32.mrf.mxu0 }
 0x1e4   : > { %v7846_v58 = vadd.f32 %v3553_v5, %v3361_v1  ;;  %v3363_v53 = vadd.f32 %v3362_v21, %v7568_v44 }
 0x1e5   : > { %v3364_v41 = vpop.f32.mrf.mxu1  ;;  %v3557_v2 = vpop.f32.mrf.mxu0 }
 0x1e6   : > { %v7851_v22 = vadd.f32 %v3555_v45, %v3363_v53  ;;  %v3365_v25 = vadd.f32 %v3364_v41, %v7574_v43 }
 0x1e7   : > { %v3366_v40 = vpop.f32.mrf.mxu1  ;;  %v3559_v31 = vpop.f32.mrf.mxu0 }
 0x1e8   : > { %v7855_v47 = vadd.f32 %v3557_v2, %v3365_v25  ;;  %v3367_v6 = vadd.f32 %v3366_v40, %v7578_v26  ;;  %v6321_v25 = vld [vmem:[%s6647_s29 + $0x508] ss:$52 sps:$4 sm:$0xff]  }
 0x1e9   : > { %v3370_v5 = vpop.f32.mrf.mxu1  ;;  %v3563_v1 = vpop.f32.mrf.mxu0  ;;  %3835 = vmatmul.mubr.bf16.gmra.mxu1 %v6317_v13  ;;  %5454 = vmatmul.mubr.msk.bf16.gmra.mxu0 %vm2678_vm0, %v6320_v32  ;;  %v6324_v13 = vld [vmem:[%s6647_s29 + $0x510] ss:$52 sps:$4 sm:$0xff]  }
 0x1ea   : > { %v7859_v44 = vadd.f32 %v3559_v31, %v3367_v6  ;;  %v3371_v21 = vadd.f32 %v3370_v5, %v7582_v7  ;;  %3844 = vmatprep.mubr.bf16.mxu1 %v6323_v11  ;;  %4037 = vmatprep.mubr.bf16.mxu0 %v8682_v20  ;;  %v6327_v31 = vld [vmem:[%s6647_s29 + $0x574] ss:$52 sps:$4 sm:$0xff]  }
 0x1eb   : > { %v3372_v43 = vpop.f32.mrf.mxu1  ;;  %v3565_v45 = vpop.f32.mrf.mxu0 }
 0x1ec   : > { %v7863_v53 = vadd.f32 %v3563_v1, %v3371_v21  ;;  %v3373_v26 = vadd.f32 %v3372_v43, %v7588_v35 }
 0x1ed   : > { %v3374_v41 = vpop.f32.mrf.mxu1  ;;  %v3567_v2 = vpop.f32.mrf.mxu0 }
 0x1ee   : > { %v7868_v40 = vadd.f32 %v3565_v45, %v3373_v26  ;;  %v3375_v32 = vadd.f32 %v3374_v41, %v7594_v0 }
 0x1ef   : > { %v3376_v6 = vpop.f32.mrf.mxu1  ;;  %v3569_v7 = vpop.f32.mrf.mxu0 }
 0x1f0   : > { %v7872_v11 = vadd.f32 %v3567_v2, %v3375_v32  ;;  %v3377_v5 = vadd.f32 %v3376_v6, %v7598_v46  ;;  %v6325_v32 = vld [vmem:[%s6647_s29 + $0x570] ss:$52 sps:$4 sm:$0xff]  }
 0x1f1   : > { %v3380_v1 = vpop.f32.mrf.mxu1  ;;  %v3573_v21 = vpop.f32.mrf.mxu0  ;;  %3845 = vmatmul.mubr.bf16.gmra.mxu1 %v6321_v25  ;;  %5455 = vmatmul.mubr.msk.bf16.gmra.mxu0 %vm2678_vm0, %v6324_v13  ;;  %v6328_v25 = vld [vmem:[%s6647_s29 + $0x578] ss:$52 sps:$4 sm:$0xff]  }
 0x1f2   : > { %v7876_v35 = vadd.f32 %v3569_v7, %v3377_v5  ;;  %v3381_v43 = vadd.f32 %v3380_v1, %v7602_v10  ;;  %3854 = vmatprep.mubr.bf16.mxu1 %v6327_v31  ;;  %4047 = vmatprep.mubr.bf16.mxu0 %v8682_v20  ;;  %v6331_v7 = vld [vmem:[%s6647_s29 + $0x5dc] ss:$52 sps:$4 sm:$0xff]  }
 0x1f3   : > { %v3382_v0 = vpop.f32.mrf.mxu1  ;;  %v3575_v45 = vpop.f32.mrf.mxu0 }
 0x1f4   : > { %v7880_v26 = vadd.f32 %v3573_v21, %v3381_v43  ;;  %v3383_v46 = vadd.f32 %v3382_v0, %v7608_v24 }
 0x1f5   : > { %v3384_v41 = vpop.f32.mrf.mxu1  ;;  %v3577_v2 = vpop.f32.mrf.mxu0 }
 0x1f6   : > { %v7885_v6 = vadd.f32 %v3575_v45, %v3383_v46  ;;  %v3385_v13 = vadd.f32 %v3384_v41, %v7614_v23 }
 0x1f7   : > { %v3386_v5 = vpop.f32.mrf.mxu1  ;;  %v3579_v10 = vpop.f32.mrf.mxu0 }
 0x1f8   : > { %v7889_v31 = vadd.f32 %v3577_v2, %v3385_v13  ;;  %v3387_v1 = vadd.f32 %v3386_v5, %v7618_v3  ;;  %v6329_v13 = vld [vmem:[%s6647_s29 + $0x5d8] ss:$52 sps:$4 sm:$0xff]  }
 0x1f9   : > { %v3390_v21 = vpop.f32.mrf.mxu1  ;;  %v3583_v43 = vpop.f32.mrf.mxu0  ;;  %3855 = vmatmul.mubr.bf16.gmra.mxu1 %v6325_v32  ;;  %5456 = vmatmul.mubr.msk.bf16.gmra.mxu0 %vm2678_vm0, %v6328_v25  ;;  %v6332_v32 = vld [vmem:[%s6647_s29 + $0x5e0] ss:$52 sps:$4 sm:$0xff]  }
 0x1fa   : > { %v7893_v24 = vadd.f32 %v3579_v10, %v3387_v1  ;;  %v3391_v0 = vadd.f32 %v3390_v21, %v7622_v36  ;;  %3864 = vmatprep.mubr.bf16.mxu1 %v6331_v7  ;;  %4057 = vmatprep.mubr.bf16.mxu0 %v8682_v20  ;;  %v6335_v10 = vld [vmem:[%s6647_s29 + $0x644] ss:$52 sps:$4 sm:$0xff]  }
 0x1fb   : > { %v3392_v23 = vpop.f32.mrf.mxu1  ;;  %v3585_v45 = vpop.f32.mrf.mxu0 }
 0x1fc   : > { %v7897_v46 = vadd.f32 %v3583_v43, %v3391_v0  ;;  %v3393_v3 = vadd.f32 %v3392_v23, %v7628_v38 }
 0x1fd   : > { %v3394_v41 = vpop.f32.mrf.mxu1  ;;  %v3587_v2 = vpop.f32.mrf.mxu0 }
 0x1fe   : > { %v7902_v5 = vadd.f32 %v3585_v45, %v3393_v3  ;;  %v3395_v25 = vadd.f32 %v3394_v41, %v7634_v55 }
 0x1ff   : > { %v3396_v1 = vpop.f32.mrf.mxu1  ;;  %v3589_v36 = vpop.f32.mrf.mxu0 }
 0x200   : > { %v7906_v7 = vadd.f32 %v3587_v2, %v3395_v25  ;;  %v3397_v21 = vadd.f32 %v3396_v1, %v7638_v28  ;;  %v6333_v25 = vld [vmem:[%s6647_s29 + $0x640] ss:$52 sps:$4 sm:$0xff]   ;;  %v6336_v1 = vld [vmem:[%s6647_s29 + $0x648] ss:$52 sps:$4 sm:$0xff]   ;;  %s175_s29 = sand.u32 1, %s6511_s12  }
 0x201   : > { %v3400_v43 = vpop.f32.mrf.mxu1  ;;  %v3593_v0 = vpop.f32.mrf.mxu0  ;;  %3865 = vmatmul.mubr.bf16.gmra.mxu1 %v6329_v13  ;;  %5457 = vmatmul.mubr.msk.bf16.gmra.mxu0 %vm2678_vm0, %v6332_v32  ;;  %s5032_s12 = sshll.u32 %s175_s29, 8 }
 0x202   : > { %v7910_v38 = vadd.f32 %v3589_v36, %v3397_v21  ;;  %v3401_v23 = vadd.f32 %v3400_v43, %v7642_v59  ;;  %3874 = vmatprep.mubr.bf16.mxu1 %v6335_v10  ;;  %4067 = vmatprep.mubr.bf16.mxu0 %v8682_v20  ;;  %s8096_s27 = scalar_lea.vmem [#allocation2], %s5032_s12  }
 0x203   : > { %v3402_v55 = vpop.f32.mrf.mxu1  ;;  %v3595_v45 = vpop.f32.mrf.mxu0 }
 0x204   : > { %v7914_v3 = vadd.f32 %v3593_v0, %v3401_v23  ;;  %v3403_v41 = vadd.f32 %v3402_v55, %v7648_v57 }
 0x205   : > { %v3404_v28 = vpop.f32.mrf.mxu1  ;;  %v3597_v2 = vpop.f32.mrf.mxu0 }
 0x206   : > { %v7919_v13 = vadd.f32 %v3595_v45, %v3403_v41  ;;  %v3405_v32 = vadd.f32 %v3404_v28, %v7653_v61 }
 0x207   : > { %v3406_v36 = vpop.f32.mrf.mxu1  ;;  %v3599_v21 = vpop.f32.mrf.mxu0 }
 0x208   : > { %v7922_v59 = vadd.f32 %v3597_v2, %v3405_v32  ;;  %v3407_v20 = vadd.f32 %v3406_v36, %v7657_v60 }
 0x209   : > { %v3410_v10 = vpop.f32.mrf.mxu1  ;;  %v3603_v43 = vpop.f32.mrf.mxu0  ;;  %3875 = vmatmul.mubr.bf16.gmra.mxu1 %v6333_v25  ;;  %5458 = vmatmul.mubr.msk.bf16.gmra.mxu0 %vm2678_vm0, %v6336_v1 }
 0x20a   : > { %v7926_v57 = vadd.f32 %v3599_v21, %v3407_v20  ;;  %v3411_v0 = vadd.f32 %v3410_v10, %v7660_v39 }
 0x20b   : > { %v3412_v23 = vpop.f32.mrf.mxu1  ;;  %v3605_v55 = vpop.f32.mrf.mxu0 }
 0x20c   : > { %v7929_v45 = vadd.f32 %v3603_v43, %v3411_v0  ;;  %v3413_v61 = vadd.f32 %v3412_v23, %v7664_v51 }
 0x20d   : > { %v3414_v41 = vpop.f32.mrf.mxu1  ;;  %v3607_v28 = vpop.f32.mrf.mxu0 }
 0x20e   : > { %v7932_v2 = vadd.f32 %v3605_v55, %v3413_v61  ;;  %v3415_v60 = vadd.f32 %v3414_v41, %v7668_v17 }
 0x20f   : > { %v3416_v32 = vpop.f32.mrf.mxu1  ;;  %v3609_v25 = vpop.f32.mrf.mxu0 }
 0x210   : > { %v7935_v36 = vadd.f32 %v3607_v28, %v3415_v60  ;;  %v3417_v1 = vadd.f32 %v3416_v32, %v7672_v52 }
 0x211   : > { %v3420_v21 = vpop.f32.mrf.mxu1  ;;  %v3613_v39 = vpop.f32.mrf.mxu0 }
 0x212   : > { %v7938_v20 = vadd.f32 %v3609_v25, %v3417_v1  ;;  %v3421_v10 = vadd.f32 %v3420_v21, %v7676_v14 }
 0x213   : > { %v3422_v43 = vpop.f32.mrf.mxu1  ;;  %v3615_v51 = vpop.f32.mrf.mxu0 }
 0x214   : > { %v7941_v0 = vadd.f32 %v3613_v39, %v3421_v10  ;;  %v3423_v23 = vadd.f32 %v3422_v43, %v7681_v16 }
 0x215   : > { %v3424_v55 = vpop.f32.mrf.mxu1  ;;  %v3617_v17 = vpop.f32.mrf.mxu0 }
 0x216   : > { %v7944_v61 = vadd.f32 %v3615_v51, %v3423_v23  ;;  %v3425_v41 = vadd.f32 %v3424_v55, %v7685_v63 }
 0x217   : > { %v3426_v28 = vpop.f32.mrf.mxu1  ;;  %v3619_v52 = vpop.f32.mrf.mxu0 }
 0x218   : > { %v7947_v60 = vadd.f32 %v3617_v17, %v3425_v41  ;;  %v3427_v32 = vadd.f32 %v3426_v28, %v7689_v29 }
 0x219   : > { %v3430_v25 = vpop.f32.mrf.mxu1  ;;  %v3623_v14 = vpop.f32.mrf.mxu0 }
 0x21a   : > { %v7950_v1 = vadd.f32 %v3619_v52, %v3427_v32  ;;  %v3431_v21 = vadd.f32 %v3430_v25, %v7693_v15 }
 0x21b   : > { %v3432_v39 = vpop.f32.mrf.mxu1  ;;  %v3625_v16 = vpop.f32.mrf.mxu0 }
 0x21c   : > { %v7953_v10 = vadd.f32 %v3623_v14, %v3431_v21  ;;  %v3433_v43 = vadd.f32 %v3432_v39, %v7698_v37 }
 0x21d   : > { %v3434_v51 = vpop.f32.mrf.mxu1  ;;  %v3627_v63 = vpop.f32.mrf.mxu0 }
 0x21e   : > { %v7956_v23 = vadd.f32 %v3625_v16, %v3433_v43  ;;  %v3435_v55 = vadd.f32 %v3434_v51, %v7702_v18 }
 0x21f   : > { %v3436_v17 = vpop.f32.mrf.mxu1  ;;  %v3629_v29 = vpop.f32.mrf.mxu0 }
 0x220   : > { %v7959_v41 = vadd.f32 %v3627_v63, %v3435_v55  ;;  %v3437_v28 = vadd.f32 %v3436_v17, %v7706_v50  ;;  %v8713_v17 = vld [vmem:[#allocation22_spill] sm:$0xff] }
 0x221   : > { %v3440_v52 = vpop.f32.mrf.mxu1  ;;  %v3633_v15 = vpop.f32.mrf.mxu0 }
 0x222   : > { %v7962_v32 = vadd.f32 %v3629_v29, %v3437_v28  ;;  %v3441_v25 = vadd.f32 %v3440_v52, %v7710_v33 }
 0x223   : > { %v3442_v14 = vpop.f32.mrf.mxu1  ;;  %v3635_v37 = vpop.f32.mrf.mxu0 }
 0x224   : > { %v7965_v21 = vadd.f32 %v3633_v15, %v3441_v25  ;;  %v3443_v39 = vadd.f32 %v3442_v14, %v7715_v4  ;;  %v8715_v15 = vld [vmem:[#allocation23_spill] sm:$0xff] }
 0x225   : > { %v3444_v16 = vpop.f32.mrf.mxu1  ;;  %v3637_v18 = vpop.f32.mrf.mxu0 }
 0x226   : > { %8710 = vst [vmem:[#allocation18_spill] sm:$0xff] %v7965_v21  ;;  %v7968_v43 = vadd.f32 %v3635_v37, %v3443_v39  ;;  %v3445_v51 = vadd.f32 %v3444_v16, %v7719_v48  ;;  %v8717_v37 = vld [vmem:[#allocation3_spill] sm:$0xff] }
 0x227   : > { %v3446_v63 = vpop.f32.mrf.mxu1  ;;  %v3639_v50 = vpop.f32.mrf.mxu0 }
 0x228   : > { %8711 = vst [vmem:[#allocation19_spill] sm:$0xff] %v7968_v43  ;;  %v7971_v55 = vadd.f32 %v3637_v18, %v3445_v51  ;;  %v3447_v29 = vadd.f32 %v3446_v63, %v8713_v17  ;;  %v8719_v18 = vld [vmem:[#allocation4_spill] sm:$0xff] }
 0x229   : > { %v3450_v28 = vpop.f32.mrf.mxu1  ;;  %v3643_v33 = vpop.f32.mrf.mxu0 }
 0x22a   : > { %8712 = vst [vmem:[#allocation20_spill] sm:$0xff] %v7971_v55  ;;  %v7974_v52 = vadd.f32 %v3639_v50, %v3447_v29  ;;  %v3451_v25 = vadd.f32 %v3450_v28, %v8715_v15  ;;  %v8721_v50 = vld [vmem:[#allocation5_spill] sm:$0xff] }
 0x22b   : > { %v3452_v21 = vpop.f32.mrf.mxu1  ;;  %v3645_v4 = vpop.f32.mrf.mxu0 }
 0x22c   : > { %8714 = vst [vmem:[#allocation21_spill] sm:$0xff] %v7974_v52  ;;  %v7977_v14 = vadd.f32 %v3643_v33, %v3451_v25  ;;  %v3453_v39 = vadd.f32 %v3452_v21, %v8717_v37  ;;  %v8723_v33 = vld [vmem:[#allocation6_spill] sm:$0xff] }
 0x22d   : > { %v3454_v43 = vpop.f32.mrf.mxu1  ;;  %v3647_v48 = vpop.f32.mrf.mxu0 }
 0x22e   : > { %8716 = vst [vmem:[#allocation22_spill] sm:$0xff] %v7977_v14  ;;  %v7980_v16 = vadd.f32 %v3645_v4, %v3453_v39  ;;  %v3455_v51 = vadd.f32 %v3454_v43, %v8719_v18  ;;  %v8725_v4 = vld [vmem:[#allocation7_spill] sm:$0xff] }
 0x22f   : > { %v3456_v55 = vpop.f32.mrf.mxu1  ;;  %v3649_v63 = vpop.f32.mrf.mxu0 }
 0x230   : > { %8718 = vst [vmem:[#allocation23_spill] sm:$0xff] %v7980_v16  ;;  %v7983_v17 = vadd.f32 %v3647_v48, %v3455_v51  ;;  %v3457_v29 = vadd.f32 %v3456_v55, %v8721_v50  ;;  %v8727_v48 = vld [vmem:[#allocation8_spill] sm:$0xff] }
 0x231   : > { %v3460_v52 = vpop.f32.mrf.mxu1  ;;  %v3653_v28 = vpop.f32.mrf.mxu0 }
 0x232   : > { %8720 = vst [vmem:[#allocation3_spill] sm:$0xff] %v7983_v17  ;;  %v7986_v15 = vadd.f32 %v3649_v63, %v3457_v29  ;;  %v3461_v25 = vadd.f32 %v3460_v52, %v8723_v33  ;;  %v8729_v63 = vld [vmem:[#allocation9_spill] sm:$0xff] }
 0x233   : > { %v3462_v14 = vpop.f32.mrf.mxu1  ;;  %v3655_v21 = vpop.f32.mrf.mxu0 }
 0x234   : > { %8722 = vst [vmem:[#allocation4_spill] sm:$0xff] %v7986_v15  ;;  %v7989_v37 = vadd.f32 %v3653_v28, %v3461_v25  ;;  %v3463_v39 = vadd.f32 %v3462_v14, %v8725_v4  ;;  %v8731_v28 = vld [vmem:[#allocation10_spill] sm:$0xff] }
 0x235   : > { %v3464_v16 = vpop.f32.mrf.mxu1  ;;  %v3657_v43 = vpop.f32.mrf.mxu0 }
 0x236   : > { %8724 = vst [vmem:[#allocation5_spill] sm:$0xff] %v7989_v37  ;;  %v7992_v18 = vadd.f32 %v3655_v21, %v3463_v39  ;;  %v3465_v51 = vadd.f32 %v3464_v16, %v8727_v48  ;;  %v8733_v21 = vld [vmem:[#allocation11_spill] sm:$0xff] }
 0x237   : > { %v3466_v17 = vpop.f32.mrf.mxu1  ;;  %v3659_v55 = vpop.f32.mrf.mxu0 }
 0x238   : > { %8726 = vst [vmem:[#allocation6_spill] sm:$0xff] %v7992_v18  ;;  %v7995_v50 = vadd.f32 %v3657_v43, %v3465_v51  ;;  %v3467_v29 = vadd.f32 %v3466_v17, %v8729_v63  ;;  %v8735_v43 = vld [vmem:[#allocation12_spill] sm:$0xff] }
 0x239   : > { %v3470_v15 = vpop.f32.mrf.mxu1  ;;  %v3663_v52 = vpop.f32.mrf.mxu0 }
 0x23a   : > { %8728 = vst [vmem:[#allocation7_spill] sm:$0xff] %v7995_v50  ;;  %v7998_v33 = vadd.f32 %v3659_v55, %v3467_v29  ;;  %v3471_v25 = vadd.f32 %v3470_v15, %v8731_v28  ;;  %v8737_v55 = vld [vmem:[#allocation13_spill] sm:$0xff] }
 0x23b   : > { %v3472_v37 = vpop.f32.mrf.mxu1  ;;  %v3665_v14 = vpop.f32.mrf.mxu0 }
 0x23c   : > { %8730 = vst [vmem:[#allocation8_spill] sm:$0xff] %v7998_v33  ;;  %v8001_v4 = vadd.f32 %v3663_v52, %v3471_v25  ;;  %v3473_v39 = vadd.f32 %v3472_v37, %v8733_v21  ;;  %v8739_v52 = vld [vmem:[#allocation14_spill] sm:$0xff] }
 0x23d   : > { %v3474_v18 = vpop.f32.mrf.mxu1  ;;  %v3667_v16 = vpop.f32.mrf.mxu0 }
 0x23e   : > { %8732 = vst [vmem:[#allocation9_spill] sm:$0xff] %v8001_v4  ;;  %v8004_v48 = vadd.f32 %v3665_v14, %v3473_v39  ;;  %v3475_v51 = vadd.f32 %v3474_v18, %v8735_v43  ;;  %v8740_v14 = vld [vmem:[#allocation15_spill] sm:$0xff] }
 0x23f   : > { %v3476_v50 = vpop.f32.mrf.mxu1  ;;  %v3669_v17 = vpop.f32.mrf.mxu0 }
 0x240   : > { %8734 = vst [vmem:[#allocation10_spill] sm:$0xff] %v8004_v48  ;;  %v8007_v63 = vadd.f32 %v3667_v16, %v3475_v51  ;;  %v3477_v29 = vadd.f32 %v3476_v50, %v8737_v55  ;;  %v8741_v16 = vld [vmem:[#allocation16_spill] sm:$0xff] }
 0x241   : > { %v3480_v33 = vpop.f32.mrf.mxu1  ;;  %v3673_v15 = vpop.f32.mrf.mxu0 }
 0x242   : > { %8736 = vst [vmem:[#allocation11_spill] sm:$0xff] %v8007_v63  ;;  %v8010_v28 = vadd.f32 %v3669_v17, %v3477_v29  ;;  %v3481_v25 = vadd.f32 %v3480_v33, %v8739_v52  ;;  %v8742_v17 = vld [vmem:[#allocation17_spill] sm:$0xff] }
 0x243   : > { %v3482_v4 = vpop.f32.mrf.mxu1  ;;  %v3675_v37 = vpop.f32.mrf.mxu0 }
 0x244   : > { %8738 = vst [vmem:[#allocation12_spill] sm:$0xff] %v8010_v28  ;;  %v8013_v21 = vadd.f32 %v3673_v15, %v3481_v25  ;;  %v3483_v39 = vadd.f32 %v3482_v4, %v8740_v14 }
 0x245   : > { %v3484_v48 = vpop.f32.mrf.mxu1  ;;  %v3677_v18 = vpop.f32.mrf.mxu0 }
 0x246   : > { %v8016_v43 = vadd.f32 %v3675_v37, %v3483_v39  ;;  %v3485_v51 = vadd.f32 %v3484_v48, %v8741_v16 }
 0x247   : > { %v3486_v63 = vpop.f32.mrf.mxu1  ;;  %v3679_v50 = vpop.f32.mrf.mxu0 }
 0x248   : > { %v8019_v55 = vadd.f32 %v3677_v18, %v3485_v51  ;;  %v3487_v29 = vadd.f32 %v3486_v63, %v8742_v17 }
 0x249   : > { %v3490_v28 = vpop.f32.mrf.mxu1  ;;  %v3683_v33 = vpop.f32.mrf.mxu0 }
 0x24a   : > { %v8022_v52 = vadd.f32 %v3679_v50, %v3487_v29  ;;  %v3491_v15 = vadd.f32 %v3490_v28, %v7795_v49 }
 0x24b   : > { %v3492_v25 = vpop.f32.mrf.mxu1  ;;  %v3685_v4 = vpop.f32.mrf.mxu0 }
 0x24c   : > { %8743 = vst [vmem:[#allocation13_spill] sm:$0xff] %v8022_v52  ;;  %v8025_v14 = vadd.f32 %v3683_v33, %v3491_v15  ;;  %v3493_v37 = vadd.f32 %v3492_v25, %v7800_v56 }
 0x24d   : > { %v3494_v39 = vpop.f32.mrf.mxu1  ;;  %v3687_v48 = vpop.f32.mrf.mxu0 }
 0x24e   : > { %8744 = vst [vmem:[#allocation14_spill] sm:$0xff] %v8025_v14  ;;  %v8028_v16 = vadd.f32 %v3685_v4, %v3493_v37  ;;  %v3495_v18 = vadd.f32 %v3494_v39, %v7804_v30 }
 0x24f   : > { %v3496_v51 = vpop.f32.mrf.mxu1  ;;  %v3689_v63 = vpop.f32.mrf.mxu0 }
 0x250   : > { %8745 = vst [vmem:[#allocation15_spill] sm:$0xff] %v8028_v16  ;;  %v8031_v17 = vadd.f32 %v3687_v48, %v3495_v18  ;;  %v3497_v50 = vadd.f32 %v3496_v51, %v7808_v62 }
 0x251   : > { %v3726_v29 = vpop.f32.mrf.mxu1  ;;  %v3919_v49 = vpop.f32.mrf.mxu0 }
 0x252   : > { %8746 = vst [vmem:[#allocation16_spill] sm:$0xff] %v8031_v17  ;;  %v8034_v28 = vadd.f32 %v3689_v63, %v3497_v50  ;;  %v3727_v33 = vadd.f32 %v3726_v29, %v7812_v54 }
 0x253   : > { %v3728_v15 = vpop.f32.mrf.mxu1  ;;  %v3921_v56 = vpop.f32.mrf.mxu0 }
 0x254   : > { %8747 = vst [vmem:[#allocation17_spill] sm:$0xff] %v8034_v28  ;;  %v8037_v25 = vadd.f32 %v3919_v49, %v3727_v33  ;;  %v3729_v4 = vadd.f32 %v3728_v15, %v7817_v8 }
 0x255   : > { %v3730_v37 = vpop.f32.mrf.mxu1  ;;  %v3923_v30 = vpop.f32.mrf.mxu0 }
 0x256   : > { %v4142_v39 = vmin.f32 %v8037_v25, 0.0  ;;  %v8041_v48 = vadd.f32 %v3921_v56, %v3729_v4  ;;  %v3731_v62 = vadd.f32 %v3730_v37, %v7821_v9  ;;  %vm4078_vm1 = vcmp.gt.f32.partialorder %v8037_v25, 0.0 }
 0x257   : > { %v3732_v18 = vpop.f32.mrf.mxu1  ;;  %v3925_v51 = vpop.f32.mrf.mxu0 }
 0x258   : > { %v4206_v63 = vmul.f32 1.442695, %v4142_v39  ;;  %v4143_v50 = vmin.f32 %v8041_v48, 0.0  ;;  %v8045_v54 = vadd.f32 %v3923_v30, %v3731_v62  ;;  %v3733_v29 = vadd.f32 %v3732_v18, %v7825_v42 }
 0x259   : > { %v3736_v49 = vpop.f32.mrf.mxu1  ;;  %v3929_v33 = vpop.f32.mrf.mxu0  ;;  %vm4079_vm2 = vcmp.gt.f32.partialorder %v8041_v48, 0.0 }
 0x25a   : > { %6337 = vpow2.f32 %v4206_v63  ;;  %v4208_v8 = vmul.f32 1.442695, %v4143_v50  ;;  %v4144_v15 = vmin.f32 %v8045_v54, 0.0  ;;  %v8049_v28 = vadd.f32 %v3925_v51, %v3733_v29 }
 0x25b   : > { %v3737_v56 = vadd.f32 %v3736_v49, %v7829_v12  ;;  %v3738_v9 = vpop.f32.mrf.mxu1  ;;  %v3931_v4 = vpop.f32.mrf.mxu0  ;;  %vm4080_vm3 = vcmp.gt.f32.partialorder %v8045_v54, 0.0 }
 0x25c   : > { %6339 = vpow2.f32 %v4208_v8  ;;  %v4210_v37 = vmul.f32 1.442695, %v4144_v15  ;;  %v3739_v39 = vadd.f32 %v3738_v9, %v7834_v19  ;;  %v4145_v30 = vmin.f32 %v8049_v28, 0.0 }
 0x25d   : > { %v8054_v62 = vadd.f32 %v3929_v33, %v3737_v56  ;;  %v3740_v42 = vpop.f32.mrf.mxu1  ;;  %v3933_v18 = vpop.f32.mrf.mxu0  ;;  %vm4081_vm4 = vcmp.gt.f32.partialorder %v8049_v28, 0.0 }
 0x25e   : > { %6341 = vpow2.f32 %v4210_v37  ;;  %v8056_v63 = vadd.f32 %v3931_v4, %v3739_v39  ;;  %v3741_v51 = vadd.f32 %v3740_v42, %v7838_v27  ;;  %v4212_v50 = vmul.f32 1.442695, %v4145_v30 }
 0x25f   : > { %v4146_v12 = vmin.f32 %v8054_v62, 0.0  ;;  %v3742_v29 = vpop.f32.mrf.mxu1  ;;  %v3935_v49 = vpop.f32.mrf.mxu0  ;;  %vm4082_vm5 = vcmp.gt.f32.partialorder %v8054_v62, 0.0 }
 0x260   : > { %v4147_v8 = vmin.f32 %v8056_v63, 0.0  ;;  %v8061_v15 = vadd.f32 %v3933_v18, %v3741_v51  ;;  %v3743_v19 = vadd.f32 %v3742_v29, %v7842_v34  ;;  %6343 = vpow2.f32 %v4212_v50 }
 0x261   : > { %v4214_v33 = vmul.f32 1.442695, %v4146_v12  ;;  %v3746_v56 = vpop.f32.mrf.mxu1  ;;  %v3939_v9 = vpop.f32.mrf.mxu0  ;;  %vm4083_vm6 = vcmp.gt.f32.partialorder %v8056_v63, 0.0 }
 0x262   : > { %v4216_v4 = vmul.f32 1.442695, %v4147_v8  ;;  %v4148_v37 = vmin.f32 %v8061_v15, 0.0  ;;  %v8065_v27 = vadd.f32 %v3935_v49, %v3743_v19  ;;  %v3747_v39 = vadd.f32 %v3746_v56, %v7846_v58 }
 0x263   : > { %6345 = vpow2.f32 %v4214_v33  ;;  %v3748_v30 = vpop.f32.mrf.mxu1  ;;  %v3941_v42 = vpop.f32.mrf.mxu0  ;;  %vm4084_vm7 = vcmp.gt.f32.partialorder %v8061_v15, 0.0 }
 0x264   : > { %6347 = vpow2.f32 %v4216_v4  ;;  %v4218_v18 = vmul.f32 1.442695, %v4148_v37  ;;  %v4149_v51 = vmin.f32 %v8065_v27, 0.0  ;;  %v8069_v34 = vadd.f32 %v3939_v9, %v3747_v39 }
 0x265   : > { %v3749_v50 = vadd.f32 %v3748_v30, %v7851_v22  ;;  %v3750_v12 = vpop.f32.mrf.mxu1  ;;  %v3943_v29 = vpop.f32.mrf.mxu0  ;;  %vm4085_vm8 = vcmp.gt.f32.partialorder %v8065_v27, 0.0 }
 0x266   : > { %6349 = vpow2.f32 %v4218_v18  ;;  %v4220_v8 = vmul.f32 1.442695, %v4149_v51  ;;  %v3751_v49 = vadd.f32 %v3750_v12, %v7855_v47  ;;  %v4150_v58 = vmin.f32 %v8069_v34, 0.0 }
 0x267   : > { %v6338_v19 = vpop.eup %6337  ;;  %v8075_v33 = vadd.f32 %v3941_v42, %v3749_v50  ;;  %v3752_v56 = vpop.f32.mrf.mxu1  ;;  %vm4086_vm9 = vcmp.gt.f32.partialorder %v8069_v34, 0.0 }
 0x268   : > { %v3945_v4 = vpop.f32.mrf.mxu0  ;;  %v5459_v37 = vadd.f32 -1.0, %v6338_v19  ;;  %6351 = vpow2.f32 %v4220_v8  ;;  %v8077_v9 = vadd.f32 %v3943_v29, %v3751_v49  ;;  %v3753_v22 = vadd.f32 %v3752_v56, %v7859_v44 }
 0x269   : > { %v6340_v39 = vpop.eup %6339  ;;  %v4222_v30 = vmul.f32 1.442695, %v4150_v58  ;;  %v4151_v47 = vmin.f32 %v8075_v33, 0.0  ;;  %v3756_v18 = vpop.f32.mrf.mxu1  ;;  %vm4087_vm10 = vcmp.gt.f32.partialorder %v8075_v33, 0.0 }
 0x26a   : > { %v3949_v51 = vpop.f32.mrf.mxu0  ;;  %v4398_v42 = vsel %vm4078_vm1, %v8037_v25, %v5459_v37  ;;  %v5460_v50 = vadd.f32 -1.0, %v6340_v39  ;;  %v4152_v12 = vmin.f32 %v8077_v9, 0.0  ;;  %v8085_v44 = vadd.f32 %v3945_v4, %v3753_v22 }
 0x26b   : > { %v6342_v29 = vpop.eup %6341  ;;  %6353 = vpow2.f32 %v4222_v30  ;;  %v4224_v8 = vmul.f32 1.442695, %v4151_v47  ;;  %v3757_v49 = vadd.f32 %v3756_v18, %v7863_v53  ;;  %v3758_v19 = vpop.f32.mrf.mxu1  ;;  %vm4088_vm11 = vcmp.gt.f32.partialorder %v8077_v9, 0.0 }
 0x26c   : > { %v3951_v58 = vpop.f32.mrf.mxu0  ;;  %v4399_v56 = vsel %vm4079_vm2, %v8041_v48, %v5460_v50  ;;  %v5461_v17 = vadd.f32 -1.0, %v6342_v29  ;;  %v4226_v16 = vmul.f32 1.442695, %v4152_v12  ;;  %v3759_v25 = vadd.f32 %v3758_v19, %v7868_v40 }
 0x26d   : > { %v5574_v37 = vpack.c.bf16 %v4399_v56, %v4398_v42  ;;  %6355 = vpow2.f32 %v4224_v8  ;;  %v4153_v39 = vmin.f32 %v8085_v44, 0.0  ;;  %v3760_v14 = vpop.f32.mrf.mxu1  ;;  %v6344_v30 = vpop.eup %6343  ;;  %v8092_v4 = vadd.f32 %v3949_v51, %v3757_v49 }
 0x26e   : > { %v3953_v52 = vpop.f32.mrf.mxu0  ;;  %6357 = vpow2.f32 %v4226_v16  ;;  %v8094_v53 = vadd.f32 %v3951_v58, %v3759_v25  ;;  %v5462_v40 = vadd.f32 -1.0, %v6344_v30  ;;  %v3761_v22 = vadd.f32 %v3760_v14, %v7872_v11 }
 0x26f   : > { %4654 = vst [vmem:[%s8096_s27] sm:$0xff] %v5574_v37  ;;  %v4228_v48 = vmul.f32 1.442695, %v4153_v39  ;;  %v3762_v47 = vpop.f32.mrf.mxu1  ;;  %v4400_v50 = vsel %vm4080_vm3, %v8045_v54, %v5461_v17  ;;  %v4154_v16 = vmin.f32 %v8092_v4, 0.0  ;;  %vm4089_vm12 = vcmp.gt.f32.partialorder %v8085_v44, 0.0 }
 0x270   : > { %v3955_v18 = vpop.f32.mrf.mxu0  ;;  %v6346_v42 = vpop.eup %6345  ;;  %v4155_v51 = vmin.f32 %v8094_v53, 0.0  ;;  %v4401_v29 = vsel %vm4081_vm4, %v8049_v28, %v5462_v40  ;;  %v8106_v49 = vadd.f32 %v3953_v52, %v3761_v22  ;;  %v3763_v28 = vadd.f32 %v3762_v47, %v7876_v35 }
 0x271   : > { %v6348_v12 = vpop.eup %6347  ;;  %v5463_v8 = vadd.f32 -1.0, %v6346_v42  ;;  %6359 = vpow2.f32 %v4228_v48  ;;  %v3766_v11 = vpop.f32.mrf.mxu1  ;;  %v5575_v19 = vpack.c.bf16 %v4401_v29, %v4400_v50  ;;  %v4230_v56 = vmul.f32 1.442695, %v4154_v16 }
 0x272   : > { %v3959_v14 = vpop.f32.mrf.mxu0  ;;  %v5464_v58 = vadd.f32 -1.0, %v6348_v12  ;;  %v4232_v17 = vmul.f32 1.442695, %v4155_v51  ;;  %v4156_v37 = vmin.f32 %v8106_v49, 0.0  ;;  %v3767_v48 = vadd.f32 %v3766_v11, %v7880_v26 }
 0x273   : > { %v6350_v54 = vpop.eup %6349  ;;  %v4402_v25 = vsel %vm4082_vm5, %v8054_v62, %v5463_v8  ;;  %v3768_v39 = vpop.f32.mrf.mxu1  ;;  %4655 = vst [vmem:[%s8096_s27 + $0x8] sm:$0xff] %v5575_v19  ;;  %6361 = vpow2.f32 %v4230_v56  ;;  %v8115_v50 = vadd.f32 %v3955_v18, %v3763_v28  ;;  %vm4090_vm13 = vcmp.gt.f32.partialorder %v8092_v4, 0.0 }
 0x274   : > { %v3961_v30 = vpop.f32.mrf.mxu0  ;;  %v4403_v52 = vsel %vm4083_vm6, %v8056_v63, %v5464_v58  ;;  %v5465_v40 = vadd.f32 -1.0, %v6350_v54  ;;  %6363 = vpow2.f32 %v4232_v17  ;;  %v4234_v62 = vmul.f32 1.442695, %v4156_v37 }
 0x275   : > { %v6352_v22 = vpop.eup %6351  ;;  %v5576_v42 = vpack.c.bf16 %v4403_v52, %v4402_v25  ;;  %v3770_v16 = vpop.f32.mrf.mxu1  ;;  %v8118_v47 = vadd.f32 %v3959_v14, %v3767_v48  ;;  %v3769_v12 = vadd.f32 %v3768_v39, %v7885_v6  ;;  %v4157_v26 = vmin.f32 %v8115_v50, 0.0 }
 0x276   : > { %v3963_v51 = vpop.f32.mrf.mxu0  ;;  %v5466_v35 = vadd.f32 -1.0, %v6352_v22  ;;  %6365 = vpow2.f32 %v4234_v62  ;;  %v3771_v63 = vadd.f32 %v3770_v16, %v7889_v31  ;;  %v4404_v11 = vsel %vm4084_vm7, %v8061_v15, %v5465_v40 }
 0x277   : > { %4656 = vst [vmem:[%s8096_s27 + $0x10] sm:$0xff] %v5576_v42  ;;  %v3772_v29 = vpop.f32.mrf.mxu1  ;;  %v4158_v14 = vmin.f32 %v8118_v47, 0.0  ;;  %v8128_v58 = vadd.f32 %v3961_v30, %v3769_v12  ;;  %v4236_v17 = vmul.f32 1.442695, %v4157_v26  ;;  %vm4091_vm14 = vcmp.gt.f32.partialorder %v8094_v53, 0.0 }
 0x278   : > { %v3965_v18 = vpop.f32.mrf.mxu0  ;;  %v6354_v8 = vpop.eup %6353  ;;  %v4405_v19 = vsel %vm4085_vm8, %v8065_v27, %v5466_v35  ;;  %v8130_v54 = vadd.f32 %v3963_v51, %v3771_v63  ;;  %v3773_v39 = vadd.f32 %v3772_v29, %v7893_v24  ;;  %vm4092_vm15 = vcmp.gt.f32.partialorder %v8106_v49, 0.0 }
 0x279   : > { %v5577_v6 = vpack.c.bf16 %v4405_v19, %v4404_v11  ;;  %v5467_v56 = vadd.f32 -1.0, %v6354_v8  ;;  %v3776_v25 = vpop.f32.mrf.mxu1  ;;  %v4238_v28 = vmul.f32 1.442695, %v4158_v14  ;;  %v4159_v15 = vmin.f32 %v8128_v58, 0.0 }
 0x27a   : > { %v3969_v37 = vpop.f32.mrf.mxu0  ;;  %v6356_v31 = vpop.eup %6355  ;;  %6367 = vpow2.f32 %v4236_v17  ;;  %v4160_v62 = vmin.f32 %v8130_v54, 0.0  ;;  %v8140_v51 = vadd.f32 %v3965_v18, %v3773_v39  ;;  %v3777_v24 = vadd.f32 %v3776_v25, %v7897_v46 }
 0x27b   : > { %v6358_v27 = vpop.eup %6357  ;;  %4657 = vst [vmem:[%s8096_s27 + $0x18] sm:$0xff] %v5577_v6  ;;  %v4406_v30 = vsel %vm4086_vm9, %v8069_v34, %v5467_v56  ;;  %v5468_v52 = vadd.f32 -1.0, %v6356_v31  ;;  %v3778_v40 = vpop.f32.mrf.mxu1  ;;  %6369 = vpow2.f32 %v4238_v28  ;;  %v4240_v42 = vmul.f32 1.442695, %v4159_v15 }
 0x27c   : > { %v3971_v48 = vpop.f32.mrf.mxu0  ;;  %v5469_v22 = vadd.f32 -1.0, %v6358_v27  ;;  %v3779_v34 = vadd.f32 %v3778_v40, %v7902_v5  ;;  %v4242_v29 = vmul.f32 1.442695, %v4160_v62  ;;  %v8147_v18 = vadd.f32 %v3969_v37, %v3777_v24 }
 0x27d   : > { %v4407_v16 = vsel %vm4087_vm10, %v8075_v33, %v5468_v52  ;;  %v3780_v35 = vpop.f32.mrf.mxu1  ;;  %6371 = vpow2.f32 %v4240_v42  ;;  %v4161_v33 = vmin.f32 %v8140_v51, 0.0  ;;  %vm4093_vm0 = vcmp.gt.f32.partialorder %v8115_v50, 0.0 }
 0x27e   : > { %v3973_v12 = vpop.f32.mrf.mxu0  ;;  %v6360_v26 = vpop.eup %6359  ;;  %v5578_v63 = vpack.c.bf16 %v4407_v16, %v4406_v30  ;;  %6373 = vpow2.f32 %v4242_v29  ;;  %v8150_v46 = vadd.f32 %v3971_v48, %v3779_v34  ;;  %v3781_v5 = vadd.f32 %v3780_v35, %v7906_v7 }
 0x27f   : > { %v5470_v8 = vadd.f32 -1.0, %v6360_v26  ;;  %v3782_v11 = vpop.f32.mrf.mxu1  ;;  %v4408_v56 = vsel %vm4088_vm11, %v8077_v9, %v5469_v22  ;;  %v4244_v25 = vmul.f32 1.442695, %v4161_v33  ;;  %v4162_v37 = vmin.f32 %v8147_v18, 0.0 }
 0x280   : > { %v3975_v19 = vpop.f32.mrf.mxu0  ;;  %4658 = vst [vmem:[%s8096_s27 + $0x20] sm:$0xff] %v5578_v63  ;;  %v3783_v14 = vadd.f32 %v3782_v11, %v7910_v38  ;;  %v6362_v6 = vpop.eup %6361  ;;  %v4163_v7 = vmin.f32 %v8150_v46, 0.0  ;;  %v8159_v52 = vadd.f32 %v3973_v12, %v3781_v5  ;;  %vm4094_vm1 = vcmp.gt.f32.partialorder %v8118_v47, 0.0 }
 0x281   : > { %v4409_v17 = vsel %vm4089_vm12, %v8085_v44, %v5470_v8  ;;  %v3786_v31 = vpop.f32.mrf.mxu1  ;;  %v6364_v15 = vpop.eup %6363  ;;  %v5471_v27 = vadd.f32 -1.0, %v6362_v6  ;;  %6375 = vpow2.f32 %v4244_v25  ;;  %v4246_v38 = vmul.f32 1.442695, %v4162_v37 }
 0x282   : > { %v3979_v28 = vpop.f32.mrf.mxu0  ;;  %v5579_v39 = vpack.c.bf16 %v4409_v17, %v4408_v56  ;;  %v5472_v30 = vadd.f32 -1.0, %v6364_v15  ;;  %v4248_v48 = vmul.f32 1.442695, %v4163_v7  ;;  %v8163_v22 = vadd.f32 %v3975_v19, %v3783_v14 }
 0x283   : > { %v3788_v9 = vpop.f32.mrf.mxu1  ;;  %v6366_v40 = vpop.eup %6365  ;;  %v3787_v42 = vadd.f32 %v3786_v31, %v7914_v3  ;;  %v4410_v62 = vsel %vm4090_vm13, %v8092_v4, %v5471_v27  ;;  %6377 = vpow2.f32 %v4246_v38  ;;  %v4164_v26 = vmin.f32 %v8159_v52, 0.0 }
 0x284   : > { %v3981_v44 = vpop.f32.mrf.mxu0  ;;  %4659 = vst [vmem:[%s8096_s27 + $0x28] sm:$0xff] %v5579_v39  ;;  %v4411_v16 = vsel %vm4091_vm14, %v8094_v53, %v5472_v30  ;;  %v5473_v24 = vadd.f32 -1.0, %v6366_v40  ;;  %6379 = vpow2.f32 %v4248_v48  ;;  %v4165_v63 = vmin.f32 %v8163_v22, 0.0 }
 0x285   : > { %v3790_v34 = vpop.f32.mrf.mxu1  ;;  %v5580_v12 = vpack.c.bf16 %v4411_v16, %v4410_v62  ;;  %v8172_v3 = vadd.f32 %v3979_v28, %v3787_v42  ;;  %v3789_v4 = vadd.f32 %v3788_v9, %v7919_v13  ;;  %v4250_v33 = vmul.f32 1.442695, %v4164_v26 }
 0x286   : > { %v3983_v35 = vpop.f32.mrf.mxu0  ;;  %v3791_v11 = vadd.f32 %v3790_v34, %v7922_v59  ;;  %v4412_v14 = vsel %vm4092_vm15, %v8106_v49, %v5473_v24  ;;  %v4252_v56 = vmul.f32 1.442695, %v4165_v63  ;;  %vm4095_vm2 = vcmp.gt.f32.partialorder %v8128_v58, 0.0 }
 0x287   : > { %v3792_v53 = vpop.f32.mrf.mxu1  ;;  %v6368_v8 = vpop.eup %6367  ;;  %4660 = vst [vmem:[%s8096_s27 + $0x30] sm:$0xff] %v5580_v12  ;;  %v4166_v13 = vmin.f32 %v8172_v3, 0.0  ;;  %6381 = vpow2.f32 %v4250_v33  ;;  %v8183_v31 = vadd.f32 %v3981_v44, %v3789_v4  ;;  %vm4096_vm3 = vcmp.gt.f32.partialorder %v8130_v54, 0.0 }
 0x288   : > { %v3985_v29 = vpop.f32.mrf.mxu0  ;;  %v3793_v19 = vadd.f32 %v3792_v53, %v7926_v57  ;;  %v6370_v5 = vpop.eup %6369  ;;  %v5474_v6 = vadd.f32 -1.0, %v6368_v8  ;;  %v8185_v28 = vadd.f32 %v3983_v35, %v3791_v11  ;;  %6383 = vpow2.f32 %v4252_v56 }
 0x289   : > { %v3796_v17 = vpop.f32.mrf.mxu1  ;;  %v5475_v37 = vadd.f32 -1.0, %v6370_v5  ;;  %v4254_v49 = vmul.f32 1.442695, %v4166_v13  ;;  %vm4097_vm4 = vcmp.gt.f32.partialorder %v8140_v51, 0.0  ;;  %v4167_v9 = vmin.f32 %v8183_v31, 0.0 }
 0x28a   : > { %v3989_v25 = vpop.f32.mrf.mxu0  ;;  %v6372_v59 = vpop.eup %6371  ;;  %v4413_v57 = vsel %vm4093_vm0, %v8115_v50, %v5474_v6  ;;  %v8190_v15 = vadd.f32 %v3985_v29, %v3793_v19  ;;  %v4168_v50 = vmin.f32 %v8185_v28, 0.0  ;;  %v3797_v12 = vadd.f32 %v3796_v17, %v7929_v45 }
 0x28b   : > { %v3798_v39 = vpop.f32.mrf.mxu1  ;;  %v5581_v7 = vpack.c.bf16 %v4413_v57, %v4412_v14  ;;  %v5476_v30 = vadd.f32 -1.0, %v6372_v59  ;;  %v6374_v38 = vpop.eup %6373  ;;  %6385 = vpow2.f32 %v4254_v49  ;;  %v4414_v48 = vsel %vm4094_vm1, %v8118_v47, %v5475_v37 }
 0x28c   : > { %v3991_v27 = vpop.f32.mrf.mxu0  ;;  %v5477_v62 = vadd.f32 -1.0, %v6374_v38  ;;  %v4169_v16 = vmin.f32 %v8190_v15, 0.0  ;;  %v4256_v34 = vmul.f32 1.442695, %v4167_v9  ;;  %v4258_v35 = vmul.f32 1.442695, %v4168_v50 }
 0x28d   : > { %v3800_v44 = vpop.f32.mrf.mxu1  ;;  %4661 = vst [vmem:[%s8096_s27 + $0x38] sm:$0xff] %v5581_v7  ;;  %v4415_v42 = vsel %vm4095_vm2, %v8128_v58, %v5476_v30  ;;  %vm4098_vm5 = vcmp.gt.f32.partialorder %v8147_v18, 0.0  ;;  %v3799_v29 = vadd.f32 %v3798_v39, %v7932_v2  ;;  %v8208_v8 = vadd.f32 %v3989_v25, %v3797_v12 }
 0x28e   : > { %v3993_v40 = vpop.f32.mrf.mxu0  ;;  %v5582_v24 = vpack.c.bf16 %v4415_v42, %v4414_v48  ;;  %v6376_v4 = vpop.eup %6375  ;;  %v4260_v53 = vmul.f32 1.442695, %v4169_v16  ;;  %v3801_v47 = vadd.f32 %v3800_v44, %v7935_v36  ;;  %6387 = vpow2.f32 %v4256_v34 }
 0x28f   : > { %v3802_v26 = vpop.f32.mrf.mxu1  ;;  %v5478_v58 = vadd.f32 -1.0, %v6376_v4  ;;  %6389 = vpow2.f32 %v4258_v35  ;;  %v8211_v5 = vadd.f32 %v3991_v27, %v3799_v29  ;;  %v4416_v36 = vsel %vm4096_vm3, %v8130_v54, %v5477_v62 }
 0x290   : > { %v3995_v63 = vpop.f32.mrf.mxu0  ;;  %4662 = vst [vmem:[%s8096_s27 + $0x40] sm:$0xff] %v5582_v24  ;;  %v3803_v33 = vadd.f32 %v3802_v26, %v7938_v20  ;;  %v6378_v45 = vpop.eup %6377  ;;  %v8213_v14 = vadd.f32 %v3993_v40, %v3801_v47  ;;  %6391 = vpow2.f32 %v4260_v53  ;;  %vm4099_vm6 = vcmp.gt.f32.partialorder %v8150_v46, 0.0 }
 0x291   : > { %v3806_v11 = vpop.f32.mrf.mxu1  ;;  %v6380_v2 = vpop.eup %6379  ;;  %v4417_v20 = vsel %vm4097_vm4, %v8140_v51, %v5478_v58  ;;  %v5479_v56 = vadd.f32 -1.0, %v6378_v45  ;;  %vm4100_vm7 = vcmp.gt.f32.partialorder %v8159_v52, 0.0  ;;  %v4171_v54 = vmin.f32 %v8211_v5, 0.0 }
 0x292   : > { %v3999_v19 = vpop.f32.mrf.mxu0  ;;  %v3807_v6 = vadd.f32 %v3806_v11, %v7941_v0  ;;  %v5583_v25 = vpack.c.bf16 %v4417_v20, %v4416_v36  ;;  %v5480_v37 = vadd.f32 -1.0, %v6380_v2  ;;  %v4170_v0 = vmin.f32 %v8208_v8, 0.0 }
 0x293   : > { %v3808_v13 = vpop.f32.mrf.mxu1  ;;  %v4418_v59 = vsel %vm4098_vm5, %v8147_v18, %v5479_v56  ;;  %v4172_v51 = vmin.f32 %v8213_v14, 0.0  ;;  %v8232_v7 = vadd.f32 %v3995_v63, %v3803_v33  ;;  %v4264_v18 = vmul.f32 1.442695, %v4171_v54 }
 0x294   : > { %v4001_v17 = vpop.f32.mrf.mxu0  ;;  %4663 = vst [vmem:[%s8096_s27 + $0x48] sm:$0xff] %v5583_v25  ;;  %v4419_v39 = vsel %vm4099_vm6, %v8150_v46, %v5480_v37  ;;  %v4262_v27 = vmul.f32 1.442695, %v4170_v0  ;;  %v8234_v30 = vadd.f32 %v3999_v19, %v3807_v6  ;;  %v6382_v38 = vpop.eup %6381  ;;  %v3809_v44 = vadd.f32 %v3808_v13, %v7944_v61 }
 0x295   : > { %v3810_v57 = vpop.f32.mrf.mxu1  ;;  %v5584_v9 = vpack.c.bf16 %v4419_v39, %v4418_v59  ;;  %v4266_v50 = vmul.f32 1.442695, %v4172_v51  ;;  %v6384_v42 = vpop.eup %6383  ;;  %v5481_v62 = vadd.f32 -1.0, %v6382_v38  ;;  %vm4101_vm8 = vcmp.gt.f32.partialorder %v8163_v22, 0.0 }
 0x296   : > { %v4003_v49 = vpop.f32.mrf.mxu0  ;;  %6393 = vpow2.f32 %v4262_v27  ;;  %v4173_v46 = vmin.f32 %v8232_v7, 0.0  ;;  %v5482_v16 = vadd.f32 -1.0, %v6384_v42  ;;  %vm4102_vm9 = vcmp.gt.f32.partialorder %v8172_v3, 0.0 }
 0x297   : > { %v3812_v40 = vpop.f32.mrf.mxu1  ;;  %4664 = vst [vmem:[%s8096_s27 + $0x50] sm:$0xff] %v5584_v9  ;;  %6395 = vpow2.f32 %v4264_v18  ;;  %v4174_v24 = vmin.f32 %v8234_v30, 0.0  ;;  %vm4103_vm10 = vcmp.gt.f32.partialorder %v8183_v31, 0.0  ;;  %v8243_v26 = vadd.f32 %v4001_v17, %v3809_v44 }
 0x298   : > { %v4005_v48 = vpop.f32.mrf.mxu0  ;;  %v6386_v12 = vpop.eup %6385  ;;  %6397 = vpow2.f32 %v4266_v50  ;;  %v4268_v61 = vmul.f32 1.442695, %v4173_v46  ;;  %v4420_v63 = vsel %vm4100_vm7, %v8159_v52, %v5481_v62  ;;  %v4421_v4 = vsel %vm4101_vm8, %v8163_v22, %v5482_v16 }
 0x299   : > { %v3816_v34 = vpop.f32.mrf.mxu1  ;;  %v4270_v53 = vmul.f32 1.442695, %v4174_v24  ;;  %v3811_v29 = vadd.f32 %v3810_v57, %v7947_v60  ;;  %v5585_v33 = vpack.c.bf16 %v4421_v4, %v4420_v63  ;;  %vm4104_vm11 = vcmp.gt.f32.partialorder %v8185_v28, 0.0 }
 0x29a   : > { %v4009_v35 = vpop.f32.mrf.mxu0  ;;  %6399 = vpow2.f32 %v4268_v61  ;;  %v4175_v11 = vmin.f32 %v8243_v26, 0.0  ;;  %v5483_v19 = vadd.f32 -1.0, %v6386_v12  ;;  %v3813_v52 = vadd.f32 %v3812_v40, %v7950_v1 }
 0x29b   : > { %v3818_v47 = vpop.f32.mrf.mxu1  ;;  %6401 = vpow2.f32 %v4270_v53  ;;  %v8254_v45 = vadd.f32 %v4003_v49, %v3811_v29  ;;  %v6388_v2 = vpop.eup %6387  ;;  %4665 = vst [vmem:[%s8096_s27 + $0x58] sm:$0xff] %v5585_v33  ;;  %vm4105_vm12 = vcmp.gt.f32.partialorder %v8190_v15, 0.0  ;;  %v3817_v36 = vadd.f32 %v3816_v34, %v7953_v10 }
 0x29c   : > { %v4011_v58 = vpop.f32.mrf.mxu0  ;;  %v4272_v60 = vmul.f32 1.442695, %v4175_v11  ;;  %v3819_v20 = vadd.f32 %v3818_v47, %v7956_v23  ;;  %v6390_v56 = vpop.eup %6389  ;;  %v5484_v13 = vadd.f32 -1.0, %v6388_v2  ;;  %v8262_v25 = vadd.f32 %v4005_v48, %v3813_v52 }
 0x29d   : > { %v3820_v6 = vpop.f32.mrf.mxu1  ;;  %v4176_v17 = vmin.f32 %v8254_v45, 0.0  ;;  %v6392_v59 = vpop.eup %6391  ;;  %v5485_v54 = vadd.f32 -1.0, %v6390_v56  ;;  %v8265_v51 = vadd.f32 %v4009_v35, %v3817_v36  ;;  %v4422_v10 = vsel %vm4102_vm9, %v8172_v3, %v5483_v19  ;;  %v8749_v19 = vld [vmem:[#allocation19_spill] sm:$0xff] }
 0x29e   : > { %v4013_v22 = vpop.f32.mrf.mxu0  ;;  %v3821_v37 = vadd.f32 %v3820_v6, %v7959_v41  ;;  %6403 = vpow2.f32 %v4272_v60  ;;  %v8267_v57 = vadd.f32 %v4011_v58, %v3819_v20  ;;  %v4423_v23 = vsel %vm4103_vm10, %v8183_v31, %v5484_v13 }
 0x29f   : > { %v3822_v1 = vpop.f32.mrf.mxu1  ;;  %v5486_v49 = vadd.f32 -1.0, %v6392_v59  ;;  %v4274_v41 = vmul.f32 1.442695, %v4176_v17  ;;  %v5586_v38 = vpack.c.bf16 %v4423_v23, %v4422_v10  ;;  %vm4106_vm13 = vcmp.gt.f32.partialorder %v8208_v8, 0.0 }
 0x2a0   : > { %v4015_v0 = vpop.f32.mrf.mxu0  ;;  %vm4107_vm14 = vcmp.gt.f32.partialorder %v8211_v5, 0.0  ;;  %v4177_v9 = vmin.f32 %v8262_v25, 0.0  ;;  %v4424_v3 = vsel %vm4104_vm11, %v8185_v28, %v5485_v54  ;;  %v4178_v31 = vmin.f32 %v8265_v51, 0.0 }
 0x2a1   : > { %v3826_v39 = vpop.f32.mrf.mxu1  ;;  %v4425_v18 = vsel %vm4105_vm12, %v8190_v15, %v5486_v49  ;;  %6405 = vpow2.f32 %v4274_v41  ;;  %4666 = vst [vmem:[%s8096_s27 + $0x60] sm:$0xff] %v5586_v38  ;;  %v4179_v42 = vmin.f32 %v8267_v57, 0.0  ;;  %v8287_v62 = vadd.f32 %v4013_v22, %v3821_v37  ;;  %v8748_v15 = vld [vmem:[#allocation18_spill] sm:$0xff]  ;;  %v8750_v49 = vld [vmem:[#allocation20_spill] sm:$0xff]  ;;  %v8751_v41 = vld [vmem:[#allocation21_spill] sm:$0xff] }
 0x2a2   : > { %v4019_v27 = vpop.f32.mrf.mxu0  ;;  %v5587_v40 = vpack.c.bf16 %v4425_v18, %v4424_v3  ;;  %v4276_v48 = vmul.f32 1.442695, %v4177_v9  ;;  %vm4108_vm15 = vcmp.gt.f32.partialorder %v8213_v14, 0.0  ;;  %v4278_v28 = vmul.f32 1.442695, %v4178_v31 }
 0x2a3   : > { %v3828_v50 = vpop.f32.mrf.mxu1  ;;  %v6394_v46 = vpop.eup %6393  ;;  %v3823_v16 = vadd.f32 %v3822_v1, %v7962_v32  ;;  %v3827_v24 = vadd.f32 %v3826_v39, %v8748_v15  ;;  %vm4109_vm0 = vcmp.gt.f32.partialorder %v8232_v7, 0.0  ;;  %v4280_v63 = vmul.f32 1.442695, %v4179_v42  ;;  %v8753_v42 = vld [vmem:[#allocation23_spill] sm:$0xff] }
 0x2a4   : > { %v4021_v44 = vpop.f32.mrf.mxu0  ;;  %v6396_v12 = vpop.eup %6395  ;;  %4667 = vst [vmem:[%s8096_s27 + $0x68] sm:$0xff] %v5587_v40  ;;  %v5487_v61 = vadd.f32 -1.0, %v6394_v46  ;;  %6407 = vpow2.f32 %v4276_v48  ;;  %v4180_v29 = vmin.f32 %v8287_v62, 0.0  ;;  %v3829_v52 = vadd.f32 %v3828_v50, %v8749_v19  ;;  %v8752_v40 = vld [vmem:[#allocation22_spill] sm:$0xff]  ;;  %v8754_v19 = vld [vmem:[#allocation3_spill] sm:$0xff] }
 0x2a5   : > { %v3830_v34 = vpop.f32.mrf.mxu1  ;;  %v6398_v4 = vpop.eup %6397  ;;  %v5488_v53 = vadd.f32 -1.0, %v6396_v12  ;;  %6409 = vpow2.f32 %v4278_v28  ;;  %v8295_v47 = vadd.f32 %v4015_v0, %v3823_v16  ;;  %v8297_v11 = vadd.f32 %v4019_v27, %v3827_v24 }
 0x2a6   : > { %v4023_v35 = vpop.f32.mrf.mxu0  ;;  %v5489_v33 = vadd.f32 -1.0, %v6398_v4  ;;  %6411 = vpow2.f32 %v4280_v63  ;;  %v4426_v22 = vsel %vm4106_vm13, %v8208_v8, %v5487_v61  ;;  %v4282_v60 = vmul.f32 1.442695, %v4180_v29 }
 0x2a7   : > { %v3832_v58 = vpop.f32.mrf.mxu1  ;;  %v6400_v6 = vpop.eup %6399  ;;  %v4427_v2 = vsel %vm4107_vm14, %v8211_v5, %v5488_v53  ;;  %v4181_v36 = vmin.f32 %v8295_v47, 0.0  ;;  %vm4110_vm1 = vcmp.gt.f32.partialorder %v8234_v30, 0.0  ;;  %v4182_v5 = vmin.f32 %v8297_v11, 0.0 }
 0x2a8   : > { %v4025_v32 = vpop.f32.mrf.mxu0  ;;  %v6402_v13 = vpop.eup %6401  ;;  %v5588_v17 = vpack.c.bf16 %v4427_v2, %v4426_v22  ;;  %v4428_v37 = vsel %vm4108_vm15, %v8213_v14, %v5489_v33  ;;  %v5490_v1 = vadd.f32 -1.0, %v6400_v6  ;;  %6413 = vpow2.f32 %v4282_v60  ;;  %v8755_v6 = vld [vmem:[#allocation4_spill] sm:$0xff] }
 0x2a9   : > { %v3836_v20 = vpop.f32.mrf.mxu1  ;;  %v5491_v8 = vadd.f32 -1.0, %v6402_v13  ;;  %v4284_v0 = vmul.f32 1.442695, %v4181_v36  ;;  %v8316_v23 = vadd.f32 %v4021_v44, %v3829_v52  ;;  %v3831_v14 = vadd.f32 %v3830_v34, %v8750_v49 }
 0x2aa   : > { %v4029_v56 = vpop.f32.mrf.mxu0  ;;  %4668 = vst [vmem:[%s8096_s27 + $0x70] sm:$0xff] %v5588_v17  ;;  %v4429_v10 = vsel %vm4109_vm0, %v8232_v7, %v5490_v1  ;;  %v3833_v39 = vadd.f32 %v3832_v58, %v8751_v41  ;;  %vm4111_vm2 = vcmp.gt.f32.partialorder %v8243_v26, 0.0  ;;  %v4286_v9 = vmul.f32 1.442695, %v4182_v5 }
 0x2ab   : > { %v3838_v59 = vpop.f32.mrf.mxu1  ;;  %v6404_v27 = vpop.eup %6403  ;;  %v5589_v38 = vpack.c.bf16 %v4429_v10, %v4428_v37  ;;  %6415 = vpow2.f32 %v4284_v0  ;;  %vm4112_vm3 = vcmp.gt.f32.partialorder %v8254_v45, 0.0  ;;  %v4183_v50 = vmin.f32 %v8316_v23, 0.0 }
 0x2ac   : > { %v4031_v54 = vpop.f32.mrf.mxu0  ;;  %v5492_v31 = vadd.f32 -1.0, %v6404_v27  ;;  %v8323_v7 = vadd.f32 %v4023_v35, %v3831_v14  ;;  %6417 = vpow2.f32 %v4286_v9  ;;  %v8326_v44 = vadd.f32 %v4025_v32, %v3833_v39 }
 0x2ad   : > { %v3840_v3 = vpop.f32.mrf.mxu1  ;;  %4669 = vst [vmem:[%s8096_s27 + $0x78] sm:$0xff] %v5589_v38  ;;  %v3837_v48 = vadd.f32 %v3836_v20, %v8752_v40  ;;  %v3839_v46 = vadd.f32 %v3838_v59, %v8753_v42  ;;  %v4430_v24 = vsel %vm4110_vm1, %v8234_v30, %v5491_v8  ;;  %v4288_v35 = vmul.f32 1.442695, %v4183_v50  ;;  %v8756_v42 = vld [vmem:[#allocation5_spill] sm:$0xff] }
 0x2ae   : > { %v4033_v18 = vpop.f32.mrf.mxu0  ;;  %v6406_v15 = vpop.eup %6405  ;;  %v4431_v34 = vsel %vm4111_vm2, %v8243_v26, %v5492_v31  ;;  %v4184_v12 = vmin.f32 %v8323_v7, 0.0  ;;  %vm4113_vm4 = vcmp.gt.f32.partialorder %v8262_v25, 0.0  ;;  %v4185_v4 = vmin.f32 %v8326_v44, 0.0 }
 0x2af   : > { %v3842_v28 = vpop.f32.mrf.mxu1  ;;  %v5590_v61 = vpack.c.bf16 %v4431_v34, %v4430_v24  ;;  %v5493_v63 = vadd.f32 -1.0, %v6406_v15  ;;  %6419 = vpow2.f32 %v4288_v35  ;;  %v8339_v32 = vadd.f32 %v4029_v56, %v3837_v48  ;;  %v8758_v24 = vld [vmem:[#allocation7_spill] sm:$0xff]  ;;  %v8759_v35 = vld [vmem:[#allocation8_spill] sm:$0xff] }
 0x2b0   : > { %v4035_v16 = vpop.f32.mrf.mxu0  ;;  %v4290_v58 = vmul.f32 1.442695, %v4184_v12  ;;  %v8341_v30 = vadd.f32 %v4031_v54, %v3839_v46  ;;  %vm4114_vm5 = vcmp.gt.f32.partialorder %v8265_v51, 0.0  ;;  %v4292_v26 = vmul.f32 1.442695, %v4185_v4 }
 0x2b1   : > { %v3846_v53 = vpop.f32.mrf.mxu1  ;;  %v6408_v33 = vpop.eup %6407  ;;  %4670 = vst [vmem:[%s8096_s27 + $0x80] sm:$0xff] %v5590_v61  ;;  %v3841_v52 = vadd.f32 %v3840_v3, %v8754_v19  ;;  %v3843_v22 = vadd.f32 %v3842_v28, %v8755_v6  ;;  %vm4115_vm6 = vcmp.gt.f32.partialorder %v8267_v57, 0.0  ;;  %v4186_v56 = vmin.f32 %v8339_v32, 0.0  ;;  %v8757_v28 = vld [vmem:[#allocation6_spill] sm:$0xff] }
 0x2b2   : > { %v4039_v29 = vpop.f32.mrf.mxu0  ;;  %v6410_v36 = vpop.eup %6409  ;;  %v5494_v20 = vadd.f32 -1.0, %v6408_v33  ;;  %6421 = vpow2.f32 %v4290_v58  ;;  %v4432_v17 = vsel %vm4112_vm3, %v8254_v45, %v5493_v63  ;;  %v4187_v1 = vmin.f32 %v8341_v30, 0.0 }
 0x2b3   : > { %v3848_v2 = vpop.f32.mrf.mxu1  ;;  %v6412_v13 = vpop.eup %6411  ;;  %v5495_v37 = vadd.f32 -1.0, %v6410_v36  ;;  %6423 = vpow2.f32 %v4292_v26  ;;  %v4294_v54 = vmul.f32 1.442695, %v4186_v56  ;;  %v8356_v10 = vadd.f32 %v4033_v18, %v3841_v52 }
 0x2b4   : > { %v4041_v60 = vpop.f32.mrf.mxu0  ;;  %v4433_v5 = vsel %vm4113_vm4, %v8262_v25, %v5494_v20  ;;  %v5496_v59 = vadd.f32 -1.0, %v6412_v13  ;;  %vm4116_vm7 = vcmp.gt.f32.partialorder %v8287_v62, 0.0  ;;  %v4296_v14 = vmul.f32 1.442695, %v4187_v1 }
 0x2b5   : > { %v3850_v8 = vpop.f32.mrf.mxu1  ;;  %v5591_v49 = vpack.c.bf16 %v4433_v5, %v4432_v17  ;;  %v8359_v45 = vadd.f32 %v4035_v16, %v3843_v22  ;;  %v6414_v27 = vpop.eup %6413  ;;  %v4434_v38 = vsel %vm4114_vm5, %v8265_v51, %v5495_v37  ;;  %6425 = vpow2.f32 %v4294_v54  ;;  %v8760_v5 = vld [vmem:[#allocation9_spill] sm:$0xff]  ;;  %v8761_v54 = vld [vmem:[#allocation10_spill] sm:$0xff] }
 0x2b6   : > { %v4043_v0 = vpop.f32.mrf.mxu0  ;;  %v4435_v25 = vsel %vm4115_vm6, %v8267_v57, %v5496_v59  ;;  %v4188_v9 = vmin.f32 %v8356_v10, 0.0  ;;  %v5497_v18 = vadd.f32 -1.0, %v6414_v27  ;;  %vm4117_vm8 = vcmp.gt.f32.partialorder %v8295_v47, 0.0 }
 0x2b7   : > { %v3852_v41 = vpop.f32.mrf.mxu1  ;;  %4671 = vst [vmem:[%s8096_s27 + $0x88] sm:$0xff] %v5591_v49  ;;  %v5592_v3 = vpack.c.bf16 %v4435_v25, %v4434_v38  ;;  %6427 = vpow2.f32 %v4296_v14  ;;  %v4189_v51 = vmin.f32 %v8359_v45, 0.0  ;;  %v3847_v46 = vadd.f32 %v3846_v53, %v8756_v42 }
 0x2b8   : > { %v4045_v39 = vpop.f32.mrf.mxu0  ;;  %v6416_v40 = vpop.eup %6415  ;;  %v4298_v48 = vmul.f32 1.442695, %v4188_v9  ;;  %v3849_v16 = vadd.f32 %v3848_v2, %v8757_v28  ;;  %v4436_v57 = vsel %vm4116_vm7, %v8287_v62, %v5497_v18  ;;  %v3851_v34 = vadd.f32 %v3850_v8, %v8758_v24 }
 0x2b9   : > { %v3856_v31 = vpop.f32.mrf.mxu1  ;;  %4672 = vst [vmem:[%s8096_s27 + $0x90] sm:$0xff] %v5592_v3  ;;  %v5498_v15 = vadd.f32 -1.0, %v6416_v40  ;;  %v3853_v12 = vadd.f32 %v3852_v41, %v8759_v35  ;;  %v6418_v4 = vpop.eup %6417  ;;  %v4300_v58 = vmul.f32 1.442695, %v4189_v51  ;;  %v8379_v33 = vadd.f32 %v4039_v29, %v3847_v46  ;;  %v8762_v46 = vld [vmem:[#allocation11_spill] sm:$0xff] }
 0x2ba   : > { %v4049_v50 = vpop.f32.mrf.mxu0  ;;  %6429 = vpow2.f32 %v4298_v48  ;;  %v8381_v53 = vadd.f32 %v4041_v60, %v3849_v16  ;;  %v5499_v19 = vadd.f32 -1.0, %v6418_v4  ;;  %v8386_v62 = vadd.f32 %v4043_v0, %v3851_v34  ;;  %v8763_v16 = vld [vmem:[#allocation12_spill] sm:$0xff] }
 0x2bb   : > { %v3858_v61 = vpop.f32.mrf.mxu1  ;;  %v4437_v26 = vsel %vm4117_vm8, %v8295_v47, %v5498_v15  ;;  %v8388_v52 = vadd.f32 %v4045_v39, %v3853_v12  ;;  %vm4118_vm9 = vcmp.gt.f32.partialorder %v8297_v11, 0.0  ;;  %6431 = vpow2.f32 %v4300_v58 }
 0x2bc   : > { %v4051_v63 = vpop.f32.mrf.mxu0  ;;  %v5593_v2 = vpack.c.bf16 %v4437_v26, %v4436_v57  ;;  %v4190_v29 = vmin.f32 %v8379_v33, 0.0  ;;  %v6420_v60 = vpop.eup %6419  ;;  %vm4119_vm10 = vcmp.gt.f32.partialorder %v8316_v23, 0.0  ;;  %vm4120_vm11 = vcmp.gt.f32.partialorder %v8323_v7, 0.0 }
 0x2bd   : > { %v3860_v6 = vpop.f32.mrf.mxu1  ;;  %vm4121_vm12 = vcmp.gt.f32.partialorder %v8326_v44, 0.0  ;;  %v4191_v47 = vmin.f32 %v8381_v53, 0.0  ;;  %v4438_v56 = vsel %vm4118_vm9, %v8297_v11, %v5499_v19  ;;  %v5500_v13 = vadd.f32 -1.0, %v6420_v60 }
 0x2be   : > { %v4053_v22 = vpop.f32.mrf.mxu0  ;;  %4673 = vst [vmem:[%s8096_s27 + $0x98] sm:$0xff] %v5593_v2  ;;  %v4302_v17 = vmul.f32 1.442695, %v4190_v29  ;;  %v4192_v37 = vmin.f32 %v8386_v62, 0.0  ;;  %v4193_v0 = vmin.f32 %v8388_v52, 0.0  ;;  %v3857_v59 = vadd.f32 %v3856_v31, %v8760_v5 }
 0x2bf   : > { %v3862_v36 = vpop.f32.mrf.mxu1  ;;  %v6422_v1 = vpop.eup %6421  ;;  %v4304_v8 = vmul.f32 1.442695, %v4191_v47  ;;  %v3859_v49 = vadd.f32 %v3858_v61, %v8761_v54  ;;  %v4439_v11 = vsel %vm4119_vm10, %v8316_v23, %v5500_v13  ;;  %v3861_v28 = vadd.f32 %v3860_v6, %v8762_v46 }
 0x2c0   : > { %v4055_v20 = vpop.f32.mrf.mxu0  ;;  %v6424_v39 = vpop.eup %6423  ;;  %v5501_v27 = vadd.f32 -1.0, %v6422_v1  ;;  %6433 = vpow2.f32 %v4302_v17  ;;  %v4306_v38 = vmul.f32 1.442695, %v4192_v37  ;;  %v5594_v25 = vpack.c.bf16 %v4439_v11, %v4438_v56 }
 0x2c1   : > { %v3866_v14 = vpop.f32.mrf.mxu1  ;;  %v5502_v9 = vadd.f32 -1.0, %v6424_v39  ;;  %6435 = vpow2.f32 %v4304_v8  ;;  %v4308_v3 = vmul.f32 1.442695, %v4193_v0  ;;  %v8408_v48 = vadd.f32 %v4049_v50, %v3857_v59 }
 0x2c2   : > { %v4059_v41 = vpop.f32.mrf.mxu0  ;;  %v4440_v31 = vsel %vm4120_vm11, %v8323_v7, %v5501_v27  ;;  %6437 = vpow2.f32 %v4306_v38  ;;  %v8410_v51 = vadd.f32 %v4051_v63, %v3859_v49  ;;  %v6426_v42 = vpop.eup %6425  ;;  %4674 = vst [vmem:[%s8096_s27 + $0xa0] sm:$0xff] %v5594_v25  ;;  %v3863_v57 = vadd.f32 %v3862_v36, %v8763_v16  ;;  %v8765_v27 = vld [vmem:[#allocation14_spill] sm:$0xff] }
 0x2c3   : > { %v3868_v18 = vpop.f32.mrf.mxu1  ;;  %v4441_v23 = vsel %vm4121_vm12, %v8326_v44, %v5502_v9  ;;  %6439 = vpow2.f32 %v4308_v3  ;;  %v5503_v50 = vadd.f32 -1.0, %v6426_v42  ;;  %v4194_v35 = vmin.f32 %v8408_v48, 0.0 }
 0x2c4   : > { %v4061_v40 = vpop.f32.mrf.mxu0  ;;  %v6428_v7 = vpop.eup %6427  ;;  %v5595_v34 = vpack.c.bf16 %v4441_v23, %v4440_v31  ;;  %vm4122_vm13 = vcmp.gt.f32.partialorder %v8339_v32, 0.0  ;;  %v4195_v61 = vmin.f32 %v8410_v51, 0.0  ;;  %v8421_v63 = vadd.f32 %v4053_v22, %v3861_v28 }
 0x2c5   : > { %v3870_v15 = vpop.f32.mrf.mxu1  ;;  %v5504_v12 = vadd.f32 -1.0, %v6428_v7  ;;  %vm4123_vm14 = vcmp.gt.f32.partialorder %v8341_v30, 0.0  ;;  %v4310_v4 = vmul.f32 1.442695, %v4194_v35  ;;  %v8425_v58 = vadd.f32 %v4055_v20, %v3863_v57 }
 0x2c6   : > { %v4063_v24 = vpop.f32.mrf.mxu0  ;;  %4675 = vst [vmem:[%s8096_s27 + $0xa8] sm:$0xff] %v5595_v34  ;;  %v3867_v26 = vadd.f32 %v3866_v14, %v8013_v21  ;;  %v4442_v2 = vsel %vm4122_vm13, %v8339_v32, %v5503_v50  ;;  %v4312_v60 = vmul.f32 1.442695, %v4195_v61  ;;  %v4196_v22 = vmin.f32 %v8421_v63, 0.0 }
 0x2c7   : > { %v3872_v44 = vpop.f32.mrf.mxu1  ;;  %v6430_v6 = vpop.eup %6429  ;;  %v4443_v29 = vsel %vm4123_vm14, %v8341_v30, %v5504_v12  ;;  %vm4124_vm15 = vcmp.gt.f32.partialorder %v8356_v10, 0.0  ;;  %6441 = vpow2.f32 %v4310_v4  ;;  %v4197_v21 = vmin.f32 %v8425_v58, 0.0 }
 0x2c8   : > { %v4065_v19 = vpop.f32.mrf.mxu0  ;;  %v5596_v36 = vpack.c.bf16 %v4443_v29, %v4442_v2  ;;  %v5505_v56 = vadd.f32 -1.0, %v6430_v6  ;;  %v6432_v20 = vpop.eup %6431  ;;  %6443 = vpow2.f32 %v4312_v60  ;;  %v4314_v13 = vmul.f32 1.442695, %v4196_v22  ;;  %v8767_v6 = vld [vmem:[#allocation16_spill] sm:$0xff]  ;;  %v8768_v22 = vld [vmem:[#allocation17_spill] sm:$0xff] }
 0x2c9   : > { %v3876_v47 = vpop.f32.mrf.mxu1  ;;  %v8433_v17 = vadd.f32 %v4059_v41, %v3867_v26  ;;  %vm4125_vm0 = vcmp.gt.f32.partialorder %v8359_v45, 0.0  ;;  %v5506_v32 = vadd.f32 -1.0, %v6432_v20  ;;  %v3869_v30 = vadd.f32 %v3868_v18, %v8016_v43  ;;  %v8764_v41 = vld [vmem:[#allocation13_spill] sm:$0xff]  ;;  %v8766_v26 = vld [vmem:[#allocation15_spill] sm:$0xff] }
 0x2ca   : > { %4676 = vst [vmem:[%s8096_s27 + $0xb0] sm:$0xff] %v5596_v36  ;;  %v3871_v37 = vadd.f32 %v3870_v15, %v8019_v55  ;;  %v4069_v1 = vpop.f32.mrf.mxu0  ;;  %v4444_v0 = vsel %vm4124_vm15, %v8356_v10, %v5505_v56  ;;  %6445 = vpow2.f32 %v4314_v13  ;;  %v4316_v5 = vmul.f32 1.442695, %v4197_v21 }
 0x2cb   : > { %v3878_v8 = vpop.f32.mrf.mxu1  ;;  %v4198_v59 = vmin.f32 %v8433_v17, 0.0  ;;  %v4445_v54 = vsel %vm4125_vm0, %v8359_v45, %v5506_v32  ;;  %v8442_v49 = vadd.f32 %v4061_v40, %v3869_v30  ;;  %v3873_v39 = vadd.f32 %v3872_v44, %v8764_v41 }
 0x2cc   : > { %v8444_v14 = vadd.f32 %v4063_v24, %v3871_v37  ;;  %v5597_v11 = vpack.c.bf16 %v4445_v54, %v4444_v0  ;;  %6447 = vpow2.f32 %v4316_v5  ;;  %v3877_v38 = vadd.f32 %v3876_v47, %v8765_v27  ;;  %v4071_v9 = vpop.f32.mrf.mxu0 }
 0x2cd   : > { %v6434_v43 = vpop.eup %6433  ;;  %v4318_v55 = vmul.f32 1.442695, %v4198_v59  ;;  %vm4126_vm1 = vcmp.gt.f32.partialorder %v8379_v33, 0.0  ;;  %vm4127_vm2 = vcmp.gt.f32.partialorder %v8381_v53, 0.0  ;;  %v4199_v45 = vmin.f32 %v8442_v49, 0.0  ;;  %v3880_v3 = vpop.f32.mrf.mxu1 }
 0x2ce   : > { %v6436_v10 = vpop.eup %6435  ;;  %v5507_v25 = vadd.f32 -1.0, %v6434_v43  ;;  %4677 = vst [vmem:[%s8096_s27 + $0xb8] sm:$0xff] %v5597_v11  ;;  %v4200_v31 = vmin.f32 %v8444_v14, 0.0  ;;  %v8453_v42 = vadd.f32 %v4065_v19, %v3873_v39  ;;  %vm4128_vm3 = vcmp.gt.f32.partialorder %v8386_v62, 0.0  ;;  %v4073_v35 = vpop.f32.mrf.mxu0 }
 0x2cf   : > { %v6438_v18 = vpop.eup %6437  ;;  %v5508_v40 = vadd.f32 -1.0, %v6436_v10  ;;  %6449 = vpow2.f32 %v4318_v55  ;;  %v4320_v28 = vmul.f32 1.442695, %v4199_v45  ;;  %v8456_v16 = vadd.f32 %v4069_v1, %v3877_v38  ;;  %v3882_v12 = vpop.f32.mrf.mxu1 }
 0x2d0   : > { %v6440_v23 = vpop.eup %6439  ;;  %v5509_v46 = vadd.f32 -1.0, %v6438_v18  ;;  %v4446_v57 = vsel %vm4126_vm1, %v8379_v33, %v5507_v25  ;;  %v4322_v7 = vmul.f32 1.442695, %v4200_v31  ;;  %vm4129_vm4 = vcmp.gt.f32.partialorder %v8388_v52, 0.0  ;;  %v4075_v20 = vpop.f32.mrf.mxu0 }
 0x2d1   : > { %v4447_v15 = vsel %vm4127_vm2, %v8381_v53, %v5508_v40  ;;  %v5510_v24 = vadd.f32 -1.0, %v6440_v23  ;;  %6451 = vpow2.f32 %v4320_v28  ;;  %v4201_v50 = vmin.f32 %v8453_v42, 0.0 }
 0x2d2   : > { %v5598_v34 = vpack.c.bf16 %v4447_v15, %v4446_v57  ;;  %v4448_v61 = vsel %vm4128_vm3, %v8386_v62, %v5509_v46  ;;  %6453 = vpow2.f32 %v4322_v7  ;;  %v4202_v33 = vmin.f32 %v8456_v16, 0.0 }
 0x2d3   : > { %v4449_v44 = vsel %vm4129_vm4, %v8388_v52, %v5510_v24  ;;  %v4324_v4 = vmul.f32 1.442695, %v4201_v50  ;;  %v3879_v19 = vadd.f32 %v3878_v8, %v8766_v26  ;;  %v3881_v2 = vadd.f32 %v3880_v3, %v8767_v6 }
 0x2d4   : > { %4678 = vst [vmem:[%s8096_s27 + $0xc0] sm:$0xff] %v5598_v34  ;;  %v5599_v53 = vpack.c.bf16 %v4449_v44, %v4448_v61  ;;  %v6442_v29 = vpop.eup %6441  ;;  %v4326_v60 = vmul.f32 1.442695, %v4202_v33  ;;  %v3883_v47 = vadd.f32 %v3882_v12, %v8768_v22  ;;  %vm4130_vm5 = vcmp.gt.f32.partialorder %v8408_v48, 0.0 }
 0x2d5   : > { %v6444_v36 = vpop.eup %6443  ;;  %v5511_v56 = vadd.f32 -1.0, %v6442_v29  ;;  %6455 = vpow2.f32 %v4324_v4  ;;  %v4072_v62 = vadd.f32 %v4071_v9, %v3879_v19  ;;  %v8474_v52 = vadd.f32 %v4073_v35, %v3881_v2 }
 0x2d6   : > { %4679 = vst [vmem:[%s8096_s27 + $0xc8] sm:$0xff] %v5599_v53  ;;  %v5512_v13 = vadd.f32 -1.0, %v6444_v36  ;;  %v8476_v21 = vadd.f32 %v4075_v20, %v3883_v47  ;;  %vm4131_vm6 = vcmp.gt.f32.partialorder %v8410_v51, 0.0  ;;  %6457 = vpow2.f32 %v4326_v60 }
 0x2d7   : > { %v6446_v32 = vpop.eup %6445  ;;  %v4203_v30 = vmin.f32 %v4072_v62, 0.0  ;;  %v4450_v37 = vsel %vm4130_vm5, %v8408_v48, %v5511_v56  ;;  %v4204_v0 = vmin.f32 %v8474_v52, 0.0  ;;  %vm4132_vm7 = vcmp.gt.f32.partialorder %v8421_v63, 0.0 }
 0x2d8   : > { %v4451_v1 = vsel %vm4131_vm6, %v8410_v51, %v5512_v13  ;;  %v5513_v8 = vadd.f32 -1.0, %v6446_v32  ;;  %v4205_v41 = vmin.f32 %v8476_v21, 0.0  ;;  %vm4133_vm8 = vcmp.gt.f32.partialorder %v8425_v58, 0.0 }
 0x2d9   : > { %v6448_v5 = vpop.eup %6447  ;;  %v5600_v59 = vpack.c.bf16 %v4451_v1, %v4450_v37  ;;  %v4328_v54 = vmul.f32 1.442695, %v4203_v30  ;;  %v4330_v43 = vmul.f32 1.442695, %v4204_v0  ;;  %vm4134_vm9 = vcmp.gt.f32.partialorder %v8433_v17, 0.0 }
 0x2da   : > { %v5514_v39 = vadd.f32 -1.0, %v6448_v5  ;;  %v4332_v48 = vmul.f32 1.442695, %v4205_v41  ;;  %v4452_v51 = vsel %vm4132_vm7, %v8421_v63, %v5513_v8  ;;  %vm4135_vm10 = vcmp.gt.f32.partialorder %v8442_v49, 0.0 }
 0x2db   : > { %4680 = vst [vmem:[%s8096_s27 + $0xd0] sm:$0xff] %v5600_v59  ;;  %6459 = vpow2.f32 %v4328_v54  ;;  %vm4136_vm11 = vcmp.gt.f32.partialorder %v8444_v14, 0.0  ;;  %vm4137_vm12 = vcmp.gt.f32.partialorder %v8453_v42, 0.0  ;;  %vm4138_vm13 = vcmp.gt.f32.partialorder %v8456_v16, 0.0 }
 0x2dc   : > { %v6450_v11 = vpop.eup %6449  ;;  %v4453_v55 = vsel %vm4133_vm8, %v8425_v58, %v5514_v39  ;;  %6461 = vpow2.f32 %v4330_v43  ;;  %vm4139_vm14 = vcmp.gt.f32.partialorder %v4072_v62, 0.0  ;;  %vm4140_vm15 = vcmp.gt.f32.partialorder %v8474_v52, 0.0 }
 0x2dd   : > { %v5601_v27 = vpack.c.bf16 %v4453_v55, %v4452_v51  ;;  %v5515_v38 = vadd.f32 -1.0, %v6450_v11  ;;  %6463 = vpow2.f32 %v4332_v48  ;;  %vm4141_vm0 = vcmp.gt.f32.partialorder %v8476_v21, 0.0 }
 0x2de   : > { %v6452_v10 = vpop.eup %6451 }
 0x2df   : > { %v6454_v25 = vpop.eup %6453  ;;  %4681 = vst [vmem:[%s8096_s27 + $0xd8] sm:$0xff] %v5601_v27  ;;  %v5516_v45 = vadd.f32 -1.0, %v6452_v10  ;;  %v4454_v9 = vsel %vm4134_vm9, %v8433_v17, %v5515_v38 }
 0x2e0   : > { %v5517_v3 = vadd.f32 -1.0, %v6454_v25 }
 0x2e1   : > { %v4455_v63 = vsel %vm4135_vm10, %v8442_v49, %v5516_v45 }
 0x2e2   : > { %v6456_v58 = vpop.eup %6455  ;;  %v5602_v18 = vpack.c.bf16 %v4455_v63, %v4454_v9  ;;  %v4456_v23 = vsel %vm4136_vm11, %v8444_v14, %v5517_v3 }
 0x2e3   : > { %v5518_v40 = vadd.f32 -1.0, %v6456_v58  ;;  %v6458_v31 = vpop.eup %6457 }
 0x2e4   : > { %4682 = vst [vmem:[%s8096_s27 + $0xe0] sm:$0xff] %v5602_v18  ;;  %v5519_v57 = vadd.f32 -1.0, %v6458_v31 }
 0x2e5   : > { %v4457_v46 = vsel %vm4137_vm12, %v8453_v42, %v5518_v40 }
 0x2e6   : > { %v5603_v28 = vpack.c.bf16 %v4457_v46, %v4456_v23  ;;  %v4458_v34 = vsel %vm4138_vm13, %v8456_v16, %v5519_v57 }
 0x2e8   : > { %v6460_v15 = vpop.eup %6459  ;;  %4683 = vst [vmem:[%s8096_s27 + $0xe8] sm:$0xff] %v5603_v28 }
 0x2e9   : > { %v6462_v17 = vpop.eup %6461  ;;  %v5520_v49 = vadd.f32 -1.0, %v6460_v15 }
 0x2ea   : > { %v6464_v24 = vpop.eup %6463  ;;  %v5521_v7 = vadd.f32 -1.0, %v6462_v17 }
 0x2eb   : > { %v4459_v50 = vsel %vm4139_vm14, %v4072_v62, %v5520_v49  ;;  %v5522_v35 = vadd.f32 -1.0, %v6464_v24 }
 0x2ec   : > { %v5604_v14 = vpack.c.bf16 %v4459_v50, %v4458_v34  ;;  %v4460_v42 = vsel %vm4140_vm15, %v8474_v52, %v5521_v7  ;;  %4692 = sbr.rel (!%p6599_p4) target bundleno = 801 (0x321), region = 36 }
 0x2ed   : > { %v4461_v12 = vsel %vm4141_vm0, %v8476_v21, %v5522_v35 }
 0x2ee   : > { %4684 = vst [vmem:[%s8096_s27 + $0xf0] sm:$0xff] %v5604_v14  ;;  %v5605_v61 = vpack.c.bf16 %v4461_v12, %v4460_v42 }
 0x2f0   : > { %4685 = vst [vmem:[%s8096_s27 + $0xf8] sm:$0xff] %v5605_v61 }
 0x2f1   : > { %s8778_s28 = smov (!%p4695_p8, %s4694_s28), 32 }
 0x2f2   : > { %s5606_s8 = sshll.u32 %s8778_s28, 7 }
 0x2f3   : > { %p5562_p9 = scmp.eq.s32.totalorder %s5606_s8, 0 }
 0x2f4   : > { %s8521_s9 = sshrl.u32 (!%p5562_p9), %s8778_s28, 5 }
 0x2f5   : > { %4705 = sbr.rel (%p5562_p9) target bundleno = 801 (0x321), region = 40  ;;  %p5563_p10 = scmp.le.s32.totalorder (!%p5562_p9), %s8521_s9, 0 }
 0x2fa   : > { %4984 = sbr.rel (%p5563_p10) target bundleno = 784 (0x310), region = 116  ;;  %s8769_s15 = smov (!%p5563_p10), %s8515_s7 }
 0x2fb   : > { %s8770_s20 = smov (!%p5563_p10), %s8096_s27  ;;  %s8530_s4 = smov (!%p5563_p10), 0  }
 0x2fc   : > { %s8532_s10 = smov (!%p5563_p10), 0  }
 0x2ff LB: >> { %v4830_v16 = vld [vmem:[%s6527_s20] sm:$0xff]  ;;  %v4832_v44 = vld [vmem:[%s6527_s20 + $0x8] sm:$0xff]  ;;  %v4834_v33 = vld [vmem:[%s6527_s20 + $0x10] sm:$0xff]  ;;  %s4894_s11 = sadd.s32 1, %s6531_s4  ;;  %s4824_s10 = sadd.s32 1, %s6535_s10   ;;  %s6535_s10 = sphi %s8532_s10, %s4824_s10   ;;  %s6531_s4 = sphi %s8530_s4, %s8773_s4   ;;  %s6527_s20 = sphi %s8770_s20, %s8772_s20   ;;  %s6523_s15 = sphi %s8769_s15, %s8771_s15  }
 0x300   : >> { %4831 = vst [vmem:[%s6523_s15] sm:$0xff] %v4830_v16  ;;  %4833 = vst [vmem:[%s6523_s15 + $0x8] sm:$0xff] %v4832_v44  ;;  %v4836_v53 = vld [vmem:[%s6527_s20 + $0x18] sm:$0xff]  ;;  %v4838_v4 = vld [vmem:[%s6527_s20 + $0x20] sm:$0xff]  ;;  %p4895_p11 = scmp.ge.s32.totalorder %s4894_s11, %s8521_s9  ;;  %p4823_p12 = scmp.ge.s32.totalorder %s4824_s10, %s8521_s9 }
 0x301   : >> { %4835 = vst [vmem:[%s6523_s15 + $0x10] sm:$0xff] %v4834_v33  ;;  %v4840_v26 = vld [vmem:[%s6527_s20 + $0x28] sm:$0xff]  ;;  %4837 = vst [vmem:[%s6523_s15 + $0x18] sm:$0xff] %v4836_v53  ;;  %v4842_v19 = vld [vmem:[%s6527_s20 + $0x30] sm:$0xff] }
 0x302   : >> { %4839 = vst [vmem:[%s6523_s15 + $0x20] sm:$0xff] %v4838_v4  ;;  %4841 = vst [vmem:[%s6523_s15 + $0x28] sm:$0xff] %v4840_v26  ;;  %v4844_v6 = vld [vmem:[%s6527_s20 + $0x38] sm:$0xff]  ;;  %v4846_v2 = vld [vmem:[%s6527_s20 + $0x40] sm:$0xff]  ;;  %s8780_s11 = smov (%p4895_p11, %s4894_s11), 0 }
 0x303   : >> { %4843 = vst [vmem:[%s6523_s15 + $0x30] sm:$0xff] %v4842_v19  ;;  %4845 = vst [vmem:[%s6523_s15 + $0x38] sm:$0xff] %v4844_v6  ;;  %v4848_v29 = vld [vmem:[%s6527_s20 + $0x48] sm:$0xff]  ;;  %v4850_v60 = vld [vmem:[%s6527_s20 + $0x50] sm:$0xff]  ;;  %s5564_s14 = sshll.u32 %s8780_s11, 8  ;;  %s8773_s4 = smov %s8780_s11 }
 0x304   : >> { %4847 = vst [vmem:[%s6523_s15 + $0x40] sm:$0xff] %v4846_v2  ;;  %v4852_v22 = vld [vmem:[%s6527_s20 + $0x58] sm:$0xff]  ;;  %4849 = vst [vmem:[%s6523_s15 + $0x48] sm:$0xff] %v4848_v29  ;;  %v4854_v47 = vld [vmem:[%s6527_s20 + $0x60] sm:$0xff]  ;;  %s8588_s17 = scalar_lea.vmem %s8096_s27, %s5564_s14 [#allocation2]   ;;  %s4900_s18 = scalar_lea.vmem %s8515_s7, %s5564_s14  }
 0x305   : >> { %4851 = vst [vmem:[%s6523_s15 + $0x50] sm:$0xff] %v4850_v60  ;;  %4853 = vst [vmem:[%s6523_s15 + $0x58] sm:$0xff] %v4852_v22  ;;  %v4856_v36 = vld [vmem:[%s6527_s20 + $0x68] sm:$0xff]  ;;  %v4858_v56 = vld [vmem:[%s6527_s20 + $0x70] sm:$0xff] }
 0x306   : >> { %4855 = vst [vmem:[%s6523_s15 + $0x60] sm:$0xff] %v4854_v47  ;;  %4857 = vst [vmem:[%s6523_s15 + $0x68] sm:$0xff] %v4856_v36  ;;  %v4860_v62 = vld [vmem:[%s6527_s20 + $0x78] sm:$0xff]  ;;  %v4862_v52 = vld [vmem:[%s6527_s20 + $0x80] sm:$0xff] }
 0x307   : >> { %4859 = vst [vmem:[%s6523_s15 + $0x70] sm:$0xff] %v4858_v56  ;;  %v4864_v20 = vld [vmem:[%s6527_s20 + $0x88] sm:$0xff]  ;;  %4861 = vst [vmem:[%s6523_s15 + $0x78] sm:$0xff] %v4860_v62  ;;  %v4866_v13 = vld [vmem:[%s6527_s20 + $0x90] sm:$0xff] }
 0x308   : >> { %4863 = vst [vmem:[%s6523_s15 + $0x80] sm:$0xff] %v4862_v52  ;;  %4865 = vst [vmem:[%s6523_s15 + $0x88] sm:$0xff] %v4864_v20  ;;  %v4868_v21 = vld [vmem:[%s6527_s20 + $0x98] sm:$0xff]  ;;  %v4870_v32 = vld [vmem:[%s6527_s20 + $0xa0] sm:$0xff] }
 0x309   : >> { %4867 = vst [vmem:[%s6523_s15 + $0x90] sm:$0xff] %v4866_v13  ;;  %4869 = vst [vmem:[%s6523_s15 + $0x98] sm:$0xff] %v4868_v21  ;;  %v4872_v30 = vld [vmem:[%s6527_s20 + $0xa8] sm:$0xff]  ;;  %v4874_v37 = vld [vmem:[%s6527_s20 + $0xb0] sm:$0xff] }
 0x30a   : >> { %4871 = vst [vmem:[%s6523_s15 + $0xa0] sm:$0xff] %v4870_v32  ;;  %v4876_v1 = vld [vmem:[%s6527_s20 + $0xb8] sm:$0xff]  ;;  %4873 = vst [vmem:[%s6523_s15 + $0xa8] sm:$0xff] %v4872_v30  ;;  %v4878_v8 = vld [vmem:[%s6527_s20 + $0xc0] sm:$0xff] }
 0x30b   : >> { %4875 = vst [vmem:[%s6523_s15 + $0xb0] sm:$0xff] %v4874_v37  ;;  %4877 = vst [vmem:[%s6523_s15 + $0xb8] sm:$0xff] %v4876_v1  ;;  %v4880_v0 = vld [vmem:[%s6527_s20 + $0xc8] sm:$0xff]  ;;  %v4882_v5 = vld [vmem:[%s6527_s20 + $0xd0] sm:$0xff]  ;;  %4826 = sbr.rel (!%p4823_p12) target bundleno = 767 (0x2ff), region = 122 }
 0x30c   : >> { %4879 = vst [vmem:[%s6523_s15 + $0xc0] sm:$0xff] %v4878_v8  ;;  %4881 = vst [vmem:[%s6523_s15 + $0xc8] sm:$0xff] %v4880_v0  ;;  %v4884_v59 = vld [vmem:[%s6527_s20 + $0xd8] sm:$0xff]  ;;  %v4886_v54 = vld [vmem:[%s6527_s20 + $0xe0] sm:$0xff] }
 0x30d   : >> { %4883 = vst [vmem:[%s6523_s15 + $0xd0] sm:$0xff] %v4882_v5  ;;  %v4888_v41 = vld [vmem:[%s6527_s20 + $0xe8] sm:$0xff]  ;;  %4885 = vst [vmem:[%s6523_s15 + $0xd8] sm:$0xff] %v4884_v59  ;;  %v4890_v39 = vld [vmem:[%s6527_s20 + $0xf0] sm:$0xff] }
 0x30e   : >> { %4887 = vst [vmem:[%s6523_s15 + $0xe0] sm:$0xff] %v4886_v54  ;;  %4889 = vst [vmem:[%s6523_s15 + $0xe8] sm:$0xff] %v4888_v41  ;;  %v4892_v43 = vld [vmem:[%s6527_s20 + $0xf8] sm:$0xff]  ;;  %s8772_s20 = smov %s8588_s17 }
 0x30f   : >> { %4891 = vst [vmem:[%s6523_s15 + $0xf0] sm:$0xff] %v4890_v39  ;;  %4893 = vst [vmem:[%s6523_s15 + $0xf8] sm:$0xff] %v4892_v43  ;;  %s8771_s15 = smov %s4900_s18 }
 0x310 PF: > { %s8629_s21 = sand.u32 31, %s8778_s28   ;;  %s5609_s22 = sshll.u32 %s8521_s9, 8 }
 0x311   : > { %s4905_s23 = scalar_lea.vmem %s8096_s27, %s5609_s22 [#allocation2]   ;;  %s4907_s24 = scalar_lea.vmem %s8515_s7, %s5609_s22  }
 0x312   : > { %p5569_p13 = scmp.le.s32.totalorder %s8629_s21, 0 }
 0x313   : > { %s6537_s25 = smov (!%p5569_p13), %s4907_s24   ;;  %s6541_s26 = smov (!%p5569_p13), %s4905_s23  }
 0x314   : > { %4998 = sbr.rel (%p5569_p13) target bundleno = 801 (0x321), region = 127  ;;  %s6545_s29 = smov (!%p5569_p13), 0  }
 0x315   : > { %s6549_s12 = smov (!%p5569_p13), 0  }
 0x319 LB: >> { %v4917_v11 = vld [vmem:[%s6543_s26] sm:$0xff]  ;;  %s4919_s28 = sadd.s32 1, %s6547_s29  ;;  %s4911_s12 = sadd.s32 1, %s6551_s12   ;;  %s6551_s12 = sphi %s6549_s12, %s4911_s12   ;;  %s6547_s29 = sphi %s6545_s29, %s6546_s29   ;;  %s6543_s26 = sphi %s6541_s26, %s4924_s26   ;;  %s6539_s25 = sphi %s6537_s25, %s4925_s25  }
 0x31a   : >> { %4918 = vst [vmem:[%s6539_s25] sm:$0xff] %v4917_v11  ;;  %p4920_p0 = scmp.ge.s32.totalorder %s4919_s28, %s8629_s21  ;;  %p4910_p1 = scmp.ge.s32.totalorder %s4911_s12, %s8629_s21 }
 0x31c   : >> { %s8782_s28 = smov (%p4920_p0, %s4919_s28), 0  ;;  %4913 = sbr.rel (!%p4910_p1) target bundleno = 793 (0x319), region = 133 }
 0x31d   : >> { %s5570_s27 = sshll.u32 %s8782_s28, 3  ;;  %s6546_s29 = smov %s8782_s28  }
 0x31e   : >> { %s4924_s26 = scalar_lea.vmem %s4905_s23, %s5570_s27 [#allocation2]   ;;  %s4925_s25 = scalar_lea.vmem %s4907_s24, %s5570_s27  }
 0x321 PF: > { %p10_p2 = scmp.ge.s32.totalorder %s6589_s16, 4   ;;  %s8774_s12 = smov %s6515_s13 }
 0x322   : > { %s8775_s13 = smov %s6597_s19  ;;  %s8776_s14 = smov %s6589_s16 }
 0x323   :  { %12 = sbr.rel (!%p10_p2) target bundleno = 2 (0x2), region = 144 }

// kernel: sac_actor_forward.7
= control target key start
LH: loop header
LB: loop body
LE: loop exit
PB: predicated region body
PF: predicated region fallthrough
CT: control target
= control target key end

     0   :  { %14 = vsyncpa [#allocation4], 0  ;;  %s9308_s0 = inlined_call_operand.vmem [shape: bf16[2,44032], index: 0, kind: input, shape index: {}]   ;;  %s9309_s1 = inlined_call_operand.vmem [shape: bf16[44032,256], index: 1, kind: input, shape index: {}]   ;;  %s9310_s2 = inlined_call_operand.vmem [shape: f32[1,256], index: 2, kind: input, shape index: {}]   ;;  %s9311_s3 = inlined_call_operand.vmem [shape: bf16[256,256], index: 3, kind: input, shape index: {}]   ;;  %s9312_s4 = inlined_call_operand.vmem [shape: f32[1,256], index: 4, kind: input, shape index: {}]   ;;  %s9313_s5 = inlined_call_operand.vmem [shape: bf16[256,128], index: 5, kind: input, shape index: {}]   ;;  %s9314_s6 = inlined_call_operand.vmem [shape: f32[1,128], index: 6, kind: input, shape index: {}]   ;;  %s9315_s7 = inlined_call_operand.hbm [shape: f32[2,128], index: 7, kind: output, shape index: {0}]   ;;  %s9316_s8 = inlined_call_operand.hbm [shape: f32[2,256], index: 8, kind: output, shape index: {1}]  }
   0x1   :  { %15 = vsyncpa [#allocation6], 0  ;;  %s8260_s27 = smov 0  }
   0x2 LB: > { %s8266_s28 = sadd.s32 4294967295, %s8207_s27   ;;  %p6241_p0 = scmp.ge.s32.totalorder %s8207_s27, 1  ;;  %s8207_s27 = sphi %s8260_s27, %s21_s27  }
   0x3   : > { %p269_p1 = scmp.lt.s32.totalorder %s8207_s27, 9 }
   0x5   : > { %p270_p2 = pnand %p6241_p0, %p269_p1 }
   0x6   : > { %s303_s29 = smul.u32 (!%p270_p2), 43, %s8266_s28  ;;  %p6244_p5 = scmp.ne.s32.totalorder (!%p270_p2), %s8266_s28, 0 }
   0x7   : > { %273 = sbr.rel (%p270_p2) target bundleno = 1379 (0x563), region = 48 }
   0x8   : > { %s308_s30 = smul.u32 (!%p270_p2), 688, %s8266_s28  ;;  %p304_p3 = scmp.lt.s32.totalorder (!%p270_p2), %s303_s29, 343 }
   0xa   : > { %p309_p4 = scmp.lt.s32.totalorder (!%p270_p2), %s308_s30, 5503 }
   0xc   : > { %s9318_s29 = smov (!%p304_p3, %s303_s29), 343  ;;  %s9320_s30 = smov (!%p309_p4, %s308_s30), 5503 }
   0xd   : > { %s8275_s11 = scalar_lea.vmem %s9308_s0, %s9318_s29  ;;  %s6991_s12 = sshll.u32 %s9320_s30, 3 }
   0xe   : > { %s8280_s15 = scalar_lea.vmem %s9309_s1, %s6991_s12  ;;  %319 = sbr.rel (%p6244_p5) target bundleno = 21 (0x15), region = 52 }
  0x13   : > { %v8209_v0 = vmov 0.0  }
  0x14   : > { %320 = vst [vmem:[#allocation2] sm:$0xf] %v8209_v0 }
  0x15 PF: > { %v7040_v1 = vld [vmem:[%s8280_s15 + $0x74] ss:$8 sps:$4 sm:$0xff]   ;;  %v7044_v3 = vld [vmem:[%s8280_s15 + $0x70] ss:$8 sps:$4 sm:$0xff]   ;;  %v7046_v5 = vld [vmem:[%s8280_s15 + $0x64] ss:$8 sps:$4 sm:$0xff]   ;;  %v1026_v39 = vlaneseq }
  0x16   : > { %v7042_v2 = vld [vmem:[%s8280_s15 + $0x174] ss:$8 sps:$4 sm:$0xff]   ;;  %4773 = vmatprep.subr.bf16.mxu0 %v7040_v1  ;;  %v7045_v4 = vld [vmem:[%s8280_s15 + $0x170] ss:$8 sps:$4 sm:$0xff]   ;;  %v7048_v6 = vld [vmem:[%s8280_s15 + $0x164] ss:$8 sps:$4 sm:$0xff]  }
  0x17   : > { %4814 = vmatprep.subr.bf16.mxu1 %v7042_v2  ;;  %4774 = vmatpush1.bf16.msra.mxu0 %v7044_v3  ;;  %v7050_v7 = vld [vmem:[%s8280_s15 + $0x60] ss:$8 sps:$4 sm:$0xff]   ;;  %v7052_v9 = vld [vmem:[%s8280_s15 + $0x54] ss:$8 sps:$4 sm:$0xff]   ;;  %v7056_v11 = vld [vmem:[%s8280_s15 + $0x50] ss:$8 sps:$4 sm:$0xff]  }
  0x18   : > { %4815 = vmatpush1.bf16.msra.mxu1 %v7045_v4  ;;  %4775 = vmatprep.subr.bf16.mxu0 %v7046_v5  ;;  %v7051_v8 = vld [vmem:[%s8280_s15 + $0x160] ss:$8 sps:$4 sm:$0xff]   ;;  %v7054_v10 = vld [vmem:[%s8280_s15 + $0x154] ss:$8 sps:$4 sm:$0xff]   ;;  %v7057_v12 = vld [vmem:[%s8280_s15 + $0x150] ss:$8 sps:$4 sm:$0xff]  }
  0x19   : > { %4816 = vmatprep.subr.bf16.mxu1 %v7048_v6  ;;  %v7058_v13 = vld [vmem:[%s8280_s15 + $0x44] ss:$8 sps:$4 sm:$0xff]   ;;  %v7062_v15 = vld [vmem:[%s8280_s15 + $0x40] ss:$8 sps:$4 sm:$0xff]   ;;  %v7064_v17 = vld [vmem:[%s8280_s15 + $0x34] ss:$8 sps:$4 sm:$0xff]  }
  0x1a   : > { %v7060_v14 = vld [vmem:[%s8280_s15 + $0x144] ss:$8 sps:$4 sm:$0xff]   ;;  %v7063_v16 = vld [vmem:[%s8280_s15 + $0x140] ss:$8 sps:$4 sm:$0xff]   ;;  %v7066_v18 = vld [vmem:[%s8280_s15 + $0x134] ss:$8 sps:$4 sm:$0xff]  }
  0x1b   : > { %4776 = vmatpush1.bf16.msra.mxu0 %v7050_v7  ;;  %v7068_v19 = vld [vmem:[%s8280_s15 + $0x30] ss:$8 sps:$4 sm:$0xff]   ;;  %v7070_v21 = vld [vmem:[%s8280_s15 + $0x24] ss:$8 sps:$4 sm:$0xff]   ;;  %v7074_v23 = vld [vmem:[%s8280_s15 + $0x20] ss:$8 sps:$4 sm:$0xff]  }
  0x1c   : > { %4817 = vmatpush1.bf16.msra.mxu1 %v7051_v8  ;;  %4777 = vmatprep.subr.bf16.mxu0 %v7052_v9  ;;  %v7069_v20 = vld [vmem:[%s8280_s15 + $0x130] ss:$8 sps:$4 sm:$0xff]   ;;  %v7072_v22 = vld [vmem:[%s8280_s15 + $0x124] ss:$8 sps:$4 sm:$0xff]   ;;  %v7075_v24 = vld [vmem:[%s8280_s15 + $0x120] ss:$8 sps:$4 sm:$0xff]  }
  0x1d   : > { %4818 = vmatprep.subr.bf16.mxu1 %v7054_v10  ;;  %v7076_v25 = vld [vmem:[%s8280_s15 + $0x14] ss:$8 sps:$4 sm:$0xff]   ;;  %v7080_v27 = vld [vmem:[%s8280_s15 + $0x10] ss:$8 sps:$4 sm:$0xff]   ;;  %v7082_v29 = vld [vmem:[%s8280_s15 + $0x4] ss:$8 sps:$4 sm:$0xff]  }
  0x1e   : > { %v7078_v26 = vld [vmem:[%s8280_s15 + $0x114] ss:$8 sps:$4 sm:$0xff]   ;;  %v7081_v28 = vld [vmem:[%s8280_s15 + $0x110] ss:$8 sps:$4 sm:$0xff]   ;;  %v7084_v30 = vld [vmem:[%s8280_s15 + $0x104] ss:$8 sps:$4 sm:$0xff]  }
  0x1f   : > { %4778 = vmatpush1.bf16.msra.mxu0 %v7056_v11  ;;  %v7086_v31 = vld [vmem:[%s8280_s15] ss:$8 sps:$4 sm:$0xff]   ;;  %v7088_v33 = vld [vmem:[%s8280_s15 + $0xf4] ss:$8 sps:$4 sm:$0xff]   ;;  %v7092_v35 = vld [vmem:[%s8280_s15 + $0xf0] ss:$8 sps:$4 sm:$0xff]  }
  0x20   : > { %4819 = vmatpush1.bf16.msra.mxu1 %v7057_v12  ;;  %4779 = vmatprep.subr.bf16.mxu0 %v7058_v13  ;;  %v7087_v32 = vld [vmem:[%s8280_s15 + $0x100] ss:$8 sps:$4 sm:$0xff]   ;;  %v7090_v34 = vld [vmem:[%s8280_s15 + $0x1f4] ss:$8 sps:$4 sm:$0xff]   ;;  %v7093_v36 = vld [vmem:[%s8280_s15 + $0x1f0] ss:$8 sps:$4 sm:$0xff]  }
  0x21   : > { %4820 = vmatprep.subr.bf16.mxu1 %v7060_v14  ;;  %v8210_v37 = vmov 1966171168   ;;  %v7094_v40 = vld [vmem:[%s8280_s15 + $0xe4] ss:$8 sps:$4 sm:$0xff]   ;;  %v7098_v42 = vld [vmem:[%s8280_s15 + $0xe0] ss:$8 sps:$4 sm:$0xff]  }
  0x22   : > { %v1024_v38 = vunpack.c.l.s4 %v8210_v37  ;;  %v7096_v41 = vld [vmem:[%s8280_s15 + $0x1e4] ss:$8 sps:$4 sm:$0xff]   ;;  %v8322_v44 = vshrl.u32 %v1026_v39, 7  ;;  %v7099_v45 = vld [vmem:[%s8280_s15 + $0x1e0] ss:$8 sps:$4 sm:$0xff]   ;;  %p7022_p6 = scmp.eq.s32.totalorder %s8266_s28, 7 }
  0x23   : > { %4780 = vmatpush1.bf16.msra.mxu0 %v7062_v15  ;;  %v7100_v46 = vld [vmem:[%s8280_s15 + $0xd4] ss:$8 sps:$4 sm:$0xff]   ;;  %v7104_v48 = vld [vmem:[%s8280_s15 + $0xd0] ss:$8 sps:$4 sm:$0xff]   ;;  %v7106_v51 = vld [vmem:[%s8280_s15 + $0xc4] ss:$8 sps:$4 sm:$0xff]  }
  0x24   : > { %4821 = vmatpush1.bf16.msra.mxu1 %v7063_v16  ;;  %4781 = vmatprep.subr.bf16.mxu0 %v7064_v17  ;;  %v1025_v43 = vunpack.c.0.s8 %v1024_v38  ;;  %v7102_v47 = vld [vmem:[%s8280_s15 + $0x1d4] ss:$8 sps:$4 sm:$0xff]   ;;  %v7105_v49 = vld [vmem:[%s8280_s15 + $0x1d0] ss:$8 sps:$4 sm:$0xff]   ;;  %v7108_v52 = vld [vmem:[%s8280_s15 + $0x1c4] ss:$8 sps:$4 sm:$0xff]  }
  0x25   : > { %4822 = vmatprep.subr.bf16.mxu1 %v7066_v18  ;;  %v322_v53 = vld [vmem:[%s8275_s11] sm:$0xff]  ;;  %v7112_v57 = vld [vmem:[%s8280_s15 + $0xb4] ss:$8 sps:$4 sm:$0xff]   ;;  %v7116_v60 = vld [vmem:[%s8280_s15 + $0xb0] ss:$8 sps:$4 sm:$0xff]   ;;  %s8213_s16 = smov [#allocation5]  }
  0x26   : > { %v8330_v50 = vsub.s32 %v1025_v43, %v8322_v44  ;;  %v7110_v54 = vld [vmem:[%s8280_s15 + $0xc0] ss:$8 sps:$4 sm:$0xff]   ;;  %v7114_v58 = vld [vmem:[%s8280_s15 + $0x1b4] ss:$8 sps:$4 sm:$0xff]   ;;  %v7117_v62 = vld [vmem:[%s8280_s15 + $0x1b0] ss:$8 sps:$4 sm:$0xff]   ;;  %v1022_v2 = vcombine.high %v322_v53, %v322_v53 }
  0x27   : > { %4782 = vmatpush1.bf16.msra.mxu0 %v7068_v19  ;;  %v7111_v56 = vld [vmem:[%s8280_s15 + $0x1c0] ss:$8 sps:$4 sm:$0xff]   ;;  %v7118_v63 = vld [vmem:[%s8280_s15 + $0xa4] ss:$8 sps:$4 sm:$0xff]   ;;  %v7124_v5 = vld [vmem:[%s8280_s15 + $0x94] ss:$8 sps:$4 sm:$0xff]  }
  0x28   : > { %4823 = vmatpush1.bf16.msra.mxu1 %v7069_v20  ;;  %4783 = vmatprep.subr.bf16.mxu0 %v7070_v21  ;;  %v1029_v55 = vrot.slane %v322_v53, %v8330_v50  ;;  %v7120_v0 = vld [vmem:[%s8280_s15 + $0x1a4] ss:$8 sps:$4 sm:$0xff]   ;;  %v7122_v3 = vld [vmem:[%s8280_s15 + $0xa0] ss:$8 sps:$4 sm:$0xff]   ;;  %v7126_v6 = vld [vmem:[%s8280_s15 + $0x194] ss:$8 sps:$4 sm:$0xff]   ;;  %v8350_v7 = vrot.slane %v1022_v2, %v8330_v50 }
  0x29   : > { %4824 = vmatprep.subr.bf16.mxu1 %v7072_v22  ;;  %v7123_v4 = vld [vmem:[%s8280_s15 + $0x1a0] ss:$8 sps:$4 sm:$0xff]   ;;  %v7128_v8 = vld [vmem:[%s8280_s15 + $0x90] ss:$8 sps:$4 sm:$0xff]   ;;  %v7130_v10 = vld [vmem:[%s8280_s15 + $0x84] ss:$8 sps:$4 sm:$0xff]  }
  0x2a   : > { %v1037_v59 = vcombine.high %v1029_v55, %v1029_v55  ;;  %v7129_v9 = vld [vmem:[%s8280_s15 + $0x190] ss:$8 sps:$4 sm:$0xff]   ;;  %v7132_v11 = vld [vmem:[%s8280_s15 + $0x184] ss:$8 sps:$4 sm:$0xff]   ;;  %v1038_v12 = vcombine.high %v8350_v7, %v8350_v7  ;;  %v7134_v13 = vld [vmem:[%s8280_s15 + $0x80] ss:$8 sps:$4 sm:$0xff]   ;;  %v1045_v14 = vrot.slane %v1029_v55, %v8330_v50 }
  0x2b   : > { %4784 = vmatpush1.bf16.msra.mxu0 %v7074_v23  ;;  %v7135_v15 = vld [vmem:[%s8280_s15 + $0x180] ss:$8 sps:$4 sm:$0xff]   ;;  %v7139_v16 = vld [vmem:[%s8280_s15 + $0x274] ss:$8 sps:$4 sm:$0xff]   ;;  %v7137_v20 = vld [vmem:[%s8280_s15 + $0x270] ss:$8 sps:$4 sm:$0xff]  }
  0x2c   : > { %4825 = vmatpush1.bf16.msra.mxu1 %v7075_v24  ;;  %4785 = vmatprep.subr.bf16.mxu0 %v7076_v25  ;;  %v1059_v61 = vrot.slane %v1037_v59, %v8330_v50  ;;  %v7142_v17 = vld [vmem:[%s8280_s15 + $0x374] ss:$8 sps:$4 sm:$0xff]   ;;  %v1066_v18 = vrot.slane %v1038_v12, %v8330_v50  ;;  %v1067_v19 = vcombine.high %v1045_v14, %v1045_v14  ;;  %v7140_v21 = vld [vmem:[%s8280_s15 + $0x370] ss:$8 sps:$4 sm:$0xff]   ;;  %v7145_v22 = vld [vmem:[%s8280_s15 + $0x264] ss:$8 sps:$4 sm:$0xff]  }
  0x2d   : > { %4826 = vmatprep.subr.bf16.mxu1 %v7078_v26  ;;  %v7148_v23 = vld [vmem:[%s8280_s15 + $0x364] ss:$8 sps:$4 sm:$0xff]   ;;  %v7143_v25 = vld [vmem:[%s8280_s15 + $0x260] ss:$8 sps:$4 sm:$0xff]   ;;  %v7161_v37 = vld [vmem:[%s8280_s15 + $0x230] ss:$8 sps:$4 sm:$0xff]  }
  0x2e   : > { %v1069_v1 = vcombine.high %v1059_v61, %v1059_v61  ;;  %4805 = vmatprep.mubr.bf16.mxu0 %v1059_v61  ;;  %v1070_v24 = vcombine.high %v1066_v18, %v1066_v18  ;;  %v7146_v26 = vld [vmem:[%s8280_s15 + $0x360] ss:$8 sps:$4 sm:$0xff]   ;;  %v7164_v38 = vld [vmem:[%s8280_s15 + $0x330] ss:$8 sps:$4 sm:$0xff]   ;;  %v7169_v39 = vld [vmem:[%s8280_s15 + $0x224] ss:$8 sps:$4 sm:$0xff]  }
  0x2f   : > { %4786 = vmatpush1.bf16.msra.mxu0 %v7080_v27  ;;  %v7151_v27 = vld [vmem:[%s8280_s15 + $0x254] ss:$8 sps:$4 sm:$0xff]   ;;  %v7185_v55 = vld [vmem:[%s8280_s15 + $0x2f0] ss:$8 sps:$4 sm:$0xff]   ;;  %v7191_v59 = vld [vmem:[%s8280_s15 + $0x2e0] ss:$8 sps:$4 sm:$0xff]  }
  0x30   : > { %4827 = vmatpush1.bf16.msra.mxu1 %v7081_v28  ;;  %4787 = vmatprep.subr.bf16.mxu0 %v7082_v29  ;;  %v7154_v28 = vld [vmem:[%s8280_s15 + $0x354] ss:$8 sps:$4 sm:$0xff]   ;;  %v7149_v29 = vld [vmem:[%s8280_s15 + $0x250] ss:$8 sps:$4 sm:$0xff]   ;;  %v7208_v2 = vld [vmem:[%s8280_s15 + $0x3c4] ss:$8 sps:$4 sm:$0xff]  }
  0x31   : > { %4828 = vmatprep.subr.bf16.mxu1 %v7084_v30  ;;  %4846 = vmatprep.mubr.bf16.mxu1 %v1069_v1  ;;  %v7152_v30 = vld [vmem:[%s8280_s15 + $0x350] ss:$8 sps:$4 sm:$0xff]   ;;  %v7175_v43 = vld [vmem:[%s8280_s15 + $0x214] ss:$8 sps:$4 sm:$0xff]   ;;  %v7205_v1 = vld [vmem:[%s8280_s15 + $0x2c4] ss:$8 sps:$4 sm:$0xff]  }
  0x32   : > { %v7187_v53 = vld [vmem:[%s8280_s15 + $0x2f4] ss:$8 sps:$4 sm:$0xff]   ;;  %v7215_v12 = vld [vmem:[%s8280_s15 + $0x2a0] ss:$8 sps:$4 sm:$0xff]   ;;  %s6179_s17 = sshll.u32 %s8213_s16, 4  ;;  %s6180_s17 = int_to_ptr.vmem [resolvable:$true] %s6179_s17 }
  0x33   : > { %4788 = vmatpush1.bf16.msra.mxu0 %v7086_v31  ;;  %v7157_v31 = vld [vmem:[%s8280_s15 + $0x244] ss:$8 sps:$4 sm:$0xff]   ;;  %v7199_v61 = vld [vmem:[%s8280_s15 + $0x2d4] ss:$8 sps:$4 sm:$0xff]   ;;  %s8145_s18 = scalar_lea.vmem %s6180_s17, 64  ;;  %p8152_p10 = scmp.lt.s32.totalorder %s6180_s17, %s6180_s17 }
  0x34   : > { %4829 = vmatpush1.bf16.msra.mxu1 %v7087_v32  ;;  %4789 = vmatprep.subr.bf16.mxu0 %v7088_v33  ;;  %v7160_v32 = vld [vmem:[%s8280_s15 + $0x344] ss:$8 sps:$4 sm:$0xff]   ;;  %v7155_v33 = vld [vmem:[%s8280_s15 + $0x240] ss:$8 sps:$4 sm:$0xff]   ;;  %p8146_p7 = scmp.ne.s32.totalorder %s6180_s17, %s8145_s18  ;;  %p8153_p11 = scmp.lt.s32.totalorder %s8145_s18, %s8145_s18 }
  0x35   : > { %4830 = vmatprep.subr.bf16.mxu1 %v7090_v34  ;;  %v7158_v34 = vld [vmem:[%s8280_s15 + $0x340] ss:$8 sps:$4 sm:$0xff]  }
  0x36   : > { %p8147_p8 = pnand %p8146_p7, %p7022_p6  ;;  %p8154_p12 = por %p8153_p11, %p8152_p10 }
  0x37   : > { %4790 = vmatpush2.bf16.msra.mxu0 %v7092_v35  ;;  %v7163_v35 = vld [vmem:[%s8280_s15 + $0x234] ss:$8 sps:$4 sm:$0xff]  }
  0x38   : > { %4831 = vmatpush2.bf16.msra.mxu1 %v7093_v36  ;;  %4791 = vmatprep.subr.bf16.mxu0 %v7094_v40  ;;  %v7166_v36 = vld [vmem:[%s8280_s15 + $0x334] ss:$8 sps:$4 sm:$0xff]   ;;  %v7172_v40 = vld [vmem:[%s8280_s15 + $0x324] ss:$8 sps:$4 sm:$0xff]   ;;  %p8148_p9 = pneg %p8147_p8 }
  0x39   : > { %4832 = vmatprep.subr.bf16.mxu1 %v7096_v41  ;;  %v7167_v41 = vld [vmem:[%s8280_s15 + $0x220] ss:$8 sps:$4 sm:$0xff]  }
  0x3a   : > { %p8155_p13 = pnand %p8154_p12, %p8148_p9 }
  0x3b   : > { %4792 = vmatpush2.bf16.msra.mxu0 %v7098_v42  ;;  %v7170_v42 = vld [vmem:[%s8280_s15 + $0x320] ss:$8 sps:$4 sm:$0xff]  }
  0x3c   : > { %4833 = vmatpush2.bf16.msra.mxu1 %v7099_v45  ;;  %4793 = vmatprep.subr.bf16.mxu0 %v7100_v46  ;;  %v7178_v45 = vld [vmem:[%s8280_s15 + $0x314] ss:$8 sps:$4 sm:$0xff]   ;;  %v7173_v46 = vld [vmem:[%s8280_s15 + $0x210] ss:$8 sps:$4 sm:$0xff]  }
  0x3d   : > { %4834 = vmatprep.subr.bf16.mxu1 %v7102_v47  ;;  %v7176_v47 = vld [vmem:[%s8280_s15 + $0x310] ss:$8 sps:$4 sm:$0xff]  }
  0x3f   : > { %4794 = vmatpush2.bf16.msra.mxu0 %v7104_v48  ;;  %v7181_v48 = vld [vmem:[%s8280_s15 + $0x204] ss:$8 sps:$4 sm:$0xff]  }
  0x40   : > { %4835 = vmatpush2.bf16.msra.mxu1 %v7105_v49  ;;  %4795 = vmatprep.subr.bf16.mxu0 %v7106_v51  ;;  %v7184_v49 = vld [vmem:[%s8280_s15 + $0x304] ss:$8 sps:$4 sm:$0xff]   ;;  %v7179_v51 = vld [vmem:[%s8280_s15 + $0x200] ss:$8 sps:$4 sm:$0xff]  }
  0x41   : > { %4836 = vmatprep.subr.bf16.mxu1 %v7108_v52  ;;  %v7182_v52 = vld [vmem:[%s8280_s15 + $0x300] ss:$8 sps:$4 sm:$0xff]  }
  0x43   : > { %4796 = vmatpush2.bf16.msra.mxu0 %v7110_v54  ;;  %v7190_v54 = vld [vmem:[%s8280_s15 + $0x3f4] ss:$8 sps:$4 sm:$0xff]  }
  0x44   : > { %4837 = vmatpush2.bf16.msra.mxu1 %v7111_v56  ;;  %4797 = vmatprep.subr.bf16.mxu0 %v7112_v57  ;;  %v7188_v56 = vld [vmem:[%s8280_s15 + $0x3f0] ss:$8 sps:$4 sm:$0xff]   ;;  %v7193_v57 = vld [vmem:[%s8280_s15 + $0x2e4] ss:$8 sps:$4 sm:$0xff]  }
  0x45   : > { %4838 = vmatprep.subr.bf16.mxu1 %v7114_v58  ;;  %v7196_v58 = vld [vmem:[%s8280_s15 + $0x3e4] ss:$8 sps:$4 sm:$0xff]  }
  0x47   : > { %4798 = vmatpush2.bf16.msra.mxu0 %v7116_v60  ;;  %v7194_v60 = vld [vmem:[%s8280_s15 + $0x3e0] ss:$8 sps:$4 sm:$0xff]  }
  0x48   : > { %4839 = vmatpush2.bf16.msra.mxu1 %v7117_v62  ;;  %4799 = vmatprep.subr.bf16.mxu0 %v7118_v63  ;;  %v7202_v62 = vld [vmem:[%s8280_s15 + $0x3d4] ss:$8 sps:$4 sm:$0xff]   ;;  %v7197_v63 = vld [vmem:[%s8280_s15 + $0x2d0] ss:$8 sps:$4 sm:$0xff]  }
  0x49   : > { %4840 = vmatprep.subr.bf16.mxu1 %v7120_v0  ;;  %v7200_v0 = vld [vmem:[%s8280_s15 + $0x3d0] ss:$8 sps:$4 sm:$0xff]  }
  0x4b   : > { %4800 = vmatpush2.bf16.msra.mxu0 %v7122_v3  ;;  %v7203_v3 = vld [vmem:[%s8280_s15 + $0x2c0] ss:$8 sps:$4 sm:$0xff]  }
  0x4c   : > { %4841 = vmatpush2.bf16.msra.mxu1 %v7123_v4  ;;  %4801 = vmatprep.subr.bf16.mxu0 %v7124_v5  ;;  %v7206_v4 = vld [vmem:[%s8280_s15 + $0x3c0] ss:$8 sps:$4 sm:$0xff]   ;;  %v7211_v5 = vld [vmem:[%s8280_s15 + $0x2b4] ss:$8 sps:$4 sm:$0xff]  }
  0x4d   : > { %4842 = vmatprep.subr.bf16.mxu1 %v7126_v6  ;;  %v7214_v6 = vld [vmem:[%s8280_s15 + $0x3b4] ss:$8 sps:$4 sm:$0xff]  }
  0x4f   : > { %4802 = vmatpush2.bf16.msra.mxu0 %v7128_v8  ;;  %v7209_v8 = vld [vmem:[%s8280_s15 + $0x2b0] ss:$8 sps:$4 sm:$0xff]  }
  0x50   : > { %4843 = vmatpush2.bf16.msra.mxu1 %v7129_v9  ;;  %4803 = vmatprep.subr.bf16.mxu0 %v7130_v10  ;;  %v7212_v9 = vld [vmem:[%s8280_s15 + $0x3b0] ss:$8 sps:$4 sm:$0xff]   ;;  %v7217_v10 = vld [vmem:[%s8280_s15 + $0x2a4] ss:$8 sps:$4 sm:$0xff]  }
  0x51   : > { %4844 = vmatprep.subr.bf16.mxu1 %v7132_v11  ;;  %v7220_v11 = vld [vmem:[%s8280_s15 + $0x3a4] ss:$8 sps:$4 sm:$0xff]  }
  0x53   : > { %4804 = vmatpush2.bf16.msra.mxu0 %v7134_v13  ;;  %v7218_v13 = vld [vmem:[%s8280_s15 + $0x3a0] ss:$8 sps:$4 sm:$0xff]  }
  0x54   : > { %4845 = vmatpush2.bf16.msra.mxu1 %v7135_v15  ;;  %4855 = vmatprep.subr.bf16.mxu0 %v7139_v16  ;;  %v7226_v15 = vld [vmem:[%s8280_s15 + $0x394] ss:$8 sps:$4 sm:$0xff]   ;;  %v7221_v16 = vld [vmem:[%s8280_s15 + $0x290] ss:$8 sps:$4 sm:$0xff]  }
  0x55   : > { %4896 = vmatprep.subr.bf16.mxu1 %v7142_v17  ;;  %v7224_v17 = vld [vmem:[%s8280_s15 + $0x390] ss:$8 sps:$4 sm:$0xff]  }
  0x56   : > { %4806 = vmatmul.mubr.bf16.vlgmr.msra.gmra.mxu0 %v1045_v14  ;;  %v7223_v14 = vld [vmem:[%s8280_s15 + $0x294] ss:$8 sps:$4 sm:$0xff]  }
  0x57   : > { %4847 = vmatmul.mubr.bf16.vlgmr.msra.gmra.mxu1 %v1067_v19  ;;  %4856 = vmatpush1.bf16.msra.mxu0 %v7137_v20  ;;  %v7232_v19 = vld [vmem:[%s8280_s15 + $0x384] ss:$8 sps:$4 sm:$0xff]   ;;  %v7227_v20 = vld [vmem:[%s8280_s15 + $0x280] ss:$8 sps:$4 sm:$0xff]  }
  0x58   : > { %4897 = vmatpush1.bf16.msra.mxu1 %v7140_v21  ;;  %4857 = vmatprep.subr.bf16.mxu0 %v7145_v22  ;;  %v1052_v21 = vrot.slane %v8350_v7, %v8330_v50  ;;  %v7230_v22 = vld [vmem:[%s8280_s15 + $0x380] ss:$8 sps:$4 sm:$0xff]   ;;  %v7241_v7 = vld [vmem:[%s8280_s15 + $0x464] ss:$8 sps:$4 sm:$0xff]  }
  0x59   : > { %4898 = vmatprep.subr.bf16.mxu1 %v7148_v23  ;;  %4887 = vmatprep.mubr.bf16.mxu0 %v1066_v18  ;;  %v7229_v18 = vld [vmem:[%s8280_s15 + $0x284] ss:$8 sps:$4 sm:$0xff]   ;;  %v7235_v23 = vld [vmem:[%s8280_s15 + $0x474] ss:$8 sps:$4 sm:$0xff]  }
  0x5a   : > { %4928 = vmatprep.mubr.bf16.mxu1 %v1070_v24  ;;  %v7238_v24 = vld [vmem:[%s8280_s15 + $0x574] ss:$8 sps:$4 sm:$0xff]  }
  0x5b   : > { %4858 = vmatpush1.bf16.msra.mxu0 %v7143_v25  ;;  %v7233_v25 = vld [vmem:[%s8280_s15 + $0x470] ss:$8 sps:$4 sm:$0xff]  }
  0x5c   : > { %4899 = vmatpush1.bf16.msra.mxu1 %v7146_v26  ;;  %4859 = vmatprep.subr.bf16.mxu0 %v7151_v27  ;;  %v1068_v26 = vcombine.high %v1052_v21, %v1052_v21  ;;  %v7236_v27 = vld [vmem:[%s8280_s15 + $0x570] ss:$8 sps:$4 sm:$0xff]  }
  0x5d   : > { %4900 = vmatprep.subr.bf16.mxu1 %v7154_v28  ;;  %v8433_v28 = vld [vmem:[%s8275_s11 + $0x8] sm:$0xff] }
  0x5f   : > { %4860 = vmatpush1.bf16.msra.mxu0 %v7149_v29  ;;  %v7244_v29 = vld [vmem:[%s8280_s15 + $0x564] ss:$8 sps:$4 sm:$0xff]  }
  0x60   : > { %4901 = vmatpush1.bf16.msra.mxu1 %v7152_v30  ;;  %4861 = vmatprep.subr.bf16.mxu0 %v7157_v31  ;;  %v8439_v30 = vrot.slane %v8433_v28, %v8330_v50 }
  0x61   : > { %4902 = vmatprep.subr.bf16.mxu1 %v7160_v32  ;;  %v7239_v32 = vld [vmem:[%s8280_s15 + $0x460] ss:$8 sps:$4 sm:$0xff]  }
  0x62   : > { %v1086_v31 = vcombine.high %v8439_v30, %v8439_v30 }
  0x63   : > { %4862 = vmatpush1.bf16.msra.mxu0 %v7155_v33  ;;  %v7242_v33 = vld [vmem:[%s8280_s15 + $0x560] ss:$8 sps:$4 sm:$0xff]  }
  0x64   : > { %4903 = vmatpush1.bf16.msra.mxu1 %v7158_v34  ;;  %4863 = vmatprep.subr.bf16.mxu0 %v7163_v35  ;;  %v7247_v34 = vld [vmem:[%s8280_s15 + $0x454] ss:$8 sps:$4 sm:$0xff]  }
  0x65   : > { %4904 = vmatprep.subr.bf16.mxu1 %v7166_v36  ;;  %v7250_v35 = vld [vmem:[%s8280_s15 + $0x554] ss:$8 sps:$4 sm:$0xff]   ;;  %v1108_v36 = vrot.slane %v1086_v31, %v8330_v50 }
  0x67   : > { %4864 = vmatpush1.bf16.msra.mxu0 %v7161_v37  ;;  %v1118_v37 = vcombine.high %v1108_v36, %v1108_v36 }
  0x68   : > { %4905 = vmatpush1.bf16.msra.mxu1 %v7164_v38  ;;  %4865 = vmatprep.subr.bf16.mxu0 %v7169_v39  ;;  %v7245_v38 = vld [vmem:[%s8280_s15 + $0x450] ss:$8 sps:$4 sm:$0xff]  }
  0x69   : > { %4906 = vmatprep.subr.bf16.mxu1 %v7172_v40  ;;  %v7248_v39 = vld [vmem:[%s8280_s15 + $0x550] ss:$8 sps:$4 sm:$0xff]   ;;  %v7253_v40 = vld [vmem:[%s8280_s15 + $0x444] ss:$8 sps:$4 sm:$0xff]  }
  0x6b   : > { %4866 = vmatpush1.bf16.msra.mxu0 %v7167_v41  ;;  %v7256_v41 = vld [vmem:[%s8280_s15 + $0x544] ss:$8 sps:$4 sm:$0xff]  }
  0x6c   : > { %4907 = vmatpush1.bf16.msra.mxu1 %v7170_v42  ;;  %4867 = vmatprep.subr.bf16.mxu0 %v7175_v43  ;;  %v7251_v42 = vld [vmem:[%s8280_s15 + $0x440] ss:$8 sps:$4 sm:$0xff]  }
  0x6d   : > { %4908 = vmatprep.subr.bf16.mxu1 %v7178_v45  ;;  %v7254_v43 = vld [vmem:[%s8280_s15 + $0x540] ss:$8 sps:$4 sm:$0xff]   ;;  %v7259_v45 = vld [vmem:[%s8280_s15 + $0x434] ss:$8 sps:$4 sm:$0xff]  }
  0x6f   : > { %4868 = vmatpush1.bf16.msra.mxu0 %v7173_v46  ;;  %v7262_v46 = vld [vmem:[%s8280_s15 + $0x534] ss:$8 sps:$4 sm:$0xff]  }
  0x70   : > { %4909 = vmatpush1.bf16.msra.mxu1 %v7176_v47  ;;  %4869 = vmatprep.subr.bf16.mxu0 %v7181_v48  ;;  %v7257_v47 = vld [vmem:[%s8280_s15 + $0x430] ss:$8 sps:$4 sm:$0xff]  }
  0x71   : > { %4910 = vmatprep.subr.bf16.mxu1 %v7184_v49  ;;  %v7260_v48 = vld [vmem:[%s8280_s15 + $0x530] ss:$8 sps:$4 sm:$0xff]   ;;  %v7265_v49 = vld [vmem:[%s8280_s15 + $0x424] ss:$8 sps:$4 sm:$0xff]  }
  0x73   : > { %4870 = vmatpush1.bf16.msra.mxu0 %v7179_v51  ;;  %v7268_v51 = vld [vmem:[%s8280_s15 + $0x524] ss:$8 sps:$4 sm:$0xff]  }
  0x74   : > { %4911 = vmatpush1.bf16.msra.mxu1 %v7182_v52  ;;  %4871 = vmatprep.subr.bf16.mxu0 %v7187_v53  ;;  %v7263_v52 = vld [vmem:[%s8280_s15 + $0x420] ss:$8 sps:$4 sm:$0xff]  }
  0x75   : > { %4912 = vmatprep.subr.bf16.mxu1 %v7190_v54  ;;  %v7266_v53 = vld [vmem:[%s8280_s15 + $0x520] ss:$8 sps:$4 sm:$0xff]   ;;  %v7271_v54 = vld [vmem:[%s8280_s15 + $0x414] ss:$8 sps:$4 sm:$0xff]  }
  0x77   : > { %4872 = vmatpush2.bf16.msra.mxu0 %v7185_v55  ;;  %v7274_v55 = vld [vmem:[%s8280_s15 + $0x514] ss:$8 sps:$4 sm:$0xff]  }
  0x78   : > { %4913 = vmatpush2.bf16.msra.mxu1 %v7188_v56  ;;  %4873 = vmatprep.subr.bf16.mxu0 %v7193_v57  ;;  %v7269_v56 = vld [vmem:[%s8280_s15 + $0x410] ss:$8 sps:$4 sm:$0xff]  }
  0x79   : > { %4914 = vmatprep.subr.bf16.mxu1 %v7196_v58  ;;  %v7272_v57 = vld [vmem:[%s8280_s15 + $0x510] ss:$8 sps:$4 sm:$0xff]   ;;  %v7277_v58 = vld [vmem:[%s8280_s15 + $0x404] ss:$8 sps:$4 sm:$0xff]  }
  0x7b   : > { %4874 = vmatpush2.bf16.msra.mxu0 %v7191_v59  ;;  %v7280_v59 = vld [vmem:[%s8280_s15 + $0x504] ss:$8 sps:$4 sm:$0xff]  }
  0x7c   : > { %4915 = vmatpush2.bf16.msra.mxu1 %v7194_v60  ;;  %4875 = vmatprep.subr.bf16.mxu0 %v7199_v61  ;;  %v7275_v60 = vld [vmem:[%s8280_s15 + $0x400] ss:$8 sps:$4 sm:$0xff]  }
  0x7d   : > { %4916 = vmatprep.subr.bf16.mxu1 %v7202_v62  ;;  %v7278_v61 = vld [vmem:[%s8280_s15 + $0x500] ss:$8 sps:$4 sm:$0xff]   ;;  %v7283_v62 = vld [vmem:[%s8280_s15 + $0x4f4] ss:$8 sps:$4 sm:$0xff]  }
  0x7f   : > { %4876 = vmatpush2.bf16.msra.mxu0 %v7197_v63  ;;  %v7286_v63 = vld [vmem:[%s8280_s15 + $0x5f4] ss:$8 sps:$4 sm:$0xff]  }
  0x80   : > { %4917 = vmatpush2.bf16.msra.mxu1 %v7200_v0  ;;  %4877 = vmatprep.subr.bf16.mxu0 %v7205_v1  ;;  %v7281_v0 = vld [vmem:[%s8280_s15 + $0x4f0] ss:$8 sps:$4 sm:$0xff]  }
  0x81   : > { %4918 = vmatprep.subr.bf16.mxu1 %v7208_v2  ;;  %v7284_v1 = vld [vmem:[%s8280_s15 + $0x5f0] ss:$8 sps:$4 sm:$0xff]   ;;  %v7289_v2 = vld [vmem:[%s8280_s15 + $0x4e4] ss:$8 sps:$4 sm:$0xff]  }
  0x83   : > { %4878 = vmatpush2.bf16.msra.mxu0 %v7203_v3  ;;  %v7292_v3 = vld [vmem:[%s8280_s15 + $0x5e4] ss:$8 sps:$4 sm:$0xff]  }
  0x84   : > { %4919 = vmatpush2.bf16.msra.mxu1 %v7206_v4  ;;  %4879 = vmatprep.subr.bf16.mxu0 %v7211_v5  ;;  %v7287_v4 = vld [vmem:[%s8280_s15 + $0x4e0] ss:$8 sps:$4 sm:$0xff]  }
  0x85   : > { %4920 = vmatprep.subr.bf16.mxu1 %v7214_v6  ;;  %v7290_v5 = vld [vmem:[%s8280_s15 + $0x5e0] ss:$8 sps:$4 sm:$0xff]   ;;  %v7295_v6 = vld [vmem:[%s8280_s15 + $0x4d4] ss:$8 sps:$4 sm:$0xff]  }
  0x87   : > { %4880 = vmatpush2.bf16.msra.mxu0 %v7209_v8  ;;  %v7298_v8 = vld [vmem:[%s8280_s15 + $0x5d4] ss:$8 sps:$4 sm:$0xff]  }
  0x88   : > { %4921 = vmatpush2.bf16.msra.mxu1 %v7212_v9  ;;  %4881 = vmatprep.subr.bf16.mxu0 %v7217_v10  ;;  %v7293_v9 = vld [vmem:[%s8280_s15 + $0x4d0] ss:$8 sps:$4 sm:$0xff]  }
  0x89   : > { %4922 = vmatprep.subr.bf16.mxu1 %v7220_v11  ;;  %v7296_v10 = vld [vmem:[%s8280_s15 + $0x5d0] ss:$8 sps:$4 sm:$0xff]   ;;  %v7301_v11 = vld [vmem:[%s8280_s15 + $0x4c4] ss:$8 sps:$4 sm:$0xff]  }
  0x8b   : > { %4882 = vmatpush2.bf16.msra.mxu0 %v7215_v12  ;;  %v7304_v12 = vld [vmem:[%s8280_s15 + $0x5c4] ss:$8 sps:$4 sm:$0xff]  }
  0x8c   : > { %4923 = vmatpush2.bf16.msra.mxu1 %v7218_v13  ;;  %4883 = vmatprep.subr.bf16.mxu0 %v7223_v14  ;;  %v7299_v13 = vld [vmem:[%s8280_s15 + $0x4c0] ss:$8 sps:$4 sm:$0xff]  }
  0x8d   : > { %4924 = vmatprep.subr.bf16.mxu1 %v7226_v15  ;;  %v7302_v14 = vld [vmem:[%s8280_s15 + $0x5c0] ss:$8 sps:$4 sm:$0xff]   ;;  %v7307_v15 = vld [vmem:[%s8280_s15 + $0x4b4] ss:$8 sps:$4 sm:$0xff]  }
  0x8f   : > { %4884 = vmatpush2.bf16.msra.mxu0 %v7221_v16  ;;  %v7310_v16 = vld [vmem:[%s8280_s15 + $0x5b4] ss:$8 sps:$4 sm:$0xff]  }
  0x90   : > { %4925 = vmatpush2.bf16.msra.mxu1 %v7224_v17  ;;  %4885 = vmatprep.subr.bf16.mxu0 %v7229_v18  ;;  %v7305_v17 = vld [vmem:[%s8280_s15 + $0x4b0] ss:$8 sps:$4 sm:$0xff]  }
  0x91   : > { %4926 = vmatprep.subr.bf16.mxu1 %v7232_v19  ;;  %v7308_v18 = vld [vmem:[%s8280_s15 + $0x5b0] ss:$8 sps:$4 sm:$0xff]   ;;  %v7313_v19 = vld [vmem:[%s8280_s15 + $0x4a4] ss:$8 sps:$4 sm:$0xff]  }
  0x93   : > { %4886 = vmatpush2.bf16.msra.mxu0 %v7227_v20  ;;  %v7316_v20 = vld [vmem:[%s8280_s15 + $0x5a4] ss:$8 sps:$4 sm:$0xff]  }
  0x94   : > { %4927 = vmatpush2.bf16.msra.mxu1 %v7230_v22  ;;  %4937 = vmatprep.subr.bf16.mxu0 %v7235_v23  ;;  %v7311_v22 = vld [vmem:[%s8280_s15 + $0x4a0] ss:$8 sps:$4 sm:$0xff]  }
  0x95   : > { %4978 = vmatprep.subr.bf16.mxu1 %v7238_v24  ;;  %v7314_v23 = vld [vmem:[%s8280_s15 + $0x5a0] ss:$8 sps:$4 sm:$0xff]   ;;  %v7319_v24 = vld [vmem:[%s8280_s15 + $0x494] ss:$8 sps:$4 sm:$0xff]  }
  0x96   : > { %4888 = vmatmul.mubr.bf16.vlgmr.msra.gmra.mxu0 %v1052_v21  ;;  %v1071_v21 = vcombine.high %v8433_v28, %v8433_v28  ;;  %v7320_v28 = vld [vmem:[%s8280_s15 + $0x590] ss:$8 sps:$4 sm:$0xff]  }
  0x97   : > { %4929 = vmatmul.mubr.bf16.vlgmr.msra.gmra.mxu1 %v1068_v26  ;;  %4938 = vmatpush1.bf16.msra.mxu0 %v7233_v25  ;;  %v7322_v25 = vld [vmem:[%s8280_s15 + $0x594] ss:$8 sps:$4 sm:$0xff]  }
  0x98   : > { %4979 = vmatpush1.bf16.msra.mxu1 %v7236_v27  ;;  %4939 = vmatprep.subr.bf16.mxu0 %v7241_v7  ;;  %v8499_v26 = vrot.slane %v1071_v21, %v8330_v50  ;;  %v7317_v27 = vld [vmem:[%s8280_s15 + $0x490] ss:$8 sps:$4 sm:$0xff]   ;;  %v7325_v7 = vld [vmem:[%s8280_s15 + $0x484] ss:$8 sps:$4 sm:$0xff]  }
  0x99   : > { %4980 = vmatprep.subr.bf16.mxu1 %v7244_v29  ;;  %4969 = vmatprep.mubr.bf16.mxu0 %v1108_v36  ;;  %v7328_v29 = vld [vmem:[%s8280_s15 + $0x584] ss:$8 sps:$4 sm:$0xff]   ;;  %v7334_v36 = vld [vmem:[%s8280_s15 + $0x774] ss:$8 sps:$4 sm:$0xff]  }
  0x9a   : > { %5010 = vmatprep.mubr.bf16.mxu1 %v1118_v37  ;;  %v1087_v31 = vcombine.high %v8499_v26, %v8499_v26  ;;  %v7400_v21 = vld [vmem:[%s8280_s15 + $0x7c4] ss:$8 sps:$4 sm:$0xff]  }
  0x9b   : > { %4940 = vmatpush1.bf16.msra.mxu0 %v7239_v32  ;;  %v1094_v32 = vrot.slane %v8439_v30, %v8330_v50  ;;  %v7332_v30 = vld [vmem:[%s8280_s15 + $0x770] ss:$8 sps:$4 sm:$0xff]  }
  0x9c   : > { %4981 = vmatpush1.bf16.msra.mxu1 %v7242_v33  ;;  %4941 = vmatprep.subr.bf16.mxu0 %v7247_v34  ;;  %v7323_v33 = vld [vmem:[%s8280_s15 + $0x480] ss:$8 sps:$4 sm:$0xff]   ;;  %v1115_v37 = vrot.slane %v1087_v31, %v8330_v50 }
  0x9d   : > { %4982 = vmatprep.subr.bf16.mxu1 %v7250_v35  ;;  %v7326_v34 = vld [vmem:[%s8280_s15 + $0x580] ss:$8 sps:$4 sm:$0xff]   ;;  %v7331_v35 = vld [vmem:[%s8280_s15 + $0x674] ss:$8 sps:$4 sm:$0xff]  }
  0x9e   : > { %v7407_v31 = vld [vmem:[%s8280_s15 + $0x6a0] ss:$8 sps:$4 sm:$0xff]  }
  0x9f   : > { %4942 = vmatpush1.bf16.msra.mxu0 %v7245_v38  ;;  %v1116_v38 = vcombine.high %v1094_v32, %v1094_v32 }
  0xa0   : > { %4983 = vmatpush1.bf16.msra.mxu1 %v7248_v39  ;;  %4943 = vmatprep.subr.bf16.mxu0 %v7253_v40  ;;  %v7329_v39 = vld [vmem:[%s8280_s15 + $0x670] ss:$8 sps:$4 sm:$0xff]   ;;  %v7337_v40 = vld [vmem:[%s8280_s15 + $0x664] ss:$8 sps:$4 sm:$0xff]  }
  0xa1   : > { %4984 = vmatprep.subr.bf16.mxu1 %v7256_v41  ;;  %v7340_v41 = vld [vmem:[%s8280_s15 + $0x764] ss:$8 sps:$4 sm:$0xff]  }
  0xa3   : > { %4944 = vmatpush1.bf16.msra.mxu0 %v7251_v42  ;;  %v1119_v42 = vcombine.high %v1115_v37, %v1115_v37 }
  0xa4   : > { %4985 = vmatpush1.bf16.msra.mxu1 %v7254_v43  ;;  %4945 = vmatprep.subr.bf16.mxu0 %v7259_v45  ;;  %v7335_v43 = vld [vmem:[%s8280_s15 + $0x660] ss:$8 sps:$4 sm:$0xff]  }
  0xa5   : > { %4986 = vmatprep.subr.bf16.mxu1 %v7262_v46  ;;  %v7338_v45 = vld [vmem:[%s8280_s15 + $0x760] ss:$8 sps:$4 sm:$0xff]   ;;  %v7343_v46 = vld [vmem:[%s8280_s15 + $0x654] ss:$8 sps:$4 sm:$0xff]  }
  0xa7   : > { %4946 = vmatpush1.bf16.msra.mxu0 %v7257_v47  ;;  %v7346_v47 = vld [vmem:[%s8280_s15 + $0x754] ss:$8 sps:$4 sm:$0xff]  }
  0xa8   : > { %4987 = vmatpush1.bf16.msra.mxu1 %v7260_v48  ;;  %4947 = vmatprep.subr.bf16.mxu0 %v7265_v49  ;;  %v7341_v48 = vld [vmem:[%s8280_s15 + $0x650] ss:$8 sps:$4 sm:$0xff]  }
  0xa9   : > { %4988 = vmatprep.subr.bf16.mxu1 %v7268_v51  ;;  %v7344_v49 = vld [vmem:[%s8280_s15 + $0x750] ss:$8 sps:$4 sm:$0xff]   ;;  %v7349_v51 = vld [vmem:[%s8280_s15 + $0x644] ss:$8 sps:$4 sm:$0xff]  }
  0xab   : > { %4948 = vmatpush1.bf16.msra.mxu0 %v7263_v52  ;;  %v7352_v52 = vld [vmem:[%s8280_s15 + $0x744] ss:$8 sps:$4 sm:$0xff]  }
  0xac   : > { %4989 = vmatpush1.bf16.msra.mxu1 %v7266_v53  ;;  %4949 = vmatprep.subr.bf16.mxu0 %v7271_v54  ;;  %v7347_v53 = vld [vmem:[%s8280_s15 + $0x640] ss:$8 sps:$4 sm:$0xff]  }
  0xad   : > { %4990 = vmatprep.subr.bf16.mxu1 %v7274_v55  ;;  %v7350_v54 = vld [vmem:[%s8280_s15 + $0x740] ss:$8 sps:$4 sm:$0xff]   ;;  %v7355_v55 = vld [vmem:[%s8280_s15 + $0x634] ss:$8 sps:$4 sm:$0xff]  }
  0xaf   : > { %4950 = vmatpush1.bf16.msra.mxu0 %v7269_v56  ;;  %v7358_v56 = vld [vmem:[%s8280_s15 + $0x734] ss:$8 sps:$4 sm:$0xff]  }
  0xb0   : > { %4991 = vmatpush1.bf16.msra.mxu1 %v7272_v57  ;;  %4951 = vmatprep.subr.bf16.mxu0 %v7277_v58  ;;  %v7353_v57 = vld [vmem:[%s8280_s15 + $0x630] ss:$8 sps:$4 sm:$0xff]  }
  0xb1   : > { %4992 = vmatprep.subr.bf16.mxu1 %v7280_v59  ;;  %v7356_v58 = vld [vmem:[%s8280_s15 + $0x730] ss:$8 sps:$4 sm:$0xff]   ;;  %v7361_v59 = vld [vmem:[%s8280_s15 + $0x624] ss:$8 sps:$4 sm:$0xff]  }
  0xb3   : > { %4952 = vmatpush1.bf16.msra.mxu0 %v7275_v60  ;;  %v7364_v60 = vld [vmem:[%s8280_s15 + $0x724] ss:$8 sps:$4 sm:$0xff]  }
  0xb4   : > { %4993 = vmatpush1.bf16.msra.mxu1 %v7278_v61  ;;  %4953 = vmatprep.subr.bf16.mxu0 %v7283_v62  ;;  %v7359_v61 = vld [vmem:[%s8280_s15 + $0x620] ss:$8 sps:$4 sm:$0xff]  }
  0xb5   : > { %4994 = vmatprep.subr.bf16.mxu1 %v7286_v63  ;;  %v7362_v62 = vld [vmem:[%s8280_s15 + $0x720] ss:$8 sps:$4 sm:$0xff]   ;;  %v7367_v63 = vld [vmem:[%s8280_s15 + $0x614] ss:$8 sps:$4 sm:$0xff]  }
  0xb7   : > { %4954 = vmatpush2.bf16.msra.mxu0 %v7281_v0  ;;  %v7370_v0 = vld [vmem:[%s8280_s15 + $0x714] ss:$8 sps:$4 sm:$0xff]  }
  0xb8   : > { %4995 = vmatpush2.bf16.msra.mxu1 %v7284_v1  ;;  %4955 = vmatprep.subr.bf16.mxu0 %v7289_v2  ;;  %v7365_v1 = vld [vmem:[%s8280_s15 + $0x610] ss:$8 sps:$4 sm:$0xff]  }
  0xb9   : > { %4996 = vmatprep.subr.bf16.mxu1 %v7292_v3  ;;  %v7368_v2 = vld [vmem:[%s8280_s15 + $0x710] ss:$8 sps:$4 sm:$0xff]   ;;  %v7373_v3 = vld [vmem:[%s8280_s15 + $0x604] ss:$8 sps:$4 sm:$0xff]  }
  0xbb   : > { %4956 = vmatpush2.bf16.msra.mxu0 %v7287_v4  ;;  %v7376_v4 = vld [vmem:[%s8280_s15 + $0x704] ss:$8 sps:$4 sm:$0xff]  }
  0xbc   : > { %4997 = vmatpush2.bf16.msra.mxu1 %v7290_v5  ;;  %4957 = vmatprep.subr.bf16.mxu0 %v7295_v6  ;;  %v7371_v5 = vld [vmem:[%s8280_s15 + $0x600] ss:$8 sps:$4 sm:$0xff]  }
  0xbd   : > { %4998 = vmatprep.subr.bf16.mxu1 %v7298_v8  ;;  %v7374_v6 = vld [vmem:[%s8280_s15 + $0x700] ss:$8 sps:$4 sm:$0xff]   ;;  %v7379_v8 = vld [vmem:[%s8280_s15 + $0x6f4] ss:$8 sps:$4 sm:$0xff]  }
  0xbf   : > { %4958 = vmatpush2.bf16.msra.mxu0 %v7293_v9  ;;  %v7382_v9 = vld [vmem:[%s8280_s15 + $0x7f4] ss:$8 sps:$4 sm:$0xff]  }
  0xc0   : > { %4999 = vmatpush2.bf16.msra.mxu1 %v7296_v10  ;;  %4959 = vmatprep.subr.bf16.mxu0 %v7301_v11  ;;  %v7377_v10 = vld [vmem:[%s8280_s15 + $0x6f0] ss:$8 sps:$4 sm:$0xff]  }
  0xc1   : > { %5000 = vmatprep.subr.bf16.mxu1 %v7304_v12  ;;  %v7380_v11 = vld [vmem:[%s8280_s15 + $0x7f0] ss:$8 sps:$4 sm:$0xff]   ;;  %v7385_v12 = vld [vmem:[%s8280_s15 + $0x6e4] ss:$8 sps:$4 sm:$0xff]  }
  0xc3   : > { %4960 = vmatpush2.bf16.msra.mxu0 %v7299_v13  ;;  %v7388_v13 = vld [vmem:[%s8280_s15 + $0x7e4] ss:$8 sps:$4 sm:$0xff]  }
  0xc4   : > { %5001 = vmatpush2.bf16.msra.mxu1 %v7302_v14  ;;  %4961 = vmatprep.subr.bf16.mxu0 %v7307_v15  ;;  %v7383_v14 = vld [vmem:[%s8280_s15 + $0x6e0] ss:$8 sps:$4 sm:$0xff]  }
  0xc5   : > { %5002 = vmatprep.subr.bf16.mxu1 %v7310_v16  ;;  %v7386_v15 = vld [vmem:[%s8280_s15 + $0x7e0] ss:$8 sps:$4 sm:$0xff]   ;;  %v7391_v16 = vld [vmem:[%s8280_s15 + $0x6d4] ss:$8 sps:$4 sm:$0xff]  }
  0xc7   : > { %4962 = vmatpush2.bf16.msra.mxu0 %v7305_v17  ;;  %v7394_v17 = vld [vmem:[%s8280_s15 + $0x7d4] ss:$8 sps:$4 sm:$0xff]  }
  0xc8   : > { %5003 = vmatpush2.bf16.msra.mxu1 %v7308_v18  ;;  %4963 = vmatprep.subr.bf16.mxu0 %v7313_v19  ;;  %v7389_v18 = vld [vmem:[%s8280_s15 + $0x6d0] ss:$8 sps:$4 sm:$0xff]  }
  0xc9   : > { %5004 = vmatprep.subr.bf16.mxu1 %v7316_v20  ;;  %v7392_v19 = vld [vmem:[%s8280_s15 + $0x7d0] ss:$8 sps:$4 sm:$0xff]   ;;  %v7397_v20 = vld [vmem:[%s8280_s15 + $0x6c4] ss:$8 sps:$4 sm:$0xff]  }
  0xcb   : > { %4964 = vmatpush2.bf16.msra.mxu0 %v7311_v22  ;;  %v7395_v22 = vld [vmem:[%s8280_s15 + $0x6c0] ss:$8 sps:$4 sm:$0xff]  }
  0xcc   : > { %5005 = vmatpush2.bf16.msra.mxu1 %v7314_v23  ;;  %4965 = vmatprep.subr.bf16.mxu0 %v7319_v24  ;;  %v7398_v23 = vld [vmem:[%s8280_s15 + $0x7c0] ss:$8 sps:$4 sm:$0xff]   ;;  %v7403_v24 = vld [vmem:[%s8280_s15 + $0x6b4] ss:$8 sps:$4 sm:$0xff]  }
  0xcd   : > { %5006 = vmatprep.subr.bf16.mxu1 %v7322_v25  ;;  %v7406_v25 = vld [vmem:[%s8280_s15 + $0x7b4] ss:$8 sps:$4 sm:$0xff]  }
  0xcf   : > { %4966 = vmatpush2.bf16.msra.mxu0 %v7317_v27  ;;  %v7401_v27 = vld [vmem:[%s8280_s15 + $0x6b0] ss:$8 sps:$4 sm:$0xff]  }
  0xd0   : > { %5007 = vmatpush2.bf16.msra.mxu1 %v7320_v28  ;;  %4967 = vmatprep.subr.bf16.mxu0 %v7325_v7  ;;  %v7404_v28 = vld [vmem:[%s8280_s15 + $0x7b0] ss:$8 sps:$4 sm:$0xff]   ;;  %v7409_v7 = vld [vmem:[%s8280_s15 + $0x6a4] ss:$8 sps:$4 sm:$0xff]  }
  0xd1   : > { %5008 = vmatprep.subr.bf16.mxu1 %v7328_v29  ;;  %v7412_v29 = vld [vmem:[%s8280_s15 + $0x7a4] ss:$8 sps:$4 sm:$0xff]  }
  0xd3   : > { %4968 = vmatpush2.bf16.msra.mxu0 %v7323_v33  ;;  %v7410_v33 = vld [vmem:[%s8280_s15 + $0x7a0] ss:$8 sps:$4 sm:$0xff]  }
  0xd4   : > { %5009 = vmatpush2.bf16.msra.mxu1 %v7326_v34  ;;  %5019 = vmatprep.subr.bf16.mxu0 %v7331_v35  ;;  %v7415_v34 = vld [vmem:[%s8280_s15 + $0x694] ss:$8 sps:$4 sm:$0xff]  }
  0xd5   : > { %5060 = vmatprep.subr.bf16.mxu1 %v7334_v36  ;;  %v7418_v35 = vld [vmem:[%s8280_s15 + $0x794] ss:$8 sps:$4 sm:$0xff]  }
  0xd6   : > { %4970 = vmatmul.mubr.bf16.vlgmr.msra.gmra.mxu0 %v1094_v32  ;;  %v8568_v32 = vld [vmem:[%s8275_s11 + $0x10] sm:$0xff] }
  0xd7   : > { %5011 = vmatmul.mubr.bf16.vlgmr.msra.gmra.mxu1 %v1116_v38  ;;  %5020 = vmatpush1.bf16.msra.mxu0 %v7329_v39  ;;  %v8575_v36 = vrot.slane %v8568_v32, %v8330_v50  ;;  %v7416_v38 = vld [vmem:[%s8280_s15 + $0x790] ss:$8 sps:$4 sm:$0xff]   ;;  %v7421_v39 = vld [vmem:[%s8280_s15 + $0x684] ss:$8 sps:$4 sm:$0xff]  }
  0xd8   : > { %5061 = vmatpush1.bf16.msra.mxu1 %v7332_v30  ;;  %5021 = vmatprep.subr.bf16.mxu0 %v7337_v40  ;;  %v7424_v30 = vld [vmem:[%s8280_s15 + $0x784] ss:$8 sps:$4 sm:$0xff]  }
  0xd9   : > { %5062 = vmatprep.subr.bf16.mxu1 %v7340_v41  ;;  %5051 = vmatprep.mubr.bf16.mxu0 %v1115_v37  ;;  %v7413_v37 = vld [vmem:[%s8280_s15 + $0x690] ss:$8 sps:$4 sm:$0xff]   ;;  %v1135_v40 = vcombine.high %v8575_v36, %v8575_v36  ;;  %v7419_v41 = vld [vmem:[%s8280_s15 + $0x680] ss:$8 sps:$4 sm:$0xff]  }
  0xda   : > { %5092 = vmatprep.mubr.bf16.mxu1 %v1119_v42  ;;  %v1101_v42 = vrot.slane %v8499_v26, %v8330_v50  ;;  %v7437_v26 = vld [vmem:[%s8280_s15 + $0x964] ss:$8 sps:$4 sm:$0xff]  }
  0xdb   : > { %5022 = vmatpush1.bf16.msra.mxu0 %v7335_v43  ;;  %v7422_v43 = vld [vmem:[%s8280_s15 + $0x780] ss:$8 sps:$4 sm:$0xff]  }
  0xdc   : > { %5063 = vmatpush1.bf16.msra.mxu1 %v7338_v45  ;;  %5023 = vmatprep.subr.bf16.mxu0 %v7343_v46  ;;  %v7428_v45 = vld [vmem:[%s8280_s15 + $0x874] ss:$8 sps:$4 sm:$0xff]  }
  0xdd   : > { %5064 = vmatprep.subr.bf16.mxu1 %v7346_v47  ;;  %v7431_v46 = vld [vmem:[%s8280_s15 + $0x974] ss:$8 sps:$4 sm:$0xff]   ;;  %v1157_v47 = vrot.slane %v1135_v40, %v8330_v50  ;;  %v7489_v40 = vld [vmem:[%s8280_s15 + $0x9d0] ss:$8 sps:$4 sm:$0xff]  }
  0xdf   : > { %5024 = vmatpush1.bf16.msra.mxu0 %v7341_v48  ;;  %v7426_v48 = vld [vmem:[%s8280_s15 + $0x870] ss:$8 sps:$4 sm:$0xff]  }
  0xe0   : > { %5065 = vmatpush1.bf16.msra.mxu1 %v7344_v49  ;;  %5025 = vmatprep.subr.bf16.mxu0 %v7349_v51  ;;  %v1117_v49 = vcombine.high %v1101_v42, %v1101_v42  ;;  %v7429_v51 = vld [vmem:[%s8280_s15 + $0x970] ss:$8 sps:$4 sm:$0xff]  }
  0xe1   : > { %5066 = vmatprep.subr.bf16.mxu1 %v7352_v52  ;;  %v7434_v52 = vld [vmem:[%s8280_s15 + $0x864] ss:$8 sps:$4 sm:$0xff]  }
  0xe3   : > { %5026 = vmatpush1.bf16.msra.mxu0 %v7347_v53  ;;  %v7432_v53 = vld [vmem:[%s8280_s15 + $0x860] ss:$8 sps:$4 sm:$0xff]  }
  0xe4   : > { %5067 = vmatpush1.bf16.msra.mxu1 %v7350_v54  ;;  %5027 = vmatprep.subr.bf16.mxu0 %v7355_v55  ;;  %v1167_v54 = vcombine.high %v1157_v47, %v1157_v47 }
  0xe5   : > { %5068 = vmatprep.subr.bf16.mxu1 %v7358_v56 }
  0xe7   : > { %5028 = vmatpush1.bf16.msra.mxu0 %v7353_v57  ;;  %v7435_v57 = vld [vmem:[%s8280_s15 + $0x960] ss:$8 sps:$4 sm:$0xff]  }
  0xe8   : > { %5069 = vmatpush1.bf16.msra.mxu1 %v7356_v58  ;;  %5029 = vmatprep.subr.bf16.mxu0 %v7361_v59  ;;  %v7440_v59 = vld [vmem:[%s8280_s15 + $0x854] ss:$8 sps:$4 sm:$0xff]  }
  0xe9   : > { %5070 = vmatprep.subr.bf16.mxu1 %v7364_v60 }
  0xeb   : > { %5030 = vmatpush1.bf16.msra.mxu0 %v7359_v61 }
  0xec   : > { %5071 = vmatpush1.bf16.msra.mxu1 %v7362_v62  ;;  %5031 = vmatprep.subr.bf16.mxu0 %v7367_v63  ;;  %v7443_v62 = vld [vmem:[%s8280_s15 + $0x954] ss:$8 sps:$4 sm:$0xff]  }
  0xed   : > { %5072 = vmatprep.subr.bf16.mxu1 %v7370_v0 }
  0xef   : > { %5032 = vmatpush1.bf16.msra.mxu0 %v7365_v1  ;;  %v7438_v1 = vld [vmem:[%s8280_s15 + $0x850] ss:$8 sps:$4 sm:$0xff]  }
  0xf0   : > { %5073 = vmatpush1.bf16.msra.mxu1 %v7368_v2  ;;  %5033 = vmatprep.subr.bf16.mxu0 %v7373_v3  ;;  %v7441_v3 = vld [vmem:[%s8280_s15 + $0x950] ss:$8 sps:$4 sm:$0xff]  }
  0xf1   : > { %5074 = vmatprep.subr.bf16.mxu1 %v7376_v4 }
  0xf3   : > { %5034 = vmatpush1.bf16.msra.mxu0 %v7371_v5  ;;  %v7446_v5 = vld [vmem:[%s8280_s15 + $0x844] ss:$8 sps:$4 sm:$0xff]  }
  0xf4   : > { %5075 = vmatpush1.bf16.msra.mxu1 %v7374_v6  ;;  %5035 = vmatprep.subr.bf16.mxu0 %v7379_v8  ;;  %v7449_v6 = vld [vmem:[%s8280_s15 + $0x944] ss:$8 sps:$4 sm:$0xff]  }
  0xf5   : > { %5076 = vmatprep.subr.bf16.mxu1 %v7382_v9  ;;  %v7444_v9 = vld [vmem:[%s8280_s15 + $0x840] ss:$8 sps:$4 sm:$0xff]  }
  0xf7   : > { %5036 = vmatpush2.bf16.msra.mxu0 %v7377_v10  ;;  %v7447_v10 = vld [vmem:[%s8280_s15 + $0x940] ss:$8 sps:$4 sm:$0xff]  }
  0xf8   : > { %5077 = vmatpush2.bf16.msra.mxu1 %v7380_v11  ;;  %5037 = vmatprep.subr.bf16.mxu0 %v7385_v12  ;;  %v7452_v11 = vld [vmem:[%s8280_s15 + $0x834] ss:$8 sps:$4 sm:$0xff]  }
  0xf9   : > { %5078 = vmatprep.subr.bf16.mxu1 %v7388_v13  ;;  %v7455_v12 = vld [vmem:[%s8280_s15 + $0x934] ss:$8 sps:$4 sm:$0xff]   ;;  %v7450_v13 = vld [vmem:[%s8280_s15 + $0x830] ss:$8 sps:$4 sm:$0xff]  }
  0xfb   : > { %5038 = vmatpush2.bf16.msra.mxu0 %v7383_v14  ;;  %v7453_v14 = vld [vmem:[%s8280_s15 + $0x930] ss:$8 sps:$4 sm:$0xff]  }
  0xfc   : > { %5079 = vmatpush2.bf16.msra.mxu1 %v7386_v15  ;;  %5039 = vmatprep.subr.bf16.mxu0 %v7391_v16  ;;  %v7458_v15 = vld [vmem:[%s8280_s15 + $0x824] ss:$8 sps:$4 sm:$0xff]  }
  0xfd   : > { %5080 = vmatprep.subr.bf16.mxu1 %v7394_v17  ;;  %v7461_v16 = vld [vmem:[%s8280_s15 + $0x924] ss:$8 sps:$4 sm:$0xff]   ;;  %v7456_v17 = vld [vmem:[%s8280_s15 + $0x820] ss:$8 sps:$4 sm:$0xff]  }
  0xff   : > { %5040 = vmatpush2.bf16.msra.mxu0 %v7389_v18  ;;  %v7459_v18 = vld [vmem:[%s8280_s15 + $0x920] ss:$8 sps:$4 sm:$0xff]  }
 0x100   : > { %5081 = vmatpush2.bf16.msra.mxu1 %v7392_v19  ;;  %5041 = vmatprep.subr.bf16.mxu0 %v7397_v20  ;;  %v7464_v19 = vld [vmem:[%s8280_s15 + $0x814] ss:$8 sps:$4 sm:$0xff]  }
 0x101   : > { %5082 = vmatprep.subr.bf16.mxu1 %v7400_v21  ;;  %v7467_v20 = vld [vmem:[%s8280_s15 + $0x914] ss:$8 sps:$4 sm:$0xff]   ;;  %v7462_v21 = vld [vmem:[%s8280_s15 + $0x810] ss:$8 sps:$4 sm:$0xff]  }
 0x103   : > { %5042 = vmatpush2.bf16.msra.mxu0 %v7395_v22  ;;  %v7465_v22 = vld [vmem:[%s8280_s15 + $0x910] ss:$8 sps:$4 sm:$0xff]  }
 0x104   : > { %5083 = vmatpush2.bf16.msra.mxu1 %v7398_v23  ;;  %5043 = vmatprep.subr.bf16.mxu0 %v7403_v24  ;;  %v7470_v23 = vld [vmem:[%s8280_s15 + $0x804] ss:$8 sps:$4 sm:$0xff]  }
 0x105   : > { %5084 = vmatprep.subr.bf16.mxu1 %v7406_v25  ;;  %v7473_v24 = vld [vmem:[%s8280_s15 + $0x904] ss:$8 sps:$4 sm:$0xff]   ;;  %v7468_v25 = vld [vmem:[%s8280_s15 + $0x800] ss:$8 sps:$4 sm:$0xff]  }
 0x107   : > { %5044 = vmatpush2.bf16.msra.mxu0 %v7401_v27  ;;  %v7471_v27 = vld [vmem:[%s8280_s15 + $0x900] ss:$8 sps:$4 sm:$0xff]  }
 0x108   : > { %5085 = vmatpush2.bf16.msra.mxu1 %v7404_v28  ;;  %5045 = vmatprep.subr.bf16.mxu0 %v7409_v7  ;;  %v7476_v28 = vld [vmem:[%s8280_s15 + $0x8f4] ss:$8 sps:$4 sm:$0xff]  }
 0x109   : > { %5086 = vmatprep.subr.bf16.mxu1 %v7412_v29  ;;  %v7479_v7 = vld [vmem:[%s8280_s15 + $0x9f4] ss:$8 sps:$4 sm:$0xff]   ;;  %v7474_v29 = vld [vmem:[%s8280_s15 + $0x8f0] ss:$8 sps:$4 sm:$0xff]  }
 0x10b   : > { %5046 = vmatpush2.bf16.msra.mxu0 %v7407_v31  ;;  %v7477_v31 = vld [vmem:[%s8280_s15 + $0x9f0] ss:$8 sps:$4 sm:$0xff]  }
 0x10c   : > { %5087 = vmatpush2.bf16.msra.mxu1 %v7410_v33  ;;  %5047 = vmatprep.subr.bf16.mxu0 %v7415_v34  ;;  %v7482_v33 = vld [vmem:[%s8280_s15 + $0x8e4] ss:$8 sps:$4 sm:$0xff]  }
 0x10d   : > { %5088 = vmatprep.subr.bf16.mxu1 %v7418_v35  ;;  %v7485_v34 = vld [vmem:[%s8280_s15 + $0x9e4] ss:$8 sps:$4 sm:$0xff]   ;;  %v7480_v35 = vld [vmem:[%s8280_s15 + $0x8e0] ss:$8 sps:$4 sm:$0xff]  }
 0x10f   : > { %5048 = vmatpush2.bf16.msra.mxu0 %v7413_v37  ;;  %v7483_v37 = vld [vmem:[%s8280_s15 + $0x9e0] ss:$8 sps:$4 sm:$0xff]  }
 0x110   : > { %5089 = vmatpush2.bf16.msra.mxu1 %v7416_v38  ;;  %5049 = vmatprep.subr.bf16.mxu0 %v7421_v39  ;;  %v7488_v38 = vld [vmem:[%s8280_s15 + $0x8d4] ss:$8 sps:$4 sm:$0xff]  }
 0x111   : > { %5090 = vmatprep.subr.bf16.mxu1 %v7424_v30  ;;  %v7491_v39 = vld [vmem:[%s8280_s15 + $0x9d4] ss:$8 sps:$4 sm:$0xff]   ;;  %v7486_v30 = vld [vmem:[%s8280_s15 + $0x8d0] ss:$8 sps:$4 sm:$0xff]  }
 0x113   : > { %5050 = vmatpush2.bf16.msra.mxu0 %v7419_v41  ;;  %v7494_v41 = vld [vmem:[%s8280_s15 + $0x8c4] ss:$8 sps:$4 sm:$0xff]  }
 0x114   : > { %5091 = vmatpush2.bf16.msra.mxu1 %v7422_v43  ;;  %5101 = vmatprep.subr.bf16.mxu0 %v7428_v45  ;;  %v7492_v43 = vld [vmem:[%s8280_s15 + $0x8c0] ss:$8 sps:$4 sm:$0xff]  }
 0x115   : > { %5142 = vmatprep.subr.bf16.mxu1 %v7431_v46  ;;  %v7495_v45 = vld [vmem:[%s8280_s15 + $0x9c0] ss:$8 sps:$4 sm:$0xff]   ;;  %v7500_v46 = vld [vmem:[%s8280_s15 + $0x8b4] ss:$8 sps:$4 sm:$0xff]  }
 0x116   : > { %v4807_v55 = vpop.f32.mrf.mxu0  ;;  %5052 = vmatmul.mubr.bf16.vlgmr.msra.gmra.mxu0 %v1101_v42  ;;  %v7497_v42 = vld [vmem:[%s8280_s15 + $0x9c4] ss:$8 sps:$4 sm:$0xff]  }
 0x117   : > { %v4848_v56 = vpop.f32.mrf.mxu1  ;;  %5093 = vmatmul.mubr.bf16.vlgmr.msra.gmra.mxu1 %v1117_v49  ;;  %5102 = vmatpush1.bf16.msra.mxu0 %v7426_v48  ;;  %v7498_v48 = vld [vmem:[%s8280_s15 + $0x8b0] ss:$8 sps:$4 sm:$0xff]  }
 0x118   : > { %v8596_v58 = vadd.f32 %v4848_v56, %v4807_v55  ;;  %5143 = vmatpush1.bf16.msra.mxu1 %v7429_v51  ;;  %v4809_v60 = vpop.f32.mrf.mxu0  ;;  %5103 = vmatprep.subr.bf16.mxu0 %v7434_v52  ;;  %v7501_v49 = vld [vmem:[%s8280_s15 + $0x9b0] ss:$8 sps:$4 sm:$0xff]   ;;  %v7506_v51 = vld [vmem:[%s8280_s15 + $0x8a4] ss:$8 sps:$4 sm:$0xff]   ;;  %v7512_v55 = vld [vmem:[%s8280_s15 + $0x894] ss:$8 sps:$4 sm:$0xff]  }
 0x119   : > { %v4850_v61 = vpop.f32.mrf.mxu1  ;;  %5144 = vmatprep.subr.bf16.mxu1 %v7437_v26  ;;  %5133 = vmatprep.mubr.bf16.mxu0 %v1157_v47  ;;  %v7503_v47 = vld [vmem:[%s8280_s15 + $0x9b4] ss:$8 sps:$4 sm:$0xff]   ;;  %v7509_v52 = vld [vmem:[%s8280_s15 + $0x9a4] ss:$8 sps:$4 sm:$0xff]   ;;  %v1120_v26 = vcombine.high %v8568_v32, %v8568_v32  ;;  %v7513_v32 = vld [vmem:[%s8280_s15 + $0x990] ss:$8 sps:$4 sm:$0xff]  }
 0x11a   : > { %v8600_v63 = vadd.f32 %v4850_v61, %v4809_v60  ;;  %5174 = vmatprep.mubr.bf16.mxu1 %v1167_v54  ;;  %v4811_v0 = vpop.f32.mrf.mxu0  ;;  %v7507_v54 = vld [vmem:[%s8280_s15 + $0x9a0] ss:$8 sps:$4 sm:$0xff]   ;;  %v7515_v56 = vld [vmem:[%s8280_s15 + $0x994] ss:$8 sps:$4 sm:$0xff]   ;;  %v7518_v60 = vld [vmem:[%s8280_s15 + $0x884] ss:$8 sps:$4 sm:$0xff]  }
 0x11b   : > { %v4852_v2 = vpop.f32.mrf.mxu1  ;;  %5104 = vmatpush1.bf16.msra.mxu0 %v7432_v53  ;;  %v7504_v53 = vld [vmem:[%s8280_s15 + $0x8a0] ss:$8 sps:$4 sm:$0xff]   ;;  %v7521_v61 = vld [vmem:[%s8280_s15 + $0x984] ss:$8 sps:$4 sm:$0xff]  }
 0x11c   : > { %5145 = vmatpush1.bf16.msra.mxu1 %v7435_v57  ;;  %v4812_v4 = vpop.f32.mrf.mxu0  ;;  %5105 = vmatprep.subr.bf16.mxu0 %v7440_v59  ;;  %v8653_v57 = vrot.slane %v1120_v26, %v8330_v50  ;;  %v7510_v59 = vld [vmem:[%s8280_s15 + $0x890] ss:$8 sps:$4 sm:$0xff]   ;;  %v7516_v0 = vld [vmem:[%s8280_s15 + $0x880] ss:$8 sps:$4 sm:$0xff]   ;;  %v7575_v26 = vld [vmem:[%s8280_s15 + $0xbf4] ss:$8 sps:$4 sm:$0xff]  }
 0x11d   : > { %5146 = vmatprep.subr.bf16.mxu1 %v7443_v62  ;;  %v4853_v8 = vpop.f32.mrf.mxu1  ;;  %v7519_v2 = vld [vmem:[%s8280_s15 + $0x980] ss:$8 sps:$4 sm:$0xff]   ;;  %v7527_v4 = vld [vmem:[%s8280_s15 + $0xb74] ss:$8 sps:$4 sm:$0xff]  }
 0x11e   : > { %v1136_v62 = vcombine.high %v8653_v57, %v8653_v57 }
 0x11f   : > { %5106 = vmatpush1.bf16.msra.mxu0 %v7438_v1  ;;  %v1143_v1 = vrot.slane %v8575_v36, %v8330_v50  ;;  %v7533_v36 = vld [vmem:[%s8280_s15 + $0xb64] ss:$8 sps:$4 sm:$0xff]  }
 0x120   : > { %5147 = vmatpush1.bf16.msra.mxu1 %v7441_v3  ;;  %5107 = vmatprep.subr.bf16.mxu0 %v7446_v5  ;;  %v7524_v3 = vld [vmem:[%s8280_s15 + $0xa74] ss:$8 sps:$4 sm:$0xff]   ;;  %v7522_v5 = vld [vmem:[%s8280_s15 + $0xa70] ss:$8 sps:$4 sm:$0xff]  }
 0x121   : > { %5148 = vmatprep.subr.bf16.mxu1 %v7449_v6  ;;  %v1164_v6 = vrot.slane %v1136_v62, %v8330_v50  ;;  %v1165_v8 = vcombine.high %v1143_v1, %v1143_v1  ;;  %v7582_v62 = vld [vmem:[%s8280_s15 + $0xad0] ss:$8 sps:$4 sm:$0xff]  }
 0x123   : > { %5108 = vmatpush1.bf16.msra.mxu0 %v7444_v9  ;;  %v7525_v9 = vld [vmem:[%s8280_s15 + $0xb70] ss:$8 sps:$4 sm:$0xff]  }
 0x124   : > { %5149 = vmatpush1.bf16.msra.mxu1 %v7447_v10  ;;  %5109 = vmatprep.subr.bf16.mxu0 %v7452_v11  ;;  %v7530_v10 = vld [vmem:[%s8280_s15 + $0xa64] ss:$8 sps:$4 sm:$0xff]   ;;  %v7528_v11 = vld [vmem:[%s8280_s15 + $0xa60] ss:$8 sps:$4 sm:$0xff]  }
 0x125   : > { %5150 = vmatprep.subr.bf16.mxu1 %v7455_v12  ;;  %v1168_v12 = vcombine.high %v1164_v6, %v1164_v6 }
 0x127   : > { %5110 = vmatpush1.bf16.msra.mxu0 %v7450_v13 }
 0x128   : > { %5151 = vmatpush1.bf16.msra.mxu1 %v7453_v14  ;;  %5111 = vmatprep.subr.bf16.mxu0 %v7458_v15  ;;  %v7531_v15 = vld [vmem:[%s8280_s15 + $0xb60] ss:$8 sps:$4 sm:$0xff]  }
 0x129   : > { %5152 = vmatprep.subr.bf16.mxu1 %v7461_v16 }
 0x12b   : > { %5112 = vmatpush1.bf16.msra.mxu0 %v7456_v17  ;;  %v7536_v17 = vld [vmem:[%s8280_s15 + $0xa54] ss:$8 sps:$4 sm:$0xff]  }
 0x12c   : > { %5153 = vmatpush1.bf16.msra.mxu1 %v7459_v18  ;;  %5113 = vmatprep.subr.bf16.mxu0 %v7464_v19 }
 0x12d   : > { %5154 = vmatprep.subr.bf16.mxu1 %v7467_v20  ;;  %v7539_v20 = vld [vmem:[%s8280_s15 + $0xb54] ss:$8 sps:$4 sm:$0xff]  }
 0x12f   : > { %5114 = vmatpush1.bf16.msra.mxu0 %v7462_v21 }
 0x130   : > { %5155 = vmatpush1.bf16.msra.mxu1 %v7465_v22  ;;  %5115 = vmatprep.subr.bf16.mxu0 %v7470_v23 }
 0x131   : > { %5156 = vmatprep.subr.bf16.mxu1 %v7473_v24 }
 0x133   : > { %5116 = vmatpush1.bf16.msra.mxu0 %v7468_v25 }
 0x134   : > { %5157 = vmatpush1.bf16.msra.mxu1 %v7471_v27  ;;  %5117 = vmatprep.subr.bf16.mxu0 %v7476_v28  ;;  %v7537_v27 = vld [vmem:[%s8280_s15 + $0xb50] ss:$8 sps:$4 sm:$0xff]  }
 0x135   : > { %5158 = vmatprep.subr.bf16.mxu1 %v7479_v7  ;;  %v7545_v7 = vld [vmem:[%s8280_s15 + $0xb44] ss:$8 sps:$4 sm:$0xff]  }
 0x137   : > { %5118 = vmatpush2.bf16.msra.mxu0 %v7474_v29 }
 0x138   : > { %5159 = vmatpush2.bf16.msra.mxu1 %v7477_v31  ;;  %5119 = vmatprep.subr.bf16.mxu0 %v7482_v33  ;;  %v7540_v31 = vld [vmem:[%s8280_s15 + $0xa40] ss:$8 sps:$4 sm:$0xff]  }
 0x139   : > { %5160 = vmatprep.subr.bf16.mxu1 %v7485_v34  ;;  %v7543_v33 = vld [vmem:[%s8280_s15 + $0xb40] ss:$8 sps:$4 sm:$0xff]   ;;  %v7548_v34 = vld [vmem:[%s8280_s15 + $0xa34] ss:$8 sps:$4 sm:$0xff]  }
 0x13b   : > { %5120 = vmatpush2.bf16.msra.mxu0 %v7480_v35  ;;  %v7551_v35 = vld [vmem:[%s8280_s15 + $0xb34] ss:$8 sps:$4 sm:$0xff]  }
 0x13c   : > { %5161 = vmatpush2.bf16.msra.mxu1 %v7483_v37  ;;  %5121 = vmatprep.subr.bf16.mxu0 %v7488_v38  ;;  %v7546_v37 = vld [vmem:[%s8280_s15 + $0xa30] ss:$8 sps:$4 sm:$0xff]  }
 0x13d   : > { %5162 = vmatprep.subr.bf16.mxu1 %v7491_v39  ;;  %v7549_v38 = vld [vmem:[%s8280_s15 + $0xb30] ss:$8 sps:$4 sm:$0xff]   ;;  %v7554_v39 = vld [vmem:[%s8280_s15 + $0xa24] ss:$8 sps:$4 sm:$0xff]  }
 0x13f   : > { %5122 = vmatpush2.bf16.msra.mxu0 %v7486_v30  ;;  %v7557_v30 = vld [vmem:[%s8280_s15 + $0xb24] ss:$8 sps:$4 sm:$0xff]  }
 0x140   : > { %5163 = vmatpush2.bf16.msra.mxu1 %v7489_v40  ;;  %5123 = vmatprep.subr.bf16.mxu0 %v7494_v41  ;;  %v7552_v40 = vld [vmem:[%s8280_s15 + $0xa20] ss:$8 sps:$4 sm:$0xff]  }
 0x141   : > { %5164 = vmatprep.subr.bf16.mxu1 %v7497_v42  ;;  %v7555_v41 = vld [vmem:[%s8280_s15 + $0xb20] ss:$8 sps:$4 sm:$0xff]   ;;  %v7560_v42 = vld [vmem:[%s8280_s15 + $0xa14] ss:$8 sps:$4 sm:$0xff]  }
 0x143   : > { %5124 = vmatpush2.bf16.msra.mxu0 %v7492_v43  ;;  %v7563_v43 = vld [vmem:[%s8280_s15 + $0xb14] ss:$8 sps:$4 sm:$0xff]  }
 0x144   : > { %5165 = vmatpush2.bf16.msra.mxu1 %v7495_v45  ;;  %5125 = vmatprep.subr.bf16.mxu0 %v7500_v46  ;;  %v7558_v45 = vld [vmem:[%s8280_s15 + $0xa10] ss:$8 sps:$4 sm:$0xff]  }
 0x145   : > { %5166 = vmatprep.subr.bf16.mxu1 %v7503_v47  ;;  %v7561_v46 = vld [vmem:[%s8280_s15 + $0xb10] ss:$8 sps:$4 sm:$0xff]   ;;  %v7566_v47 = vld [vmem:[%s8280_s15 + $0xa04] ss:$8 sps:$4 sm:$0xff]  }
 0x147   : > { %5126 = vmatpush2.bf16.msra.mxu0 %v7498_v48  ;;  %v7569_v48 = vld [vmem:[%s8280_s15 + $0xb04] ss:$8 sps:$4 sm:$0xff]  }
 0x148   : > { %5167 = vmatpush2.bf16.msra.mxu1 %v7501_v49  ;;  %5127 = vmatprep.subr.bf16.mxu0 %v7506_v51  ;;  %v7564_v49 = vld [vmem:[%s8280_s15 + $0xa00] ss:$8 sps:$4 sm:$0xff]  }
 0x149   : > { %5168 = vmatprep.subr.bf16.mxu1 %v7509_v52  ;;  %v7567_v51 = vld [vmem:[%s8280_s15 + $0xb00] ss:$8 sps:$4 sm:$0xff]   ;;  %v7572_v52 = vld [vmem:[%s8280_s15 + $0xaf4] ss:$8 sps:$4 sm:$0xff]  }
 0x14b   : > { %5128 = vmatpush2.bf16.msra.mxu0 %v7504_v53  ;;  %v7570_v53 = vld [vmem:[%s8280_s15 + $0xaf0] ss:$8 sps:$4 sm:$0xff]  }
 0x14c   : > { %5169 = vmatpush2.bf16.msra.mxu1 %v7507_v54  ;;  %5129 = vmatprep.subr.bf16.mxu0 %v7512_v55  ;;  %v7573_v54 = vld [vmem:[%s8280_s15 + $0xbf0] ss:$8 sps:$4 sm:$0xff]   ;;  %v7578_v55 = vld [vmem:[%s8280_s15 + $0xae4] ss:$8 sps:$4 sm:$0xff]  }
 0x14d   : > { %5170 = vmatprep.subr.bf16.mxu1 %v7515_v56  ;;  %v7581_v56 = vld [vmem:[%s8280_s15 + $0xbe4] ss:$8 sps:$4 sm:$0xff]  }
 0x14f   : > { %5130 = vmatpush2.bf16.msra.mxu0 %v7510_v59  ;;  %v7576_v59 = vld [vmem:[%s8280_s15 + $0xae0] ss:$8 sps:$4 sm:$0xff]  }
 0x150   : > { %5171 = vmatpush2.bf16.msra.mxu1 %v7513_v32  ;;  %5131 = vmatprep.subr.bf16.mxu0 %v7518_v60  ;;  %v7579_v32 = vld [vmem:[%s8280_s15 + $0xbe0] ss:$8 sps:$4 sm:$0xff]   ;;  %v7584_v60 = vld [vmem:[%s8280_s15 + $0xad4] ss:$8 sps:$4 sm:$0xff]  }
 0x151   : > { %5172 = vmatprep.subr.bf16.mxu1 %v7521_v61  ;;  %v7587_v61 = vld [vmem:[%s8280_s15 + $0xbd4] ss:$8 sps:$4 sm:$0xff]  }
 0x153   : > { %5132 = vmatpush2.bf16.msra.mxu0 %v7516_v0  ;;  %v7585_v0 = vld [vmem:[%s8280_s15 + $0xbd0] ss:$8 sps:$4 sm:$0xff]  }
 0x154   : > { %5173 = vmatpush2.bf16.msra.mxu1 %v7519_v2  ;;  %5183 = vmatprep.subr.bf16.mxu0 %v7524_v3  ;;  %v7593_v2 = vld [vmem:[%s8280_s15 + $0xbc4] ss:$8 sps:$4 sm:$0xff]   ;;  %v7588_v3 = vld [vmem:[%s8280_s15 + $0xac0] ss:$8 sps:$4 sm:$0xff]  }
 0x155   : > { %5224 = vmatprep.subr.bf16.mxu1 %v7527_v4  ;;  %v7591_v4 = vld [vmem:[%s8280_s15 + $0xbc0] ss:$8 sps:$4 sm:$0xff]  }
 0x156   : > { %v4889_v13 = vpop.f32.mrf.mxu0  ;;  %5134 = vmatmul.mubr.bf16.vlgmr.msra.gmra.mxu0 %v1143_v1  ;;  %v7590_v1 = vld [vmem:[%s8280_s15 + $0xac4] ss:$8 sps:$4 sm:$0xff]  }
 0x157   : > { %v4930_v14 = vpop.f32.mrf.mxu1  ;;  %5175 = vmatmul.mubr.bf16.vlgmr.msra.gmra.mxu1 %v1165_v8  ;;  %v4890_v16 = vadd.f32 %v4889_v13, %v8596_v58  ;;  %5184 = vmatpush1.bf16.msra.mxu0 %v7522_v5  ;;  %v7534_v58 = vld [vmem:[%s8280_s15 + $0xa50] ss:$8 sps:$4 sm:$0xff]   ;;  %v7596_v5 = vld [vmem:[%s8280_s15 + $0xab4] ss:$8 sps:$4 sm:$0xff]   ;;  %v7603_v13 = vld [vmem:[%s8280_s15 + $0xba0] ss:$8 sps:$4 sm:$0xff]  }
 0x158   : > { %5225 = vmatpush1.bf16.msra.mxu1 %v7525_v9  ;;  %v4891_v18 = vpop.f32.mrf.mxu0  ;;  %5185 = vmatprep.subr.bf16.mxu0 %v7530_v10  ;;  %v7594_v8 = vld [vmem:[%s8280_s15 + $0xab0] ss:$8 sps:$4 sm:$0xff]   ;;  %v7602_v10 = vld [vmem:[%s8280_s15 + $0xaa4] ss:$8 sps:$4 sm:$0xff]  }
 0x159   : > { %v4932_v19 = vpop.f32.mrf.mxu1  ;;  %5226 = vmatprep.subr.bf16.mxu1 %v7533_v36  ;;  %v4892_v21 = vadd.f32 %v4891_v18, %v8600_v63  ;;  %v8678_v22 = vadd.f32 %v4930_v14, %v4890_v16  ;;  %5215 = vmatprep.mubr.bf16.mxu0 %v1164_v6  ;;  %v7542_v63 = vld [vmem:[%s8280_s15 + $0xa44] ss:$8 sps:$4 sm:$0xff]   ;;  %v7599_v6 = vld [vmem:[%s8280_s15 + $0xbb4] ss:$8 sps:$4 sm:$0xff]   ;;  %v7597_v9 = vld [vmem:[%s8280_s15 + $0xbb0] ss:$8 sps:$4 sm:$0xff]  }
 0x15a   : > { %5256 = vmatprep.mubr.bf16.mxu1 %v1168_v12  ;;  %v4893_v23 = vpop.f32.mrf.mxu0  ;;  %v7605_v36 = vld [vmem:[%s8280_s15 + $0xba4] ss:$8 sps:$4 sm:$0xff]   ;;  %v8728_v12 = vld [vmem:[%s8275_s11 + $0x18] sm:$0xff] }
 0x15b   : > { %v4934_v24 = vpop.f32.mrf.mxu1  ;;  %v8681_v25 = vadd.f32 %v4932_v19, %v4892_v21  ;;  %5186 = vmatpush1.bf16.msra.mxu0 %v7528_v11  ;;  %v7600_v11 = vld [vmem:[%s8280_s15 + $0xaa0] ss:$8 sps:$4 sm:$0xff]   ;;  %v7608_v14 = vld [vmem:[%s8280_s15 + $0xa94] ss:$8 sps:$4 sm:$0xff]   ;;  %v8735_v16 = vrot.slane %v8728_v12, %v8330_v50  ;;  %v7609_v18 = vld [vmem:[%s8280_s15 + $0xb90] ss:$8 sps:$4 sm:$0xff]  }
 0x15c   : > { %5227 = vmatpush1.bf16.msra.mxu1 %v7531_v15  ;;  %v4894_v28 = vpop.f32.mrf.mxu0  ;;  %5187 = vmatprep.subr.bf16.mxu0 %v7536_v17  ;;  %v7611_v15 = vld [vmem:[%s8280_s15 + $0xb94] ss:$8 sps:$4 sm:$0xff]   ;;  %v7606_v17 = vld [vmem:[%s8280_s15 + $0xa90] ss:$8 sps:$4 sm:$0xff]   ;;  %v7614_v19 = vld [vmem:[%s8280_s15 + $0xa84] ss:$8 sps:$4 sm:$0xff]  }
 0x15d   : > { %5228 = vmatprep.subr.bf16.mxu1 %v7539_v20  ;;  %v4935_v29 = vpop.f32.mrf.mxu1  ;;  %v7617_v20 = vld [vmem:[%s8280_s15 + $0xb84] ss:$8 sps:$4 sm:$0xff]   ;;  %v1184_v21 = vcombine.high %v8735_v16, %v8735_v16  ;;  %v7612_v23 = vld [vmem:[%s8280_s15 + $0xa80] ss:$8 sps:$4 sm:$0xff]   ;;  %v7624_v28 = vld [vmem:[%s8280_s15 + $0xd74] ss:$8 sps:$4 sm:$0xff]  }
 0x15e   : > { %v7615_v24 = vld [vmem:[%s8280_s15 + $0xb80] ss:$8 sps:$4 sm:$0xff]  }
 0x15f   : > { %5188 = vmatpush1.bf16.msra.mxu0 %v7534_v58  ;;  %v1150_v58 = vrot.slane %v8653_v57, %v8330_v50  ;;  %v7630_v57 = vld [vmem:[%s8280_s15 + $0xd64] ss:$8 sps:$4 sm:$0xff]  }
 0x160   : > { %5229 = vmatpush1.bf16.msra.mxu1 %v7537_v27  ;;  %5189 = vmatprep.subr.bf16.mxu0 %v7542_v63  ;;  %v7621_v27 = vld [vmem:[%s8280_s15 + $0xc74] ss:$8 sps:$4 sm:$0xff]   ;;  %v7619_v63 = vld [vmem:[%s8280_s15 + $0xc70] ss:$8 sps:$4 sm:$0xff]  }
 0x161   : > { %5230 = vmatprep.subr.bf16.mxu1 %v7545_v7  ;;  %v1206_v7 = vrot.slane %v1184_v21, %v8330_v50  ;;  %v1166_v29 = vcombine.high %v1150_v58, %v1150_v58  ;;  %v7684_v21 = vld [vmem:[%s8280_s15 + $0xdd4] ss:$8 sps:$4 sm:$0xff]  }
 0x163   : > { %5190 = vmatpush1.bf16.msra.mxu0 %v7540_v31  ;;  %v7622_v31 = vld [vmem:[%s8280_s15 + $0xd70] ss:$8 sps:$4 sm:$0xff]  }
 0x164   : > { %5231 = vmatpush1.bf16.msra.mxu1 %v7543_v33  ;;  %5191 = vmatprep.subr.bf16.mxu0 %v7548_v34  ;;  %v7627_v33 = vld [vmem:[%s8280_s15 + $0xc64] ss:$8 sps:$4 sm:$0xff]   ;;  %v7625_v34 = vld [vmem:[%s8280_s15 + $0xc60] ss:$8 sps:$4 sm:$0xff]  }
 0x165   : > { %5232 = vmatprep.subr.bf16.mxu1 %v7551_v35  ;;  %v1216_v35 = vcombine.high %v1206_v7, %v1206_v7 }
 0x167   : > { %5192 = vmatpush1.bf16.msra.mxu0 %v7546_v37 }
 0x168   : > { %5233 = vmatpush1.bf16.msra.mxu1 %v7549_v38  ;;  %5193 = vmatprep.subr.bf16.mxu0 %v7554_v39  ;;  %v7628_v39 = vld [vmem:[%s8280_s15 + $0xd60] ss:$8 sps:$4 sm:$0xff]  }
 0x169   : > { %5234 = vmatprep.subr.bf16.mxu1 %v7557_v30 }
 0x16b   : > { %5194 = vmatpush1.bf16.msra.mxu0 %v7552_v40  ;;  %v7633_v40 = vld [vmem:[%s8280_s15 + $0xc54] ss:$8 sps:$4 sm:$0xff]  }
 0x16c   : > { %5235 = vmatpush1.bf16.msra.mxu1 %v7555_v41  ;;  %5195 = vmatprep.subr.bf16.mxu0 %v7560_v42 }
 0x16d   : > { %5236 = vmatprep.subr.bf16.mxu1 %v7563_v43  ;;  %v7636_v43 = vld [vmem:[%s8280_s15 + $0xd54] ss:$8 sps:$4 sm:$0xff]  }
 0x16f   : > { %5196 = vmatpush1.bf16.msra.mxu0 %v7558_v45 }
 0x170   : > { %5237 = vmatpush1.bf16.msra.mxu1 %v7561_v46  ;;  %5197 = vmatprep.subr.bf16.mxu0 %v7566_v47 }
 0x171   : > { %5238 = vmatprep.subr.bf16.mxu1 %v7569_v48 }
 0x173   : > { %5198 = vmatpush1.bf16.msra.mxu0 %v7564_v49 }
 0x174   : > { %5239 = vmatpush1.bf16.msra.mxu1 %v7567_v51  ;;  %5199 = vmatprep.subr.bf16.mxu0 %v7572_v52  ;;  %v7634_v51 = vld [vmem:[%s8280_s15 + $0xd50] ss:$8 sps:$4 sm:$0xff]  }
 0x175   : > { %5240 = vmatprep.subr.bf16.mxu1 %v7575_v26  ;;  %v7642_v26 = vld [vmem:[%s8280_s15 + $0xd44] ss:$8 sps:$4 sm:$0xff]  }
 0x177   : > { %5200 = vmatpush2.bf16.msra.mxu0 %v7570_v53 }
 0x178   : > { %5241 = vmatpush2.bf16.msra.mxu1 %v7573_v54  ;;  %5201 = vmatprep.subr.bf16.mxu0 %v7578_v55  ;;  %v7637_v54 = vld [vmem:[%s8280_s15 + $0xc40] ss:$8 sps:$4 sm:$0xff]  }
 0x179   : > { %5242 = vmatprep.subr.bf16.mxu1 %v7581_v56  ;;  %v7640_v55 = vld [vmem:[%s8280_s15 + $0xd40] ss:$8 sps:$4 sm:$0xff]   ;;  %v7645_v56 = vld [vmem:[%s8280_s15 + $0xc34] ss:$8 sps:$4 sm:$0xff]  }
 0x17b   : > { %5202 = vmatpush2.bf16.msra.mxu0 %v7576_v59  ;;  %v7648_v59 = vld [vmem:[%s8280_s15 + $0xd34] ss:$8 sps:$4 sm:$0xff]  }
 0x17c   : > { %5243 = vmatpush2.bf16.msra.mxu1 %v7579_v32  ;;  %5203 = vmatprep.subr.bf16.mxu0 %v7584_v60  ;;  %v7643_v32 = vld [vmem:[%s8280_s15 + $0xc30] ss:$8 sps:$4 sm:$0xff]  }
 0x17d   : > { %5244 = vmatprep.subr.bf16.mxu1 %v7587_v61  ;;  %v7646_v60 = vld [vmem:[%s8280_s15 + $0xd30] ss:$8 sps:$4 sm:$0xff]   ;;  %v7651_v61 = vld [vmem:[%s8280_s15 + $0xc24] ss:$8 sps:$4 sm:$0xff]  }
 0x17f   : > { %5204 = vmatpush2.bf16.msra.mxu0 %v7582_v62  ;;  %v7654_v62 = vld [vmem:[%s8280_s15 + $0xd24] ss:$8 sps:$4 sm:$0xff]  }
 0x180   : > { %5245 = vmatpush2.bf16.msra.mxu1 %v7585_v0  ;;  %5205 = vmatprep.subr.bf16.mxu0 %v7590_v1  ;;  %v7649_v0 = vld [vmem:[%s8280_s15 + $0xc20] ss:$8 sps:$4 sm:$0xff]  }
 0x181   : > { %5246 = vmatprep.subr.bf16.mxu1 %v7593_v2  ;;  %v7652_v1 = vld [vmem:[%s8280_s15 + $0xd20] ss:$8 sps:$4 sm:$0xff]   ;;  %v7657_v2 = vld [vmem:[%s8280_s15 + $0xc14] ss:$8 sps:$4 sm:$0xff]  }
 0x183   : > { %5206 = vmatpush2.bf16.msra.mxu0 %v7588_v3  ;;  %v7660_v3 = vld [vmem:[%s8280_s15 + $0xd14] ss:$8 sps:$4 sm:$0xff]  }
 0x184   : > { %5247 = vmatpush2.bf16.msra.mxu1 %v7591_v4  ;;  %5207 = vmatprep.subr.bf16.mxu0 %v7596_v5  ;;  %v7655_v4 = vld [vmem:[%s8280_s15 + $0xc10] ss:$8 sps:$4 sm:$0xff]  }
 0x185   : > { %5248 = vmatprep.subr.bf16.mxu1 %v7599_v6  ;;  %v7658_v5 = vld [vmem:[%s8280_s15 + $0xd10] ss:$8 sps:$4 sm:$0xff]   ;;  %v7663_v6 = vld [vmem:[%s8280_s15 + $0xc04] ss:$8 sps:$4 sm:$0xff]  }
 0x187   : > { %5208 = vmatpush2.bf16.msra.mxu0 %v7594_v8  ;;  %v7666_v8 = vld [vmem:[%s8280_s15 + $0xd04] ss:$8 sps:$4 sm:$0xff]  }
 0x188   : > { %5249 = vmatpush2.bf16.msra.mxu1 %v7597_v9  ;;  %5209 = vmatprep.subr.bf16.mxu0 %v7602_v10  ;;  %v7661_v9 = vld [vmem:[%s8280_s15 + $0xc00] ss:$8 sps:$4 sm:$0xff]  }
 0x189   : > { %5250 = vmatprep.subr.bf16.mxu1 %v7605_v36  ;;  %v7664_v10 = vld [vmem:[%s8280_s15 + $0xd00] ss:$8 sps:$4 sm:$0xff]   ;;  %v7669_v36 = vld [vmem:[%s8280_s15 + $0xcf4] ss:$8 sps:$4 sm:$0xff]  }
 0x18b   : > { %5210 = vmatpush2.bf16.msra.mxu0 %v7600_v11  ;;  %v7672_v11 = vld [vmem:[%s8280_s15 + $0xdf4] ss:$8 sps:$4 sm:$0xff]  }
 0x18c   : > { %5251 = vmatpush2.bf16.msra.mxu1 %v7603_v13  ;;  %5211 = vmatprep.subr.bf16.mxu0 %v7608_v14  ;;  %v7667_v13 = vld [vmem:[%s8280_s15 + $0xcf0] ss:$8 sps:$4 sm:$0xff]  }
 0x18d   : > { %5252 = vmatprep.subr.bf16.mxu1 %v7611_v15  ;;  %v7670_v14 = vld [vmem:[%s8280_s15 + $0xdf0] ss:$8 sps:$4 sm:$0xff]   ;;  %v7675_v15 = vld [vmem:[%s8280_s15 + $0xce4] ss:$8 sps:$4 sm:$0xff]  }
 0x18f   : > { %5212 = vmatpush2.bf16.msra.mxu0 %v7606_v17  ;;  %v7678_v17 = vld [vmem:[%s8280_s15 + $0xde4] ss:$8 sps:$4 sm:$0xff]  }
 0x190   : > { %5253 = vmatpush2.bf16.msra.mxu1 %v7609_v18  ;;  %5213 = vmatprep.subr.bf16.mxu0 %v7614_v19  ;;  %v7673_v18 = vld [vmem:[%s8280_s15 + $0xce0] ss:$8 sps:$4 sm:$0xff]  }
 0x191   : > { %5254 = vmatprep.subr.bf16.mxu1 %v7617_v20  ;;  %v7676_v19 = vld [vmem:[%s8280_s15 + $0xde0] ss:$8 sps:$4 sm:$0xff]   ;;  %v7681_v20 = vld [vmem:[%s8280_s15 + $0xcd4] ss:$8 sps:$4 sm:$0xff]  }
 0x193   : > { %5214 = vmatpush2.bf16.msra.mxu0 %v7612_v23  ;;  %v7679_v23 = vld [vmem:[%s8280_s15 + $0xcd0] ss:$8 sps:$4 sm:$0xff]  }
 0x194   : > { %5255 = vmatpush2.bf16.msra.mxu1 %v7615_v24  ;;  %5265 = vmatprep.subr.bf16.mxu0 %v7621_v27  ;;  %v7687_v24 = vld [vmem:[%s8280_s15 + $0xcc4] ss:$8 sps:$4 sm:$0xff]  }
 0x195   : > { %5306 = vmatprep.subr.bf16.mxu1 %v7624_v28  ;;  %v7690_v27 = vld [vmem:[%s8280_s15 + $0xdc4] ss:$8 sps:$4 sm:$0xff]   ;;  %v7685_v28 = vld [vmem:[%s8280_s15 + $0xcc0] ss:$8 sps:$4 sm:$0xff]  }
 0x196   : > { %v4971_v37 = vpop.f32.mrf.mxu0  ;;  %5216 = vmatmul.mubr.bf16.vlgmr.msra.gmra.mxu0 %v1150_v58  ;;  %v7682_v58 = vld [vmem:[%s8280_s15 + $0xdd0] ss:$8 sps:$4 sm:$0xff]  }
 0x197   : > { %v5012_v38 = vpop.f32.mrf.mxu1  ;;  %5257 = vmatmul.mubr.bf16.vlgmr.msra.gmra.mxu1 %v1166_v29  ;;  %v4972_v30 = vadd.f32 %v4971_v37, %v8678_v22  ;;  %5266 = vmatpush1.bf16.msra.mxu0 %v7619_v63  ;;  %v7631_v22 = vld [vmem:[%s8280_s15 + $0xc50] ss:$8 sps:$4 sm:$0xff]   ;;  %v7688_v63 = vld [vmem:[%s8280_s15 + $0xdc0] ss:$8 sps:$4 sm:$0xff]   ;;  %v7696_v29 = vld [vmem:[%s8280_s15 + $0xdb4] ss:$8 sps:$4 sm:$0xff]  }
 0x198   : > { %5307 = vmatpush1.bf16.msra.mxu1 %v7622_v31  ;;  %v4973_v41 = vpop.f32.mrf.mxu0  ;;  %5267 = vmatprep.subr.bf16.mxu0 %v7627_v33  ;;  %v7691_v31 = vld [vmem:[%s8280_s15 + $0xcb0] ss:$8 sps:$4 sm:$0xff]   ;;  %v7697_v37 = vld [vmem:[%s8280_s15 + $0xca0] ss:$8 sps:$4 sm:$0xff]  }
 0x199   : > { %v5014_v42 = vpop.f32.mrf.mxu1  ;;  %5308 = vmatprep.subr.bf16.mxu1 %v7630_v57  ;;  %v4974_v45 = vadd.f32 %v4973_v41, %v8681_v25  ;;  %v8760_v46 = vadd.f32 %v5012_v38, %v4972_v30  ;;  %5297 = vmatprep.mubr.bf16.mxu0 %v1206_v7  ;;  %v7639_v25 = vld [vmem:[%s8280_s15 + $0xc44] ss:$8 sps:$4 sm:$0xff]   ;;  %v7693_v7 = vld [vmem:[%s8280_s15 + $0xcb4] ss:$8 sps:$4 sm:$0xff]   ;;  %v7694_v33 = vld [vmem:[%s8280_s15 + $0xdb0] ss:$8 sps:$4 sm:$0xff]  }
 0x19a   : > { %5338 = vmatprep.mubr.bf16.mxu1 %v1216_v35  ;;  %v4975_v47 = vpop.f32.mrf.mxu0  ;;  %v7699_v57 = vld [vmem:[%s8280_s15 + $0xca4] ss:$8 sps:$4 sm:$0xff]   ;;  %v1169_v35 = vcombine.high %v8728_v12, %v8728_v12  ;;  %v7700_v38 = vld [vmem:[%s8280_s15 + $0xda0] ss:$8 sps:$4 sm:$0xff]   ;;  %v7708_v30 = vld [vmem:[%s8280_s15 + $0xd94] ss:$8 sps:$4 sm:$0xff]  }
 0x19b   : > { %v5016_v48 = vpop.f32.mrf.mxu1  ;;  %v8763_v49 = vadd.f32 %v5014_v42, %v4974_v45  ;;  %5268 = vmatpush1.bf16.msra.mxu0 %v7625_v34  ;;  %v7702_v34 = vld [vmem:[%s8280_s15 + $0xda4] ss:$8 sps:$4 sm:$0xff]   ;;  %v7703_v41 = vld [vmem:[%s8280_s15 + $0xc90] ss:$8 sps:$4 sm:$0xff]   ;;  %v1192_v47 = vrot.slane %v8735_v16, %v8330_v50 }
 0x19c   : > { %5309 = vmatpush1.bf16.msra.mxu1 %v7628_v39  ;;  %v4976_v52 = vpop.f32.mrf.mxu0  ;;  %5269 = vmatprep.subr.bf16.mxu0 %v7633_v40  ;;  %v7705_v39 = vld [vmem:[%s8280_s15 + $0xc94] ss:$8 sps:$4 sm:$0xff]   ;;  %v8815_v40 = vrot.slane %v1169_v35, %v8330_v50  ;;  %v7706_v42 = vld [vmem:[%s8280_s15 + $0xd90] ss:$8 sps:$4 sm:$0xff]   ;;  %v7711_v12 = vld [vmem:[%s8280_s15 + $0xc84] ss:$8 sps:$4 sm:$0xff]  }
 0x19d   : > { %5310 = vmatprep.subr.bf16.mxu1 %v7636_v43  ;;  %v5017_v53 = vpop.f32.mrf.mxu1  ;;  %v7714_v43 = vld [vmem:[%s8280_s15 + $0xd84] ss:$8 sps:$4 sm:$0xff]   ;;  %v7712_v48 = vld [vmem:[%s8280_s15 + $0xd80] ss:$8 sps:$4 sm:$0xff]   ;;  %v7720_v52 = vld [vmem:[%s8280_s15 + $0xf74] ss:$8 sps:$4 sm:$0xff]  }
 0x19e   : > { %v1185_v45 = vcombine.high %v8815_v40, %v8815_v40  ;;  %v7715_v53 = vld [vmem:[%s8280_s15 + $0xe70] ss:$8 sps:$4 sm:$0xff]   ;;  %v7723_v16 = vld [vmem:[%s8280_s15 + $0xe64] ss:$8 sps:$4 sm:$0xff]   ;;  %v7768_v35 = vld [vmem:[%s8280_s15 + $0xff4] ss:$8 sps:$4 sm:$0xff]  }
 0x19f   : > { %5270 = vmatpush1.bf16.msra.mxu0 %v7631_v22  ;;  %v7709_v22 = vld [vmem:[%s8280_s15 + $0xc80] ss:$8 sps:$4 sm:$0xff]  }
 0x1a0   : > { %5311 = vmatpush1.bf16.msra.mxu1 %v7634_v51  ;;  %5271 = vmatprep.subr.bf16.mxu0 %v7639_v25  ;;  %v7717_v51 = vld [vmem:[%s8280_s15 + $0xe74] ss:$8 sps:$4 sm:$0xff]   ;;  %v1213_v25 = vrot.slane %v1185_v45, %v8330_v50  ;;  %v7775_v45 = vld [vmem:[%s8280_s15 + $0xed0] ss:$8 sps:$4 sm:$0xff]  }
 0x1a1   : > { %5312 = vmatprep.subr.bf16.mxu1 %v7642_v26  ;;  %v1214_v26 = vcombine.high %v1192_v47, %v1192_v47 }
 0x1a3   : > { %5272 = vmatpush1.bf16.msra.mxu0 %v7637_v54  ;;  %v7718_v54 = vld [vmem:[%s8280_s15 + $0xf70] ss:$8 sps:$4 sm:$0xff]  }
 0x1a4   : > { %5313 = vmatpush1.bf16.msra.mxu1 %v7640_v55  ;;  %5273 = vmatprep.subr.bf16.mxu0 %v7645_v56  ;;  %v7726_v55 = vld [vmem:[%s8280_s15 + $0xf64] ss:$8 sps:$4 sm:$0xff]   ;;  %v1217_v56 = vcombine.high %v1213_v25, %v1213_v25 }
 0x1a5   : > { %5314 = vmatprep.subr.bf16.mxu1 %v7648_v59 }
 0x1a7   : > { %5274 = vmatpush1.bf16.msra.mxu0 %v7643_v32 }
 0x1a8   : > { %5315 = vmatpush1.bf16.msra.mxu1 %v7646_v60  ;;  %5275 = vmatprep.subr.bf16.mxu0 %v7651_v61  ;;  %v7721_v61 = vld [vmem:[%s8280_s15 + $0xe60] ss:$8 sps:$4 sm:$0xff]  }
 0x1a9   : > { %5316 = vmatprep.subr.bf16.mxu1 %v7654_v62  ;;  %v7724_v62 = vld [vmem:[%s8280_s15 + $0xf60] ss:$8 sps:$4 sm:$0xff]  }
 0x1ab   : > { %5276 = vmatpush1.bf16.msra.mxu0 %v7649_v0 }
 0x1ac   : > { %5317 = vmatpush1.bf16.msra.mxu1 %v7652_v1  ;;  %5277 = vmatprep.subr.bf16.mxu0 %v7657_v2  ;;  %v7729_v2 = vld [vmem:[%s8280_s15 + $0xe54] ss:$8 sps:$4 sm:$0xff]  }
 0x1ad   : > { %5318 = vmatprep.subr.bf16.mxu1 %v7660_v3  ;;  %v7732_v3 = vld [vmem:[%s8280_s15 + $0xf54] ss:$8 sps:$4 sm:$0xff]  }
 0x1af   : > { %5278 = vmatpush1.bf16.msra.mxu0 %v7655_v4 }
 0x1b0   : > { %5319 = vmatpush1.bf16.msra.mxu1 %v7658_v5  ;;  %5279 = vmatprep.subr.bf16.mxu0 %v7663_v6 }
 0x1b1   : > { %5320 = vmatprep.subr.bf16.mxu1 %v7666_v8 }
 0x1b3   : > { %5280 = vmatpush1.bf16.msra.mxu0 %v7661_v9  ;;  %v7727_v9 = vld [vmem:[%s8280_s15 + $0xe50] ss:$8 sps:$4 sm:$0xff]  }
 0x1b4   : > { %5321 = vmatpush1.bf16.msra.mxu1 %v7664_v10  ;;  %5281 = vmatprep.subr.bf16.mxu0 %v7669_v36  ;;  %v7730_v10 = vld [vmem:[%s8280_s15 + $0xf50] ss:$8 sps:$4 sm:$0xff]  }
 0x1b5   : > { %5322 = vmatprep.subr.bf16.mxu1 %v7672_v11  ;;  %v7738_v11 = vld [vmem:[%s8280_s15 + $0xf44] ss:$8 sps:$4 sm:$0xff]  }
 0x1b7   : > { %5282 = vmatpush2.bf16.msra.mxu0 %v7667_v13 }
 0x1b8   : > { %5323 = vmatpush2.bf16.msra.mxu1 %v7670_v14  ;;  %5283 = vmatprep.subr.bf16.mxu0 %v7675_v15  ;;  %v7733_v14 = vld [vmem:[%s8280_s15 + $0xe40] ss:$8 sps:$4 sm:$0xff]  }
 0x1b9   : > { %5324 = vmatprep.subr.bf16.mxu1 %v7678_v17  ;;  %v7736_v15 = vld [vmem:[%s8280_s15 + $0xf40] ss:$8 sps:$4 sm:$0xff]   ;;  %v7741_v17 = vld [vmem:[%s8280_s15 + $0xe34] ss:$8 sps:$4 sm:$0xff]  }
 0x1bb   : > { %5284 = vmatpush2.bf16.msra.mxu0 %v7673_v18  ;;  %v7744_v18 = vld [vmem:[%s8280_s15 + $0xf34] ss:$8 sps:$4 sm:$0xff]  }
 0x1bc   : > { %5325 = vmatpush2.bf16.msra.mxu1 %v7676_v19  ;;  %5285 = vmatprep.subr.bf16.mxu0 %v7681_v20  ;;  %v7739_v19 = vld [vmem:[%s8280_s15 + $0xe30] ss:$8 sps:$4 sm:$0xff]  }
 0x1bd   : > { %5326 = vmatprep.subr.bf16.mxu1 %v7684_v21  ;;  %v7742_v20 = vld [vmem:[%s8280_s15 + $0xf30] ss:$8 sps:$4 sm:$0xff]   ;;  %v7747_v21 = vld [vmem:[%s8280_s15 + $0xe24] ss:$8 sps:$4 sm:$0xff]  }
 0x1bf   : > { %5286 = vmatpush2.bf16.msra.mxu0 %v7679_v23  ;;  %v7750_v23 = vld [vmem:[%s8280_s15 + $0xf24] ss:$8 sps:$4 sm:$0xff]  }
 0x1c0   : > { %5327 = vmatpush2.bf16.msra.mxu1 %v7682_v58  ;;  %5287 = vmatprep.subr.bf16.mxu0 %v7687_v24  ;;  %v7745_v58 = vld [vmem:[%s8280_s15 + $0xe20] ss:$8 sps:$4 sm:$0xff]  }
 0x1c1   : > { %5328 = vmatprep.subr.bf16.mxu1 %v7690_v27  ;;  %v7748_v24 = vld [vmem:[%s8280_s15 + $0xf20] ss:$8 sps:$4 sm:$0xff]   ;;  %v7753_v27 = vld [vmem:[%s8280_s15 + $0xe14] ss:$8 sps:$4 sm:$0xff]  }
 0x1c3   : > { %5288 = vmatpush2.bf16.msra.mxu0 %v7685_v28  ;;  %v7756_v28 = vld [vmem:[%s8280_s15 + $0xf14] ss:$8 sps:$4 sm:$0xff]  }
 0x1c4   : > { %5329 = vmatpush2.bf16.msra.mxu1 %v7688_v63  ;;  %5289 = vmatprep.subr.bf16.mxu0 %v7693_v7  ;;  %v7751_v63 = vld [vmem:[%s8280_s15 + $0xe10] ss:$8 sps:$4 sm:$0xff]  }
 0x1c5   : > { %5330 = vmatprep.subr.bf16.mxu1 %v7696_v29  ;;  %v7754_v7 = vld [vmem:[%s8280_s15 + $0xf10] ss:$8 sps:$4 sm:$0xff]   ;;  %v7759_v29 = vld [vmem:[%s8280_s15 + $0xe04] ss:$8 sps:$4 sm:$0xff]  }
 0x1c7   : > { %5290 = vmatpush2.bf16.msra.mxu0 %v7691_v31  ;;  %v7762_v31 = vld [vmem:[%s8280_s15 + $0xf04] ss:$8 sps:$4 sm:$0xff]  }
 0x1c8   : > { %5331 = vmatpush2.bf16.msra.mxu1 %v7694_v33  ;;  %5291 = vmatprep.subr.bf16.mxu0 %v7699_v57  ;;  %v7757_v33 = vld [vmem:[%s8280_s15 + $0xe00] ss:$8 sps:$4 sm:$0xff]  }
 0x1c9   : > { %5332 = vmatprep.subr.bf16.mxu1 %v7702_v34  ;;  %v7760_v57 = vld [vmem:[%s8280_s15 + $0xf00] ss:$8 sps:$4 sm:$0xff]   ;;  %v7765_v34 = vld [vmem:[%s8280_s15 + $0xef4] ss:$8 sps:$4 sm:$0xff]  }
 0x1cb   : > { %5292 = vmatpush2.bf16.msra.mxu0 %v7697_v37  ;;  %v7763_v37 = vld [vmem:[%s8280_s15 + $0xef0] ss:$8 sps:$4 sm:$0xff]  }
 0x1cc   : > { %5333 = vmatpush2.bf16.msra.mxu1 %v7700_v38  ;;  %5293 = vmatprep.subr.bf16.mxu0 %v7705_v39  ;;  %v7766_v38 = vld [vmem:[%s8280_s15 + $0xff0] ss:$8 sps:$4 sm:$0xff]   ;;  %v7771_v39 = vld [vmem:[%s8280_s15 + $0xee4] ss:$8 sps:$4 sm:$0xff]  }
 0x1cd   : > { %5334 = vmatprep.subr.bf16.mxu1 %v7708_v30  ;;  %v7774_v30 = vld [vmem:[%s8280_s15 + $0xfe4] ss:$8 sps:$4 sm:$0xff]  }
 0x1cf   : > { %5294 = vmatpush2.bf16.msra.mxu0 %v7703_v41  ;;  %v7769_v41 = vld [vmem:[%s8280_s15 + $0xee0] ss:$8 sps:$4 sm:$0xff]  }
 0x1d0   : > { %5335 = vmatpush2.bf16.msra.mxu1 %v7706_v42  ;;  %5295 = vmatprep.subr.bf16.mxu0 %v7711_v12  ;;  %v7772_v42 = vld [vmem:[%s8280_s15 + $0xfe0] ss:$8 sps:$4 sm:$0xff]   ;;  %v7777_v12 = vld [vmem:[%s8280_s15 + $0xed4] ss:$8 sps:$4 sm:$0xff]  }
 0x1d1   : > { %5336 = vmatprep.subr.bf16.mxu1 %v7714_v43  ;;  %v7780_v43 = vld [vmem:[%s8280_s15 + $0xfd4] ss:$8 sps:$4 sm:$0xff]  }
 0x1d3   : > { %5296 = vmatpush2.bf16.msra.mxu0 %v7709_v22  ;;  %v7783_v22 = vld [vmem:[%s8280_s15 + $0xec4] ss:$8 sps:$4 sm:$0xff]  }
 0x1d4   : > { %5337 = vmatpush2.bf16.msra.mxu1 %v7712_v48  ;;  %5347 = vmatprep.subr.bf16.mxu0 %v7717_v51  ;;  %v7786_v48 = vld [vmem:[%s8280_s15 + $0xfc4] ss:$8 sps:$4 sm:$0xff]   ;;  %v7781_v51 = vld [vmem:[%s8280_s15 + $0xec0] ss:$8 sps:$4 sm:$0xff]  }
 0x1d5   : > { %5388 = vmatprep.subr.bf16.mxu1 %v7720_v52  ;;  %v7784_v52 = vld [vmem:[%s8280_s15 + $0xfc0] ss:$8 sps:$4 sm:$0xff]  }
 0x1d6   : > { %v5053_v59 = vpop.f32.mrf.mxu0  ;;  %5298 = vmatmul.mubr.bf16.vlgmr.msra.gmra.mxu0 %v1192_v47  ;;  %v7778_v47 = vld [vmem:[%s8280_s15 + $0xfd0] ss:$8 sps:$4 sm:$0xff]  }
 0x1d7   : > { %v5094_v32 = vpop.f32.mrf.mxu1  ;;  %5339 = vmatmul.mubr.bf16.vlgmr.msra.gmra.mxu1 %v1214_v26  ;;  %v5054_v60 = vadd.f32 %v5053_v59, %v8760_v46  ;;  %5348 = vmatpush1.bf16.msra.mxu0 %v7715_v53  ;;  %v7792_v26 = vld [vmem:[%s8280_s15 + $0xfb4] ss:$8 sps:$4 sm:$0xff]   ;;  %v7787_v53 = vld [vmem:[%s8280_s15 + $0xeb0] ss:$8 sps:$4 sm:$0xff]   ;;  %v7793_v59 = vld [vmem:[%s8280_s15 + $0xea0] ss:$8 sps:$4 sm:$0xff]  }
 0x1d8   : > { %5389 = vmatpush1.bf16.msra.mxu1 %v7718_v54  ;;  %v5055_v0 = vpop.f32.mrf.mxu0  ;;  %5349 = vmatprep.subr.bf16.mxu0 %v7723_v16  ;;  %v7790_v54 = vld [vmem:[%s8280_s15 + $0xfb0] ss:$8 sps:$4 sm:$0xff]   ;;  %v7795_v16 = vld [vmem:[%s8280_s15 + $0xea4] ss:$8 sps:$4 sm:$0xff]  }
 0x1d9   : > { %v5096_v1 = vpop.f32.mrf.mxu1  ;;  %5390 = vmatprep.subr.bf16.mxu1 %v7726_v55  ;;  %v5056_v4 = vadd.f32 %v5055_v0, %v8763_v49  ;;  %v8840_v5 = vadd.f32 %v5094_v32, %v5054_v60  ;;  %5379 = vmatprep.mubr.bf16.mxu0 %v1213_v25  ;;  %v7735_v49 = vld [vmem:[%s8280_s15 + $0xe44] ss:$8 sps:$4 sm:$0xff]   ;;  %v7789_v25 = vld [vmem:[%s8280_s15 + $0xeb4] ss:$8 sps:$4 sm:$0xff]   ;;  %v7796_v32 = vld [vmem:[%s8280_s15 + $0xfa0] ss:$8 sps:$4 sm:$0xff]  }
 0x1da   : > { %5420 = vmatprep.mubr.bf16.mxu1 %v1217_v56  ;;  %v5057_v46 = vpop.f32.mrf.mxu0  ;;  %v7798_v55 = vld [vmem:[%s8280_s15 + $0xfa4] ss:$8 sps:$4 sm:$0xff]   ;;  %v7801_v60 = vld [vmem:[%s8280_s15 + $0xe94] ss:$8 sps:$4 sm:$0xff]   ;;  %v7799_v0 = vld [vmem:[%s8280_s15 + $0xe90] ss:$8 sps:$4 sm:$0xff]  }
 0x1db   : > { %v5098_v6 = vpop.f32.mrf.mxu1  ;;  %v8842_v8 = vadd.f32 %v5096_v1, %v5056_v4  ;;  %5350 = vmatpush1.bf16.msra.mxu0 %v7721_v61  ;;  %v8889_v56 = vld [vmem:[%s8275_s11 + $0x20] sm:$0xff]  ;;  %v7804_v61 = vld [vmem:[%s8280_s15 + $0xf94] ss:$8 sps:$4 sm:$0xff]   ;;  %v7802_v1 = vld [vmem:[%s8280_s15 + $0xf90] ss:$8 sps:$4 sm:$0xff]   ;;  %v1199_v46 = vrot.slane %v8815_v40, %v8330_v50 }
 0x1dc   : > { %5391 = vmatpush1.bf16.msra.mxu1 %v7724_v62  ;;  %v5058_v36 = vpop.f32.mrf.mxu0  ;;  %5351 = vmatprep.subr.bf16.mxu0 %v7729_v2  ;;  %v8897_v62 = vrot.slane %v8889_v56, %v8330_v50  ;;  %v7807_v2 = vld [vmem:[%s8280_s15 + $0xe84] ss:$8 sps:$4 sm:$0xff]   ;;  %v7805_v6 = vld [vmem:[%s8280_s15 + $0xe80] ss:$8 sps:$4 sm:$0xff]  }
 0x1dd   : > { %5392 = vmatprep.subr.bf16.mxu1 %v7732_v3  ;;  %v5099_v13 = vpop.f32.mrf.mxu1  ;;  %v7810_v3 = vld [vmem:[%s8280_s15 + $0xf84] ss:$8 sps:$4 sm:$0xff]   ;;  %v7817_v36 = vld [vmem:[%s8280_s15 + $0x1174] ss:$8 sps:$4 sm:$0xff]  }
 0x1de   : > { %v1233_v4 = vcombine.high %v8897_v62, %v8897_v62  ;;  %v7812_v13 = vld [vmem:[%s8280_s15 + $0x1070] ss:$8 sps:$4 sm:$0xff]   ;;  %v7820_v40 = vld [vmem:[%s8280_s15 + $0x1064] ss:$8 sps:$4 sm:$0xff]  }
 0x1df   : > { %5352 = vmatpush1.bf16.msra.mxu0 %v7727_v9  ;;  %v7808_v9 = vld [vmem:[%s8280_s15 + $0xf80] ss:$8 sps:$4 sm:$0xff]  }
 0x1e0   : > { %5393 = vmatpush1.bf16.msra.mxu1 %v7730_v10  ;;  %5353 = vmatprep.subr.bf16.mxu0 %v7735_v49  ;;  %v7814_v10 = vld [vmem:[%s8280_s15 + $0x1074] ss:$8 sps:$4 sm:$0xff]   ;;  %v1255_v49 = vrot.slane %v1233_v4, %v8330_v50 }
 0x1e1   : > { %5394 = vmatprep.subr.bf16.mxu1 %v7738_v11  ;;  %v1215_v11 = vcombine.high %v1199_v46, %v1199_v46  ;;  %v7877_v4 = vld [vmem:[%s8280_s15 + $0x11d4] ss:$8 sps:$4 sm:$0xff]  }
 0x1e3   : > { %5354 = vmatpush1.bf16.msra.mxu0 %v7733_v14  ;;  %v7815_v14 = vld [vmem:[%s8280_s15 + $0x1170] ss:$8 sps:$4 sm:$0xff]  }
 0x1e4   : > { %5395 = vmatpush1.bf16.msra.mxu1 %v7736_v15  ;;  %5355 = vmatprep.subr.bf16.mxu0 %v7741_v17  ;;  %v7823_v15 = vld [vmem:[%s8280_s15 + $0x1164] ss:$8 sps:$4 sm:$0xff]   ;;  %v1265_v17 = vcombine.high %v1255_v49, %v1255_v49 }
 0x1e5   : > { %5396 = vmatprep.subr.bf16.mxu1 %v7744_v18 }
 0x1e7   : > { %5356 = vmatpush1.bf16.msra.mxu0 %v7739_v19 }
 0x1e8   : > { %5397 = vmatpush1.bf16.msra.mxu1 %v7742_v20  ;;  %5357 = vmatprep.subr.bf16.mxu0 %v7747_v21  ;;  %v7818_v21 = vld [vmem:[%s8280_s15 + $0x1060] ss:$8 sps:$4 sm:$0xff]  }
 0x1e9   : > { %5398 = vmatprep.subr.bf16.mxu1 %v7750_v23  ;;  %v7821_v23 = vld [vmem:[%s8280_s15 + $0x1160] ss:$8 sps:$4 sm:$0xff]  }
 0x1eb   : > { %5358 = vmatpush1.bf16.msra.mxu0 %v7745_v58 }
 0x1ec   : > { %5399 = vmatpush1.bf16.msra.mxu1 %v7748_v24  ;;  %5359 = vmatprep.subr.bf16.mxu0 %v7753_v27  ;;  %v7826_v27 = vld [vmem:[%s8280_s15 + $0x1054] ss:$8 sps:$4 sm:$0xff]  }
 0x1ed   : > { %5400 = vmatprep.subr.bf16.mxu1 %v7756_v28  ;;  %v7829_v28 = vld [vmem:[%s8280_s15 + $0x1154] ss:$8 sps:$4 sm:$0xff]  }
 0x1ef   : > { %5360 = vmatpush1.bf16.msra.mxu0 %v7751_v63 }
 0x1f0   : > { %5401 = vmatpush1.bf16.msra.mxu1 %v7754_v7  ;;  %5361 = vmatprep.subr.bf16.mxu0 %v7759_v29 }
 0x1f1   : > { %5402 = vmatprep.subr.bf16.mxu1 %v7762_v31 }
 0x1f3   : > { %5362 = vmatpush1.bf16.msra.mxu0 %v7757_v33  ;;  %v7824_v33 = vld [vmem:[%s8280_s15 + $0x1050] ss:$8 sps:$4 sm:$0xff]  }
 0x1f4   : > { %5403 = vmatpush1.bf16.msra.mxu1 %v7760_v57  ;;  %5363 = vmatprep.subr.bf16.mxu0 %v7765_v34  ;;  %v7827_v57 = vld [vmem:[%s8280_s15 + $0x1150] ss:$8 sps:$4 sm:$0xff]  }
 0x1f5   : > { %5404 = vmatprep.subr.bf16.mxu1 %v7768_v35  ;;  %v7835_v35 = vld [vmem:[%s8280_s15 + $0x1144] ss:$8 sps:$4 sm:$0xff]  }
 0x1f7   : > { %5364 = vmatpush2.bf16.msra.mxu0 %v7763_v37 }
 0x1f8   : > { %5405 = vmatpush2.bf16.msra.mxu1 %v7766_v38  ;;  %5365 = vmatprep.subr.bf16.mxu0 %v7771_v39  ;;  %v7830_v38 = vld [vmem:[%s8280_s15 + $0x1040] ss:$8 sps:$4 sm:$0xff]  }
 0x1f9   : > { %5406 = vmatprep.subr.bf16.mxu1 %v7774_v30  ;;  %v7833_v39 = vld [vmem:[%s8280_s15 + $0x1140] ss:$8 sps:$4 sm:$0xff]   ;;  %v7838_v30 = vld [vmem:[%s8280_s15 + $0x1034] ss:$8 sps:$4 sm:$0xff]  }
 0x1fb   : > { %5366 = vmatpush2.bf16.msra.mxu0 %v7769_v41  ;;  %v7841_v41 = vld [vmem:[%s8280_s15 + $0x1134] ss:$8 sps:$4 sm:$0xff]  }
 0x1fc   : > { %5407 = vmatpush2.bf16.msra.mxu1 %v7772_v42  ;;  %5367 = vmatprep.subr.bf16.mxu0 %v7777_v12  ;;  %v7836_v42 = vld [vmem:[%s8280_s15 + $0x1030] ss:$8 sps:$4 sm:$0xff]  }
 0x1fd   : > { %5408 = vmatprep.subr.bf16.mxu1 %v7780_v43  ;;  %v7839_v12 = vld [vmem:[%s8280_s15 + $0x1130] ss:$8 sps:$4 sm:$0xff]   ;;  %v7844_v43 = vld [vmem:[%s8280_s15 + $0x1024] ss:$8 sps:$4 sm:$0xff]  }
 0x1ff   : > { %5368 = vmatpush2.bf16.msra.mxu0 %v7775_v45  ;;  %v7847_v45 = vld [vmem:[%s8280_s15 + $0x1124] ss:$8 sps:$4 sm:$0xff]  }
 0x200   : > { %5409 = vmatpush2.bf16.msra.mxu1 %v7778_v47  ;;  %5369 = vmatprep.subr.bf16.mxu0 %v7783_v22  ;;  %v7842_v47 = vld [vmem:[%s8280_s15 + $0x1020] ss:$8 sps:$4 sm:$0xff]  }
 0x201   : > { %5410 = vmatprep.subr.bf16.mxu1 %v7786_v48  ;;  %v7845_v22 = vld [vmem:[%s8280_s15 + $0x1120] ss:$8 sps:$4 sm:$0xff]   ;;  %v7850_v48 = vld [vmem:[%s8280_s15 + $0x1014] ss:$8 sps:$4 sm:$0xff]  }
 0x203   : > { %5370 = vmatpush2.bf16.msra.mxu0 %v7781_v51  ;;  %v7853_v51 = vld [vmem:[%s8280_s15 + $0x1114] ss:$8 sps:$4 sm:$0xff]  }
 0x204   : > { %5411 = vmatpush2.bf16.msra.mxu1 %v7784_v52  ;;  %5371 = vmatprep.subr.bf16.mxu0 %v7789_v25  ;;  %v7848_v52 = vld [vmem:[%s8280_s15 + $0x1010] ss:$8 sps:$4 sm:$0xff]  }
 0x205   : > { %5412 = vmatprep.subr.bf16.mxu1 %v7792_v26  ;;  %v7851_v25 = vld [vmem:[%s8280_s15 + $0x1110] ss:$8 sps:$4 sm:$0xff]   ;;  %v7856_v26 = vld [vmem:[%s8280_s15 + $0x1004] ss:$8 sps:$4 sm:$0xff]  }
 0x207   : > { %5372 = vmatpush2.bf16.msra.mxu0 %v7787_v53  ;;  %v7859_v53 = vld [vmem:[%s8280_s15 + $0x1104] ss:$8 sps:$4 sm:$0xff]  }
 0x208   : > { %5413 = vmatpush2.bf16.msra.mxu1 %v7790_v54  ;;  %5373 = vmatprep.subr.bf16.mxu0 %v7795_v16  ;;  %v7854_v54 = vld [vmem:[%s8280_s15 + $0x1000] ss:$8 sps:$4 sm:$0xff]  }
 0x209   : > { %5414 = vmatprep.subr.bf16.mxu1 %v7798_v55  ;;  %v7857_v16 = vld [vmem:[%s8280_s15 + $0x1100] ss:$8 sps:$4 sm:$0xff]   ;;  %v7862_v55 = vld [vmem:[%s8280_s15 + $0x10f4] ss:$8 sps:$4 sm:$0xff]  }
 0x20b   : > { %5374 = vmatpush2.bf16.msra.mxu0 %v7793_v59  ;;  %v7865_v59 = vld [vmem:[%s8280_s15 + $0x11f4] ss:$8 sps:$4 sm:$0xff]  }
 0x20c   : > { %5415 = vmatpush2.bf16.msra.mxu1 %v7796_v32  ;;  %5375 = vmatprep.subr.bf16.mxu0 %v7801_v60  ;;  %v7860_v32 = vld [vmem:[%s8280_s15 + $0x10f0] ss:$8 sps:$4 sm:$0xff]  }
 0x20d   : > { %5416 = vmatprep.subr.bf16.mxu1 %v7804_v61  ;;  %v7863_v60 = vld [vmem:[%s8280_s15 + $0x11f0] ss:$8 sps:$4 sm:$0xff]   ;;  %v7868_v61 = vld [vmem:[%s8280_s15 + $0x10e4] ss:$8 sps:$4 sm:$0xff]  }
 0x20f   : > { %5376 = vmatpush2.bf16.msra.mxu0 %v7799_v0  ;;  %v7871_v0 = vld [vmem:[%s8280_s15 + $0x11e4] ss:$8 sps:$4 sm:$0xff]  }
 0x210   : > { %5417 = vmatpush2.bf16.msra.mxu1 %v7802_v1  ;;  %5377 = vmatprep.subr.bf16.mxu0 %v7807_v2  ;;  %v7866_v1 = vld [vmem:[%s8280_s15 + $0x10e0] ss:$8 sps:$4 sm:$0xff]  }
 0x211   : > { %5418 = vmatprep.subr.bf16.mxu1 %v7810_v3  ;;  %v7869_v2 = vld [vmem:[%s8280_s15 + $0x11e0] ss:$8 sps:$4 sm:$0xff]   ;;  %v7874_v3 = vld [vmem:[%s8280_s15 + $0x10d4] ss:$8 sps:$4 sm:$0xff]  }
 0x213   : > { %5378 = vmatpush2.bf16.msra.mxu0 %v7805_v6  ;;  %v7875_v6 = vld [vmem:[%s8280_s15 + $0x11d0] ss:$8 sps:$4 sm:$0xff]  }
 0x214   : > { %5419 = vmatpush2.bf16.msra.mxu1 %v7808_v9  ;;  %5429 = vmatprep.subr.bf16.mxu0 %v7814_v10  ;;  %v7880_v9 = vld [vmem:[%s8280_s15 + $0x10c4] ss:$8 sps:$4 sm:$0xff]  }
 0x215   : > { %5470 = vmatprep.subr.bf16.mxu1 %v7817_v36  ;;  %v7883_v10 = vld [vmem:[%s8280_s15 + $0x11c4] ss:$8 sps:$4 sm:$0xff]   ;;  %v7878_v36 = vld [vmem:[%s8280_s15 + $0x10c0] ss:$8 sps:$4 sm:$0xff]  }
 0x216   : > { %v5135_v18 = vpop.f32.mrf.mxu0  ;;  %5380 = vmatmul.mubr.bf16.vlgmr.msra.gmra.mxu0 %v1199_v46  ;;  %v7872_v46 = vld [vmem:[%s8280_s15 + $0x10d0] ss:$8 sps:$4 sm:$0xff]  }
 0x217   : > { %v5176_v19 = vpop.f32.mrf.mxu1  ;;  %5421 = vmatmul.mubr.bf16.vlgmr.msra.gmra.mxu1 %v1215_v11  ;;  %v5136_v20 = vadd.f32 %v5135_v18, %v8840_v5  ;;  %5430 = vmatpush1.bf16.msra.mxu0 %v7812_v13  ;;  %v7886_v11 = vld [vmem:[%s8280_s15 + $0x10b4] ss:$8 sps:$4 sm:$0xff]   ;;  %v1218_v18 = vcombine.high %v8889_v56, %v8889_v56  ;;  %v7896_v56 = vld [vmem:[%s8280_s15 + $0x1090] ss:$8 sps:$4 sm:$0xff]  }
 0x218   : > { %5471 = vmatpush1.bf16.msra.mxu1 %v7815_v14  ;;  %v5137_v58 = vpop.f32.mrf.mxu0  ;;  %5431 = vmatprep.subr.bf16.mxu0 %v7820_v40  ;;  %v7889_v13 = vld [vmem:[%s8280_s15 + $0x11b4] ss:$8 sps:$4 sm:$0xff]   ;;  %v7884_v14 = vld [vmem:[%s8280_s15 + $0x10b0] ss:$8 sps:$4 sm:$0xff]  }
 0x219   : > { %v5178_v24 = vpop.f32.mrf.mxu1  ;;  %5472 = vmatprep.subr.bf16.mxu1 %v7823_v15  ;;  %v5138_v63 = vadd.f32 %v5137_v58, %v8842_v8  ;;  %v8922_v7 = vadd.f32 %v5176_v19, %v5136_v20  ;;  %5461 = vmatprep.mubr.bf16.mxu0 %v1255_v49  ;;  %v7832_v8 = vld [vmem:[%s8280_s15 + $0x1044] ss:$8 sps:$4 sm:$0xff]   ;;  %v7881_v49 = vld [vmem:[%s8280_s15 + $0x11c0] ss:$8 sps:$4 sm:$0xff]   ;;  %v7887_v40 = vld [vmem:[%s8280_s15 + $0x11b0] ss:$8 sps:$4 sm:$0xff]   ;;  %v8977_v58 = vrot.slane %v1218_v18, %v8330_v50 }
 0x21a   : > { %5502 = vmatprep.mubr.bf16.mxu1 %v1265_v17  ;;  %v5139_v5 = vpop.f32.mrf.mxu0  ;;  %v7892_v15 = vld [vmem:[%s8280_s15 + $0x10a4] ss:$8 sps:$4 sm:$0xff]   ;;  %v7890_v19 = vld [vmem:[%s8280_s15 + $0x10a0] ss:$8 sps:$4 sm:$0xff]   ;;  %v7961_v18 = vld [vmem:[%s8280_s15 + $0x13f4] ss:$8 sps:$4 sm:$0xff]  }
 0x21b   : > { %v5180_v29 = vpop.f32.mrf.mxu1  ;;  %v8924_v31 = vadd.f32 %v5178_v24, %v5138_v63  ;;  %5432 = vmatpush1.bf16.msra.mxu0 %v7818_v21  ;;  %v7895_v17 = vld [vmem:[%s8280_s15 + $0x11a4] ss:$8 sps:$4 sm:$0xff]   ;;  %v7893_v20 = vld [vmem:[%s8280_s15 + $0x11a0] ss:$8 sps:$4 sm:$0xff]   ;;  %v7898_v21 = vld [vmem:[%s8280_s15 + $0x1094] ss:$8 sps:$4 sm:$0xff]   ;;  %v1234_v63 = vcombine.high %v8977_v58, %v8977_v58  ;;  %v1241_v5 = vrot.slane %v8897_v62, %v8330_v50 }
 0x21c   : > { %5473 = vmatpush1.bf16.msra.mxu1 %v7821_v23  ;;  %v5140_v34 = vpop.f32.mrf.mxu0  ;;  %5433 = vmatprep.subr.bf16.mxu0 %v7826_v27  ;;  %v7901_v23 = vld [vmem:[%s8280_s15 + $0x1194] ss:$8 sps:$4 sm:$0xff]   ;;  %v7899_v24 = vld [vmem:[%s8280_s15 + $0x1190] ss:$8 sps:$4 sm:$0xff]   ;;  %v7904_v27 = vld [vmem:[%s8280_s15 + $0x1084] ss:$8 sps:$4 sm:$0xff]  }
 0x21d   : > { %5474 = vmatprep.subr.bf16.mxu1 %v7829_v28  ;;  %v5181_v37 = vpop.f32.mrf.mxu1  ;;  %v7907_v28 = vld [vmem:[%s8280_s15 + $0x1184] ss:$8 sps:$4 sm:$0xff]   ;;  %v7902_v29 = vld [vmem:[%s8280_s15 + $0x1080] ss:$8 sps:$4 sm:$0xff]   ;;  %v7913_v34 = vld [vmem:[%s8280_s15 + $0x1374] ss:$8 sps:$4 sm:$0xff]  }
 0x21e   : > { %v7908_v37 = vld [vmem:[%s8280_s15 + $0x1270] ss:$8 sps:$4 sm:$0xff]   ;;  %v7916_v62 = vld [vmem:[%s8280_s15 + $0x1264] ss:$8 sps:$4 sm:$0xff]  }
 0x21f   : > { %5434 = vmatpush1.bf16.msra.mxu0 %v7824_v33  ;;  %v7905_v33 = vld [vmem:[%s8280_s15 + $0x1180] ss:$8 sps:$4 sm:$0xff]  }
 0x220   : > { %5475 = vmatpush1.bf16.msra.mxu1 %v7827_v57  ;;  %5435 = vmatprep.subr.bf16.mxu0 %v7832_v8  ;;  %v7910_v57 = vld [vmem:[%s8280_s15 + $0x1274] ss:$8 sps:$4 sm:$0xff]   ;;  %v1262_v8 = vrot.slane %v1234_v63, %v8330_v50  ;;  %v7968_v63 = vld [vmem:[%s8280_s15 + $0x12d0] ss:$8 sps:$4 sm:$0xff]  }
 0x221   : > { %5476 = vmatprep.subr.bf16.mxu1 %v7835_v35  ;;  %v1263_v35 = vcombine.high %v1241_v5, %v1241_v5 }
 0x223   : > { %5436 = vmatpush1.bf16.msra.mxu0 %v7830_v38  ;;  %v7911_v38 = vld [vmem:[%s8280_s15 + $0x1370] ss:$8 sps:$4 sm:$0xff]  }
 0x224   : > { %5477 = vmatpush1.bf16.msra.mxu1 %v7833_v39  ;;  %5437 = vmatprep.subr.bf16.mxu0 %v7838_v30  ;;  %v7919_v39 = vld [vmem:[%s8280_s15 + $0x1364] ss:$8 sps:$4 sm:$0xff]   ;;  %v1266_v30 = vcombine.high %v1262_v8, %v1262_v8 }
 0x225   : > { %5478 = vmatprep.subr.bf16.mxu1 %v7841_v41 }
 0x227   : > { %5438 = vmatpush1.bf16.msra.mxu0 %v7836_v42 }
 0x228   : > { %5479 = vmatpush1.bf16.msra.mxu1 %v7839_v12  ;;  %5439 = vmatprep.subr.bf16.mxu0 %v7844_v43  ;;  %v7914_v43 = vld [vmem:[%s8280_s15 + $0x1260] ss:$8 sps:$4 sm:$0xff]  }
 0x229   : > { %5480 = vmatprep.subr.bf16.mxu1 %v7847_v45  ;;  %v7917_v45 = vld [vmem:[%s8280_s15 + $0x1360] ss:$8 sps:$4 sm:$0xff]  }
 0x22b   : > { %5440 = vmatpush1.bf16.msra.mxu0 %v7842_v47 }
 0x22c   : > { %5481 = vmatpush1.bf16.msra.mxu1 %v7845_v22  ;;  %5441 = vmatprep.subr.bf16.mxu0 %v7850_v48  ;;  %v7922_v48 = vld [vmem:[%s8280_s15 + $0x1254] ss:$8 sps:$4 sm:$0xff]  }
 0x22d   : > { %5482 = vmatprep.subr.bf16.mxu1 %v7853_v51  ;;  %v7925_v51 = vld [vmem:[%s8280_s15 + $0x1354] ss:$8 sps:$4 sm:$0xff]  }
 0x22f   : > { %5442 = vmatpush1.bf16.msra.mxu0 %v7848_v52 }
 0x230   : > { %5483 = vmatpush1.bf16.msra.mxu1 %v7851_v25  ;;  %5443 = vmatprep.subr.bf16.mxu0 %v7856_v26 }
 0x231   : > { %5484 = vmatprep.subr.bf16.mxu1 %v7859_v53 }
 0x233   : > { %5444 = vmatpush1.bf16.msra.mxu0 %v7854_v54  ;;  %v7920_v54 = vld [vmem:[%s8280_s15 + $0x1250] ss:$8 sps:$4 sm:$0xff]  }
 0x234   : > { %5485 = vmatpush1.bf16.msra.mxu1 %v7857_v16  ;;  %5445 = vmatprep.subr.bf16.mxu0 %v7862_v55  ;;  %v7923_v16 = vld [vmem:[%s8280_s15 + $0x1350] ss:$8 sps:$4 sm:$0xff]  }
 0x235   : > { %5486 = vmatprep.subr.bf16.mxu1 %v7865_v59  ;;  %v7931_v59 = vld [vmem:[%s8280_s15 + $0x1344] ss:$8 sps:$4 sm:$0xff]  }
 0x237   : > { %5446 = vmatpush2.bf16.msra.mxu0 %v7860_v32 }
 0x238   : > { %5487 = vmatpush2.bf16.msra.mxu1 %v7863_v60  ;;  %5447 = vmatprep.subr.bf16.mxu0 %v7868_v61  ;;  %v7926_v60 = vld [vmem:[%s8280_s15 + $0x1240] ss:$8 sps:$4 sm:$0xff]  }
 0x239   : > { %5488 = vmatprep.subr.bf16.mxu1 %v7871_v0  ;;  %v7929_v61 = vld [vmem:[%s8280_s15 + $0x1340] ss:$8 sps:$4 sm:$0xff]   ;;  %v7934_v0 = vld [vmem:[%s8280_s15 + $0x1234] ss:$8 sps:$4 sm:$0xff]  }
 0x23b   : > { %5448 = vmatpush2.bf16.msra.mxu0 %v7866_v1  ;;  %v7937_v1 = vld [vmem:[%s8280_s15 + $0x1334] ss:$8 sps:$4 sm:$0xff]  }
 0x23c   : > { %5489 = vmatpush2.bf16.msra.mxu1 %v7869_v2  ;;  %5449 = vmatprep.subr.bf16.mxu0 %v7874_v3  ;;  %v7932_v2 = vld [vmem:[%s8280_s15 + $0x1230] ss:$8 sps:$4 sm:$0xff]  }
 0x23d   : > { %5490 = vmatprep.subr.bf16.mxu1 %v7877_v4  ;;  %v7935_v3 = vld [vmem:[%s8280_s15 + $0x1330] ss:$8 sps:$4 sm:$0xff]   ;;  %v7940_v4 = vld [vmem:[%s8280_s15 + $0x1224] ss:$8 sps:$4 sm:$0xff]  }
 0x23f   : > { %5450 = vmatpush2.bf16.msra.mxu0 %v7872_v46  ;;  %v7943_v46 = vld [vmem:[%s8280_s15 + $0x1324] ss:$8 sps:$4 sm:$0xff]  }
 0x240   : > { %5491 = vmatpush2.bf16.msra.mxu1 %v7875_v6  ;;  %5451 = vmatprep.subr.bf16.mxu0 %v7880_v9  ;;  %v7938_v6 = vld [vmem:[%s8280_s15 + $0x1220] ss:$8 sps:$4 sm:$0xff]  }
 0x241   : > { %5492 = vmatprep.subr.bf16.mxu1 %v7883_v10  ;;  %v7941_v9 = vld [vmem:[%s8280_s15 + $0x1320] ss:$8 sps:$4 sm:$0xff]   ;;  %v7946_v10 = vld [vmem:[%s8280_s15 + $0x1214] ss:$8 sps:$4 sm:$0xff]  }
 0x243   : > { %5452 = vmatpush2.bf16.msra.mxu0 %v7878_v36  ;;  %v7949_v36 = vld [vmem:[%s8280_s15 + $0x1314] ss:$8 sps:$4 sm:$0xff]  }
 0x244   : > { %5493 = vmatpush2.bf16.msra.mxu1 %v7881_v49  ;;  %5453 = vmatprep.subr.bf16.mxu0 %v7886_v11  ;;  %v7944_v49 = vld [vmem:[%s8280_s15 + $0x1210] ss:$8 sps:$4 sm:$0xff]  }
 0x245   : > { %5494 = vmatprep.subr.bf16.mxu1 %v7889_v13  ;;  %v7947_v11 = vld [vmem:[%s8280_s15 + $0x1310] ss:$8 sps:$4 sm:$0xff]   ;;  %v7952_v13 = vld [vmem:[%s8280_s15 + $0x1204] ss:$8 sps:$4 sm:$0xff]  }
 0x247   : > { %5454 = vmatpush2.bf16.msra.mxu0 %v7884_v14  ;;  %v7955_v14 = vld [vmem:[%s8280_s15 + $0x1304] ss:$8 sps:$4 sm:$0xff]  }
 0x248   : > { %5495 = vmatpush2.bf16.msra.mxu1 %v7887_v40  ;;  %5455 = vmatprep.subr.bf16.mxu0 %v7892_v15  ;;  %v7950_v40 = vld [vmem:[%s8280_s15 + $0x1200] ss:$8 sps:$4 sm:$0xff]  }
 0x249   : > { %5496 = vmatprep.subr.bf16.mxu1 %v7895_v17  ;;  %v7953_v15 = vld [vmem:[%s8280_s15 + $0x1300] ss:$8 sps:$4 sm:$0xff]   ;;  %v7958_v17 = vld [vmem:[%s8280_s15 + $0x12f4] ss:$8 sps:$4 sm:$0xff]  }
 0x24b   : > { %5456 = vmatpush2.bf16.msra.mxu0 %v7890_v19  ;;  %v7956_v19 = vld [vmem:[%s8280_s15 + $0x12f0] ss:$8 sps:$4 sm:$0xff]  }
 0x24c   : > { %5497 = vmatpush2.bf16.msra.mxu1 %v7893_v20  ;;  %5457 = vmatprep.subr.bf16.mxu0 %v7898_v21  ;;  %v7959_v20 = vld [vmem:[%s8280_s15 + $0x13f0] ss:$8 sps:$4 sm:$0xff]   ;;  %v7964_v21 = vld [vmem:[%s8280_s15 + $0x12e4] ss:$8 sps:$4 sm:$0xff]  }
 0x24d   : > { %5498 = vmatprep.subr.bf16.mxu1 %v7901_v23  ;;  %v7967_v23 = vld [vmem:[%s8280_s15 + $0x13e4] ss:$8 sps:$4 sm:$0xff]  }
 0x24f   : > { %5458 = vmatpush2.bf16.msra.mxu0 %v7896_v56  ;;  %v7962_v56 = vld [vmem:[%s8280_s15 + $0x12e0] ss:$8 sps:$4 sm:$0xff]  }
 0x250   : > { %5499 = vmatpush2.bf16.msra.mxu1 %v7899_v24  ;;  %5459 = vmatprep.subr.bf16.mxu0 %v7904_v27  ;;  %v7965_v24 = vld [vmem:[%s8280_s15 + $0x13e0] ss:$8 sps:$4 sm:$0xff]   ;;  %v7970_v27 = vld [vmem:[%s8280_s15 + $0x12d4] ss:$8 sps:$4 sm:$0xff]  }
 0x251   : > { %5500 = vmatprep.subr.bf16.mxu1 %v7907_v28  ;;  %v7973_v28 = vld [vmem:[%s8280_s15 + $0x13d4] ss:$8 sps:$4 sm:$0xff]  }
 0x253   : > { %5460 = vmatpush2.bf16.msra.mxu0 %v7902_v29  ;;  %v7976_v29 = vld [vmem:[%s8280_s15 + $0x12c4] ss:$8 sps:$4 sm:$0xff]  }
 0x254   : > { %5501 = vmatpush2.bf16.msra.mxu1 %v7905_v33  ;;  %5511 = vmatprep.subr.bf16.mxu0 %v7910_v57  ;;  %v7979_v33 = vld [vmem:[%s8280_s15 + $0x13c4] ss:$8 sps:$4 sm:$0xff]   ;;  %v7974_v57 = vld [vmem:[%s8280_s15 + $0x12c0] ss:$8 sps:$4 sm:$0xff]  }
 0x255   : > { %5552 = vmatprep.subr.bf16.mxu1 %v7913_v34  ;;  %v7977_v34 = vld [vmem:[%s8280_s15 + $0x13c0] ss:$8 sps:$4 sm:$0xff]  }
 0x256   : > { %v5217_v41 = vpop.f32.mrf.mxu0  ;;  %5462 = vmatmul.mubr.bf16.vlgmr.msra.gmra.mxu0 %v1241_v5  ;;  %v7971_v5 = vld [vmem:[%s8280_s15 + $0x13d0] ss:$8 sps:$4 sm:$0xff]  }
 0x257   : > { %v5258_v42 = vpop.f32.mrf.mxu1  ;;  %5503 = vmatmul.mubr.bf16.vlgmr.msra.gmra.mxu1 %v1263_v35  ;;  %v5218_v12 = vadd.f32 %v5217_v41, %v8922_v7  ;;  %5512 = vmatpush1.bf16.msra.mxu0 %v7908_v37  ;;  %v7985_v35 = vld [vmem:[%s8280_s15 + $0x13b4] ss:$8 sps:$4 sm:$0xff]   ;;  %v7980_v37 = vld [vmem:[%s8280_s15 + $0x12b0] ss:$8 sps:$4 sm:$0xff]   ;;  %v7989_v41 = vld [vmem:[%s8280_s15 + $0x13a0] ss:$8 sps:$4 sm:$0xff]  }
 0x258   : > { %5553 = vmatpush1.bf16.msra.mxu1 %v7911_v38  ;;  %v5219_v47 = vpop.f32.mrf.mxu0  ;;  %5513 = vmatprep.subr.bf16.mxu0 %v7916_v62  ;;  %v7983_v38 = vld [vmem:[%s8280_s15 + $0x13b0] ss:$8 sps:$4 sm:$0xff]   ;;  %v7988_v62 = vld [vmem:[%s8280_s15 + $0x12a4] ss:$8 sps:$4 sm:$0xff]  }
 0x259   : > { %v5260_v22 = vpop.f32.mrf.mxu1  ;;  %5554 = vmatprep.subr.bf16.mxu1 %v7919_v39  ;;  %v5220_v52 = vadd.f32 %v5219_v47, %v8924_v31  ;;  %v9002_v25 = vadd.f32 %v5258_v42, %v5218_v12  ;;  %5543 = vmatprep.mubr.bf16.mxu0 %v1262_v8  ;;  %v7928_v31 = vld [vmem:[%s8280_s15 + $0x1244] ss:$8 sps:$4 sm:$0xff]   ;;  %v7982_v8 = vld [vmem:[%s8280_s15 + $0x12b4] ss:$8 sps:$4 sm:$0xff]  }
 0x25a   : > { %5584 = vmatprep.mubr.bf16.mxu1 %v1266_v30  ;;  %v5221_v7 = vpop.f32.mrf.mxu0  ;;  %v7991_v39 = vld [vmem:[%s8280_s15 + $0x13a4] ss:$8 sps:$4 sm:$0xff]   ;;  %v7986_v30 = vld [vmem:[%s8280_s15 + $0x12a0] ss:$8 sps:$4 sm:$0xff]   ;;  %v7994_v42 = vld [vmem:[%s8280_s15 + $0x1294] ss:$8 sps:$4 sm:$0xff]  }
 0x25b   : > { %v5262_v26 = vpop.f32.mrf.mxu1  ;;  %v9004_v53 = vadd.f32 %v5260_v22, %v5220_v52  ;;  %5514 = vmatpush1.bf16.msra.mxu0 %v7914_v43  ;;  %v7997_v12 = vld [vmem:[%s8280_s15 + $0x1394] ss:$8 sps:$4 sm:$0xff]   ;;  %v7992_v43 = vld [vmem:[%s8280_s15 + $0x1290] ss:$8 sps:$4 sm:$0xff]   ;;  %v8000_v47 = vld [vmem:[%s8280_s15 + $0x1284] ss:$8 sps:$4 sm:$0xff]  }
 0x25c   : > { %5555 = vmatpush1.bf16.msra.mxu1 %v7917_v45  ;;  %v5222_v55 = vpop.f32.mrf.mxu0  ;;  %5515 = vmatprep.subr.bf16.mxu0 %v7922_v48  ;;  %v7995_v45 = vld [vmem:[%s8280_s15 + $0x1390] ss:$8 sps:$4 sm:$0xff]   ;;  %v8003_v22 = vld [vmem:[%s8280_s15 + $0x1384] ss:$8 sps:$4 sm:$0xff]   ;;  %v1248_v48 = vrot.slane %v8977_v58, %v8330_v50  ;;  %v8001_v52 = vld [vmem:[%s8280_s15 + $0x1380] ss:$8 sps:$4 sm:$0xff]  }
 0x25d   : > { %5556 = vmatprep.subr.bf16.mxu1 %v7925_v51  ;;  %v5263_v32 = vpop.f32.mrf.mxu1  ;;  %v7998_v51 = vld [vmem:[%s8280_s15 + $0x1280] ss:$8 sps:$4 sm:$0xff]   ;;  %v8007_v7 = vld [vmem:[%s8280_s15 + $0x1474] ss:$8 sps:$4 sm:$0xff]   ;;  %v8005_v58 = vld [vmem:[%s8280_s15 + $0x1470] ss:$8 sps:$4 sm:$0xff]  }
 0x25e   : > { %v8031_v26 = vld [vmem:[%s8280_s15 + $0x1574] ss:$8 sps:$4 sm:$0xff]   ;;  %v1264_v55 = vcombine.high %v1248_v48, %v1248_v48  ;;  %v8037_v32 = vld [vmem:[%s8280_s15 + $0x1564] ss:$8 sps:$4 sm:$0xff]  }
 0x25f   : > { %5516 = vmatpush1.bf16.msra.mxu0 %v7920_v54  ;;  %v9065_v54 = vld.sshfl [vmem:[%s8275_s11 + $0x28] sm:$0x13 pattern:$0x75316420] }
 0x260   : > { %5557 = vmatpush1.bf16.msra.mxu1 %v7923_v16  ;;  %5517 = vmatprep.subr.bf16.mxu0 %v7928_v31  ;;  %v1274_v16 = vcombine.high %v9065_v54, %v9065_v54  ;;  %v8029_v31 = vld [vmem:[%s8280_s15 + $0x1570] ss:$8 sps:$4 sm:$0xff]  }
 0x261   : > { %5558 = vmatprep.subr.bf16.mxu1 %v7931_v59  ;;  %v8010_v59 = vld [vmem:[%s8280_s15 + $0x1464] ss:$8 sps:$4 sm:$0xff]  }
 0x263   : > { %5518 = vmatpush1.bf16.msra.mxu0 %v7926_v60  ;;  %v1288_v60 = vrot.slane %v1274_v16, %v8330_v50  ;;  %v8074_v16 = vld [vmem:[%s8280_s15 + $0x1480] ss:$8 sps:$4 sm:$0xff]  }
 0x264   : > { %5559 = vmatpush1.bf16.msra.mxu1 %v7929_v61  ;;  %5519 = vmatprep.subr.bf16.mxu0 %v7934_v0 }
 0x265   : > { %5560 = vmatprep.subr.bf16.mxu1 %v7937_v1 }
 0x267   : > { %5520 = vmatpush1.bf16.msra.mxu0 %v7932_v2  ;;  %v8008_v2 = vld [vmem:[%s8280_s15 + $0x1460] ss:$8 sps:$4 sm:$0xff]  }
 0x268   : > { %5561 = vmatpush1.bf16.msra.mxu1 %v7935_v3  ;;  %5521 = vmatprep.subr.bf16.mxu0 %v7940_v4  ;;  %v8035_v3 = vld [vmem:[%s8280_s15 + $0x1560] ss:$8 sps:$4 sm:$0xff]  }
 0x269   : > { %5562 = vmatprep.subr.bf16.mxu1 %v7943_v46 }
 0x26b   : > { %5522 = vmatpush1.bf16.msra.mxu0 %v7938_v6  ;;  %v8013_v6 = vld [vmem:[%s8280_s15 + $0x1454] ss:$8 sps:$4 sm:$0xff]  }
 0x26c   : > { %5563 = vmatpush1.bf16.msra.mxu1 %v7941_v9  ;;  %5523 = vmatprep.subr.bf16.mxu0 %v7946_v10  ;;  %v8043_v9 = vld [vmem:[%s8280_s15 + $0x1554] ss:$8 sps:$4 sm:$0xff]  }
 0x26d   : > { %5564 = vmatprep.subr.bf16.mxu1 %v7949_v36 }
 0x26f   : > { %5524 = vmatpush1.bf16.msra.mxu0 %v7944_v49  ;;  %v8211_v49 = vmov 0  }
 0x270   : > { %5565 = vmatpush1.bf16.msra.mxu1 %v7947_v11  ;;  %5525 = vmatprep.subr.bf16.mxu0 %v7952_v13 }
 0x271   : > { %5566 = vmatprep.subr.bf16.mxu1 %v7955_v14  ;;  %v8011_v14 = vld [vmem:[%s8280_s15 + $0x1450] ss:$8 sps:$4 sm:$0xff]  }
 0x273   : > { %5526 = vmatpush1.bf16.msra.mxu0 %v7950_v40  ;;  %v8041_v40 = vld [vmem:[%s8280_s15 + $0x1550] ss:$8 sps:$4 sm:$0xff]  }
 0x274   : > { %5567 = vmatpush1.bf16.msra.mxu1 %v7953_v15  ;;  %5527 = vmatprep.subr.bf16.mxu0 %v7958_v17  ;;  %v8016_v15 = vld [vmem:[%s8280_s15 + $0x1444] ss:$8 sps:$4 sm:$0xff]  }
 0x275   : > { %5568 = vmatprep.subr.bf16.mxu1 %v7961_v18  ;;  %v8049_v18 = vld [vmem:[%s8280_s15 + $0x1544] ss:$8 sps:$4 sm:$0xff]  }
 0x277   : > { %5528 = vmatpush2.bf16.msra.mxu0 %v7956_v19  ;;  %v8014_v19 = vld [vmem:[%s8280_s15 + $0x1440] ss:$8 sps:$4 sm:$0xff]  }
 0x278   : > { %5569 = vmatpush2.bf16.msra.mxu1 %v7959_v20  ;;  %5529 = vmatprep.subr.bf16.mxu0 %v7964_v21  ;;  %v8047_v20 = vld [vmem:[%s8280_s15 + $0x1540] ss:$8 sps:$4 sm:$0xff]   ;;  %v8019_v21 = vld [vmem:[%s8280_s15 + $0x1434] ss:$8 sps:$4 sm:$0xff]  }
 0x279   : > { %5570 = vmatprep.subr.bf16.mxu1 %v7967_v23  ;;  %v8055_v23 = vld [vmem:[%s8280_s15 + $0x1534] ss:$8 sps:$4 sm:$0xff]  }
 0x27b   : > { %5530 = vmatpush2.bf16.msra.mxu0 %v7962_v56  ;;  %v8017_v56 = vld [vmem:[%s8280_s15 + $0x1430] ss:$8 sps:$4 sm:$0xff]  }
 0x27c   : > { %5571 = vmatpush2.bf16.msra.mxu1 %v7965_v24  ;;  %5531 = vmatprep.subr.bf16.mxu0 %v7970_v27  ;;  %v8053_v24 = vld [vmem:[%s8280_s15 + $0x1530] ss:$8 sps:$4 sm:$0xff]   ;;  %v8022_v27 = vld [vmem:[%s8280_s15 + $0x1424] ss:$8 sps:$4 sm:$0xff]  }
 0x27d   : > { %5572 = vmatprep.subr.bf16.mxu1 %v7973_v28  ;;  %v8061_v28 = vld [vmem:[%s8280_s15 + $0x1524] ss:$8 sps:$4 sm:$0xff]  }
 0x27f   : > { %5532 = vmatpush2.bf16.msra.mxu0 %v7968_v63  ;;  %v8020_v63 = vld [vmem:[%s8280_s15 + $0x1420] ss:$8 sps:$4 sm:$0xff]  }
 0x280   : > { %5573 = vmatpush2.bf16.msra.mxu1 %v7971_v5  ;;  %5533 = vmatprep.subr.bf16.mxu0 %v7976_v29  ;;  %v8059_v5 = vld [vmem:[%s8280_s15 + $0x1520] ss:$8 sps:$4 sm:$0xff]   ;;  %v8025_v29 = vld [vmem:[%s8280_s15 + $0x1414] ss:$8 sps:$4 sm:$0xff]  }
 0x281   : > { %5574 = vmatprep.subr.bf16.mxu1 %v7979_v33  ;;  %v8067_v33 = vld [vmem:[%s8280_s15 + $0x1514] ss:$8 sps:$4 sm:$0xff]  }
 0x283   : > { %5534 = vmatpush2.bf16.msra.mxu0 %v7974_v57  ;;  %v8023_v57 = vld [vmem:[%s8280_s15 + $0x1410] ss:$8 sps:$4 sm:$0xff]  }
 0x284   : > { %5575 = vmatpush2.bf16.msra.mxu1 %v7977_v34  ;;  %5535 = vmatprep.subr.bf16.mxu0 %v7982_v8  ;;  %v8065_v34 = vld [vmem:[%s8280_s15 + $0x1510] ss:$8 sps:$4 sm:$0xff]   ;;  %v8028_v8 = vld [vmem:[%s8280_s15 + $0x1404] ss:$8 sps:$4 sm:$0xff]  }
 0x285   : > { %5576 = vmatprep.subr.bf16.mxu1 %v7985_v35  ;;  %v8073_v35 = vld [vmem:[%s8280_s15 + $0x1504] ss:$8 sps:$4 sm:$0xff]  }
 0x287   : > { %5536 = vmatpush2.bf16.msra.mxu0 %v7980_v37  ;;  %v1281_v37 = vrot.slane %v9065_v54, %v8330_v50  ;;  %v8040_v50 = vld [vmem:[%s8280_s15 + $0x14e4] ss:$8 sps:$4 sm:$0xff]  }
 0x288   : > { %5577 = vmatpush2.bf16.msra.mxu1 %v7983_v38  ;;  %5537 = vmatprep.subr.bf16.mxu0 %v7988_v62  ;;  %v8026_v38 = vld [vmem:[%s8280_s15 + $0x1400] ss:$8 sps:$4 sm:$0xff]   ;;  %v8076_v54 = vld [vmem:[%s8280_s15 + $0x1484] ss:$8 sps:$4 sm:$0xff]  }
 0x289   : > { %5578 = vmatprep.subr.bf16.mxu1 %v7991_v39  ;;  %v8071_v62 = vld [vmem:[%s8280_s15 + $0x1500] ss:$8 sps:$4 sm:$0xff]   ;;  %v8034_v39 = vld [vmem:[%s8280_s15 + $0x14f4] ss:$8 sps:$4 sm:$0xff]  }
 0x28b   : > { %5538 = vmatpush2.bf16.msra.mxu0 %v7986_v30  ;;  %v1289_v30 = vcombine.high %v1281_v37, %v1281_v37 }
 0x28c   : > { %5579 = vmatpush2.bf16.msra.mxu1 %v7989_v41  ;;  %5539 = vmatprep.subr.bf16.mxu0 %v7994_v42  ;;  %v8032_v41 = vld [vmem:[%s8280_s15 + $0x14f0] ss:$8 sps:$4 sm:$0xff]   ;;  %v8038_v42 = vld [vmem:[%s8280_s15 + $0x14e0] ss:$8 sps:$4 sm:$0xff]  }
 0x28d   : > { %5580 = vmatprep.subr.bf16.mxu1 %v7997_v12  ;;  %v8046_v12 = vld [vmem:[%s8280_s15 + $0x14d4] ss:$8 sps:$4 sm:$0xff]  }
 0x28f   : > { %5540 = vmatpush2.bf16.msra.mxu0 %v7992_v43  ;;  %v8044_v43 = vld [vmem:[%s8280_s15 + $0x14d0] ss:$8 sps:$4 sm:$0xff]  }
 0x290   : > { %5581 = vmatpush2.bf16.msra.mxu1 %v7995_v45  ;;  %5541 = vmatprep.subr.bf16.mxu0 %v8000_v47  ;;  %v8052_v45 = vld [vmem:[%s8280_s15 + $0x14c4] ss:$8 sps:$4 sm:$0xff]   ;;  %v8050_v47 = vld [vmem:[%s8280_s15 + $0x14c0] ss:$8 sps:$4 sm:$0xff]  }
 0x291   : > { %5582 = vmatprep.subr.bf16.mxu1 %v8003_v22  ;;  %v8058_v22 = vld [vmem:[%s8280_s15 + $0x14b4] ss:$8 sps:$4 sm:$0xff]  }
 0x293   : > { %5542 = vmatpush2.bf16.msra.mxu0 %v7998_v51  ;;  %v8064_v51 = vld [vmem:[%s8280_s15 + $0x14a4] ss:$8 sps:$4 sm:$0xff]  }
 0x294   : > { %5583 = vmatpush2.bf16.msra.mxu1 %v8001_v52  ;;  %5593 = vmatprep.subr.bf16.mxu0 %v8007_v7  ;;  %v8062_v52 = vld [vmem:[%s8280_s15 + $0x14a0] ss:$8 sps:$4 sm:$0xff]   ;;  %v8070_v7 = vld [vmem:[%s8280_s15 + $0x1494] ss:$8 sps:$4 sm:$0xff]  }
 0x295   : > { %5634 = vmatprep.subr.bf16.mxu1 %v8031_v26  ;;  %v8068_v26 = vld [vmem:[%s8280_s15 + $0x1490] ss:$8 sps:$4 sm:$0xff]  }
 0x296   : > { %v5299_v61 = vpop.f32.mrf.mxu0  ;;  %5544 = vmatmul.mubr.bf16.vlgmr.msra.gmra.mxu0 %v1248_v48  ;;  %v8056_v48 = vld [vmem:[%s8280_s15 + $0x14b0] ss:$8 sps:$4 sm:$0xff]  }
 0x297   : > { %v5340_v0 = vpop.f32.mrf.mxu1  ;;  %5585 = vmatmul.mubr.bf16.vlgmr.msra.gmra.mxu1 %v1264_v55  ;;  %v5300_v1 = vadd.f32 %v5299_v61, %v9002_v25  ;;  %5594 = vmatpush1.bf16.msra.mxu0 %v8005_v58 }
 0x298   : > { %5635 = vmatpush1.bf16.msra.mxu1 %v8029_v31  ;;  %v5301_v4 = vpop.f32.mrf.mxu0  ;;  %5595 = vmatprep.subr.bf16.mxu0 %v8010_v59 }
 0x299   : > { %v5342_v46 = vpop.f32.mrf.mxu1  ;;  %5636 = vmatprep.subr.bf16.mxu1 %v8037_v32  ;;  %v5302_v10 = vadd.f32 %v5301_v4, %v9004_v53  ;;  %v9080_v36 = vadd.f32 %v5340_v0, %v5300_v1  ;;  %5666 = vmatprep.mubr.bf16.mxu1 %v8211_v49  ;;  %v8083_v49 = vld [vmem:[%s9311_s3 + $0x50] ss:$8 sps:$4 sm:$0xff]  }
 0x29a   : > { %5625 = vmatprep.mubr.bf16.mxu0 %v1288_v60  ;;  %v5303_v25 = vpop.f32.mrf.mxu0 }
 0x29b   : > { %v5344_v11 = vpop.f32.mrf.mxu1  ;;  %v9082_v13 = vadd.f32 %v5342_v46, %v5302_v10  ;;  %5596 = vmatpush1.bf16.msra.mxu0 %v8008_v2  ;;  %v8077_v46 = vld [vmem:[%s9311_s3 + $0x70] ss:$8 sps:$4 sm:$0xff]   ;;  %v8080_v10 = vld [vmem:[%s9311_s3 + $0x60] ss:$8 sps:$4 sm:$0xff]   ;;  %v8088_v25 = vld [vmem:[%s9311_s3 + $0x44] ss:$8 sps:$4 sm:$0xff]  }
 0x29c   : > { %5637 = vmatpush1.bf16.msra.mxu1 %v8035_v3  ;;  %v5304_v53 = vpop.f32.mrf.mxu0  ;;  %5597 = vmatprep.subr.bf16.mxu0 %v8013_v6  ;;  %v8079_v6 = vld [vmem:[%s9311_s3 + $0x74] ss:$8 sps:$4 sm:$0xff]   ;;  %v8086_v11 = vld [vmem:[%s9311_s3 + $0x40] ss:$8 sps:$4 sm:$0xff]  }
 0x29d   : > { %v5345_v17 = vpop.f32.mrf.mxu1  ;;  %5638 = vmatprep.subr.bf16.mxu1 %v8043_v9  ;;  %v8082_v9 = vld [vmem:[%s9311_s3 + $0x64] ss:$8 sps:$4 sm:$0xff]   ;;  %v8092_v53 = vld [vmem:[%s9311_s3 + $0x20] ss:$8 sps:$4 sm:$0xff]  }
 0x29e   : > { %v8095_v17 = vld [vmem:[%s9311_s3 + $0x10] ss:$8 sps:$4 sm:$0xff]  }
 0x29f   : > { %5598 = vmatpush1.bf16.msra.mxu0 %v8011_v14  ;;  %v8089_v14 = vld [vmem:[%s9311_s3 + $0x30] ss:$8 sps:$4 sm:$0xff]  }
 0x2a0   : > { %5639 = vmatpush1.bf16.msra.mxu1 %v8041_v40  ;;  %5599 = vmatprep.subr.bf16.mxu0 %v8016_v15  ;;  %v8094_v40 = vld [vmem:[%s9311_s3 + $0x24] ss:$8 sps:$4 sm:$0xff]   ;;  %v8097_v15 = vld [vmem:[%s9311_s3 + $0x14] ss:$8 sps:$4 sm:$0xff]  }
 0x2a1   : > { %5640 = vmatprep.subr.bf16.mxu1 %v8049_v18  ;;  %v8100_v18 = vld [vmem:[%s9311_s3 + $0x4] ss:$8 sps:$4 sm:$0xff]  }
 0x2a3   : > { %5600 = vmatpush1.bf16.msra.mxu0 %v8014_v19  ;;  %v8098_v19 = vld [vmem:[%s9311_s3] ss:$8 sps:$4 sm:$0xff]  }
 0x2a4   : > { %5641 = vmatpush1.bf16.msra.mxu1 %v8047_v20  ;;  %5601 = vmatprep.subr.bf16.mxu0 %v8019_v21  ;;  %v8103_v20 = vld [vmem:[%s9311_s3 + $0xf4] ss:$8 sps:$4 sm:$0xff]   ;;  %v8101_v21 = vld [vmem:[%s9311_s3 + $0xf0] ss:$8 sps:$4 sm:$0xff]  }
 0x2a5   : > { %5642 = vmatprep.subr.bf16.mxu1 %v8055_v23 }
 0x2a7   : > { %5602 = vmatpush1.bf16.msra.mxu0 %v8017_v56 }
 0x2a8   : > { %5643 = vmatpush1.bf16.msra.mxu1 %v8053_v24  ;;  %5603 = vmatprep.subr.bf16.mxu0 %v8022_v27 }
 0x2a9   : > { %5644 = vmatprep.subr.bf16.mxu1 %v8061_v28 }
 0x2ab   : > { %5604 = vmatpush1.bf16.msra.mxu0 %v8020_v63  ;;  %v8106_v63 = vld [vmem:[%s9311_s3 + $0xe4] ss:$8 sps:$4 sm:$0xff]  }
 0x2ac   : > { %5645 = vmatpush1.bf16.msra.mxu1 %v8059_v5  ;;  %5605 = vmatprep.subr.bf16.mxu0 %v8025_v29 }
 0x2ad   : > { %5646 = vmatprep.subr.bf16.mxu1 %v8067_v33  ;;  %v8104_v33 = vld [vmem:[%s9311_s3 + $0xe0] ss:$8 sps:$4 sm:$0xff]  }
 0x2af   : > { %5606 = vmatpush1.bf16.msra.mxu0 %v8023_v57 }
 0x2b0   : > { %5647 = vmatpush1.bf16.msra.mxu1 %v8065_v34  ;;  %5607 = vmatprep.subr.bf16.mxu0 %v8028_v8 }
 0x2b1   : > { %5648 = vmatprep.subr.bf16.mxu1 %v8073_v35 }
 0x2b3   : > { %5608 = vmatpush1.bf16.msra.mxu0 %v8026_v38  ;;  %v8109_v38 = vld [vmem:[%s9311_s3 + $0xd4] ss:$8 sps:$4 sm:$0xff]  }
 0x2b4   : > { %5649 = vmatpush1.bf16.msra.mxu1 %v8071_v62  ;;  %5609 = vmatprep.subr.bf16.mxu0 %v8034_v39  ;;  %v8107_v62 = vld [vmem:[%s9311_s3 + $0xd0] ss:$8 sps:$4 sm:$0xff]   ;;  %v8112_v39 = vld [vmem:[%s9311_s3 + $0xc4] ss:$8 sps:$4 sm:$0xff]  }
 0x2b5   : > { %5928 = vmatprep.subr.bf16.mxu1 %v8079_v6 }
 0x2b7   : > { %5667 = vmatmul.mubr.bf16.vlgmr.msra.gmra.mxu1 %v1289_v30  ;;  %5610 = vmatpush2.bf16.msra.mxu0 %v8032_v41  ;;  %v8110_v30 = vld [vmem:[%s9311_s3 + $0xc0] ss:$8 sps:$4 sm:$0xff]   ;;  %v8113_v41 = vld [vmem:[%s9311_s3 + $0xb0] ss:$8 sps:$4 sm:$0xff]  }
 0x2b8   : > { %5611 = vmatprep.subr.bf16.mxu0 %v8040_v50  ;;  %5929 = vmatpush1.bf16.msra.mxu1 %v8077_v46  ;;  %v8115_v50 = vld [vmem:[%s9311_s3 + $0xb4] ss:$8 sps:$4 sm:$0xff]  }
 0x2b9   : > { %5930 = vmatprep.subr.bf16.mxu1 %v8082_v9 }
 0x2bb   : > { %5612 = vmatpush2.bf16.msra.mxu0 %v8038_v42  ;;  %v8118_v42 = vld [vmem:[%s9311_s3 + $0xa4] ss:$8 sps:$4 sm:$0xff]  }
 0x2bc   : > { %5613 = vmatprep.subr.bf16.mxu0 %v8046_v12  ;;  %5931 = vmatpush1.bf16.msra.mxu1 %v8080_v10  ;;  %v8116_v12 = vld [vmem:[%s9311_s3 + $0xa0] ss:$8 sps:$4 sm:$0xff]  }
 0x2bf   : > { %5614 = vmatpush2.bf16.msra.mxu0 %v8044_v43  ;;  %v8121_v43 = vld [vmem:[%s9311_s3 + $0x94] ss:$8 sps:$4 sm:$0xff]  }
 0x2c0   : > { %5615 = vmatprep.subr.bf16.mxu0 %v8052_v45  ;;  %v8119_v45 = vld [vmem:[%s9311_s3 + $0x90] ss:$8 sps:$4 sm:$0xff]  }
 0x2c3   : > { %5616 = vmatpush2.bf16.msra.mxu0 %v8050_v47  ;;  %v8124_v47 = vld [vmem:[%s9311_s3 + $0x84] ss:$8 sps:$4 sm:$0xff]  }
 0x2c4   : > { %5617 = vmatprep.subr.bf16.mxu0 %v8058_v22  ;;  %v8122_v22 = vld [vmem:[%s9311_s3 + $0x80] ss:$8 sps:$4 sm:$0xff]  }
 0x2c7   : > { %5618 = vmatpush2.bf16.msra.mxu0 %v8056_v48  ;;  %v8125_v48 = vld [vmem:[%s9313_s5 + $0x78] sm:$0xff]  }
 0x2c8   : > { %5619 = vmatprep.subr.bf16.mxu0 %v8064_v51 }
 0x2cb   : > { %5620 = vmatpush2.bf16.msra.mxu0 %v8062_v52 }
 0x2cc   : > { %5621 = vmatprep.subr.bf16.mxu0 %v8070_v7 }
 0x2cf   : > { %5622 = vmatpush2.bf16.msra.mxu0 %v8068_v26 }
 0x2d0   : > { %5623 = vmatprep.subr.bf16.mxu0 %v8076_v54 }
 0x2d3   : > { %5624 = vmatpush2.bf16.msra.mxu0 %v8074_v16 }
 0x2d4   : > { %6992 = vmatprep.subr.bf16.mxu0 %v8125_v48 }
 0x2d6   : > { %v5381_v55 = vpop.f32.mrf.mxu0  ;;  %5626 = vmatmul.mubr.bf16.vlgmr.msra.gmra.mxu0 %v1281_v37 }
 0x2d7   : > { %v5422_v58 = vpop.f32.mrf.mxu1  ;;  %v5382_v31 = vadd.f32 %v5381_v55, %v9080_v36  ;;  %v8085_v36 = vld [vmem:[%s9311_s3 + $0x54] ss:$8 sps:$4 sm:$0xff]  }
 0x2d8   : > { %v5383_v59 = vpop.f32.mrf.mxu0  ;;  %5932 = vmatprep.subr.bf16.mxu1 %v8085_v36 }
 0x2d9   : > { %v5424_v32 = vpop.f32.mrf.mxu1  ;;  %v5384_v60 = vadd.f32 %v5383_v59, %v9082_v13  ;;  %v5423_v61 = vadd.f32 %v5422_v58, %v5382_v31  ;;  %5933 = vmatpush1.bf16.msra.mxu1 %v8083_v49  ;;  %v8091_v13 = vld [vmem:[%s9311_s3 + $0x34] ss:$8 sps:$4 sm:$0xff]  }
 0x2da   : > { %v5385_v0 = vpop.f32.mrf.mxu0  ;;  %5934 = vmatprep.subr.bf16.mxu1 %v8088_v25 }
 0x2db   : > { %v5426_v1 = vpop.f32.mrf.mxu1  ;;  %v5425_v2 = vadd.f32 %v5424_v32, %v5384_v60 }
 0x2dc   : > { %v5386_v3 = vpop.f32.mrf.mxu0  ;;  %v8212_v1 = vmov 1983009808  }
 0x2dd   : > { %v5427_v4 = vpop.f32.mrf.mxu1  ;;  %5935 = vmatpush1.bf16.msra.mxu1 %v8086_v11 }
 0x2de   : > { %5936 = vmatprep.subr.bf16.mxu1 %v8091_v13 }
 0x2e1   : > { %5937 = vmatpush1.bf16.msra.mxu1 %v8089_v14  ;;  %v5693_v14 = vsub.s32 0, %v8322_v44 }
 0x2e2   : > { %5938 = vmatprep.subr.bf16.mxu1 %v8094_v40  ;;  %v5697_v40 = vsub.s32 1, %v8322_v44 }
 0x2e5   : > { %5939 = vmatpush1.bf16.msra.mxu1 %v8092_v53 }
 0x2e6   : > { %5940 = vmatprep.subr.bf16.mxu1 %v8097_v15  ;;  %v5689_v15 = vld [vmem:[%s9310_s2] sm:$0x3] }
 0x2e9   : > { %5941 = vmatpush1.bf16.msra.mxu1 %v8095_v17 }
 0x2ea   : > { %5942 = vmatprep.subr.bf16.mxu1 %v8100_v18  ;;  %v321_v18 = vld [vmem:[#allocation2] sm:$0xf] }
 0x2ed   : > { %5943 = vmatpush1.bf16.msra.mxu1 %v8098_v19 }
 0x2ee   : > { %5944 = vmatprep.subr.bf16.mxu1 %v8103_v20  ;;  %v5694_v20 = vrot.slane %v5689_v15, %v5693_v14 }
 0x2f1   : > { %5945 = vmatpush2.bf16.msra.mxu1 %v8101_v21  ;;  %v5698_v21 = vrot.slane %v5689_v15, %v5697_v40 }
 0x2f2   : > { %5946 = vmatprep.subr.bf16.mxu1 %v8106_v63 }
 0x2f5   : > { %5947 = vmatpush2.bf16.msra.mxu1 %v8104_v33 }
 0x2f6   : > { %5948 = vmatprep.subr.bf16.mxu1 %v8109_v38  ;;  %v8131_v38 = vld [vmem:[%s9313_s5 + $0x60] sm:$0xff]  }
 0x2f9   : > { %5949 = vmatpush2.bf16.msra.mxu1 %v8107_v62  ;;  %v8132_v62 = vld [vmem:[%s9313_s5 + $0x20] sm:$0xff]  }
 0x2fa   : > { %5950 = vmatprep.subr.bf16.mxu1 %v8112_v39  ;;  %v8133_v39 = vld [vmem:[%s9313_s5 + $0x58] sm:$0xff]  }
 0x2fd   : > { %5951 = vmatpush2.bf16.msra.mxu1 %v8110_v30  ;;  %v8134_v30 = vld [vmem:[%s9313_s5 + $0x18] sm:$0xff]  }
 0x2fe   : > { %5952 = vmatprep.subr.bf16.mxu1 %v8115_v50  ;;  %v8136_v50 = vld [vmem:[%s9313_s5 + $0x10] sm:$0xff]  }
 0x301   : > { %5953 = vmatpush2.bf16.msra.mxu1 %v8113_v41  ;;  %v8135_v41 = vld [vmem:[%s9313_s5 + $0x50] sm:$0xff]  }
 0x302   : > { %5954 = vmatprep.subr.bf16.mxu1 %v8118_v42  ;;  %v8137_v42 = vld [vmem:[%s9313_s5 + $0x48] sm:$0xff]  }
 0x305   : > { %5955 = vmatpush2.bf16.msra.mxu1 %v8116_v12  ;;  %v8138_v12 = vld [vmem:[%s9313_s5 + $0x8] sm:$0xff]  }
 0x306   : > { %5956 = vmatprep.subr.bf16.mxu1 %v8121_v43  ;;  %v8139_v43 = vld [vmem:[%s9313_s5 + $0x40] sm:$0xff]  }
 0x309   : > { %5957 = vmatpush2.bf16.msra.mxu1 %v8119_v45  ;;  %v8140_v45 = vld [vmem:[%s9313_s5] sm:$0xff]  }
 0x30a   : > { %5958 = vmatprep.subr.bf16.mxu1 %v8124_v47  ;;  %v5756_v47 = vld [vmem:[%s9312_s4] sm:$0x3] }
 0x30b   : > { %v5765_v48 = vrot.slane %v5756_v47, %v5697_v40 }
 0x30d   : > { %5959 = vmatpush2.bf16.msra.mxu1 %v8122_v22  ;;  %v5761_v22 = vrot.slane %v5756_v47, %v5693_v14 }
 0x316   : > { %v5463_v23 = vpop.f32.mrf.mxu0 }
 0x317   : > { %v5504_v56 = vpop.f32.mrf.mxu1  ;;  %v5464_v24 = vadd.f32 %v5463_v23, %v5423_v61 }
 0x318   : > { %v5465_v27 = vpop.f32.mrf.mxu0 }
 0x319   : > { %v5506_v28 = vpop.f32.mrf.mxu1  ;;  %v5466_v5 = vadd.f32 %v5465_v27, %v5425_v2  ;;  %v5505_v29 = vadd.f32 %v5504_v56, %v5464_v24  ;;  %v5679_v2 = vunpack.c.l.s4 %v8212_v1  ;;  %v5699_v56 = vcombine.low %v5694_v20, %v5698_v21 }
 0x31a   : > { %v5467_v57 = vpop.f32.mrf.mxu0 }
 0x31b   : > { %v5508_v34 = vpop.f32.mrf.mxu1  ;;  %v5507_v8 = vadd.f32 %v5506_v28, %v5466_v5  ;;  %v5680_v46 = vunpack.c.0.s8 %v5679_v2  ;;  %v8126_v57 = vld [vmem:[%s9313_s5 + $0x38] sm:$0xff]  }
 0x31c   : > { %v5468_v35 = vpop.f32.mrf.mxu0  ;;  %6993 = vmatpush3.bf16.msra.mxu0 %v8126_v57  ;;  %v8127_v34 = vld [vmem:[%s9313_s5 + $0x70] sm:$0xff]  }
 0x31d   : > { %v5509_v37 = vpop.f32.mrf.mxu1  ;;  %v5683_v49 = vsub.s32 %v5680_v46, %v8322_v44  ;;  %6994 = vmatprep.subr.bf16.mxu0 %v8127_v34  ;;  %v8129_v35 = vld [vmem:[%s9313_s5 + $0x68] sm:$0xff]  }
 0x31e   : > { %v8130_v37 = vld [vmem:[%s9313_s5 + $0x28] sm:$0xff]  }
 0x31f   : > { %v5706_v24 = vrot.slane %v5699_v56, %v5683_v49 }
 0x356   : > { %v5545_v51 = vpop.f32.mrf.mxu0 }
 0x357   : > { %v5586_v52 = vpop.f32.mrf.mxu1  ;;  %v5546_v7 = vadd.f32 %v5545_v51, %v5505_v29 }
 0x358   : > { %v5547_v26 = vpop.f32.mrf.mxu0 }
 0x359   : > { %v5588_v54 = vpop.f32.mrf.mxu1  ;;  %v5587_v16 = vadd.f32 %v5586_v52, %v5546_v7  ;;  %v5548_v3 = vadd.f32 %v5547_v26, %v5507_v8  ;;  %v8128_v8 = vld [vmem:[%s9313_s5 + $0x30] sm:$0xff]  }
 0x35a   : > { %v5549_v55 = vpop.f32.mrf.mxu0  ;;  %6995 = vmatpush3.bf16.msra.mxu0 %v8128_v8 }
 0x35b   : > { %v5590_v58 = vpop.f32.mrf.mxu1  ;;  %v5589_v6 = vadd.f32 %v5588_v54, %v5548_v3  ;;  %6996 = vmatprep.subr.bf16.mxu0 %v8129_v35 }
 0x35c   : > { %v5550_v31 = vpop.f32.mrf.mxu0 }
 0x35d   : > { %v5591_v59 = vpop.f32.mrf.mxu1 }
 0x35e   : > { %6997 = vmatpush3.bf16.msra.mxu0 %v8130_v37 }
 0x35f   : > { %6998 = vmatprep.subr.bf16.mxu0 %v8131_v38 }
 0x362   : > { %6999 = vmatpush3.bf16.msra.mxu0 %v8132_v62 }
 0x363   : > { %7000 = vmatprep.subr.bf16.mxu0 %v8133_v39 }
 0x366   : > { %7001 = vmatpush3.bf16.msra.mxu0 %v8134_v30 }
 0x367   : > { %7002 = vmatprep.subr.bf16.mxu0 %v8135_v41 }
 0x36a   : > { %7003 = vmatpush3.bf16.msra.mxu0 %v8136_v50 }
 0x36b   : > { %7004 = vmatprep.subr.bf16.mxu0 %v8137_v42 }
 0x36e   : > { %7005 = vmatpush3.bf16.msra.mxu0 %v8138_v12 }
 0x36f   : > { %7006 = vmatprep.subr.bf16.mxu0 %v8139_v43 }
 0x372   : > { %7007 = vmatpush3.bf16.msra.mxu0 %v8140_v45 }
 0x377   : > { %v5668_v32 = vpop.f32.mrf.mxu1 }
 0x379   : > { %v5670_v60 = vpop.f32.mrf.mxu1 }
 0x37b   : > { %v5672_v61 = vpop.f32.mrf.mxu1 }
 0x37d   : > { %v5673_v0 = vpop.f32.mrf.mxu1 }
 0x396   : > { %v5627_v4 = vpop.f32.mrf.mxu0 }
 0x397   : > { %v5628_v9 = vadd.f32 %v5627_v4, %v5587_v16 }
 0x398   : > { %v5629_v10 = vpop.f32.mrf.mxu0 }
 0x399   : > { %v5630_v36 = vadd.f32 %v5629_v10, %v5589_v6  ;;  %v5669_v11 = vadd.f32 %v5668_v32, %v5628_v9 }
 0x39a   : > { %v5631_v25 = vpop.f32.mrf.mxu0 }
 0x39b   : > { %v5671_v13 = vadd.f32 %v5670_v60, %v5630_v36 }
 0x39c   : > { %v5632_v53 = vpop.f32.mrf.mxu0 }
 0x39d   : > { %v5677_v17 = vcombine.low %v5669_v11, %v5671_v13 }
 0x39f   : > { %v5684_v19 = vrot.slane %v5677_v17, %v5683_v49 }
 0x3a1   : > { %v5686_v23 = vadd.f32 %v5684_v19, %v321_v18 }
 0x3a3   : > { %5687 = vst [vmem:[#allocation2] sm:$0xf] %v5686_v23 }
 0x3aa   : > { %v5688_v27 = vld [vmem:[#allocation2] sm:$0xf] }
 0x3ab   : > { %v5708_v28 = vadd.f32 %v5706_v24, %v5688_v27 }
 0x3ad   : > { %v5710_v63 = vmul.f32 0.0, %v5708_v28  ;;  %5709 = vst [vmem:[#allocation5] sm:$0xf] %v5708_v28 }
 0x3af   : > { %v5718_v5 = vrot.slane %v5710_v63, %v5683_v49 }
 0x3b1   : > { %v5719_v44 = vcombine.high %v5718_v5, %v5718_v5  ;;  %v5722_v33 = vpack.c.bf16 %v5718_v5, %v5718_v5 }
 0x3b3   : > { %v5723_v29 = vpack.c.bf16 %v5719_v44, %v5719_v44 }
 0x3b5   : > { %5960 = vmatprep.mubr.bf16.mxu1 %v5723_v29 }
 0x3b6   : > { %5961 = vmatmul.mubr.bf16.vlgmr.msra.gmra.mxu1 %v5722_v33 }
 0x476   : > { %v5962_v51 = vpop.f32.mrf.mxu1 }
 0x477   : > { %v5963_v52 = vadd.f32 %v5962_v51, %v5761_v22 }
 0x478   : > { %v5964_v7 = vpop.f32.mrf.mxu1 }
 0x479   : > { %v5969_v26 = vmul.f32 0.0, %v5963_v52  ;;  %v5965_v54 = vadd.f32 %v5964_v7, %v5765_v48 }
 0x47a   : > { %v5966_v16 = vpop.f32.mrf.mxu1 }
 0x47b   : > { %v5973_v55 = vmin.f32 %v5969_v26, 0.0  ;;  %v5970_v58 = vmul.f32 0.0, %v5965_v54  ;;  %vm5971_vm0 = vcmp.gt.f32.partialorder %v5969_v26, 0.0 }
 0x47c   : > { %v5967_v31 = vpop.f32.mrf.mxu1 }
 0x47d   : > { %v5975_v59 = vmul.f32 1.442695, %v5973_v55  ;;  %v5974_v32 = vmin.f32 %v5970_v58, 0.0  ;;  %vm5972_vm1 = vcmp.gt.f32.partialorder %v5970_v58, 0.0 }
 0x47f   : > { %8141 = vpow2.f32 %v5975_v59  ;;  %v5977_v60 = vmul.f32 1.442695, %v5974_v32 }
 0x481   : > { %8143 = vpow2.f32 %v5977_v60 }
 0x48c   : > { %v8142_v61 = vpop.eup %8141 }
 0x48d   : > { %v6966_v0 = vadd.f32 -1.0, %v8142_v61 }
 0x48e   : > { %v8144_v1 = vpop.eup %8143 }
 0x48f   : > { %v6967_v2 = vadd.f32 -1.0, %v8144_v1  ;;  %v5981_v3 = vsel %vm5971_vm0, %v5969_v26, %v6966_v0 }
 0x490   : > { %v5983_v6 = vpack.c.bf16 %v5981_v3, %v5981_v3 }
 0x491   : > { %v5982_v4 = vsel %vm5972_vm1, %v5970_v58, %v6967_v2 }
 0x492   : > { %v5984_v46 = vpack.c.bf16 %v5982_v4, %v5982_v4 }
 0x494   : > { %6152 = vmatprep.mubr.bf16.mxu0 %v5984_v46 }
 0x495   : > { %6153 = vmatmul.mubr.bf16.vlgmr.msra.gmra.mxu0 %v5983_v6 }
 0x496   : > { %8158 = shalt.err (!%p8155_p13)
}
 0x497   : > { %7017 = dma.vmem_to_hbm [thread:$0]  (%p7022_p6), %s6180_s17, 64, %s9316_s8, [#allocation6]   ;;  %v6968_v36 = vld [vmem:[%s9314_s6] ss:$0 sm:$0xff] }
 0x498   : > { %s8214_s23 = smov [#allocation3]  }
 0x499   : > { %s6168_s24 = sshll.u32 %s8214_s23, 4  ;;  %s6169_s24 = int_to_ptr.vmem [resolvable:$true] %s6168_s24 }
 0x49a   : > { %s8169_s25 = scalar_lea.vmem %s6169_s24, 32  ;;  %p8176_p3 = scmp.lt.s32.totalorder %s6169_s24, %s6169_s24 }
 0x49b   : > { %p8170_p0 = scmp.ne.s32.totalorder %s6169_s24, %s8169_s25  ;;  %p8177_p4 = scmp.lt.s32.totalorder %s8169_s25, %s8169_s25 }
 0x49d   : > { %p8171_p1 = pnand %p8170_p0, %p7022_p6  ;;  %p8178_p5 = por %p8177_p4, %p8176_p3 }
 0x49f   : > { %p8172_p2 = pneg %p8171_p1 }
 0x4a1   : > { %p8179_p7 = pnand %p8178_p5, %p8172_p2 }
 0x555   : > { %v7008_v9 = vpop.f32.mrf.mxu0 }
 0x557   : > { %v7009_v10 = vpop.f32.mrf.mxu0 }
 0x558   : > { %v7010_v49 = vadd.f32 %v7009_v10, %v7008_v9 }
 0x559   : > { %v7011_v25 = vpop.f32.mrf.mxu0 }
 0x55a   : > { %v6155_v11 = vadd.f32 %v7010_v49, %v6968_v36 }
 0x55b   : > { %v7012_v13 = vpop.f32.mrf.mxu0 }
 0x55c   : > { %6160 = vst [vmem:[#allocation3] sm:$0x3] %v6155_v11 }
 0x55d   : > { %8182 = shalt.err (!%p8179_p7)
}
 0x55e   : > { %7015 = dma.vmem_to_hbm [thread:$0]  (%p7022_p6), %s6169_s24, 32, %s9315_s7, [#allocation4]  }
 0x55f   : > { %8198 = dma.done.wait (%p7022_p6), [#allocation4], 32  }
 0x560   : > { %8200 = vsyncadd (%p7022_p6), [#allocation4], 4294967264 }
 0x561   : > { %8202 = dma.done.wait (%p7022_p6), [#allocation6], 64  }
 0x562   : > { %8204 = vsyncadd (%p7022_p6), [#allocation6], 4294967232 }
 0x563 PF: > { %s21_s27 = sadd.s32 1, %s8207_s27  }
 0x564   : > { %p18_p8 = scmp.ge.s32.totalorder %s21_s27, 10  }
 0x566   :  { %20 = sbr.rel (!%p18_p8) target bundleno = 2 (0x2), region = 90 }
 0x56b   :  { %6196 = vsyncpa [#allocation4], 1 }
 0x56c   :  { %6198 = vsyncpa [#allocation4 + $0x1], 1 }
 0x56d   :  { %6199 = vsyncpa [#allocation6], 1 }

</bundles_post_ra>
